<compile_context>
chip_gen: v7x
topology: tpu7x:2x2x1
jax: 0.10.0
libtpu: 0.0.40
codegen_flags: <defaults>
</compile_context>

<pallas_src>
import jax
import jax.numpy as jnp
import numpy as np
from jax.experimental import pallas as pl
from jax.experimental.pallas import tpu as pltpu


def _alpha_kernel(wrfp_ref, h_ref, c_ref,
                  w1_ref, b1_ref, w2_ref, b2_ref, w3_ref, b3_ref,
                  wh_ref, wc_ref, bhw_ref,
                  alpha_ref,
                  c1_ref, p1p_ref, c2_ref):
    H, W, C = c1_ref.shape
    H2, W2, _ = c2_ref.shape
    H4, W4 = H2 // 2, W2 // 2

    # ---------- stage 1: depthwise 5x5 (input pre-padded by 2 in wrapper) ----------
    acc = jnp.zeros((H, W, C), jnp.float32)
    for di in range(5):
        for dj in range(5):
            acc = acc + (wrfp_ref[di:di + H, dj:dj + W, :]
                         * w1_ref[di:di + 1, dj:dj + 1, :])
    c1_ref[...] = jnp.maximum(acc + b1_ref[...], 0.0)

    # ---------- 2x2 maxpool, stride 2 ----------
    p1 = jnp.maximum(
        jnp.maximum(c1_ref[pl.ds(0, H2, stride=2), pl.ds(0, W2, stride=2), :],
                    c1_ref[pl.ds(0, H2, stride=2), pl.ds(1, W2, stride=2), :]),
        jnp.maximum(c1_ref[pl.ds(1, H2, stride=2), pl.ds(0, W2, stride=2), :],
                    c1_ref[pl.ds(1, H2, stride=2), pl.ds(1, W2, stride=2), :]))

    # ---------- stage-2 padded input: zero only the 2-wide halo stripes ----------
    p1p_ref[0:2, :, :] = jnp.zeros((2, W2 + 4, C), jnp.float32)
    p1p_ref[H2 + 2:H2 + 4, :, :] = jnp.zeros((2, W2 + 4, C), jnp.float32)
    p1p_ref[:, 0:2, :] = jnp.zeros((H2 + 4, 2, C), jnp.float32)
    p1p_ref[:, W2 + 2:W2 + 4, :] = jnp.zeros((H2 + 4, 2, C), jnp.float32)
    p1p_ref[2:H2 + 2, 2:W2 + 2, :] = p1

    # ---------- stage 2: depthwise 5x5 + ReLU ----------
    acc2 = jnp.zeros((H2, W2, C), jnp.float32)
    for di in range(5):
        for dj in range(5):
            acc2 = acc2 + (p1p_ref[di:di + H2, dj:dj + W2, :]
                           * w2_ref[di:di + 1, dj:dj + 1, :])
    c2_ref[...] = jnp.maximum(acc2 + b2_ref[...], 0.0)

    # ---------- 2x2 maxpool, stride 2 ----------
    p2 = jnp.maximum(
        jnp.maximum(c2_ref[pl.ds(0, H4, stride=2), pl.ds(0, W4, stride=2), :],
                    c2_ref[pl.ds(0, H4, stride=2), pl.ds(1, W4, stride=2), :]),
        jnp.maximum(c2_ref[pl.ds(1, H4, stride=2), pl.ds(0, W4, stride=2), :],
                    c2_ref[pl.ds(1, H4, stride=2), pl.ds(1, W4, stride=2), :]))

    # ---------- 1x1 depthwise conv == per-channel affine ----------
    att_wrf = p2 * w3_ref[...] + b3_ref[...]                      # (H4, W4, C)

    # ---------- CNN_hw: 1x1 conv over cat(h, c), h/c kept separate ----------
    att_hc = (jnp.sum(h_ref[...] * wh_ref[...], axis=-1, keepdims=True)
              + jnp.sum(c_ref[...] * wc_ref[...], axis=-1, keepdims=True)
              + bhw_ref[...])                                     # (H4, W4, 1)

    # ---------- attention: spatial sum / W4, softmax over channels ----------
    att = att_hc * att_wrf                                        # (H4, W4, C)
    e = jnp.sum(jnp.sum(att, axis=0, keepdims=True),
                axis=1, keepdims=True) / float(W4)                # (1, 1, C)
    m = jnp.max(e, axis=-1, keepdims=True)
    ex = jnp.exp(e - m)
    s = jnp.sum(ex, axis=-1, keepdims=True)
    inv = pl.reciprocal(s, approx=True)
    inv = inv * (2.0 - s * inv)          # one Newton step to keep f32 accuracy
    alpha_ref[...] = ex * inv                                     # (1, 1, C)


def _rescale_kernel(wrf_ref, alpha_ref, out_ref):
    # lane-dense elementwise rescale: (TR, TW) * (TR, 1) broadcast
    out_ref[...] = wrf_ref[...] * alpha_ref[...]


def _pick_tile(n, preferred):
    for t in preferred:
        if t <= n and n % t == 0:
            return t
    return n


def attention_forward(wrf, h, c, params):
    """NCHW forward of Attention_model via two Pallas kernels."""
    w1, b1, w2, b2, w3, b3, whw, bhw = params
    B, C, H, W = wrf.shape
    H2, W2 = H // 2, W // 2
    H4, W4 = H2 // 2, W2 // 2
    HH = h.shape[1]                       # 128
    f32 = jnp.float32

    # ---- layout plumbing (cheap XLA ops feeding the small alpha kernel) ----
    wrfp = jnp.pad(jnp.transpose(wrf, (0, 2, 3, 1)),
                   ((0, 0), (2, 2), (2, 2), (0, 0)))              # (B, H+4, W+4, C)
    h_hwc = jnp.transpose(h, (0, 2, 3, 1))                        # (B, H4, W4, 128)
    c_hwc = jnp.transpose(c, (0, 2, 3, 1))
    w1k = jnp.transpose(w1.reshape(C, 5, 5), (1, 2, 0))           # (5, 5, C)
    w2k = jnp.transpose(w2.reshape(C, 5, 5), (1, 2, 0))
    b1k = b1.reshape(1, 1, C)
    b2k = b2.reshape(1, 1, C)
    w3k = w3.reshape(1, 1, C)
    b3k = b3.reshape(1, 1, C)
    whw_vec = whw.reshape(2 * HH)
    whk = whw_vec[:HH].reshape(1, 1, HH)
    wck = whw_vec[HH:].reshape(1, 1, HH)
    bhwk = bhw.reshape(1, 1, 1)

    batch4 = lambda b: (b, 0, 0, 0)
    const3 = lambda b: (0, 0, 0)

    alpha = pl.pallas_call(
        _alpha_kernel,
        out_shape=jax.ShapeDtypeStruct((B, 1, 1, C), f32),
        grid=(B,),
        in_specs=[
            pl.BlockSpec((None, H + 4, W + 4, C), batch4),    # pre-padded wrf
            pl.BlockSpec((None, H4, W4, HH), batch4),         # h
            pl.BlockSpec((None, H4, W4, HH), batch4),         # c
            pl.BlockSpec((5, 5, C), const3),                  # dw conv1 weight
            pl.BlockSpec((1, 1, C), const3),                  # dw conv1 bias
            pl.BlockSpec((5, 5, C), const3),                  # dw conv2 weight
            pl.BlockSpec((1, 1, C), const3),                  # dw conv2 bias
            pl.BlockSpec((1, 1, C), const3),                  # 1x1 dw weight
            pl.BlockSpec((1, 1, C), const3),                  # 1x1 dw bias
            pl.BlockSpec((1, 1, HH), const3),                 # CNN_hw weight (h half)
            pl.BlockSpec((1, 1, HH), const3),                 # CNN_hw weight (c half)
            pl.BlockSpec((1, 1, 1), const3),                  # CNN_hw bias
        ],
        out_specs=pl.BlockSpec((None, 1, 1, C), batch4),
        scratch_shapes=[
            pltpu.VMEM((H, W, C), f32),              # conv1 + relu output
            pltpu.VMEM((H2 + 4, W2 + 4, C), f32),    # zero-padded pooled stage-1
            pltpu.VMEM((H2, W2, C), f32),            # conv2 + relu output
        ],
        compiler_params=pltpu.CompilerParams(
            dimension_semantics=("parallel",),
            vmem_limit_bytes=48 * 1024 * 1024),
    )(wrfp, h_hwc, c_hwc, w1k, b1k, w2k, b2k, w3k, b3k, whk, wck, bhwk)

    # ---- lane-dense, row-tiled rescale pass: out = wrf * alpha ----
    R, HW = B * C, H * W
    wrf_flat = wrf.reshape(R, HW)              # NCHW -> (B*C, H*W) is a free reshape
    alpha_flat = alpha.reshape(R, 1)
    TR = _pick_tile(R, (512, 256, 128, 64, 32, 16, 8))
    TW = _pick_tile(HW, (2048, 1024, 512, 256, 128))

    out_flat = pl.pallas_call(
        _rescale_kernel,
        out_shape=jax.ShapeDtypeStruct((R, HW), f32),
        grid=(R // TR, HW // TW),
        in_specs=[
            pl.BlockSpec((TR, TW), lambda i, j: (i, j)),
            pl.BlockSpec((TR, 1), lambda i, j: (i, 0)),
        ],
        out_specs=pl.BlockSpec((TR, TW), lambda i, j: (i, j)),
        compiler_params=pltpu.CompilerParams(
            dimension_semantics=("parallel", "parallel"),
            vmem_limit_bytes=48 * 1024 * 1024),
    )(wrf_flat, alpha_flat)

    return out_flat.reshape(B, C, H, W)


def reference_forward(wrf, h, c, params):
    """Pure-JAX (XLA) reference matching the PyTorch module, NCHW layout."""
    w1, b1, w2, b2, w3, b3, whw, bhw = params
    B, C, H, W = wrf.shape

    def dwconv5(x, w, b):
        y = jax.lax.conv_general_dilated(
            x, w, window_strides=(1, 1), padding=((2, 2), (2, 2)),
            dimension_numbers=('NCHW', 'OIHW', 'NCHW'),
            feature_group_count=C)
        return y + b.reshape(1, C, 1, 1)

    def maxpool(x):
        return jax.lax.reduce_window(x, -jnp.inf, jax.lax.max,
                                     (1, 1, 2, 2), (1, 1, 2, 2), 'VALID')

    x = maxpool(jax.nn.relu(dwconv5(wrf, w1, b1)))
    x = maxpool(jax.nn.relu(dwconv5(x, w2, b2)))
    att_wrf = x * w3.reshape(1, C, 1, 1) + b3.reshape(1, C, 1, 1)
    hc = jnp.concatenate([h, c], axis=1)
    att_hc = (jnp.sum(hc * whw.reshape(1, -1, 1, 1), axis=1, keepdims=True)
              + bhw.reshape(1, 1, 1, 1))
    att = att_hc * att_wrf
    e = jnp.sum(att, axis=(2, 3), keepdims=True) / att_wrf.shape[3]
    alpha = jax.nn.softmax(e, axis=1)
    return wrf * alpha


if __name__ == "__main__":
    B, C, H, W = 2, 4, 16, 16
    H4, W4 = H // 4, W // 4
    HH = 128

    key = jax.random.PRNGKey(0)
    ks = jax.random.split(key, 11)
    wrf = jax.random.normal(ks[0], (B, C, H, W), jnp.float32)
    h = jax.random.normal(ks[1], (B, HH, H4, W4), jnp.float32)
    c = jax.random.normal(ks[2], (B, HH, H4, W4), jnp.float32)

    params = (
        jax.random.normal(ks[3], (C, 1, 5, 5), jnp.float32) * 0.2,       # dw conv1 weight
        jax.random.normal(ks[4], (C,), jnp.float32) * 0.1,               # dw conv1 bias
        jax.random.normal(ks[5], (C, 1, 5, 5), jnp.float32) * 0.2,       # dw conv2 weight
        jax.random.normal(ks[6], (C,), jnp.float32) * 0.1,               # dw conv2 bias
        jax.random.normal(ks[7], (C, 1, 1, 1), jnp.float32) * 0.5,       # 1x1 dw weight
        jax.random.normal(ks[8], (C,), jnp.float32) * 0.1,               # 1x1 dw bias
        jax.random.normal(ks[9], (1, 2 * HH, 1, 1), jnp.float32) * 0.05, # CNN_hw weight
        jax.random.normal(ks[10], (1,), jnp.float32) * 0.1,              # CNN_hw bias
    )

    out = jax.block_until_ready(attention_forward(wrf, h, c, params))
    ref = jax.block_until_ready(reference_forward(wrf, h, c, params))
    np.testing.assert_allclose(np.asarray(out), np.asarray(ref),
                               rtol=1e-4, atol=1e-4)
    print("KERNEL_OK")
</pallas_src>

<mosaic_0001>
module attributes {stable_mosaic.version = 11 : i64} {
  func.func @_alpha_kernel(%arg0: i32, %arg1: memref<1x20x20x4xf32, #tpu.memory_space<vmem>>, %arg2: memref<1x4x4x128xf32, #tpu.memory_space<vmem>>, %arg3: memref<1x4x4x128xf32, #tpu.memory_space<vmem>>, %arg4: memref<5x5x4xf32, #tpu.memory_space<vmem>>, %arg5: memref<1x1x4xf32, #tpu.memory_space<vmem>>, %arg6: memref<5x5x4xf32, #tpu.memory_space<vmem>>, %arg7: memref<1x1x4xf32, #tpu.memory_space<vmem>>, %arg8: memref<1x1x4xf32, #tpu.memory_space<vmem>>, %arg9: memref<1x1x4xf32, #tpu.memory_space<vmem>>, %arg10: memref<1x1x128xf32, #tpu.memory_space<vmem>>, %arg11: memref<1x1x128xf32, #tpu.memory_space<vmem>>, %arg12: memref<1x1x1xf32, #tpu.memory_space<vmem>>, %arg13: memref<1x1x1x4xf32, #tpu.memory_space<vmem>>, %arg14: memref<16x16x4xf32, #tpu.memory_space<vmem>>, %arg15: memref<12x12x4xf32, #tpu.memory_space<vmem>>, %arg16: memref<8x8x4xf32, #tpu.memory_space<vmem>>) attributes {dimension_semantics = [#tpu.dimension_semantics<parallel>], iteration_bounds = array<i64: 2>, scalar_prefetch = 0 : i64, scratch_operands = 3 : i64, tpu.core_type = #tpu.core_type<tc>, window_params = [{transform_indices = @transform_0, window_bounds = array<i64: 1, 20, 20, 4>}, {transform_indices = @transform_1, window_bounds = array<i64: 1, 4, 4, 128>}, {transform_indices = @transform_2, window_bounds = array<i64: 1, 4, 4, 128>}, {pipeline_mode = #tpu.pipeline_mode<synchronous>, transform_indices = @transform_3, window_bounds = array<i64: 5, 5, 4>}, {pipeline_mode = #tpu.pipeline_mode<synchronous>, transform_indices = @transform_4, window_bounds = array<i64: 1, 1, 4>}, {pipeline_mode = #tpu.pipeline_mode<synchronous>, transform_indices = @transform_5, window_bounds = array<i64: 5, 5, 4>}, {pipeline_mode = #tpu.pipeline_mode<synchronous>, transform_indices = @transform_6, window_bounds = array<i64: 1, 1, 4>}, {pipeline_mode = #tpu.pipeline_mode<synchronous>, transform_indices = @transform_7, window_bounds = array<i64: 1, 1, 4>}, {pipeline_mode = #tpu.pipeline_mode<synchronous>, transform_indices = @transform_8, window_bounds = array<i64: 1, 1, 4>}, {pipeline_mode = #tpu.pipeline_mode<synchronous>, transform_indices = @transform_9, window_bounds = array<i64: 1, 1, 128>}, {pipeline_mode = #tpu.pipeline_mode<synchronous>, transform_indices = @transform_10, window_bounds = array<i64: 1, 1, 128>}, {pipeline_mode = #tpu.pipeline_mode<synchronous>, transform_indices = @transform_11, window_bounds = array<i64: 1, 1, 1>}, {transform_indices = @transform_12, window_bounds = array<i64: 1, 1, 1, 4>}]} {
    %cst = arith.constant 0.000000e+00 : f32
    %0 = vector.broadcast %cst : f32 to vector<16x16x4xf32>
    %c0 = arith.constant 0 : index
    %c0_0 = arith.constant 0 : index
    %c0_1 = arith.constant 0 : index
    %c0_2 = arith.constant 0 : index
    %1 = vector.load %arg1[%c0, %c0_0, %c0_1, %c0_2] : memref<1x20x20x4xf32, #tpu.memory_space<vmem>>, vector<1x16x16x4xf32>
    %2 = vector.shape_cast %1 : vector<1x16x16x4xf32> to vector<16x16x4xf32>
    %c0_3 = arith.constant 0 : index
    %c0_4 = arith.constant 0 : index
    %c0_5 = arith.constant 0 : index
    %3 = vector.load %arg4[%c0_3, %c0_4, %c0_5] : memref<5x5x4xf32, #tpu.memory_space<vmem>>, vector<1x1x4xf32>
    %4 = vector.broadcast %3 : vector<1x1x4xf32> to vector<16x16x4xf32>
    %5 = arith.mulf %2, %4 : vector<16x16x4xf32>
    %6 = arith.addf %0, %5 : vector<16x16x4xf32>
    %c0_6 = arith.constant 0 : index
    %c0_7 = arith.constant 0 : index
    %c1 = arith.constant 1 : index
    %c0_8 = arith.constant 0 : index
    %7 = vector.load %arg1[%c0_6, %c0_7, %c1, %c0_8] : memref<1x20x20x4xf32, #tpu.memory_space<vmem>>, vector<1x16x16x4xf32>
    %8 = vector.shape_cast %7 : vector<1x16x16x4xf32> to vector<16x16x4xf32>
    %c0_9 = arith.constant 0 : index
    %c1_10 = arith.constant 1 : index
    %c0_11 = arith.constant 0 : index
    %9 = vector.load %arg4[%c0_9, %c1_10, %c0_11] : memref<5x5x4xf32, #tpu.memory_space<vmem>>, vector<1x1x4xf32>
    %10 = vector.broadcast %9 : vector<1x1x4xf32> to vector<16x16x4xf32>
    %11 = arith.mulf %8, %10 : vector<16x16x4xf32>
    %12 = arith.addf %6, %11 : vector<16x16x4xf32>
    %c0_12 = arith.constant 0 : index
    %c0_13 = arith.constant 0 : index
    %c2 = arith.constant 2 : index
    %c0_14 = arith.constant 0 : index
    %13 = vector.load %arg1[%c0_12, %c0_13, %c2, %c0_14] : memref<1x20x20x4xf32, #tpu.memory_space<vmem>>, vector<1x16x16x4xf32>
    %14 = vector.shape_cast %13 : vector<1x16x16x4xf32> to vector<16x16x4xf32>
    %c0_15 = arith.constant 0 : index
    %c2_16 = arith.constant 2 : index
    %c0_17 = arith.constant 0 : index
    %15 = vector.load %arg4[%c0_15, %c2_16, %c0_17] : memref<5x5x4xf32, #tpu.memory_space<vmem>>, vector<1x1x4xf32>
    %16 = vector.broadcast %15 : vector<1x1x4xf32> to vector<16x16x4xf32>
    %17 = arith.mulf %14, %16 : vector<16x16x4xf32>
    %18 = arith.addf %12, %17 : vector<16x16x4xf32>
    %c0_18 = arith.constant 0 : index
    %c0_19 = arith.constant 0 : index
    %c3 = arith.constant 3 : index
    %c0_20 = arith.constant 0 : index
    %19 = vector.load %arg1[%c0_18, %c0_19, %c3, %c0_20] : memref<1x20x20x4xf32, #tpu.memory_space<vmem>>, vector<1x16x16x4xf32>
    %20 = vector.shape_cast %19 : vector<1x16x16x4xf32> to vector<16x16x4xf32>
    %c0_21 = arith.constant 0 : index
    %c3_22 = arith.constant 3 : index
    %c0_23 = arith.constant 0 : index
    %21 = vector.load %arg4[%c0_21, %c3_22, %c0_23] : memref<5x5x4xf32, #tpu.memory_space<vmem>>, vector<1x1x4xf32>
    %22 = vector.broadcast %21 : vector<1x1x4xf32> to vector<16x16x4xf32>
    %23 = arith.mulf %20, %22 : vector<16x16x4xf32>
    %24 = arith.addf %18, %23 : vector<16x16x4xf32>
    %c0_24 = arith.constant 0 : index
    %c0_25 = arith.constant 0 : index
    %c4 = arith.constant 4 : index
    %c0_26 = arith.constant 0 : index
    %25 = vector.load %arg1[%c0_24, %c0_25, %c4, %c0_26] : memref<1x20x20x4xf32, #tpu.memory_space<vmem>>, vector<1x16x16x4xf32>
    %26 = vector.shape_cast %25 : vector<1x16x16x4xf32> to vector<16x16x4xf32>
    %c0_27 = arith.constant 0 : index
    %c4_28 = arith.constant 4 : index
    %c0_29 = arith.constant 0 : index
    %27 = vector.load %arg4[%c0_27, %c4_28, %c0_29] : memref<5x5x4xf32, #tpu.memory_space<vmem>>, vector<1x1x4xf32>
    %28 = vector.broadcast %27 : vector<1x1x4xf32> to vector<16x16x4xf32>
    %29 = arith.mulf %26, %28 : vector<16x16x4xf32>
    %30 = arith.addf %24, %29 : vector<16x16x4xf32>
    %c0_30 = arith.constant 0 : index
    %c1_31 = arith.constant 1 : index
    %c0_32 = arith.constant 0 : index
    %c0_33 = arith.constant 0 : index
    %31 = vector.load %arg1[%c0_30, %c1_31, %c0_32, %c0_33] : memref<1x20x20x4xf32, #tpu.memory_space<vmem>>, vector<1x16x16x4xf32>
    %32 = vector.shape_cast %31 : vector<1x16x16x4xf32> to vector<16x16x4xf32>
    %c1_34 = arith.constant 1 : index
    %c0_35 = arith.constant 0 : index
    %c0_36 = arith.constant 0 : index
    %33 = vector.load %arg4[%c1_34, %c0_35, %c0_36] : memref<5x5x4xf32, #tpu.memory_space<vmem>>, vector<1x1x4xf32>
    %34 = vector.broadcast %33 : vector<1x1x4xf32> to vector<16x16x4xf32>
    %35 = arith.mulf %32, %34 : vector<16x16x4xf32>
    %36 = arith.addf %30, %35 : vector<16x16x4xf32>
    %c0_37 = arith.constant 0 : index
    %c1_38 = arith.constant 1 : index
    %c1_39 = arith.constant 1 : index
    %c0_40 = arith.constant 0 : index
    %37 = vector.load %arg1[%c0_37, %c1_38, %c1_39, %c0_40] : memref<1x20x20x4xf32, #tpu.memory_space<vmem>>, vector<1x16x16x4xf32>
    %38 = vector.shape_cast %37 : vector<1x16x16x4xf32> to vector<16x16x4xf32>
    %c1_41 = arith.constant 1 : index
    %c1_42 = arith.constant 1 : index
    %c0_43 = arith.constant 0 : index
    %39 = vector.load %arg4[%c1_41, %c1_42, %c0_43] : memref<5x5x4xf32, #tpu.memory_space<vmem>>, vector<1x1x4xf32>
    %40 = vector.broadcast %39 : vector<1x1x4xf32> to vector<16x16x4xf32>
    %41 = arith.mulf %38, %40 : vector<16x16x4xf32>
    %42 = arith.addf %36, %41 : vector<16x16x4xf32>
    %c0_44 = arith.constant 0 : index
    %c1_45 = arith.constant 1 : index
    %c2_46 = arith.constant 2 : index
    %c0_47 = arith.constant 0 : index
    %43 = vector.load %arg1[%c0_44, %c1_45, %c2_46, %c0_47] : memref<1x20x20x4xf32, #tpu.memory_space<vmem>>, vector<1x16x16x4xf32>
    %44 = vector.shape_cast %43 : vector<1x16x16x4xf32> to vector<16x16x4xf32>
    %c1_48 = arith.constant 1 : index
    %c2_49 = arith.constant 2 : index
    %c0_50 = arith.constant 0 : index
    %45 = vector.load %arg4[%c1_48, %c2_49, %c0_50] : memref<5x5x4xf32, #tpu.memory_space<vmem>>, vector<1x1x4xf32>
    %46 = vector.broadcast %45 : vector<1x1x4xf32> to vector<16x16x4xf32>
    %47 = arith.mulf %44, %46 : vector<16x16x4xf32>
    %48 = arith.addf %42, %47 : vector<16x16x4xf32>
    %c0_51 = arith.constant 0 : index
    %c1_52 = arith.constant 1 : index
    %c3_53 = arith.constant 3 : index
    %c0_54 = arith.constant 0 : index
    %49 = vector.load %arg1[%c0_51, %c1_52, %c3_53, %c0_54] : memref<1x20x20x4xf32, #tpu.memory_space<vmem>>, vector<1x16x16x4xf32>
    %50 = vector.shape_cast %49 : vector<1x16x16x4xf32> to vector<16x16x4xf32>
    %c1_55 = arith.constant 1 : index
    %c3_56 = arith.constant 3 : index
    %c0_57 = arith.constant 0 : index
    %51 = vector.load %arg4[%c1_55, %c3_56, %c0_57] : memref<5x5x4xf32, #tpu.memory_space<vmem>>, vector<1x1x4xf32>
    %52 = vector.broadcast %51 : vector<1x1x4xf32> to vector<16x16x4xf32>
    %53 = arith.mulf %50, %52 : vector<16x16x4xf32>
    %54 = arith.addf %48, %53 : vector<16x16x4xf32>
    %c0_58 = arith.constant 0 : index
    %c1_59 = arith.constant 1 : index
    %c4_60 = arith.constant 4 : index
    %c0_61 = arith.constant 0 : index
    %55 = vector.load %arg1[%c0_58, %c1_59, %c4_60, %c0_61] : memref<1x20x20x4xf32, #tpu.memory_space<vmem>>, vector<1x16x16x4xf32>
    %56 = vector.shape_cast %55 : vector<1x16x16x4xf32> to vector<16x16x4xf32>
    %c1_62 = arith.constant 1 : index
    %c4_63 = arith.constant 4 : index
    %c0_64 = arith.constant 0 : index
    %57 = vector.load %arg4[%c1_62, %c4_63, %c0_64] : memref<5x5x4xf32, #tpu.memory_space<vmem>>, vector<1x1x4xf32>
    %58 = vector.broadcast %57 : vector<1x1x4xf32> to vector<16x16x4xf32>
    %59 = arith.mulf %56, %58 : vector<16x16x4xf32>
    %60 = arith.addf %54, %59 : vector<16x16x4xf32>
    %c0_65 = arith.constant 0 : index
    %c2_66 = arith.constant 2 : index
    %c0_67 = arith.constant 0 : index
    %c0_68 = arith.constant 0 : index
    %61 = vector.load %arg1[%c0_65, %c2_66, %c0_67, %c0_68] : memref<1x20x20x4xf32, #tpu.memory_space<vmem>>, vector<1x16x16x4xf32>
    %62 = vector.shape_cast %61 : vector<1x16x16x4xf32> to vector<16x16x4xf32>
    %c2_69 = arith.constant 2 : index
    %c0_70 = arith.constant 0 : index
    %c0_71 = arith.constant 0 : index
    %63 = vector.load %arg4[%c2_69, %c0_70, %c0_71] : memref<5x5x4xf32, #tpu.memory_space<vmem>>, vector<1x1x4xf32>
    %64 = vector.broadcast %63 : vector<1x1x4xf32> to vector<16x16x4xf32>
    %65 = arith.mulf %62, %64 : vector<16x16x4xf32>
    %66 = arith.addf %60, %65 : vector<16x16x4xf32>
    %c0_72 = arith.constant 0 : index
    %c2_73 = arith.constant 2 : index
    %c1_74 = arith.constant 1 : index
    %c0_75 = arith.constant 0 : index
    %67 = vector.load %arg1[%c0_72, %c2_73, %c1_74, %c0_75] : memref<1x20x20x4xf32, #tpu.memory_space<vmem>>, vector<1x16x16x4xf32>
    %68 = vector.shape_cast %67 : vector<1x16x16x4xf32> to vector<16x16x4xf32>
    %c2_76 = arith.constant 2 : index
    %c1_77 = arith.constant 1 : index
    %c0_78 = arith.constant 0 : index
    %69 = vector.load %arg4[%c2_76, %c1_77, %c0_78] : memref<5x5x4xf32, #tpu.memory_space<vmem>>, vector<1x1x4xf32>
    %70 = vector.broadcast %69 : vector<1x1x4xf32> to vector<16x16x4xf32>
    %71 = arith.mulf %68, %70 : vector<16x16x4xf32>
    %72 = arith.addf %66, %71 : vector<16x16x4xf32>
    %c0_79 = arith.constant 0 : index
    %c2_80 = arith.constant 2 : index
    %c2_81 = arith.constant 2 : index
    %c0_82 = arith.constant 0 : index
    %73 = vector.load %arg1[%c0_79, %c2_80, %c2_81, %c0_82] : memref<1x20x20x4xf32, #tpu.memory_space<vmem>>, vector<1x16x16x4xf32>
    %74 = vector.shape_cast %73 : vector<1x16x16x4xf32> to vector<16x16x4xf32>
    %c2_83 = arith.constant 2 : index
    %c2_84 = arith.constant 2 : index
    %c0_85 = arith.constant 0 : index
    %75 = vector.load %arg4[%c2_83, %c2_84, %c0_85] : memref<5x5x4xf32, #tpu.memory_space<vmem>>, vector<1x1x4xf32>
    %76 = vector.broadcast %75 : vector<1x1x4xf32> to vector<16x16x4xf32>
    %77 = arith.mulf %74, %76 : vector<16x16x4xf32>
    %78 = arith.addf %72, %77 : vector<16x16x4xf32>
    %c0_86 = arith.constant 0 : index
    %c2_87 = arith.constant 2 : index
    %c3_88 = arith.constant 3 : index
    %c0_89 = arith.constant 0 : index
    %79 = vector.load %arg1[%c0_86, %c2_87, %c3_88, %c0_89] : memref<1x20x20x4xf32, #tpu.memory_space<vmem>>, vector<1x16x16x4xf32>
    %80 = vector.shape_cast %79 : vector<1x16x16x4xf32> to vector<16x16x4xf32>
    %c2_90 = arith.constant 2 : index
    %c3_91 = arith.constant 3 : index
    %c0_92 = arith.constant 0 : index
    %81 = vector.load %arg4[%c2_90, %c3_91, %c0_92] : memref<5x5x4xf32, #tpu.memory_space<vmem>>, vector<1x1x4xf32>
    %82 = vector.broadcast %81 : vector<1x1x4xf32> to vector<16x16x4xf32>
    %83 = arith.mulf %80, %82 : vector<16x16x4xf32>
    %84 = arith.addf %78, %83 : vector<16x16x4xf32>
    %c0_93 = arith.constant 0 : index
    %c2_94 = arith.constant 2 : index
    %c4_95 = arith.constant 4 : index
    %c0_96 = arith.constant 0 : index
    %85 = vector.load %arg1[%c0_93, %c2_94, %c4_95, %c0_96] : memref<1x20x20x4xf32, #tpu.memory_space<vmem>>, vector<1x16x16x4xf32>
    %86 = vector.shape_cast %85 : vector<1x16x16x4xf32> to vector<16x16x4xf32>
    %c2_97 = arith.constant 2 : index
    %c4_98 = arith.constant 4 : index
    %c0_99 = arith.constant 0 : index
    %87 = vector.load %arg4[%c2_97, %c4_98, %c0_99] : memref<5x5x4xf32, #tpu.memory_space<vmem>>, vector<1x1x4xf32>
    %88 = vector.broadcast %87 : vector<1x1x4xf32> to vector<16x16x4xf32>
    %89 = arith.mulf %86, %88 : vector<16x16x4xf32>
    %90 = arith.addf %84, %89 : vector<16x16x4xf32>
    %c0_100 = arith.constant 0 : index
    %c3_101 = arith.constant 3 : index
    %c0_102 = arith.constant 0 : index
    %c0_103 = arith.constant 0 : index
    %91 = vector.load %arg1[%c0_100, %c3_101, %c0_102, %c0_103] : memref<1x20x20x4xf32, #tpu.memory_space<vmem>>, vector<1x16x16x4xf32>
    %92 = vector.shape_cast %91 : vector<1x16x16x4xf32> to vector<16x16x4xf32>
    %c3_104 = arith.constant 3 : index
    %c0_105 = arith.constant 0 : index
    %c0_106 = arith.constant 0 : index
    %93 = vector.load %arg4[%c3_104, %c0_105, %c0_106] : memref<5x5x4xf32, #tpu.memory_space<vmem>>, vector<1x1x4xf32>
    %94 = vector.broadcast %93 : vector<1x1x4xf32> to vector<16x16x4xf32>
    %95 = arith.mulf %92, %94 : vector<16x16x4xf32>
    %96 = arith.addf %90, %95 : vector<16x16x4xf32>
    %c0_107 = arith.constant 0 : index
    %c3_108 = arith.constant 3 : index
    %c1_109 = arith.constant 1 : index
    %c0_110 = arith.constant 0 : index
    %97 = vector.load %arg1[%c0_107, %c3_108, %c1_109, %c0_110] : memref<1x20x20x4xf32, #tpu.memory_space<vmem>>, vector<1x16x16x4xf32>
    %98 = vector.shape_cast %97 : vector<1x16x16x4xf32> to vector<16x16x4xf32>
    %c3_111 = arith.constant 3 : index
    %c1_112 = arith.constant 1 : index
    %c0_113 = arith.constant 0 : index
    %99 = vector.load %arg4[%c3_111, %c1_112, %c0_113] : memref<5x5x4xf32, #tpu.memory_space<vmem>>, vector<1x1x4xf32>
    %100 = vector.broadcast %99 : vector<1x1x4xf32> to vector<16x16x4xf32>
    %101 = arith.mulf %98, %100 : vector<16x16x4xf32>
    %102 = arith.addf %96, %101 : vector<16x16x4xf32>
    %c0_114 = arith.constant 0 : index
    %c3_115 = arith.constant 3 : index
    %c2_116 = arith.constant 2 : index
    %c0_117 = arith.constant 0 : index
    %103 = vector.load %arg1[%c0_114, %c3_115, %c2_116, %c0_117] : memref<1x20x20x4xf32, #tpu.memory_space<vmem>>, vector<1x16x16x4xf32>
    %104 = vector.shape_cast %103 : vector<1x16x16x4xf32> to vector<16x16x4xf32>
    %c3_118 = arith.constant 3 : index
    %c2_119 = arith.constant 2 : index
    %c0_120 = arith.constant 0 : index
    %105 = vector.load %arg4[%c3_118, %c2_119, %c0_120] : memref<5x5x4xf32, #tpu.memory_space<vmem>>, vector<1x1x4xf32>
    %106 = vector.broadcast %105 : vector<1x1x4xf32> to vector<16x16x4xf32>
    %107 = arith.mulf %104, %106 : vector<16x16x4xf32>
    %108 = arith.addf %102, %107 : vector<16x16x4xf32>
    %c0_121 = arith.constant 0 : index
    %c3_122 = arith.constant 3 : index
    %c3_123 = arith.constant 3 : index
    %c0_124 = arith.constant 0 : index
    %109 = vector.load %arg1[%c0_121, %c3_122, %c3_123, %c0_124] : memref<1x20x20x4xf32, #tpu.memory_space<vmem>>, vector<1x16x16x4xf32>
    %110 = vector.shape_cast %109 : vector<1x16x16x4xf32> to vector<16x16x4xf32>
    %c3_125 = arith.constant 3 : index
    %c3_126 = arith.constant 3 : index
    %c0_127 = arith.constant 0 : index
    %111 = vector.load %arg4[%c3_125, %c3_126, %c0_127] : memref<5x5x4xf32, #tpu.memory_space<vmem>>, vector<1x1x4xf32>
    %112 = vector.broadcast %111 : vector<1x1x4xf32> to vector<16x16x4xf32>
    %113 = arith.mulf %110, %112 : vector<16x16x4xf32>
    %114 = arith.addf %108, %113 : vector<16x16x4xf32>
    %c0_128 = arith.constant 0 : index
    %c3_129 = arith.constant 3 : index
    %c4_130 = arith.constant 4 : index
    %c0_131 = arith.constant 0 : index
    %115 = vector.load %arg1[%c0_128, %c3_129, %c4_130, %c0_131] : memref<1x20x20x4xf32, #tpu.memory_space<vmem>>, vector<1x16x16x4xf32>
    %116 = vector.shape_cast %115 : vector<1x16x16x4xf32> to vector<16x16x4xf32>
    %c3_132 = arith.constant 3 : index
    %c4_133 = arith.constant 4 : index
    %c0_134 = arith.constant 0 : index
    %117 = vector.load %arg4[%c3_132, %c4_133, %c0_134] : memref<5x5x4xf32, #tpu.memory_space<vmem>>, vector<1x1x4xf32>
    %118 = vector.broadcast %117 : vector<1x1x4xf32> to vector<16x16x4xf32>
    %119 = arith.mulf %116, %118 : vector<16x16x4xf32>
    %120 = arith.addf %114, %119 : vector<16x16x4xf32>
    %c0_135 = arith.constant 0 : index
    %c4_136 = arith.constant 4 : index
    %c0_137 = arith.constant 0 : index
    %c0_138 = arith.constant 0 : index
    %121 = vector.load %arg1[%c0_135, %c4_136, %c0_137, %c0_138] : memref<1x20x20x4xf32, #tpu.memory_space<vmem>>, vector<1x16x16x4xf32>
    %122 = vector.shape_cast %121 : vector<1x16x16x4xf32> to vector<16x16x4xf32>
    %c4_139 = arith.constant 4 : index
    %c0_140 = arith.constant 0 : index
    %c0_141 = arith.constant 0 : index
    %123 = vector.load %arg4[%c4_139, %c0_140, %c0_141] : memref<5x5x4xf32, #tpu.memory_space<vmem>>, vector<1x1x4xf32>
    %124 = vector.broadcast %123 : vector<1x1x4xf32> to vector<16x16x4xf32>
    %125 = arith.mulf %122, %124 : vector<16x16x4xf32>
    %126 = arith.addf %120, %125 : vector<16x16x4xf32>
    %c0_142 = arith.constant 0 : index
    %c4_143 = arith.constant 4 : index
    %c1_144 = arith.constant 1 : index
    %c0_145 = arith.constant 0 : index
    %127 = vector.load %arg1[%c0_142, %c4_143, %c1_144, %c0_145] : memref<1x20x20x4xf32, #tpu.memory_space<vmem>>, vector<1x16x16x4xf32>
    %128 = vector.shape_cast %127 : vector<1x16x16x4xf32> to vector<16x16x4xf32>
    %c4_146 = arith.constant 4 : index
    %c1_147 = arith.constant 1 : index
    %c0_148 = arith.constant 0 : index
    %129 = vector.load %arg4[%c4_146, %c1_147, %c0_148] : memref<5x5x4xf32, #tpu.memory_space<vmem>>, vector<1x1x4xf32>
    %130 = vector.broadcast %129 : vector<1x1x4xf32> to vector<16x16x4xf32>
    %131 = arith.mulf %128, %130 : vector<16x16x4xf32>
    %132 = arith.addf %126, %131 : vector<16x16x4xf32>
    %c0_149 = arith.constant 0 : index
    %c4_150 = arith.constant 4 : index
    %c2_151 = arith.constant 2 : index
    %c0_152 = arith.constant 0 : index
    %133 = vector.load %arg1[%c0_149, %c4_150, %c2_151, %c0_152] : memref<1x20x20x4xf32, #tpu.memory_space<vmem>>, vector<1x16x16x4xf32>
    %134 = vector.shape_cast %133 : vector<1x16x16x4xf32> to vector<16x16x4xf32>
    %c4_153 = arith.constant 4 : index
    %c2_154 = arith.constant 2 : index
    %c0_155 = arith.constant 0 : index
    %135 = vector.load %arg4[%c4_153, %c2_154, %c0_155] : memref<5x5x4xf32, #tpu.memory_space<vmem>>, vector<1x1x4xf32>
    %136 = vector.broadcast %135 : vector<1x1x4xf32> to vector<16x16x4xf32>
    %137 = arith.mulf %134, %136 : vector<16x16x4xf32>
    %138 = arith.addf %132, %137 : vector<16x16x4xf32>
    %c0_156 = arith.constant 0 : index
    %c4_157 = arith.constant 4 : index
    %c3_158 = arith.constant 3 : index
    %c0_159 = arith.constant 0 : index
    %139 = vector.load %arg1[%c0_156, %c4_157, %c3_158, %c0_159] : memref<1x20x20x4xf32, #tpu.memory_space<vmem>>, vector<1x16x16x4xf32>
    %140 = vector.shape_cast %139 : vector<1x16x16x4xf32> to vector<16x16x4xf32>
    %c4_160 = arith.constant 4 : index
    %c3_161 = arith.constant 3 : index
    %c0_162 = arith.constant 0 : index
    %141 = vector.load %arg4[%c4_160, %c3_161, %c0_162] : memref<5x5x4xf32, #tpu.memory_space<vmem>>, vector<1x1x4xf32>
    %142 = vector.broadcast %141 : vector<1x1x4xf32> to vector<16x16x4xf32>
    %143 = arith.mulf %140, %142 : vector<16x16x4xf32>
    %144 = arith.addf %138, %143 : vector<16x16x4xf32>
    %c0_163 = arith.constant 0 : index
    %c4_164 = arith.constant 4 : index
    %c4_165 = arith.constant 4 : index
    %c0_166 = arith.constant 0 : index
    %145 = vector.load %arg1[%c0_163, %c4_164, %c4_165, %c0_166] : memref<1x20x20x4xf32, #tpu.memory_space<vmem>>, vector<1x16x16x4xf32>
    %146 = vector.shape_cast %145 : vector<1x16x16x4xf32> to vector<16x16x4xf32>
    %c4_167 = arith.constant 4 : index
    %c4_168 = arith.constant 4 : index
    %c0_169 = arith.constant 0 : index
    %147 = vector.load %arg4[%c4_167, %c4_168, %c0_169] : memref<5x5x4xf32, #tpu.memory_space<vmem>>, vector<1x1x4xf32>
    %148 = vector.broadcast %147 : vector<1x1x4xf32> to vector<16x16x4xf32>
    %149 = arith.mulf %146, %148 : vector<16x16x4xf32>
    %150 = arith.addf %144, %149 : vector<16x16x4xf32>
    %c0_170 = arith.constant 0 : index
    %c0_171 = arith.constant 0 : index
    %c0_172 = arith.constant 0 : index
    %151 = vector.load %arg5[%c0_170, %c0_171, %c0_172] : memref<1x1x4xf32, #tpu.memory_space<vmem>>, vector<1x1x4xf32>
    %152 = vector.broadcast %151 : vector<1x1x4xf32> to vector<16x16x4xf32>
    %153 = arith.addf %150, %152 : vector<16x16x4xf32>
    %cst_173 = arith.constant 0.000000e+00 : f32
    %154 = vector.broadcast %cst_173 : f32 to vector<16x16x4xf32>
    %155 = arith.maximumf %153, %154 : vector<16x16x4xf32>
    %c0_174 = arith.constant 0 : index
    %c0_175 = arith.constant 0 : index
    %c0_176 = arith.constant 0 : index
    %156 = vector.load %arg14[%c0_174, %c0_175, %c0_176] : memref<16x16x4xf32, #tpu.memory_space<vmem>>, vector<16x16x4xf32>
    tpu.vector_store %arg14[%c0_174, %c0_175, %c0_176], %155 {strides = array<i32>} : memref<16x16x4xf32, #tpu.memory_space<vmem>>, vector<16x16x4xf32>,
    %c0_177 = arith.constant 0 : index
    %c0_178 = arith.constant 0 : index
    %c0_179 = arith.constant 0 : index
    %157 = tpu.strided_load %arg14[%c0_177, %c0_178, %c0_179] {strides = array<i32: 2, 2, 1>} : memref<16x16x4xf32, #tpu.memory_space<vmem>>, vector<8x8x4xf32>
    %c0_180 = arith.constant 0 : index
    %c1_181 = arith.constant 1 : index
    %c0_182 = arith.constant 0 : index
    %158 = tpu.strided_load %arg14[%c0_180, %c1_181, %c0_182] {strides = array<i32: 2, 2, 1>} : memref<16x16x4xf32, #tpu.memory_space<vmem>>, vector<8x8x4xf32>
    %159 = arith.maximumf %157, %158 : vector<8x8x4xf32>
    %c1_183 = arith.constant 1 : index
    %c0_184 = arith.constant 0 : index
    %c0_185 = arith.constant 0 : index
    %160 = tpu.strided_load %arg14[%c1_183, %c0_184, %c0_185] {strides = array<i32: 2, 2, 1>} : memref<16x16x4xf32, #tpu.memory_space<vmem>>, vector<8x8x4xf32>
    %c1_186 = arith.constant 1 : index
    %c1_187 = arith.constant 1 : index
    %c0_188 = arith.constant 0 : index
    %161 = tpu.strided_load %arg14[%c1_186, %c1_187, %c0_188] {strides = array<i32: 2, 2, 1>} : memref<16x16x4xf32, #tpu.memory_space<vmem>>, vector<8x8x4xf32>
    %162 = arith.maximumf %160, %161 : vector<8x8x4xf32>
    %163 = arith.maximumf %159, %162 : vector<8x8x4xf32>
    %cst_189 = arith.constant 0.000000e+00 : f32
    %164 = vector.broadcast %cst_189 : f32 to vector<2x12x4xf32>
    %c0_190 = arith.constant 0 : index
    %c0_191 = arith.constant 0 : index
    %c0_192 = arith.constant 0 : index
    %165 = vector.load %arg15[%c0_190, %c0_191, %c0_192] : memref<12x12x4xf32, #tpu.memory_space<vmem>>, vector<2x12x4xf32>
    tpu.vector_store %arg15[%c0_190, %c0_191, %c0_192], %164 {strides = array<i32>} : memref<12x12x4xf32, #tpu.memory_space<vmem>>, vector<2x12x4xf32>,
    %cst_193 = arith.constant 0.000000e+00 : f32
    %166 = vector.broadcast %cst_193 : f32 to vector<2x12x4xf32>
    %c10 = arith.constant 10 : index
    %c0_194 = arith.constant 0 : index
    %c0_195 = arith.constant 0 : index
    %167 = vector.load %arg15[%c10, %c0_194, %c0_195] : memref<12x12x4xf32, #tpu.memory_space<vmem>>, vector<2x12x4xf32>
    tpu.vector_store %arg15[%c10, %c0_194, %c0_195], %166 {strides = array<i32>} : memref<12x12x4xf32, #tpu.memory_space<vmem>>, vector<2x12x4xf32>,
    %cst_196 = arith.constant 0.000000e+00 : f32
    %168 = vector.broadcast %cst_196 : f32 to vector<12x2x4xf32>
    %c0_197 = arith.constant 0 : index
    %c0_198 = arith.constant 0 : index
    %c0_199 = arith.constant 0 : index
    %169 = vector.load %arg15[%c0_197, %c0_198, %c0_199] : memref<12x12x4xf32, #tpu.memory_space<vmem>>, vector<12x2x4xf32>
    tpu.vector_store %arg15[%c0_197, %c0_198, %c0_199], %168 {strides = array<i32>} : memref<12x12x4xf32, #tpu.memory_space<vmem>>, vector<12x2x4xf32>,
    %cst_200 = arith.constant 0.000000e+00 : f32
    %170 = vector.broadcast %cst_200 : f32 to vector<12x2x4xf32>
    %c0_201 = arith.constant 0 : index
    %c10_202 = arith.constant 10 : index
    %c0_203 = arith.constant 0 : index
    %171 = vector.load %arg15[%c0_201, %c10_202, %c0_203] : memref<12x12x4xf32, #tpu.memory_space<vmem>>, vector<12x2x4xf32>
    tpu.vector_store %arg15[%c0_201, %c10_202, %c0_203], %170 {strides = array<i32>} : memref<12x12x4xf32, #tpu.memory_space<vmem>>, vector<12x2x4xf32>,
    %c2_204 = arith.constant 2 : index
    %c2_205 = arith.constant 2 : index
    %c0_206 = arith.constant 0 : index
    %172 = vector.load %arg15[%c2_204, %c2_205, %c0_206] : memref<12x12x4xf32, #tpu.memory_space<vmem>>, vector<8x8x4xf32>
    tpu.vector_store %arg15[%c2_204, %c2_205, %c0_206], %163 {strides = array<i32>} : memref<12x12x4xf32, #tpu.memory_space<vmem>>, vector<8x8x4xf32>,
    %cst_207 = arith.constant 0.000000e+00 : f32
    %173 = vector.broadcast %cst_207 : f32 to vector<8x8x4xf32>
    %c0_208 = arith.constant 0 : index
    %c0_209 = arith.constant 0 : index
    %c0_210 = arith.constant 0 : index
    %174 = vector.load %arg15[%c0_208, %c0_209, %c0_210] : memref<12x12x4xf32, #tpu.memory_space<vmem>>, vector<8x8x4xf32>
    %c0_211 = arith.constant 0 : index
    %c0_212 = arith.constant 0 : index
    %c0_213 = arith.constant 0 : index
    %175 = vector.load %arg6[%c0_211, %c0_212, %c0_213] : memref<5x5x4xf32, #tpu.memory_space<vmem>>, vector<1x1x4xf32>
    %176 = vector.broadcast %175 : vector<1x1x4xf32> to vector<8x8x4xf32>
    %177 = arith.mulf %174, %176 : vector<8x8x4xf32>
    %178 = arith.addf %173, %177 : vector<8x8x4xf32>
    %c0_214 = arith.constant 0 : index
    %c1_215 = arith.constant 1 : index
    %c0_216 = arith.constant 0 : index
    %179 = vector.load %arg15[%c0_214, %c1_215, %c0_216] : memref<12x12x4xf32, #tpu.memory_space<vmem>>, vector<8x8x4xf32>
    %c0_217 = arith.constant 0 : index
    %c1_218 = arith.constant 1 : index
    %c0_219 = arith.constant 0 : index
    %180 = vector.load %arg6[%c0_217, %c1_218, %c0_219] : memref<5x5x4xf32, #tpu.memory_space<vmem>>, vector<1x1x4xf32>
    %181 = vector.broadcast %180 : vector<1x1x4xf32> to vector<8x8x4xf32>
    %182 = arith.mulf %179, %181 : vector<8x8x4xf32>
    %183 = arith.addf %178, %182 : vector<8x8x4xf32>
    %c0_220 = arith.constant 0 : index
    %c2_221 = arith.constant 2 : index
    %c0_222 = arith.constant 0 : index
    %184 = vector.load %arg15[%c0_220, %c2_221, %c0_222] : memref<12x12x4xf32, #tpu.memory_space<vmem>>, vector<8x8x4xf32>
    %c0_223 = arith.constant 0 : index
    %c2_224 = arith.constant 2 : index
    %c0_225 = arith.constant 0 : index
    %185 = vector.load %arg6[%c0_223, %c2_224, %c0_225] : memref<5x5x4xf32, #tpu.memory_space<vmem>>, vector<1x1x4xf32>
    %186 = vector.broadcast %185 : vector<1x1x4xf32> to vector<8x8x4xf32>
    %187 = arith.mulf %184, %186 : vector<8x8x4xf32>
    %188 = arith.addf %183, %187 : vector<8x8x4xf32>
    %c0_226 = arith.constant 0 : index
    %c3_227 = arith.constant 3 : index
    %c0_228 = arith.constant 0 : index
    %189 = vector.load %arg15[%c0_226, %c3_227, %c0_228] : memref<12x12x4xf32, #tpu.memory_space<vmem>>, vector<8x8x4xf32>
    %c0_229 = arith.constant 0 : index
    %c3_230 = arith.constant 3 : index
    %c0_231 = arith.constant 0 : index
    %190 = vector.load %arg6[%c0_229, %c3_230, %c0_231] : memref<5x5x4xf32, #tpu.memory_space<vmem>>, vector<1x1x4xf32>
    %191 = vector.broadcast %190 : vector<1x1x4xf32> to vector<8x8x4xf32>
    %192 = arith.mulf %189, %191 : vector<8x8x4xf32>
    %193 = arith.addf %188, %192 : vector<8x8x4xf32>
    %c0_232 = arith.constant 0 : index
    %c4_233 = arith.constant 4 : index
    %c0_234 = arith.constant 0 : index
    %194 = vector.load %arg15[%c0_232, %c4_233, %c0_234] : memref<12x12x4xf32, #tpu.memory_space<vmem>>, vector<8x8x4xf32>
    %c0_235 = arith.constant 0 : index
    %c4_236 = arith.constant 4 : index
    %c0_237 = arith.constant 0 : index
    %195 = vector.load %arg6[%c0_235, %c4_236, %c0_237] : memref<5x5x4xf32, #tpu.memory_space<vmem>>, vector<1x1x4xf32>
    %196 = vector.broadcast %195 : vector<1x1x4xf32> to vector<8x8x4xf32>
    %197 = arith.mulf %194, %196 : vector<8x8x4xf32>
    %198 = arith.addf %193, %197 : vector<8x8x4xf32>
    %c1_238 = arith.constant 1 : index
    %c0_239 = arith.constant 0 : index
    %c0_240 = arith.constant 0 : index
    %199 = vector.load %arg15[%c1_238, %c0_239, %c0_240] : memref<12x12x4xf32, #tpu.memory_space<vmem>>, vector<8x8x4xf32>
    %c1_241 = arith.constant 1 : index
    %c0_242 = arith.constant 0 : index
    %c0_243 = arith.constant 0 : index
    %200 = vector.load %arg6[%c1_241, %c0_242, %c0_243] : memref<5x5x4xf32, #tpu.memory_space<vmem>>, vector<1x1x4xf32>
    %201 = vector.broadcast %200 : vector<1x1x4xf32> to vector<8x8x4xf32>
    %202 = arith.mulf %199, %201 : vector<8x8x4xf32>
    %203 = arith.addf %198, %202 : vector<8x8x4xf32>
    %c1_244 = arith.constant 1 : index
    %c1_245 = arith.constant 1 : index
    %c0_246 = arith.constant 0 : index
    %204 = vector.load %arg15[%c1_244, %c1_245, %c0_246] : memref<12x12x4xf32, #tpu.memory_space<vmem>>, vector<8x8x4xf32>
    %c1_247 = arith.constant 1 : index
    %c1_248 = arith.constant 1 : index
    %c0_249 = arith.constant 0 : index
    %205 = vector.load %arg6[%c1_247, %c1_248, %c0_249] : memref<5x5x4xf32, #tpu.memory_space<vmem>>, vector<1x1x4xf32>
    %206 = vector.broadcast %205 : vector<1x1x4xf32> to vector<8x8x4xf32>
    %207 = arith.mulf %204, %206 : vector<8x8x4xf32>
    %208 = arith.addf %203, %207 : vector<8x8x4xf32>
    %c1_250 = arith.constant 1 : index
    %c2_251 = arith.constant 2 : index
    %c0_252 = arith.constant 0 : index
    %209 = vector.load %arg15[%c1_250, %c2_251, %c0_252] : memref<12x12x4xf32, #tpu.memory_space<vmem>>, vector<8x8x4xf32>
    %c1_253 = arith.constant 1 : index
    %c2_254 = arith.constant 2 : index
    %c0_255 = arith.constant 0 : index
    %210 = vector.load %arg6[%c1_253, %c2_254, %c0_255] : memref<5x5x4xf32, #tpu.memory_space<vmem>>, vector<1x1x4xf32>
    %211 = vector.broadcast %210 : vector<1x1x4xf32> to vector<8x8x4xf32>
    %212 = arith.mulf %209, %211 : vector<8x8x4xf32>
    %213 = arith.addf %208, %212 : vector<8x8x4xf32>
    %c1_256 = arith.constant 1 : index
    %c3_257 = arith.constant 3 : index
    %c0_258 = arith.constant 0 : index
    %214 = vector.load %arg15[%c1_256, %c3_257, %c0_258] : memref<12x12x4xf32, #tpu.memory_space<vmem>>, vector<8x8x4xf32>
    %c1_259 = arith.constant 1 : index
    %c3_260 = arith.constant 3 : index
    %c0_261 = arith.constant 0 : index
    %215 = vector.load %arg6[%c1_259, %c3_260, %c0_261] : memref<5x5x4xf32, #tpu.memory_space<vmem>>, vector<1x1x4xf32>
    %216 = vector.broadcast %215 : vector<1x1x4xf32> to vector<8x8x4xf32>
    %217 = arith.mulf %214, %216 : vector<8x8x4xf32>
    %218 = arith.addf %213, %217 : vector<8x8x4xf32>
    %c1_262 = arith.constant 1 : index
    %c4_263 = arith.constant 4 : index
    %c0_264 = arith.constant 0 : index
    %219 = vector.load %arg15[%c1_262, %c4_263, %c0_264] : memref<12x12x4xf32, #tpu.memory_space<vmem>>, vector<8x8x4xf32>
    %c1_265 = arith.constant 1 : index
    %c4_266 = arith.constant 4 : index
    %c0_267 = arith.constant 0 : index
    %220 = vector.load %arg6[%c1_265, %c4_266, %c0_267] : memref<5x5x4xf32, #tpu.memory_space<vmem>>, vector<1x1x4xf32>
    %221 = vector.broadcast %220 : vector<1x1x4xf32> to vector<8x8x4xf32>
    %222 = arith.mulf %219, %221 : vector<8x8x4xf32>
    %223 = arith.addf %218, %222 : vector<8x8x4xf32>
    %c2_268 = arith.constant 2 : index
    %c0_269 = arith.constant 0 : index
    %c0_270 = arith.constant 0 : index
    %224 = vector.load %arg15[%c2_268, %c0_269, %c0_270] : memref<12x12x4xf32, #tpu.memory_space<vmem>>, vector<8x8x4xf32>
    %c2_271 = arith.constant 2 : index
    %c0_272 = arith.constant 0 : index
    %c0_273 = arith.constant 0 : index
    %225 = vector.load %arg6[%c2_271, %c0_272, %c0_273] : memref<5x5x4xf32, #tpu.memory_space<vmem>>, vector<1x1x4xf32>
    %226 = vector.broadcast %225 : vector<1x1x4xf32> to vector<8x8x4xf32>
    %227 = arith.mulf %224, %226 : vector<8x8x4xf32>
    %228 = arith.addf %223, %227 : vector<8x8x4xf32>
    %c2_274 = arith.constant 2 : index
    %c1_275 = arith.constant 1 : index
    %c0_276 = arith.constant 0 : index
    %229 = vector.load %arg15[%c2_274, %c1_275, %c0_276] : memref<12x12x4xf32, #tpu.memory_space<vmem>>, vector<8x8x4xf32>
    %c2_277 = arith.constant 2 : index
    %c1_278 = arith.constant 1 : index
    %c0_279 = arith.constant 0 : index
    %230 = vector.load %arg6[%c2_277, %c1_278, %c0_279] : memref<5x5x4xf32, #tpu.memory_space<vmem>>, vector<1x1x4xf32>
    %231 = vector.broadcast %230 : vector<1x1x4xf32> to vector<8x8x4xf32>
    %232 = arith.mulf %229, %231 : vector<8x8x4xf32>
    %233 = arith.addf %228, %232 : vector<8x8x4xf32>
    %c2_280 = arith.constant 2 : index
    %c2_281 = arith.constant 2 : index
    %c0_282 = arith.constant 0 : index
    %234 = vector.load %arg15[%c2_280, %c2_281, %c0_282] : memref<12x12x4xf32, #tpu.memory_space<vmem>>, vector<8x8x4xf32>
    %c2_283 = arith.constant 2 : index
    %c2_284 = arith.constant 2 : index
    %c0_285 = arith.constant 0 : index
    %235 = vector.load %arg6[%c2_283, %c2_284, %c0_285] : memref<5x5x4xf32, #tpu.memory_space<vmem>>, vector<1x1x4xf32>
    %236 = vector.broadcast %235 : vector<1x1x4xf32> to vector<8x8x4xf32>
    %237 = arith.mulf %234, %236 : vector<8x8x4xf32>
    %238 = arith.addf %233, %237 : vector<8x8x4xf32>
    %c2_286 = arith.constant 2 : index
    %c3_287 = arith.constant 3 : index
    %c0_288 = arith.constant 0 : index
    %239 = vector.load %arg15[%c2_286, %c3_287, %c0_288] : memref<12x12x4xf32, #tpu.memory_space<vmem>>, vector<8x8x4xf32>
    %c2_289 = arith.constant 2 : index
    %c3_290 = arith.constant 3 : index
    %c0_291 = arith.constant 0 : index
    %240 = vector.load %arg6[%c2_289, %c3_290, %c0_291] : memref<5x5x4xf32, #tpu.memory_space<vmem>>, vector<1x1x4xf32>
    %241 = vector.broadcast %240 : vector<1x1x4xf32> to vector<8x8x4xf32>
    %242 = arith.mulf %239, %241 : vector<8x8x4xf32>
    %243 = arith.addf %238, %242 : vector<8x8x4xf32>
    %c2_292 = arith.constant 2 : index
    %c4_293 = arith.constant 4 : index
    %c0_294 = arith.constant 0 : index
    %244 = vector.load %arg15[%c2_292, %c4_293, %c0_294] : memref<12x12x4xf32, #tpu.memory_space<vmem>>, vector<8x8x4xf32>
    %c2_295 = arith.constant 2 : index
    %c4_296 = arith.constant 4 : index
    %c0_297 = arith.constant 0 : index
    %245 = vector.load %arg6[%c2_295, %c4_296, %c0_297] : memref<5x5x4xf32, #tpu.memory_space<vmem>>, vector<1x1x4xf32>
    %246 = vector.broadcast %245 : vector<1x1x4xf32> to vector<8x8x4xf32>
    %247 = arith.mulf %244, %246 : vector<8x8x4xf32>
    %248 = arith.addf %243, %247 : vector<8x8x4xf32>
    %c3_298 = arith.constant 3 : index
    %c0_299 = arith.constant 0 : index
    %c0_300 = arith.constant 0 : index
    %249 = vector.load %arg15[%c3_298, %c0_299, %c0_300] : memref<12x12x4xf32, #tpu.memory_space<vmem>>, vector<8x8x4xf32>
    %c3_301 = arith.constant 3 : index
    %c0_302 = arith.constant 0 : index
    %c0_303 = arith.constant 0 : index
    %250 = vector.load %arg6[%c3_301, %c0_302, %c0_303] : memref<5x5x4xf32, #tpu.memory_space<vmem>>, vector<1x1x4xf32>
    %251 = vector.broadcast %250 : vector<1x1x4xf32> to vector<8x8x4xf32>
    %252 = arith.mulf %249, %251 : vector<8x8x4xf32>
    %253 = arith.addf %248, %252 : vector<8x8x4xf32>
    %c3_304 = arith.constant 3 : index
    %c1_305 = arith.constant 1 : index
    %c0_306 = arith.constant 0 : index
    %254 = vector.load %arg15[%c3_304, %c1_305, %c0_306] : memref<12x12x4xf32, #tpu.memory_space<vmem>>, vector<8x8x4xf32>
    %c3_307 = arith.constant 3 : index
    %c1_308 = arith.constant 1 : index
    %c0_309 = arith.constant 0 : index
    %255 = vector.load %arg6[%c3_307, %c1_308, %c0_309] : memref<5x5x4xf32, #tpu.memory_space<vmem>>, vector<1x1x4xf32>
    %256 = vector.broadcast %255 : vector<1x1x4xf32> to vector<8x8x4xf32>
    %257 = arith.mulf %254, %256 : vector<8x8x4xf32>
    %258 = arith.addf %253, %257 : vector<8x8x4xf32>
    %c3_310 = arith.constant 3 : index
    %c2_311 = arith.constant 2 : index
    %c0_312 = arith.constant 0 : index
    %259 = vector.load %arg15[%c3_310, %c2_311, %c0_312] : memref<12x12x4xf32, #tpu.memory_space<vmem>>, vector<8x8x4xf32>
    %c3_313 = arith.constant 3 : index
    %c2_314 = arith.constant 2 : index
    %c0_315 = arith.constant 0 : index
    %260 = vector.load %arg6[%c3_313, %c2_314, %c0_315] : memref<5x5x4xf32, #tpu.memory_space<vmem>>, vector<1x1x4xf32>
    %261 = vector.broadcast %260 : vector<1x1x4xf32> to vector<8x8x4xf32>
    %262 = arith.mulf %259, %261 : vector<8x8x4xf32>
    %263 = arith.addf %258, %262 : vector<8x8x4xf32>
    %c3_316 = arith.constant 3 : index
    %c3_317 = arith.constant 3 : index
    %c0_318 = arith.constant 0 : index
    %264 = vector.load %arg15[%c3_316, %c3_317, %c0_318] : memref<12x12x4xf32, #tpu.memory_space<vmem>>, vector<8x8x4xf32>
    %c3_319 = arith.constant 3 : index
    %c3_320 = arith.constant 3 : index
    %c0_321 = arith.constant 0 : index
    %265 = vector.load %arg6[%c3_319, %c3_320, %c0_321] : memref<5x5x4xf32, #tpu.memory_space<vmem>>, vector<1x1x4xf32>
    %266 = vector.broadcast %265 : vector<1x1x4xf32> to vector<8x8x4xf32>
    %267 = arith.mulf %264, %266 : vector<8x8x4xf32>
    %268 = arith.addf %263, %267 : vector<8x8x4xf32>
    %c3_322 = arith.constant 3 : index
    %c4_323 = arith.constant 4 : index
    %c0_324 = arith.constant 0 : index
    %269 = vector.load %arg15[%c3_322, %c4_323, %c0_324] : memref<12x12x4xf32, #tpu.memory_space<vmem>>, vector<8x8x4xf32>
    %c3_325 = arith.constant 3 : index
    %c4_326 = arith.constant 4 : index
    %c0_327 = arith.constant 0 : index
    %270 = vector.load %arg6[%c3_325, %c4_326, %c0_327] : memref<5x5x4xf32, #tpu.memory_space<vmem>>, vector<1x1x4xf32>
    %271 = vector.broadcast %270 : vector<1x1x4xf32> to vector<8x8x4xf32>
    %272 = arith.mulf %269, %271 : vector<8x8x4xf32>
    %273 = arith.addf %268, %272 : vector<8x8x4xf32>
    %c4_328 = arith.constant 4 : index
    %c0_329 = arith.constant 0 : index
    %c0_330 = arith.constant 0 : index
    %274 = vector.load %arg15[%c4_328, %c0_329, %c0_330] : memref<12x12x4xf32, #tpu.memory_space<vmem>>, vector<8x8x4xf32>
    %c4_331 = arith.constant 4 : index
    %c0_332 = arith.constant 0 : index
    %c0_333 = arith.constant 0 : index
    %275 = vector.load %arg6[%c4_331, %c0_332, %c0_333] : memref<5x5x4xf32, #tpu.memory_space<vmem>>, vector<1x1x4xf32>
    %276 = vector.broadcast %275 : vector<1x1x4xf32> to vector<8x8x4xf32>
    %277 = arith.mulf %274, %276 : vector<8x8x4xf32>
    %278 = arith.addf %273, %277 : vector<8x8x4xf32>
    %c4_334 = arith.constant 4 : index
    %c1_335 = arith.constant 1 : index
    %c0_336 = arith.constant 0 : index
    %279 = vector.load %arg15[%c4_334, %c1_335, %c0_336] : memref<12x12x4xf32, #tpu.memory_space<vmem>>, vector<8x8x4xf32>
    %c4_337 = arith.constant 4 : index
    %c1_338 = arith.constant 1 : index
    %c0_339 = arith.constant 0 : index
    %280 = vector.load %arg6[%c4_337, %c1_338, %c0_339] : memref<5x5x4xf32, #tpu.memory_space<vmem>>, vector<1x1x4xf32>
    %281 = vector.broadcast %280 : vector<1x1x4xf32> to vector<8x8x4xf32>
    %282 = arith.mulf %279, %281 : vector<8x8x4xf32>
    %283 = arith.addf %278, %282 : vector<8x8x4xf32>
    %c4_340 = arith.constant 4 : index
    %c2_341 = arith.constant 2 : index
    %c0_342 = arith.constant 0 : index
    %284 = vector.load %arg15[%c4_340, %c2_341, %c0_342] : memref<12x12x4xf32, #tpu.memory_space<vmem>>, vector<8x8x4xf32>
    %c4_343 = arith.constant 4 : index
    %c2_344 = arith.constant 2 : index
    %c0_345 = arith.constant 0 : index
    %285 = vector.load %arg6[%c4_343, %c2_344, %c0_345] : memref<5x5x4xf32, #tpu.memory_space<vmem>>, vector<1x1x4xf32>
    %286 = vector.broadcast %285 : vector<1x1x4xf32> to vector<8x8x4xf32>
    %287 = arith.mulf %284, %286 : vector<8x8x4xf32>
    %288 = arith.addf %283, %287 : vector<8x8x4xf32>
    %c4_346 = arith.constant 4 : index
    %c3_347 = arith.constant 3 : index
    %c0_348 = arith.constant 0 : index
    %289 = vector.load %arg15[%c4_346, %c3_347, %c0_348] : memref<12x12x4xf32, #tpu.memory_space<vmem>>, vector<8x8x4xf32>
    %c4_349 = arith.constant 4 : index
    %c3_350 = arith.constant 3 : index
    %c0_351 = arith.constant 0 : index
    %290 = vector.load %arg6[%c4_349, %c3_350, %c0_351] : memref<5x5x4xf32, #tpu.memory_space<vmem>>, vector<1x1x4xf32>
    %291 = vector.broadcast %290 : vector<1x1x4xf32> to vector<8x8x4xf32>
    %292 = arith.mulf %289, %291 : vector<8x8x4xf32>
    %293 = arith.addf %288, %292 : vector<8x8x4xf32>
    %c4_352 = arith.constant 4 : index
    %c4_353 = arith.constant 4 : index
    %c0_354 = arith.constant 0 : index
    %294 = vector.load %arg15[%c4_352, %c4_353, %c0_354] : memref<12x12x4xf32, #tpu.memory_space<vmem>>, vector<8x8x4xf32>
    %c4_355 = arith.constant 4 : index
    %c4_356 = arith.constant 4 : index
    %c0_357 = arith.constant 0 : index
    %295 = vector.load %arg6[%c4_355, %c4_356, %c0_357] : memref<5x5x4xf32, #tpu.memory_space<vmem>>, vector<1x1x4xf32>
    %296 = vector.broadcast %295 : vector<1x1x4xf32> to vector<8x8x4xf32>
    %297 = arith.mulf %294, %296 : vector<8x8x4xf32>
    %298 = arith.addf %293, %297 : vector<8x8x4xf32>
    %c0_358 = arith.constant 0 : index
    %c0_359 = arith.constant 0 : index
    %c0_360 = arith.constant 0 : index
    %299 = vector.load %arg7[%c0_358, %c0_359, %c0_360] : memref<1x1x4xf32, #tpu.memory_space<vmem>>, vector<1x1x4xf32>
    %300 = vector.broadcast %299 : vector<1x1x4xf32> to vector<8x8x4xf32>
    %301 = arith.addf %298, %300 : vector<8x8x4xf32>
    %cst_361 = arith.constant 0.000000e+00 : f32
    %302 = vector.broadcast %cst_361 : f32 to vector<8x8x4xf32>
    %303 = arith.maximumf %301, %302 : vector<8x8x4xf32>
    %c0_362 = arith.constant 0 : index
    %c0_363 = arith.constant 0 : index
    %c0_364 = arith.constant 0 : index
    %304 = vector.load %arg16[%c0_362, %c0_363, %c0_364] : memref<8x8x4xf32, #tpu.memory_space<vmem>>, vector<8x8x4xf32>
    tpu.vector_store %arg16[%c0_362, %c0_363, %c0_364], %303 {strides = array<i32>} : memref<8x8x4xf32, #tpu.memory_space<vmem>>, vector<8x8x4xf32>,
    %c0_365 = arith.constant 0 : index
    %c0_366 = arith.constant 0 : index
    %c0_367 = arith.constant 0 : index
    %305 = tpu.strided_load %arg16[%c0_365, %c0_366, %c0_367] {strides = array<i32: 2, 2, 1>} : memref<8x8x4xf32, #tpu.memory_space<vmem>>, vector<4x4x4xf32>
    %c0_368 = arith.constant 0 : index
    %c1_369 = arith.constant 1 : index
    %c0_370 = arith.constant 0 : index
    %306 = tpu.strided_load %arg16[%c0_368, %c1_369, %c0_370] {strides = array<i32: 2, 2, 1>} : memref<8x8x4xf32, #tpu.memory_space<vmem>>, vector<4x4x4xf32>
    %307 = arith.maximumf %305, %306 : vector<4x4x4xf32>
    %c1_371 = arith.constant 1 : index
    %c0_372 = arith.constant 0 : index
    %c0_373 = arith.constant 0 : index
    %308 = tpu.strided_load %arg16[%c1_371, %c0_372, %c0_373] {strides = array<i32: 2, 2, 1>} : memref<8x8x4xf32, #tpu.memory_space<vmem>>, vector<4x4x4xf32>
    %c1_374 = arith.constant 1 : index
    %c1_375 = arith.constant 1 : index
    %c0_376 = arith.constant 0 : index
    %309 = tpu.strided_load %arg16[%c1_374, %c1_375, %c0_376] {strides = array<i32: 2, 2, 1>} : memref<8x8x4xf32, #tpu.memory_space<vmem>>, vector<4x4x4xf32>
    %310 = arith.maximumf %308, %309 : vector<4x4x4xf32>
    %311 = arith.maximumf %307, %310 : vector<4x4x4xf32>
    %c0_377 = arith.constant 0 : index
    %c0_378 = arith.constant 0 : index
    %c0_379 = arith.constant 0 : index
    %312 = vector.load %arg8[%c0_377, %c0_378, %c0_379] : memref<1x1x4xf32, #tpu.memory_space<vmem>>, vector<1x1x4xf32>
    %313 = vector.broadcast %312 : vector<1x1x4xf32> to vector<4x4x4xf32>
    %314 = arith.mulf %311, %313 : vector<4x4x4xf32>
    %c0_380 = arith.constant 0 : index
    %c0_381 = arith.constant 0 : index
    %c0_382 = arith.constant 0 : index
    %315 = vector.load %arg9[%c0_380, %c0_381, %c0_382] : memref<1x1x4xf32, #tpu.memory_space<vmem>>, vector<1x1x4xf32>
    %316 = vector.broadcast %315 : vector<1x1x4xf32> to vector<4x4x4xf32>
    %317 = arith.addf %314, %316 : vector<4x4x4xf32>
    %c0_383 = arith.constant 0 : index
    %c0_384 = arith.constant 0 : index
    %c0_385 = arith.constant 0 : index
    %c0_386 = arith.constant 0 : index
    %318 = vector.load %arg2[%c0_383, %c0_384, %c0_385, %c0_386] : memref<1x4x4x128xf32, #tpu.memory_space<vmem>>, vector<1x4x4x128xf32>
    %319 = vector.shape_cast %318 : vector<1x4x4x128xf32> to vector<4x4x128xf32>
    %c0_387 = arith.constant 0 : index
    %c0_388 = arith.constant 0 : index
    %c0_389 = arith.constant 0 : index
    %320 = vector.load %arg10[%c0_387, %c0_388, %c0_389] : memref<1x1x128xf32, #tpu.memory_space<vmem>>, vector<1x1x128xf32>
    %321 = vector.broadcast %320 : vector<1x1x128xf32> to vector<4x4x128xf32>
    %322 = arith.mulf %319, %321 : vector<4x4x128xf32>
    %cst_390 = arith.constant dense<0.000000e+00> : vector<4x4xf32>
    %323 = vector.multi_reduction <add>, %322, %cst_390 [2] : vector<4x4x128xf32> to vector<4x4xf32>
    %324 = vector.shape_cast %323 : vector<4x4xf32> to vector<4x4x1xf32>
    %c0_391 = arith.constant 0 : index
    %c0_392 = arith.constant 0 : index
    %c0_393 = arith.constant 0 : index
    %c0_394 = arith.constant 0 : index
    %325 = vector.load %arg3[%c0_391, %c0_392, %c0_393, %c0_394] : memref<1x4x4x128xf32, #tpu.memory_space<vmem>>, vector<1x4x4x128xf32>
    %326 = vector.shape_cast %325 : vector<1x4x4x128xf32> to vector<4x4x128xf32>
    %c0_395 = arith.constant 0 : index
    %c0_396 = arith.constant 0 : index
    %c0_397 = arith.constant 0 : index
    %327 = vector.load %arg11[%c0_395, %c0_396, %c0_397] : memref<1x1x128xf32, #tpu.memory_space<vmem>>, vector<1x1x128xf32>
    %328 = vector.broadcast %327 : vector<1x1x128xf32> to vector<4x4x128xf32>
    %329 = arith.mulf %326, %328 : vector<4x4x128xf32>
    %cst_398 = arith.constant dense<0.000000e+00> : vector<4x4xf32>
    %330 = vector.multi_reduction <add>, %329, %cst_398 [2] : vector<4x4x128xf32> to vector<4x4xf32>
    %331 = vector.shape_cast %330 : vector<4x4xf32> to vector<4x4x1xf32>
    %332 = arith.addf %324, %331 : vector<4x4x1xf32>
    %c0_399 = arith.constant 0 : index
    %c0_400 = arith.constant 0 : index
    %c0_401 = arith.constant 0 : index
    %333 = vector.load %arg12[%c0_399, %c0_400, %c0_401] : memref<1x1x1xf32, #tpu.memory_space<vmem>>, vector<1x1x1xf32>
    %334 = vector.broadcast %333 : vector<1x1x1xf32> to vector<4x4x1xf32>
    %335 = arith.addf %332, %334 : vector<4x4x1xf32>
    %336 = vector.broadcast %335 : vector<4x4x1xf32> to vector<4x4x4xf32>
    %337 = arith.mulf %336, %317 : vector<4x4x4xf32>
    %cst_402 = arith.constant dense<0.000000e+00> : vector<4x4xf32>
    %338 = vector.multi_reduction <add>, %337, %cst_402 [0] : vector<4x4x4xf32> to vector<4x4xf32>
    %339 = vector.shape_cast %338 : vector<4x4xf32> to vector<1x4x4xf32>
    %cst_403 = arith.constant dense<0.000000e+00> : vector<1x4xf32>
    %340 = vector.multi_reduction <add>, %339, %cst_403 [1] : vector<1x4x4xf32> to vector<1x4xf32>
    %341 = vector.shape_cast %340 : vector<1x4xf32> to vector<1x1x4xf32>
    %cst_404 = arith.constant 4.000000e+00 : f32
    %342 = vector.broadcast %cst_404 : f32 to vector<1x1x4xf32>
    %343 = arith.divf %341, %342 : vector<1x1x4xf32>
    %cst_405 = arith.constant dense<0xFF800000> : vector<1x1xf32>
    %344 = vector.multi_reduction <maximumf>, %343, %cst_405 [2] : vector<1x1x4xf32> to vector<1x1xf32>
    %345 = vector.shape_cast %344 : vector<1x1xf32> to vector<1x1x1xf32>
    %346 = vector.broadcast %345 : vector<1x1x1xf32> to vector<1x1x4xf32>
    %347 = arith.subf %343, %346 : vector<1x1x4xf32>
    %348 = math.exp %347 : vector<1x1x4xf32>
    %cst_406 = arith.constant dense<0.000000e+00> : vector<1x1xf32>
    %349 = vector.multi_reduction <add>, %348, %cst_406 [2] : vector<1x1x4xf32> to vector<1x1xf32>
    %350 = vector.shape_cast %349 : vector<1x1xf32> to vector<1x1x1xf32>
    %351 = tpu.reciprocal %350 {approx = true} : vector<1x1x1xf32> -> vector<1x1x1xf32>
    %352 = arith.mulf %350, %351 : vector<1x1x1xf32>
    %cst_407 = arith.constant 2.000000e+00 : f32
    %353 = vector.broadcast %cst_407 : f32 to vector<1x1x1xf32>
    %354 = arith.subf %353, %352 : vector<1x1x1xf32>
    %355 = arith.mulf %351, %354 : vector<1x1x1xf32>
    %356 = vector.broadcast %355 : vector<1x1x1xf32> to vector<1x1x4xf32>
    %357 = arith.mulf %348, %356 : vector<1x1x4xf32>
    %c0_408 = arith.constant 0 : index
    %c0_409 = arith.constant 0 : index
    %c0_410 = arith.constant 0 : index
    %c0_411 = arith.constant 0 : index
    %358 = vector.load %arg13[%c0_408, %c0_409, %c0_410, %c0_411] : memref<1x1x1x4xf32, #tpu.memory_space<vmem>>, vector<1x1x1x4xf32>
    %359 = vector.shape_cast %358 : vector<1x1x1x4xf32> to vector<1x1x4xf32>
    %360 = vector.shape_cast %357 : vector<1x1x4xf32> to vector<1x1x1x4xf32>
    tpu.vector_store %arg13[%c0_408, %c0_409, %c0_410, %c0_411], %360 {strides = array<i32>} : memref<1x1x1x4xf32, #tpu.memory_space<vmem>>, vector<1x1x1x4xf32>,
    return
  }
  func.func @transform_0(%arg0: i32) -> (i32, i32, i32, i32) {
    %c0_i32 = arith.constant 0 : i32
    %c0_i32_0 = arith.constant 0 : i32
    %c0_i32_1 = arith.constant 0 : i32
    %c0_i32_2 = arith.constant 0 : i32
    return %arg0, %c0_i32, %c0_i32_0, %c0_i32_1 : i32, i32, i32, i32
  }
  func.func @transform_1(%arg0: i32) -> (i32, i32, i32, i32) {
    %c0_i32 = arith.constant 0 : i32
    %c0_i32_0 = arith.constant 0 : i32
    %c0_i32_1 = arith.constant 0 : i32
    %c0_i32_2 = arith.constant 0 : i32
    return %arg0, %c0_i32, %c0_i32_0, %c0_i32_1 : i32, i32, i32, i32
  }
  func.func @transform_2(%arg0: i32) -> (i32, i32, i32, i32) {
    %c0_i32 = arith.constant 0 : i32
    %c0_i32_0 = arith.constant 0 : i32
    %c0_i32_1 = arith.constant 0 : i32
    %c0_i32_2 = arith.constant 0 : i32
    return %arg0, %c0_i32, %c0_i32_0, %c0_i32_1 : i32, i32, i32, i32
  }
  func.func @transform_3(%arg0: i32) -> (i32, i32, i32) {
    %c0_i32 = arith.constant 0 : i32
    %c0_i32_0 = arith.constant 0 : i32
    %c0_i32_1 = arith.constant 0 : i32
    %c0_i32_2 = arith.constant 0 : i32
    return %c0_i32, %c0_i32_0, %c0_i32_1 : i32, i32, i32
  }
  func.func @transform_4(%arg0: i32) -> (i32, i32, i32) {
    %c0_i32 = arith.constant 0 : i32
    %c0_i32_0 = arith.constant 0 : i32
    %c0_i32_1 = arith.constant 0 : i32
    %c0_i32_2 = arith.constant 0 : i32
    return %c0_i32, %c0_i32_0, %c0_i32_1 : i32, i32, i32
  }
  func.func @transform_5(%arg0: i32) -> (i32, i32, i32) {
    %c0_i32 = arith.constant 0 : i32
    %c0_i32_0 = arith.constant 0 : i32
    %c0_i32_1 = arith.constant 0 : i32
    %c0_i32_2 = arith.constant 0 : i32
    return %c0_i32, %c0_i32_0, %c0_i32_1 : i32, i32, i32
  }
  func.func @transform_6(%arg0: i32) -> (i32, i32, i32) {
    %c0_i32 = arith.constant 0 : i32
    %c0_i32_0 = arith.constant 0 : i32
    %c0_i32_1 = arith.constant 0 : i32
    %c0_i32_2 = arith.constant 0 : i32
    return %c0_i32, %c0_i32_0, %c0_i32_1 : i32, i32, i32
  }
  func.func @transform_7(%arg0: i32) -> (i32, i32, i32) {
    %c0_i32 = arith.constant 0 : i32
    %c0_i32_0 = arith.constant 0 : i32
    %c0_i32_1 = arith.constant 0 : i32
    %c0_i32_2 = arith.constant 0 : i32
    return %c0_i32, %c0_i32_0, %c0_i32_1 : i32, i32, i32
  }
  func.func @transform_8(%arg0: i32) -> (i32, i32, i32) {
    %c0_i32 = arith.constant 0 : i32
    %c0_i32_0 = arith.constant 0 : i32
    %c0_i32_1 = arith.constant 0 : i32
    %c0_i32_2 = arith.constant 0 : i32
    return %c0_i32, %c0_i32_0, %c0_i32_1 : i32, i32, i32
  }
  func.func @transform_9(%arg0: i32) -> (i32, i32, i32) {
    %c0_i32 = arith.constant 0 : i32
    %c0_i32_0 = arith.constant 0 : i32
    %c0_i32_1 = arith.constant 0 : i32
    %c0_i32_2 = arith.constant 0 : i32
    return %c0_i32, %c0_i32_0, %c0_i32_1 : i32, i32, i32
  }
  func.func @transform_10(%arg0: i32) -> (i32, i32, i32) {
    %c0_i32 = arith.constant 0 : i32
    %c0_i32_0 = arith.constant 0 : i32
    %c0_i32_1 = arith.constant 0 : i32
    %c0_i32_2 = arith.constant 0 : i32
    return %c0_i32, %c0_i32_0, %c0_i32_1 : i32, i32, i32
  }
  func.func @transform_11(%arg0: i32) -> (i32, i32, i32) {
    %c0_i32 = arith.constant 0 : i32
    %c0_i32_0 = arith.constant 0 : i32
    %c0_i32_1 = arith.constant 0 : i32
    %c0_i32_2 = arith.constant 0 : i32
    return %c0_i32, %c0_i32_0, %c0_i32_1 : i32, i32, i32
  }
  func.func @transform_12(%arg0: i32) -> (i32, i32, i32, i32) {
    %c0_i32 = arith.constant 0 : i32
    %c0_i32_0 = arith.constant 0 : i32
    %c0_i32_1 = arith.constant 0 : i32
    %c0_i32_2 = arith.constant 0 : i32
    return %arg0, %c0_i32, %c0_i32_0, %c0_i32_1 : i32, i32, i32, i32
  }
}

</mosaic_0001>

<bundles_post_ra>
// kernel: tpu_custom_call.1
= control target key start
LH: loop header
LB: loop body
LE: loop exit
PB: predicated region body
PF: predicated region fallthrough
CT: control target
= control target key end

     0   :  { %s10275_s0 = inlined_call_operand.vmem [shape: f32[2,20,20,4], index: 0, kind: input, shape index: {}]   ;;  %s10276_s1 = inlined_call_operand.vmem [shape: f32[2,4,4,128], index: 1, kind: input, shape index: {}]   ;;  %s10277_s2 = inlined_call_operand.vmem [shape: f32[2,4,4,128], index: 2, kind: input, shape index: {}]   ;;  %s10278_s3 = inlined_call_operand.vmem [shape: f32[5,5,4], index: 3, kind: input, shape index: {}]   ;;  %s10279_s4 = inlined_call_operand.vmem [shape: f32[1,1,4], index: 4, kind: input, shape index: {}]   ;;  %s10280_s5 = inlined_call_operand.vmem [shape: f32[5,5,4], index: 5, kind: input, shape index: {}]   ;;  %s10281_s6 = inlined_call_operand.vmem [shape: f32[1,1,4], index: 6, kind: input, shape index: {}]   ;;  %s10282_s7 = inlined_call_operand.vmem [shape: f32[1,1,4], index: 7, kind: input, shape index: {}]   ;;  %s10283_s8 = inlined_call_operand.vmem [shape: f32[1,1,4], index: 8, kind: input, shape index: {}]   ;;  %s10284_s9 = inlined_call_operand.vmem [shape: f32[1,1,128], index: 9, kind: input, shape index: {}]   ;;  %s10285_s10 = inlined_call_operand.vmem [shape: f32[1,1,128], index: 10, kind: input, shape index: {}]   ;;  %s10286_s11 = inlined_call_operand.<no memory space> [shape: f32[1,1,1], index: 11, kind: input, shape index: {}]   ;;  %s10287_s12 = inlined_call_operand.hbm [shape: f32[2,1,1,4], index: 12, kind: output, shape index: {}]  }
   0x1   :  { %v17_v0 = vstv %s10286_s11 }
   0x2   :  { %18 = vst [vmem:[#allocation5] sm:$0x1] %v17_v0 }
   0x3   :  { %19 = vsyncpa [#allocation7], 0 }
   0x4   :  { %21 = vsyncpa [#allocation7 + $0x1], 0  ;;  %s5223_s23 = smov 0   ;;  %s5225_s24 = smov 0  }
   0x5   :  { %s5227_s25 = smov 0   ;;  %s5229_s26 = smov 0  }
   0x6 LB: > { %10633 = sst [smem:[#allocation9_spill]] %s5146_s25  ;;  %s5244_s11 = sadd.s32 4294967295, %s5150_s26   ;;  %s5150_s26 = sphi %s5229_s26, %s11919_s26   ;;  %s5146_s25 = sphi %s5227_s25, %s11916_s25   ;;  %s5142_s24 = sphi %s5225_s24, %s11918_s24   ;;  %s5138_s23 = sphi %s5223_s23, %s11917_s23  }
   0x7   : > { %s4289_s27 = sadd.s32 4294967294, %s5150_s26   ;;  %s5248_s28 = sadd.s32 1, %s5150_s26  }
   0x8   : > { %s301_s29 = sadd.s32 1, %s5146_s25  ;;  %s298_s30 = ssub.s32 %s5150_s26, %s5248_s28 }
   0x9   : > { %p311_p0 = scmp.ne.s32.totalorder %s5146_s25, %s5142_s24  ;;  %p299_p1 = scmp.eq.s32.totalorder %s298_s30, 0 }
   0xa   : > { %p312_p2 = scmp.eq.s32.totalorder %s5244_s11, 1  ;;  %p317_p3 = scmp.ne.s32.totalorder %s5142_s24, %s5138_s23 }
   0xb   : > { %p318_p4 = scmp.eq.s32.totalorder %s4289_s27, 1  ;;  %p4292_p7 = scmp.ge.s32.totalorder %s5150_s26, 1 }
   0xc   : > { %s5259_s13 = scalar_select %p299_p1, %s5146_s25, %s301_s29  }
   0xd   : > { %p5261_p5 = por %p312_p2, %p311_p0  ;;  %p5265_p6 = por %p318_p4, %p317_p3 }
   0xe   : > { %10634 = sst [smem:[#allocation10_spill]] %s5259_s13  ;;  %p387_p8 = scmp.lt.s32.totalorder %s5150_s26, 3 }
  0x10   : > { %p388_p9 = pnand %p4292_p7, %p387_p8 }
  0x12   : > { %391 = sbr.rel (%p388_p9) target bundleno = 1052 (0x41c), region = 68 }
  0x19   : > { %p438_p10 = scmp.lt.s32.totalorder %s5244_s11, 1  ;;  %v5033_v1 = vld [vmem:[%s10285_s10] ss:$0 sm:$0xff]  ;;  %vm4064_vm0 = vcmask 1043456   ;;  %v5152_v31 = vmov 0   ;;  %vm3057_vm1 = vcmask 31744  }
  0x1a   : > { %v5032_v2 = vld [vmem:[%s10284_s9] ss:$0 sm:$0xff]  ;;  %5082 = vset.pattern.permute.xlu0 %v5152_v31  ;;  %5083 = vset.pattern.permute.xlu1 %v5152_v31  ;;  %vm3178_vm2 = vcmask 27648   ;;  %vm3187_vm3 = vcmask 25600   ;;  %s436_s22 = sand.u32 1, %s5142_s24   ;;  %s5035_s27 = sshll.u32 %s5244_s11, 4 }
  0x1b   : > { %s5273_s16 = scalar_select %p438_p10, %s5244_s11, 1  ;;  %v5328_v37 = vld [vmem:[%s10278_s3] ss:$0 sm:$0xff]  ;;  %vm4173_vm4 = vcmask 24576  }
  0x1c   : > { %s4176_s18 = scalar_lea.sflag [#allocation7], %s436_s22  ;;  %s5154_s11 = smov [#allocation6]  }
  0x1d   : > { %s5038_s17 = sshll.u32 %s5273_s16, 4  ;;  %s5040_s13 = smul.u32 480, %s5273_s16 }
  0x1e   : > { %s452_s29 = scalar_lea.vmem %s10277_s2, %s5038_s17  ;;  %s447_s25 = scalar_lea.vmem %s10276_s1, %s5038_s17 }
  0x1f   : > { %v4077_v3 = vld [vmem:[%s452_s29] sm:$0xf]  ;;  %v4078_v5 = vld [vmem:[%s452_s29 + $0x4] sm:$0xf]  ;;  %v4079_v11 = vld [vmem:[%s452_s29 + $0x8] sm:$0xf]  ;;  %s5300_s19 = scalar_lea.vmem %s10275_s0, %s5040_s13  ;;  %s10233_s17 = scalar_lea.hbm %s10287_s12, %s5035_s27 }
  0x20   : > { %v4049_v4 = vld [vmem:[%s447_s25] sm:$0xf]  ;;  %v4088_v6 = vmul.f32 %v5033_v1, %v4077_v3  ;;  %v4089_v8 = vmul.f32 %v5033_v1, %v4078_v5  ;;  %v4050_v9 = vld [vmem:[%s447_s25 + $0x4] sm:$0xf]  ;;  %v4051_v12 = vld [vmem:[%s447_s25 + $0x8] sm:$0xf]  ;;  %v4090_v17 = vmul.f32 %v5033_v1, %v4079_v11 }
  0x21   : > { %v4060_v7 = vmul.f32 %v5032_v2, %v4049_v4  ;;  %v4061_v10 = vmul.f32 %v5032_v2, %v4050_v9  ;;  %v4062_v18 = vmul.f32 %v5032_v2, %v4051_v12  ;;  %v4080_v19 = vld [vmem:[%s452_s29 + $0xc] sm:$0xf]  ;;  %v453_v27 = vld [vmem:[%s5300_s19] sm:$0xff]  ;;  %v5305_v29 = vld [vmem:[%s5300_s19 + $0x18] sm:$0xff]  ;;  %s5092_s16 = sshll.u32 %s5154_s11, 4  ;;  %s5093_s16 = int_to_ptr.vmem [resolvable:$false] %s5092_s16 }
  0x22   : > { %v4092_v13 = vsel %vm4064_vm0, %v4088_v6, 0.0  ;;  %v4095_v15 = vsel %vm4064_vm0, %v4089_v8, 0.0  ;;  %v4052_v20 = vld [vmem:[%s447_s25 + $0xc] sm:$0xf]  ;;  %v4098_v21 = vsel %vm4064_vm0, %v4090_v17, 0.0  ;;  %v4091_v23 = vmul.f32 %v5033_v1, %v4080_v19  ;;  %10637 = vst [vmem:[#allocation11_spill] sm:$0xff] %v5305_v29 }
  0x23   : > { %v4065_v14 = vsel %vm4064_vm0, %v4060_v7, 0.0  ;;  %4093 = vadd.xlane.f32.xlu1 %v4092_v13  ;;  %v4068_v16 = vsel %vm4064_vm0, %v4061_v10, 0.0  ;;  %v4071_v22 = vsel %vm4064_vm0, %v4062_v18, 0.0  ;;  %v4063_v24 = vmul.f32 %v5032_v2, %v4052_v20  ;;  %v454_v28 = vld [vmem:[%s5300_s19 + $0x8] sm:$0xff]  ;;  %v5308_v30 = vld [vmem:[%s5300_s19 + $0x20] sm:$0xff]  ;;  %v5311_v32 = vld [vmem:[%s5300_s19 + $0x30] sm:$0xff] }
  0x24   : > { %4066 = vadd.xlane.f32.xlu0 %v4065_v14  ;;  %v4101_v25 = vsel %vm4064_vm0, %v4091_v23, 0.0  ;;  %10638 = vst [vmem:[#allocation12_spill] sm:$0xff] %v5308_v30  ;;  %10639 = vst [vmem:[#allocation13_spill] sm:$0xff] %v5311_v32  ;;  %v5314_v33 = vld [vmem:[%s5300_s19 + $0x38] sm:$0xff]  ;;  %v5317_v34 = vld [vmem:[%s5300_s19 + $0x48] sm:$0xff]  ;;  %v5358_v47 = vmul.f32 %v5328_v37, %v453_v27  ;;  %v5361_v48 = vmul.f32 %v5328_v37, %v454_v28  ;;  %s5094_s20 = scalar_lea.vmem %s5093_s16, 32 }
  0x25   : > { %v4074_v26 = vsel %vm4064_vm0, %v4063_v24, 0.0  ;;  %10640 = vst [vmem:[#allocation14_spill] sm:$0xff] %v5314_v33  ;;  %10641 = vst [vmem:[#allocation15_spill] sm:$0xff] %v5317_v34  ;;  %v5320_v35 = vld [vmem:[%s5300_s19 + $0x50] sm:$0xff]  ;;  %v5323_v36 = vld [vmem:[%s5300_s19 + $0x60] sm:$0xff]  ;;  %v5365_v49 = vmul.f32 %v5328_v37, %v5305_v29  ;;  %v5369_v50 = vmul.f32 %v5328_v37, %v5308_v30  ;;  %v5382_v54 = vmul.f32 %v5328_v37, %v5311_v32 }
  0x26   : > { %10642 = vst [vmem:[#allocation16_spill] sm:$0xff] %v5320_v35  ;;  %10643 = vst [vmem:[#allocation17_spill] sm:$0xff] %v5323_v36  ;;  %v5331_v38 = vld [vmem:[%s5300_s19 + $0x68] sm:$0xff]  ;;  %v5334_v39 = vld [vmem:[%s5300_s19 + $0x78] sm:$0xff]  ;;  %v5386_v55 = vmul.f32 %v5328_v37, %v5314_v33  ;;  %v5390_v56 = vmul.f32 %v5328_v37, %v5317_v34  ;;  %v5394_v57 = vmul.f32 %v5328_v37, %v5320_v35 }
  0x27   : > { %4096 = vadd.xlane.f32.xlu1 %v4095_v15  ;;  %10644 = vst [vmem:[#allocation18_spill] sm:$0xff] %v5331_v38  ;;  %10645 = vst [vmem:[#allocation19_spill] sm:$0xff] %v5334_v39  ;;  %v5337_v40 = vld [vmem:[%s5300_s19 + $0x80] sm:$0xff]  ;;  %v5340_v41 = vld [vmem:[%s5300_s19 + $0x90] sm:$0xff]  ;;  %v5407_v61 = vmul.f32 %v5328_v37, %v5323_v36  ;;  %v5411_v62 = vmul.f32 %v5328_v37, %v5331_v38  ;;  %v5415_v63 = vmul.f32 %v5328_v37, %v5334_v39 }
  0x28   : > { %4069 = vadd.xlane.f32.xlu0 %v4068_v16  ;;  %10646 = vst [vmem:[#allocation20_spill] sm:$0xff] %v5337_v40  ;;  %10647 = vst [vmem:[#allocation21_spill] sm:$0xff] %v5340_v41  ;;  %v5343_v42 = vld [vmem:[%s5300_s19 + $0x98] sm:$0xff]  ;;  %v5346_v43 = vld [vmem:[%s5300_s19 + $0xa8] sm:$0xff]  ;;  %v5419_v0 = vmul.f32 %v5328_v37, %v5337_v40  ;;  %v5440_v8 = vmul.f32 %v5328_v37, %v5340_v41 }
  0x29   : > { %10648 = vst [vmem:[#allocation22_spill] sm:$0xff] %v5343_v42  ;;  %10649 = vst [vmem:[#allocation23_spill] sm:$0xff] %v5346_v43  ;;  %v5349_v44 = vld [vmem:[%s5300_s19 + $0xb0] sm:$0xff]  ;;  %v5352_v45 = vld [vmem:[%s5300_s19 + $0xc0] sm:$0xff]  ;;  %v5444_v9 = vmul.f32 %v5328_v37, %v5343_v42  ;;  %v5448_v10 = vmul.f32 %v5328_v37, %v5346_v43 }
  0x2a   : > { %10650 = vst [vmem:[#allocation24_spill] sm:$0xff] %v5349_v44  ;;  %10651 = vst [vmem:[#allocation25_spill] sm:$0xff] %v5352_v45  ;;  %v5355_v46 = vld [vmem:[%s5300_s19 + $0xc8] sm:$0xff]  ;;  %v5372_v51 = vld [vmem:[%s5300_s19 + $0xd8] sm:$0xff]  ;;  %v5452_v11 = vmul.f32 %v5328_v37, %v5349_v44  ;;  %v5471_v17 = vmul.f32 %v5328_v37, %v5352_v45 }
  0x2b   : > { %4099 = vadd.xlane.f32.xlu1 %v4098_v21  ;;  %10652 = vst [vmem:[#allocation26_spill] sm:$0xff] %v5355_v46  ;;  %10653 = vst [vmem:[#allocation27_spill] sm:$0xff] %v5372_v51  ;;  %v5375_v52 = vld [vmem:[%s5300_s19 + $0xe0] sm:$0xff]  ;;  %v5378_v53 = vld [vmem:[%s5300_s19 + $0xf0] sm:$0xff]  ;;  %v5475_v18 = vmul.f32 %v5328_v37, %v5355_v46  ;;  %v5479_v19 = vmul.f32 %v5328_v37, %v5372_v51 }
  0x2c   : > { %4072 = vadd.xlane.f32.xlu0 %v4071_v22  ;;  %10654 = vst [vmem:[#allocation28_spill] sm:$0xff] %v5375_v52  ;;  %10655 = vst [vmem:[#allocation29_spill] sm:$0xff] %v5378_v53  ;;  %v5397_v58 = vld [vmem:[%s5300_s19 + $0xf8] sm:$0xff]  ;;  %v5400_v59 = vld [vmem:[%s5300_s19 + $0x108] sm:$0xff]  ;;  %v5483_v20 = vmul.f32 %v5328_v37, %v5375_v52  ;;  %v5496_v24 = vmul.f32 %v5328_v37, %v5378_v53 }
  0x2d   : > { %10656 = vst [vmem:[#allocation30_spill] sm:$0xff] %v5397_v58  ;;  %10657 = vst [vmem:[#allocation31_spill] sm:$0xff] %v5400_v59  ;;  %v5403_v60 = vld [vmem:[%s5300_s19 + $0x110] sm:$0xff]  ;;  %v554_v1 = vld [vmem:[%s5300_s19 + $0x1] sm:$0xff] }
  0x2e   : > { %10658 = vst [vmem:[#allocation32_spill] sm:$0xff] %v5403_v60  ;;  %v555_v2 = vld [vmem:[%s5300_s19 + $0x9] sm:$0xff]  ;;  %v5424_v3 = vld [vmem:[%s5300_s19 + $0x19] sm:$0xff]  ;;  %v5427_v4 = vld [vmem:[%s5300_s19 + $0x21] sm:$0xff]  ;;  %v5508_v27 = vmul.f32 %v5328_v37, %v5403_v60 }
  0x2f   : > { %4102 = vadd.xlane.f32.xlu1 %v4101_v25  ;;  %10659 = vst [vmem:[#allocation33_spill] sm:$0xff] %v5424_v3  ;;  %10660 = vst [vmem:[#allocation34_spill] sm:$0xff] %v5427_v4  ;;  %v5430_v5 = vld [vmem:[%s5300_s19 + $0x120] sm:$0xff]  ;;  %v5433_v6 = vld [vmem:[%s5300_s19 + $0x128] sm:$0xff]  ;;  %v5500_v25 = vmul.f32 %v5328_v37, %v5397_v58 }
  0x30   : > { %4075 = vadd.xlane.f32.xlu0 %v4074_v26  ;;  %10661 = vst [vmem:[#allocation35_spill] sm:$0xff] %v5430_v5  ;;  %10662 = vst [vmem:[#allocation36_spill] sm:$0xff] %v5433_v6  ;;  %v5436_v7 = vld [vmem:[%s5300_s19 + $0x138] sm:$0xff]  ;;  %v5461_v14 = vld [vmem:[%s5300_s19 + $0x49] sm:$0xff]  ;;  %v5504_v26 = vmul.f32 %v5328_v37, %v5400_v59  ;;  %v5521_v58 = vmul.f32 %v5328_v37, %v5430_v5  ;;  %v5525_v59 = vmul.f32 %v5328_v37, %v5433_v6 }
  0x31   : > { %10663 = vst [vmem:[#allocation37_spill] sm:$0xff] %v5436_v7  ;;  %v5455_v12 = vld [vmem:[%s5300_s19 + $0x31] sm:$0xff]  ;;  %v5458_v13 = vld [vmem:[%s5300_s19 + $0x39] sm:$0xff]  ;;  %10666 = vst [vmem:[#allocation40_spill] sm:$0xff] %v5461_v14  ;;  %v5529_v60 = vmul.f32 %v5328_v37, %v5436_v7 }
  0x32   : > { %10664 = vst [vmem:[#allocation38_spill] sm:$0xff] %v5455_v12  ;;  %10665 = vst [vmem:[#allocation39_spill] sm:$0xff] %v5458_v13  ;;  %v5464_v15 = vld [vmem:[%s5300_s19 + $0x51] sm:$0xff]  ;;  %v5467_v16 = vld [vmem:[%s5300_s19 + $0x140] sm:$0xff] }
  0x33   : > { %10667 = vst [vmem:[#allocation41_spill] sm:$0xff] %v5464_v15  ;;  %10668 = vst [vmem:[#allocation42_spill] sm:$0xff] %v5467_v16  ;;  %v5486_v21 = vld [vmem:[%s5300_s19 + $0x61] sm:$0xff]  ;;  %v5489_v22 = vld [vmem:[%s5300_s19 + $0x69] sm:$0xff]  ;;  %v5533_v52 = vmul.f32 %v5328_v37, %v5467_v16 }
  0x34   : > { %10669 = vst [vmem:[#allocation43_spill] sm:$0xff] %v5483_v20  ;;  %10670 = vst [vmem:[#allocation44_spill] sm:$0xff] %v5486_v21  ;;  %v5492_v23 = vld [vmem:[%s5300_s19 + $0x79] sm:$0xff]  ;;  %v5511_v28 = vld [vmem:[%s5300_s19 + $0x81] sm:$0xff] }
  0x35   : > { %10671 = vst [vmem:[#allocation45_spill] sm:$0xff] %v5489_v22  ;;  %10672 = vst [vmem:[#allocation46_spill] sm:$0xff] %v5492_v23  ;;  %v5514_v31 = vld [vmem:[%s5300_s19 + $0x91] sm:$0xff]  ;;  %v5517_v53 = vld [vmem:[%s5300_s19 + $0x99] sm:$0xff] }
  0x36   : > { %10673 = vst [vmem:[#allocation47_spill] sm:$0xff] %v5496_v24  ;;  %10674 = vst [vmem:[#allocation48_spill] sm:$0xff] %v5500_v25  ;;  %v5536_v51 = vld [vmem:[%s5300_s19 + $0xa9] sm:$0xff]  ;;  %v5539_v46 = vld [vmem:[%s5300_s19 + $0xb1] sm:$0xff] }
  0x37   : > { %10675 = vst [vmem:[#allocation49_spill] sm:$0xff] %v5504_v26  ;;  %10676 = vst [vmem:[#allocation50_spill] sm:$0xff] %v5508_v27  ;;  %v4299_v5 = vld [vmem:[%s10278_s3 + $0x1] ss:$0 sm:$0xff]  ;;  %v5548_v45 = vld [vmem:[%s5300_s19 + $0xc9] sm:$0xff] }
  0x38   : > { %10677 = vst [vmem:[#allocation51_spill] sm:$0xff] %v5511_v28  ;;  %10678 = vst [vmem:[#allocation52_spill] sm:$0xff] %v5514_v31  ;;  %v5545_v6 = vld [vmem:[%s5300_s19 + $0xc1] sm:$0xff]  ;;  %v5551_v7 = vld [vmem:[%s5300_s19 + $0xd9] sm:$0xff]  ;;  %v591_v44 = vmul.f32 %v4299_v5, %v554_v1  ;;  %v592_v16 = vmul.f32 %v4299_v5, %v555_v2  ;;  %v593_v43 = vmul.f32 %v4299_v5, %v5424_v3 }
  0x39   : > { %10679 = vst [vmem:[#allocation53_spill] sm:$0xff] %v5517_v53  ;;  %10680 = vst [vmem:[#allocation54_spill] sm:$0xff] %v5521_v58  ;;  %v594_v42 = vmul.f32 %v4299_v5, %v5427_v4  ;;  %v5556_v41 = vld [vmem:[%s5300_s19 + $0xe1] sm:$0xff]  ;;  %v5559_v40 = vld [vmem:[%s5300_s19 + $0xf1] sm:$0xff]  ;;  %v595_v38 = vmul.f32 %v4299_v5, %v5455_v12  ;;  %v596_v36 = vmul.f32 %v4299_v5, %v5458_v13 }
  0x3a   : > { %10681 = vst [vmem:[#allocation55_spill] sm:$0xff] %v5525_v59  ;;  %10682 = vst [vmem:[#allocation56_spill] sm:$0xff] %v5529_v60  ;;  %v5562_v39 = vld [vmem:[%s5300_s19 + $0xf9] sm:$0xff]  ;;  %v597_v1 = vmul.f32 %v4299_v5, %v5461_v14  ;;  %v598_v2 = vmul.f32 %v4299_v5, %v5464_v15  ;;  %v5569_v3 = vld [vmem:[%s5300_s19 + $0x109] sm:$0xff]  ;;  %v599_v34 = vmul.f32 %v4299_v5, %v5486_v21 }
  0x3b   : > { %10683 = vst [vmem:[#allocation57_spill] sm:$0xff] %v5533_v52  ;;  %10684 = vst [vmem:[#allocation58_spill] sm:$0xff] %v5536_v51  ;;  %v5572_v35 = vld [vmem:[%s5300_s19 + $0x111] sm:$0xff]  ;;  %v5575_v4 = vld [vmem:[%s5300_s19 + $0x121] sm:$0xff]  ;;  %v600_v33 = vmul.f32 %v4299_v5, %v5489_v22  ;;  %v601_v12 = vmul.f32 %v4299_v5, %v5492_v23  ;;  %v602_v13 = vmul.f32 %v4299_v5, %v5511_v28 }
  0x3c   : > { %10685 = vst [vmem:[#allocation59_spill] sm:$0xff] %v5539_v46  ;;  %10686 = vst [vmem:[#allocation60_spill] sm:$0xff] %v5545_v6  ;;  %v5582_v32 = vld [vmem:[%s5300_s19 + $0x129] sm:$0xff]  ;;  %v5585_v14 = vld [vmem:[%s5300_s19 + $0x139] sm:$0xff]  ;;  %v603_v30 = vmul.f32 %v4299_v5, %v5514_v31  ;;  %v604_v21 = vmul.f32 %v4299_v5, %v5517_v53  ;;  %v605_v29 = vmul.f32 %v4299_v5, %v5536_v51 }
  0x3d   : > { %10687 = vst [vmem:[#allocation61_spill] sm:$0xff] %v5548_v45  ;;  %10688 = vst [vmem:[#allocation62_spill] sm:$0xff] %v5551_v7  ;;  %v5588_v15 = vld [vmem:[%s5300_s19 + $0x141] sm:$0xff]  ;;  %v606_v22 = vmul.f32 %v4299_v5, %v5539_v46  ;;  %v607_v23 = vmul.f32 %v4299_v5, %v5545_v6  ;;  %v608_v28 = vmul.f32 %v4299_v5, %v5548_v45  ;;  %v5599_v59 = vld [vmem:[%s5300_s19 + $0x150] sm:$0xff] }
  0x3e   : > { %10689 = vst [vmem:[#allocation63_spill] sm:$0xff] %v5556_v41  ;;  %10690 = vst [vmem:[#allocation64_spill] sm:$0xff] %v5559_v40  ;;  %v609_v52 = vmul.f32 %v4299_v5, %v5551_v7  ;;  %v610_v60 = vmul.f32 %v4299_v5, %v5556_v41  ;;  %v5602_v58 = vld [vmem:[%s5300_s19 + $0x158] sm:$0xff]  ;;  %v611_v31 = vmul.f32 %v4299_v5, %v5559_v40  ;;  %v5609_v45 = vld [vmem:[%s5300_s19 + $0x168] sm:$0xff] }
  0x3f   : > { %10691 = vst [vmem:[#allocation65_spill] sm:$0xff] %v5562_v39  ;;  %10692 = vst [vmem:[#allocation66_spill] sm:$0xff] %v5569_v3  ;;  %v612_v51 = vmul.f32 %v4299_v5, %v5562_v39  ;;  %v613_v46 = vmul.f32 %v4299_v5, %v5569_v3  ;;  %v614_v6 = vmul.f32 %v4299_v5, %v5572_v35  ;;  %v5612_v7 = vld [vmem:[%s5300_s19 + $0x170] sm:$0xff]  ;;  %v5630_v24 = vld [vmem:[%s5300_s19 + $0x159] sm:$0xff] }
  0x40   : > { %10693 = vst [vmem:[#allocation67_spill] sm:$0xff] %v5572_v35  ;;  %10694 = vst [vmem:[#allocation68_spill] sm:$0xff] %v5575_v4  ;;  %v5615_v41 = vld [vmem:[%s5300_s19 + $0x151] sm:$0xff]  ;;  %v615_v53 = vmul.f32 %v4299_v5, %v5575_v4  ;;  %v616_v27 = vmul.f32 %v4299_v5, %v5582_v32  ;;  %v617_v40 = vmul.f32 %v4299_v5, %v5585_v14  ;;  %v5633_v4 = vld [vmem:[%s5300_s19 + $0x169] sm:$0xff] }
  0x41   : > { %10695 = vst [vmem:[#allocation69_spill] sm:$0xff] %v5582_v32  ;;  %10696 = vst [vmem:[#allocation70_spill] sm:$0xff] %v5585_v14  ;;  %v618_v26 = vmul.f32 %v4299_v5, %v5588_v15  ;;  %v518_v39 = vmul.f32 %v5328_v37, %v5599_v59  ;;  %v519_v35 = vmul.f32 %v5328_v37, %v5602_v58  ;;  %v5636_v32 = vld [vmem:[%s5300_s19 + $0x171] sm:$0xff] }
  0x42   : > { %10697 = vst [vmem:[#allocation71_spill] sm:$0xff] %v5588_v15  ;;  %10698 = vst [vmem:[#allocation72_spill] sm:$0xff] %v5599_v59  ;;  %v520_v3 = vmul.f32 %v5328_v37, %v5609_v45  ;;  %v521_v25 = vmul.f32 %v5328_v37, %v5612_v7  ;;  %v619_v15 = vmul.f32 %v4299_v5, %v5615_v41 }
  0x43   : > { %10699 = vst [vmem:[#allocation73_spill] sm:$0xff] %v5602_v58  ;;  %10700 = vst [vmem:[#allocation74_spill] sm:$0xff] %v5609_v45  ;;  %v620_v14 = vmul.f32 %v4299_v5, %v5630_v24  ;;  %v621_v59 = vmul.f32 %v4299_v5, %v5633_v4  ;;  %v622_v58 = vmul.f32 %v4299_v5, %v5636_v32 }
  0x44   : > { %10701 = vst [vmem:[#allocation75_spill] sm:$0xff] %v5612_v7  ;;  %10702 = vst [vmem:[#allocation76_spill] sm:$0xff] %v5615_v41  ;;  %v5643_v20 = vadd.f32 %v591_v44, %v5358_v47  ;;  %v5646_v37 = vadd.f32 %v592_v16, %v5361_v48  ;;  %v5649_v7 = vadd.f32 %v593_v43, %v5365_v49  ;;  %v10718_v16 = vld [vmem:[#allocation50_spill] sm:$0xff] }
  0x45   : > { %10703 = vst [vmem:[#allocation77_spill] sm:$0xff] %v5630_v24  ;;  %10704 = vst [vmem:[#allocation78_spill] sm:$0xff] %v5633_v4  ;;  %v5652_v41 = vadd.f32 %v594_v42, %v5369_v50  ;;  %v5655_v4 = vadd.f32 %v595_v38, %v5382_v54  ;;  %v5658_v5 = vadd.f32 %v596_v36, %v5386_v55  ;;  %v655_v50 = vld [vmem:[%s5300_s19 + $0x2] sm:$0xff]  ;;  %v656_v54 = vld [vmem:[%s5300_s19 + $0xa] sm:$0xff] }
  0x46   : > { %10705 = vst [vmem:[#allocation79_spill] sm:$0xff] %v5636_v32  ;;  %v5661_v44 = vadd.f32 %v597_v1, %v5390_v56  ;;  %v5664_v47 = vadd.f32 %v598_v2, %v5394_v57  ;;  %v5667_v43 = vadd.f32 %v599_v34, %v5407_v61  ;;  %v5670_v42 = vadd.f32 %v600_v33, %v5411_v62  ;;  %v5693_v55 = vld [vmem:[%s5300_s19 + $0x1a] sm:$0xff]  ;;  %v5696_v56 = vld [vmem:[%s5300_s19 + $0x22] sm:$0xff]  ;;  %v5815_v24 = vld [vmem:[%s5300_s19 + $0x12a] sm:$0xff] }
  0x47   : > { %v5673_v38 = vadd.f32 %v601_v12, %v5415_v63  ;;  %v5676_v36 = vadd.f32 %v602_v13, %v5419_v0  ;;  %v5679_v48 = vadd.f32 %v603_v30, %v5440_v8  ;;  %v5682_v49 = vadd.f32 %v604_v21, %v5444_v9  ;;  %10706 = vst [vmem:[#allocation80_spill] sm:$0xff] %v5693_v55  ;;  %v10708_v61 = vld [vmem:[#allocation43_spill] sm:$0xff]  ;;  %v5711_v63 = vld [vmem:[%s5300_s19 + $0x32] sm:$0xff]  ;;  %v5714_v0 = vld [vmem:[%s5300_s19 + $0x3a] sm:$0xff] }
  0x48   : > { %v5685_v34 = vadd.f32 %v605_v29, %v5448_v10  ;;  %v5688_v33 = vadd.f32 %v606_v22, %v5452_v11  ;;  %10707 = vst [vmem:[#allocation81_spill] sm:$0xff] %v5696_v56  ;;  %v5699_v30 = vadd.f32 %v607_v23, %v5471_v17  ;;  %v5702_v57 = vadd.f32 %v608_v28, %v5475_v18  ;;  %v5717_v8 = vld [vmem:[%s5300_s19 + $0x4a] sm:$0xff]  ;;  %v5720_v9 = vld [vmem:[%s5300_s19 + $0x52] sm:$0xff]  ;;  %v5735_v18 = vld [vmem:[%s5300_s19 + $0x62] sm:$0xff] }
  0x49   : > { %v5705_v29 = vadd.f32 %v609_v52, %v5479_v19  ;;  %v5708_v62 = vadd.f32 %v610_v60, %v10708_v61  ;;  %10709 = vst [vmem:[#allocation43_spill] sm:$0xff] %v5711_v63  ;;  %10710 = vst [vmem:[#allocation82_spill] sm:$0xff] %v5714_v0  ;;  %v10713_v10 = vld [vmem:[#allocation47_spill] sm:$0xff]  ;;  %v10714_v12 = vld [vmem:[#allocation48_spill] sm:$0xff]  ;;  %v5732_v17 = vadd.f32 %v614_v6, %v10718_v16 }
  0x4a   : > { %10711 = vst [vmem:[#allocation83_spill] sm:$0xff] %v5717_v8  ;;  %10712 = vst [vmem:[#allocation84_spill] sm:$0xff] %v5720_v9  ;;  %v5723_v11 = vadd.f32 %v611_v31, %v10713_v10  ;;  %v5726_v52 = vadd.f32 %v612_v51, %v10714_v12  ;;  %v10716_v13 = vld [vmem:[#allocation49_spill] sm:$0xff]  ;;  %v5738_v19 = vld [vmem:[%s5300_s19 + $0x6a] sm:$0xff] }
  0x4b   : > { %v5729_v60 = vadd.f32 %v613_v46, %v10716_v13  ;;  %10719 = vst [vmem:[#allocation49_spill] sm:$0xff] %v5732_v17  ;;  %10720 = vst [vmem:[#allocation50_spill] sm:$0xff] %v5735_v18  ;;  %v5741_v21 = vld [vmem:[%s5300_s19 + $0x7a] sm:$0xff]  ;;  %v4300_v51 = vld [vmem:[%s10278_s3 + $0x2] ss:$0 sm:$0xff]  ;;  %v5769_v13 = vadd.f32 %v620_v14, %v519_v35 }
  0x4c   : > { %10715 = vst [vmem:[#allocation47_spill] sm:$0xff] %v5726_v52  ;;  %10721 = vst [vmem:[#allocation85_spill] sm:$0xff] %v5738_v19  ;;  %v10723_v22 = vld [vmem:[#allocation54_spill] sm:$0xff]  ;;  %v10725_v6 = vld [vmem:[#allocation55_spill] sm:$0xff]  ;;  %v692_v35 = vmul.f32 %v4300_v51, %v655_v50  ;;  %v697_v32 = vmul.f32 %v4300_v51, %v5714_v0  ;;  %v698_v50 = vmul.f32 %v4300_v51, %v5717_v8 }
  0x4d   : > { %10717 = vst [vmem:[#allocation48_spill] sm:$0xff] %v5729_v60  ;;  %10722 = vst [vmem:[#allocation86_spill] sm:$0xff] %v5741_v21  ;;  %v5747_v46 = vadd.f32 %v615_v53, %v10723_v22  ;;  %v5750_v23 = vadd.f32 %v616_v27, %v10725_v6  ;;  %v10727_v28 = vld [vmem:[#allocation56_spill] sm:$0xff]  ;;  %v10729_v1 = vld [vmem:[#allocation57_spill] sm:$0xff]  ;;  %v5767_v53 = vadd.f32 %v619_v15, %v518_v39 }
  0x4e   : > { %v5753_v31 = vadd.f32 %v617_v40, %v10727_v28  ;;  %v5756_v2 = vadd.f32 %v618_v26, %v10729_v1  ;;  %v5759_v61 = vld [vmem:[%s5300_s19 + $0x82] sm:$0xff]  ;;  %v5762_v10 = vld [vmem:[%s5300_s19 + $0x92] sm:$0xff]  ;;  %v5765_v12 = vld [vmem:[%s5300_s19 + $0x9a] sm:$0xff]  ;;  %10735 = vst [vmem:[#allocation91_spill] sm:$0xff] %v5769_v13  ;;  %v5771_v27 = vadd.f32 %v621_v59, %v520_v3  ;;  %v5773_v40 = vadd.f32 %v622_v58, %v521_v25 }
  0x4f   : > { %10724 = vst [vmem:[#allocation54_spill] sm:$0xff] %v5747_v46  ;;  %10726 = vst [vmem:[#allocation55_spill] sm:$0xff] %v5750_v23  ;;  %v5776_v16 = vld [vmem:[%s5300_s19 + $0xaa] sm:$0xff]  ;;  %v5779_v26 = vld [vmem:[%s5300_s19 + $0xb2] sm:$0xff]  ;;  %v693_v59 = vmul.f32 %v4300_v51, %v656_v54  ;;  %v694_v58 = vmul.f32 %v4300_v51, %v5693_v55  ;;  %v695_v3 = vmul.f32 %v4300_v51, %v5696_v56 }
  0x50   : > { %10728 = vst [vmem:[#allocation56_spill] sm:$0xff] %v5753_v31  ;;  %10730 = vst [vmem:[#allocation57_spill] sm:$0xff] %v5756_v2  ;;  %v5782_v22 = vld [vmem:[%s5300_s19 + $0xc2] sm:$0xff]  ;;  %v5785_v6 = vld [vmem:[%s5300_s19 + $0xca] sm:$0xff]  ;;  %v696_v1 = vmul.f32 %v4300_v51, %v5711_v63  ;;  %v699_v54 = vmul.f32 %v4300_v51, %v5720_v9  ;;  %v700_v45 = vmul.f32 %v4300_v51, %v5735_v18 }
  0x51   : > { %10731 = vst [vmem:[#allocation87_spill] sm:$0xff] %v5759_v61  ;;  %10732 = vst [vmem:[#allocation88_spill] sm:$0xff] %v5762_v10  ;;  %v5788_v39 = vld [vmem:[%s5300_s19 + $0xda] sm:$0xff]  ;;  %v5791_v15 = vld [vmem:[%s5300_s19 + $0xe2] sm:$0xff]  ;;  %v702_v63 = vmul.f32 %v4300_v51, %v5741_v21  ;;  %v703_v0 = vmul.f32 %v4300_v51, %v5759_v61  ;;  %v704_v13 = vmul.f32 %v4300_v51, %v5762_v10 }
  0x52   : > { %10733 = vst [vmem:[#allocation89_spill] sm:$0xff] %v5765_v12  ;;  %10734 = vst [vmem:[#allocation90_spill] sm:$0xff] %v5767_v53  ;;  %v5796_v14 = vld [vmem:[%s5300_s19 + $0xf2] sm:$0xff]  ;;  %v5799_v25 = vld [vmem:[%s5300_s19 + $0xfa] sm:$0xff]  ;;  %v705_v53 = vmul.f32 %v4300_v51, %v5765_v12  ;;  %v706_v2 = vmul.f32 %v4300_v51, %v5776_v16  ;;  %v707_v18 = vmul.f32 %v4300_v51, %v5779_v26 }
  0x53   : > { %10736 = vst [vmem:[#allocation92_spill] sm:$0xff] %v5771_v27  ;;  %10737 = vst [vmem:[#allocation93_spill] sm:$0xff] %v5773_v40  ;;  %v5802_v28 = vld [vmem:[%s5300_s19 + $0x10a] sm:$0xff]  ;;  %v5809_v55 = vld [vmem:[%s5300_s19 + $0x112] sm:$0xff]  ;;  %v701_v40 = vmul.f32 %v4300_v51, %v5738_v19  ;;  %v708_v61 = vmul.f32 %v4300_v51, %v5782_v22  ;;  %v709_v23 = vmul.f32 %v4300_v51, %v5785_v6 }
  0x54   : > { %10738 = vst [vmem:[#allocation94_spill] sm:$0xff] %v5776_v16  ;;  %10739 = vst [vmem:[#allocation95_spill] sm:$0xff] %v5779_v26  ;;  %v5812_v56 = vld [vmem:[%s5300_s19 + $0x122] sm:$0xff]  ;;  %v5822_v8 = vld [vmem:[%s5300_s19 + $0x13a] sm:$0xff]  ;;  %v710_v46 = vmul.f32 %v4300_v51, %v5788_v39  ;;  %v711_v10 = vmul.f32 %v4300_v51, %v5791_v15  ;;  %v712_v12 = vmul.f32 %v4300_v51, %v5796_v14 }
  0x55   : > { %10740 = vst [vmem:[#allocation96_spill] sm:$0xff] %v5782_v22  ;;  %10741 = vst [vmem:[#allocation97_spill] sm:$0xff] %v5785_v6  ;;  %v5825_v27 = vld [vmem:[%s5300_s19 + $0x142] sm:$0xff]  ;;  %v5828_v9 = vld [vmem:[%s5300_s19 + $0x152] sm:$0xff]  ;;  %v713_v16 = vmul.f32 %v4300_v51, %v5799_v25  ;;  %v714_v26 = vmul.f32 %v4300_v51, %v5802_v28  ;;  %v715_v17 = vmul.f32 %v4300_v51, %v5809_v55 }
  0x56   : > { %10742 = vst [vmem:[#allocation98_spill] sm:$0xff] %v5788_v39  ;;  %10743 = vst [vmem:[#allocation99_spill] sm:$0xff] %v5791_v15  ;;  %v5835_v31 = vld [vmem:[%s5300_s19 + $0x15a] sm:$0xff]  ;;  %v5838_v19 = vld [vmem:[%s5300_s19 + $0x16a] sm:$0xff]  ;;  %v716_v60 = vmul.f32 %v4300_v51, %v5812_v56  ;;  %v717_v52 = vmul.f32 %v4300_v51, %v5815_v24  ;;  %v718_v22 = vmul.f32 %v4300_v51, %v5822_v8 }
  0x57   : > { %10744 = vst [vmem:[#allocation100_spill] sm:$0xff] %v5796_v14  ;;  %10745 = vst [vmem:[#allocation101_spill] sm:$0xff] %v5799_v25  ;;  %v5841_v21 = vld [vmem:[%s5300_s19 + $0x172] sm:$0xff]  ;;  %v719_v6 = vmul.f32 %v4300_v51, %v5825_v27  ;;  %v720_v39 = vmul.f32 %v4300_v51, %v5828_v9  ;;  %v721_v15 = vmul.f32 %v4300_v51, %v5835_v31 }
  0x58   : > { %10746 = vst [vmem:[#allocation102_spill] sm:$0xff] %v5802_v28  ;;  %10747 = vst [vmem:[#allocation103_spill] sm:$0xff] %v5809_v55  ;;  %v722_v14 = vmul.f32 %v4300_v51, %v5838_v19  ;;  %v723_v25 = vmul.f32 %v4300_v51, %v5841_v21  ;;  %v5860_v28 = vadd.f32 %v692_v35, %v5643_v20 }
  0x59   : > { %10748 = vst [vmem:[#allocation104_spill] sm:$0xff] %v5812_v56  ;;  %10749 = vst [vmem:[#allocation105_spill] sm:$0xff] %v5815_v24  ;;  %v5863_v56 = vadd.f32 %v693_v59, %v5646_v37  ;;  %v5875_v51 = vadd.f32 %v697_v32, %v5658_v5  ;;  %v5878_v20 = vadd.f32 %v698_v50, %v5661_v44  ;;  %v10777_v59 = vld [vmem:[#allocation57_spill] sm:$0xff]  ;;  %v5982_v50 = vld [vmem:[%s5300_s19 + $0x9b] sm:$0xff] }
  0x5a   : > { %10750 = vst [vmem:[#allocation106_spill] sm:$0xff] %v5822_v8  ;;  %10751 = vst [vmem:[#allocation107_spill] sm:$0xff] %v5825_v27  ;;  %v5866_v8 = vadd.f32 %v694_v58, %v5649_v7  ;;  %v5881_v37 = vadd.f32 %v699_v54, %v5664_v47  ;;  %v5884_v7 = vadd.f32 %v700_v45, %v5667_v43  ;;  %v756_v43 = vld [vmem:[%s5300_s19 + $0x3] sm:$0xff]  ;;  %v10782_v54 = vld [vmem:[#allocation90_spill] sm:$0xff] }
  0x5b   : > { %10752 = vst [vmem:[#allocation108_spill] sm:$0xff] %v5828_v9  ;;  %10753 = vst [vmem:[#allocation109_spill] sm:$0xff] %v5835_v31  ;;  %v5869_v9 = vadd.f32 %v695_v3, %v5652_v41  ;;  %v5887_v41 = vadd.f32 %v701_v40, %v5670_v42  ;;  %v5893_v32 = vadd.f32 %v703_v0, %v5676_v36  ;;  %v757_v42 = vld [vmem:[%s5300_s19 + $0xb] sm:$0xff]  ;;  %v5913_v36 = vld [vmem:[%s5300_s19 + $0x23] sm:$0xff] }
  0x5c   : > { %10754 = vst [vmem:[#allocation110_spill] sm:$0xff] %v5838_v19  ;;  %10755 = vst [vmem:[#allocation111_spill] sm:$0xff] %v5841_v21  ;;  %v5872_v19 = vadd.f32 %v696_v1, %v5655_v4  ;;  %v5890_v4 = vadd.f32 %v702_v63, %v5673_v38  ;;  %v5896_v5 = vadd.f32 %v704_v13, %v5679_v48  ;;  %v5910_v38 = vld [vmem:[%s5300_s19 + $0x1b] sm:$0xff]  ;;  %v5928_v63 = vld [vmem:[%s5300_s19 + $0x33] sm:$0xff] }
  0x5d   : > { %v5899_v44 = vadd.f32 %v705_v53, %v5682_v49  ;;  %v5902_v45 = vadd.f32 %v706_v2, %v5685_v34  ;;  %v5905_v47 = vadd.f32 %v707_v18, %v5688_v33  ;;  %10756 = vst [vmem:[#allocation112_spill] sm:$0xff] %v5910_v38  ;;  %10757 = vst [vmem:[#allocation113_spill] sm:$0xff] %v5913_v36  ;;  %v5931_v0 = vld [vmem:[%s5300_s19 + $0x3b] sm:$0xff]  ;;  %v5934_v18 = vld [vmem:[%s5300_s19 + $0x4b] sm:$0xff] }
  0x5e   : > { %v5916_v48 = vadd.f32 %v708_v61, %v5699_v30  ;;  %v5919_v49 = vadd.f32 %v709_v23, %v5702_v57  ;;  %v5922_v34 = vadd.f32 %v710_v46, %v5705_v29  ;;  %v5925_v33 = vadd.f32 %v711_v10, %v5708_v62  ;;  %10758 = vst [vmem:[#allocation114_spill] sm:$0xff] %v5928_v63  ;;  %v5937_v30 = vld [vmem:[%s5300_s19 + $0x53] sm:$0xff]  ;;  %v10762_v23 = vld [vmem:[#allocation47_spill] sm:$0xff]  ;;  %v10764_v46 = vld [vmem:[#allocation48_spill] sm:$0xff] }
  0x5f   : > { %10759 = vst [vmem:[#allocation115_spill] sm:$0xff] %v5931_v0  ;;  %10760 = vst [vmem:[#allocation116_spill] sm:$0xff] %v5934_v18  ;;  %v5940_v57 = vadd.f32 %v712_v12, %v5723_v11  ;;  %v5943_v29 = vadd.f32 %v713_v16, %v10762_v23  ;;  %v5946_v62 = vadd.f32 %v714_v26, %v10764_v46  ;;  %v10766_v2 = vld [vmem:[#allocation49_spill] sm:$0xff]  ;;  %v5952_v10 = vld [vmem:[%s5300_s19 + $0x63] sm:$0xff] }
  0x60   : > { %10761 = vst [vmem:[#allocation117_spill] sm:$0xff] %v5937_v30  ;;  %v5949_v61 = vadd.f32 %v715_v17, %v10766_v2  ;;  %10768 = vst [vmem:[#allocation118_spill] sm:$0xff] %v5952_v10  ;;  %v5955_v53 = vld [vmem:[%s5300_s19 + $0x6b] sm:$0xff]  ;;  %v5958_v13 = vld [vmem:[%s5300_s19 + $0x7b] sm:$0xff]  ;;  %v5973_v58 = vadd.f32 %v719_v6, %v10777_v59 }
  0x61   : > { %10763 = vst [vmem:[#allocation47_spill] sm:$0xff] %v5943_v29  ;;  %10765 = vst [vmem:[#allocation48_spill] sm:$0xff] %v5946_v62  ;;  %v4301_v11 = vld [vmem:[%s10278_s3 + $0x3] ss:$0 sm:$0xff]  ;;  %v10771_v12 = vld [vmem:[#allocation54_spill] sm:$0xff] }
  0x62   : > { %10767 = vst [vmem:[#allocation49_spill] sm:$0xff] %v5949_v61  ;;  %10769 = vst [vmem:[#allocation119_spill] sm:$0xff] %v5955_v53  ;;  %v5964_v40 = vadd.f32 %v716_v60, %v10771_v12  ;;  %v10773_v17 = vld [vmem:[#allocation55_spill] sm:$0xff]  ;;  %v10775_v26 = vld [vmem:[#allocation56_spill] sm:$0xff]  ;;  %v5985_v60 = vadd.f32 %v720_v39, %v10782_v54  ;;  %v794_v54 = vmul.f32 %v4301_v11, %v757_v42 }
  0x63   : > { %10770 = vst [vmem:[#allocation120_spill] sm:$0xff] %v5958_v13  ;;  %v5967_v16 = vadd.f32 %v717_v52, %v10773_v17  ;;  %v5970_v35 = vadd.f32 %v718_v22, %v10775_v26  ;;  %10778 = vst [vmem:[#allocation57_spill] sm:$0xff] %v5973_v58  ;;  %v5976_v3 = vld [vmem:[%s5300_s19 + $0x83] sm:$0xff]  ;;  %v5979_v1 = vld [vmem:[%s5300_s19 + $0x93] sm:$0xff]  ;;  %v797_v31 = vmul.f32 %v4301_v11, %v5928_v63 }
  0x64   : > { %10772 = vst [vmem:[#allocation54_spill] sm:$0xff] %v5964_v40  ;;  %10779 = vst [vmem:[#allocation121_spill] sm:$0xff] %v5976_v3  ;;  %v10784_v23 = vld [vmem:[#allocation91_spill] sm:$0xff]  ;;  %v10786_v22 = vld [vmem:[#allocation92_spill] sm:$0xff]  ;;  %v798_v27 = vmul.f32 %v4301_v11, %v5931_v0  ;;  %v800_v42 = vmul.f32 %v4301_v11, %v5937_v30  ;;  %v801_v55 = vmul.f32 %v4301_v11, %v5952_v10 }
  0x65   : > { %10774 = vst [vmem:[#allocation55_spill] sm:$0xff] %v5967_v16  ;;  %10776 = vst [vmem:[#allocation56_spill] sm:$0xff] %v5970_v35  ;;  %v5988_v52 = vadd.f32 %v721_v15, %v10784_v23  ;;  %v5991_v46 = vadd.f32 %v722_v14, %v10786_v22  ;;  %v10788_v6 = vld [vmem:[#allocation93_spill] sm:$0xff]  ;;  %v5997_v12 = vld [vmem:[%s5300_s19 + $0xab] sm:$0xff]  ;;  %v793_v14 = vmul.f32 %v4301_v11, %v756_v43 }
  0x66   : > { %10780 = vst [vmem:[#allocation122_spill] sm:$0xff] %v5979_v1  ;;  %10781 = vst [vmem:[#allocation123_spill] sm:$0xff] %v5982_v50  ;;  %v5994_v2 = vadd.f32 %v723_v25, %v10788_v6  ;;  %v6000_v17 = vld [vmem:[%s5300_s19 + $0xb3] sm:$0xff]  ;;  %v6003_v26 = vld [vmem:[%s5300_s19 + $0xc3] sm:$0xff]  ;;  %v795_v25 = vmul.f32 %v4301_v11, %v5910_v38  ;;  %v796_v23 = vmul.f32 %v4301_v11, %v5913_v36 }
  0x67   : > { %10783 = vst [vmem:[#allocation90_spill] sm:$0xff] %v5985_v60  ;;  %10785 = vst [vmem:[#allocation91_spill] sm:$0xff] %v5988_v52  ;;  %v6006_v39 = vld [vmem:[%s5300_s19 + $0xcb] sm:$0xff]  ;;  %v6009_v59 = vld [vmem:[%s5300_s19 + $0xdb] sm:$0xff]  ;;  %v799_v43 = vmul.f32 %v4301_v11, %v5934_v18  ;;  %v803_v63 = vmul.f32 %v4301_v11, %v5958_v13  ;;  %v804_v0 = vmul.f32 %v4301_v11, %v5976_v3 }
  0x68   : > { %10787 = vst [vmem:[#allocation92_spill] sm:$0xff] %v5991_v46  ;;  %10789 = vst [vmem:[#allocation93_spill] sm:$0xff] %v5994_v2  ;;  %v6012_v15 = vld [vmem:[%s5300_s19 + $0xe3] sm:$0xff]  ;;  %v6017_v22 = vld [vmem:[%s5300_s19 + $0xf3] sm:$0xff]  ;;  %v802_v2 = vmul.f32 %v4301_v11, %v5955_v53  ;;  %v805_v52 = vmul.f32 %v4301_v11, %v5979_v1  ;;  %v806_v60 = vmul.f32 %v4301_v11, %v5982_v50 }
  0x69   : > { %10790 = vst [vmem:[#allocation124_spill] sm:$0xff] %v5997_v12  ;;  %10791 = vst [vmem:[#allocation125_spill] sm:$0xff] %v6000_v17  ;;  %v6020_v6 = vld [vmem:[%s5300_s19 + $0xfb] sm:$0xff]  ;;  %v6023_v21 = vld [vmem:[%s5300_s19 + $0x10b] sm:$0xff]  ;;  %v807_v58 = vmul.f32 %v4301_v11, %v5997_v12  ;;  %v808_v10 = vmul.f32 %v4301_v11, %v6000_v17  ;;  %v809_v3 = vmul.f32 %v4301_v11, %v6003_v26 }
  0x6a   : > { %10792 = vst [vmem:[#allocation126_spill] sm:$0xff] %v6003_v26  ;;  %10793 = vst [vmem:[#allocation127_spill] sm:$0xff] %v6006_v39  ;;  %v6030_v38 = vld [vmem:[%s5300_s19 + $0x113] sm:$0xff]  ;;  %v6033_v36 = vld [vmem:[%s5300_s19 + $0x123] sm:$0xff]  ;;  %v810_v16 = vmul.f32 %v4301_v11, %v6006_v39  ;;  %v811_v40 = vmul.f32 %v4301_v11, %v6009_v59  ;;  %v812_v1 = vmul.f32 %v4301_v11, %v6012_v15 }
  0x6b   : > { %10794 = vst [vmem:[#allocation128_spill] sm:$0xff] %v6009_v59  ;;  %10795 = vst [vmem:[#allocation129_spill] sm:$0xff] %v6012_v15  ;;  %v6036_v24 = vld [vmem:[%s5300_s19 + $0x12b] sm:$0xff]  ;;  %v6043_v18 = vld [vmem:[%s5300_s19 + $0x13b] sm:$0xff]  ;;  %v813_v50 = vmul.f32 %v4301_v11, %v6017_v22  ;;  %v814_v12 = vmul.f32 %v4301_v11, %v6020_v6  ;;  %v815_v17 = vmul.f32 %v4301_v11, %v6023_v21 }
  0x6c   : > { %10796 = vst [vmem:[#allocation130_spill] sm:$0xff] %v6017_v22  ;;  %10797 = vst [vmem:[#allocation131_spill] sm:$0xff] %v6020_v6  ;;  %v6046_v46 = vld [vmem:[%s5300_s19 + $0x143] sm:$0xff]  ;;  %v6049_v30 = vld [vmem:[%s5300_s19 + $0x153] sm:$0xff]  ;;  %v816_v61 = vmul.f32 %v4301_v11, %v6030_v38  ;;  %v817_v62 = vmul.f32 %v4301_v11, %v6033_v36  ;;  %v818_v29 = vmul.f32 %v4301_v11, %v6036_v24 }
  0x6d   : > { %10798 = vst [vmem:[#allocation132_spill] sm:$0xff] %v6023_v21  ;;  %10799 = vst [vmem:[#allocation133_spill] sm:$0xff] %v6030_v38  ;;  %v6056_v35 = vld [vmem:[%s5300_s19 + $0x15b] sm:$0xff]  ;;  %v6059_v53 = vld [vmem:[%s5300_s19 + $0x16b] sm:$0xff]  ;;  %v819_v26 = vmul.f32 %v4301_v11, %v6043_v18  ;;  %v820_v39 = vmul.f32 %v4301_v11, %v6046_v46  ;;  %v821_v59 = vmul.f32 %v4301_v11, %v6049_v30 }
  0x6e   : > { %10800 = vst [vmem:[#allocation134_spill] sm:$0xff] %v6033_v36  ;;  %10801 = vst [vmem:[#allocation135_spill] sm:$0xff] %v6036_v24  ;;  %v6062_v13 = vld [vmem:[%s5300_s19 + $0x173] sm:$0xff]  ;;  %v822_v15 = vmul.f32 %v4301_v11, %v6056_v35  ;;  %v823_v22 = vmul.f32 %v4301_v11, %v6059_v53  ;;  %v6081_v21 = vadd.f32 %v793_v14, %v5860_v28 }
  0x6f   : > { %10802 = vst [vmem:[#allocation136_spill] sm:$0xff] %v6043_v18  ;;  %10803 = vst [vmem:[#allocation137_spill] sm:$0xff] %v6046_v46  ;;  %v824_v6 = vmul.f32 %v4301_v11, %v6062_v13  ;;  %v6084_v36 = vadd.f32 %v794_v54, %v5863_v56  ;;  %v6087_v18 = vadd.f32 %v795_v25, %v5866_v8  ;;  %v10829_v14 = vld [vmem:[#allocation57_spill] sm:$0xff]  ;;  %v6197_v25 = vld [vmem:[%s5300_s19 + $0x84] sm:$0xff] }
  0x70   : > { %10804 = vst [vmem:[#allocation138_spill] sm:$0xff] %v6049_v30  ;;  %10805 = vst [vmem:[#allocation139_spill] sm:$0xff] %v6056_v35  ;;  %v6090_v30 = vadd.f32 %v796_v23, %v5869_v9  ;;  %v6096_v11 = vadd.f32 %v798_v27, %v5875_v51  ;;  %v6099_v28 = vadd.f32 %v799_v43, %v5878_v20  ;;  %v6200_v23 = vld [vmem:[%s5300_s19 + $0x94] sm:$0xff]  ;;  %v6203_v43 = vld [vmem:[%s5300_s19 + $0x9c] sm:$0xff] }
  0x71   : > { %10806 = vst [vmem:[#allocation140_spill] sm:$0xff] %v6059_v53  ;;  %10807 = vst [vmem:[#allocation141_spill] sm:$0xff] %v6062_v13  ;;  %v6093_v53 = vadd.f32 %v797_v31, %v5872_v19  ;;  %v6102_v56 = vadd.f32 %v800_v42, %v5881_v37  ;;  %v6105_v8 = vadd.f32 %v801_v55, %v5884_v7  ;;  %v857_v37 = vld [vmem:[%s5300_s19 + $0x4] sm:$0xff]  ;;  %v858_v7 = vld [vmem:[%s5300_s19 + $0xc] sm:$0xff] }
  0x72   : > { %v6108_v9 = vadd.f32 %v802_v2, %v5887_v41  ;;  %v6111_v19 = vadd.f32 %v803_v63, %v5890_v4  ;;  %v6114_v31 = vadd.f32 %v804_v0, %v5893_v32  ;;  %v6117_v27 = vadd.f32 %v805_v52, %v5896_v5  ;;  %v6131_v41 = vld [vmem:[%s5300_s19 + $0x1c] sm:$0xff]  ;;  %v6134_v4 = vld [vmem:[%s5300_s19 + $0x24] sm:$0xff]  ;;  %v6155_v0 = vld [vmem:[%s5300_s19 + $0x4c] sm:$0xff]  ;;  %10831 = vst [vmem:[#allocation151_spill] sm:$0xff] %v6197_v25 }
  0x73   : > { %v6120_v51 = vadd.f32 %v806_v60, %v5899_v44  ;;  %v6123_v55 = vadd.f32 %v807_v58, %v5902_v45  ;;  %v6126_v20 = vadd.f32 %v808_v10, %v5905_v47  ;;  %10808 = vst [vmem:[#allocation142_spill] sm:$0xff] %v6131_v41  ;;  %10809 = vst [vmem:[#allocation143_spill] sm:$0xff] %v6134_v4  ;;  %v6149_v47 = vld [vmem:[%s5300_s19 + $0x34] sm:$0xff]  ;;  %v6152_v63 = vld [vmem:[%s5300_s19 + $0x3c] sm:$0xff] }
  0x74   : > { %v6137_v32 = vadd.f32 %v809_v3, %v5916_v48  ;;  %v6140_v5 = vadd.f32 %v810_v16, %v5919_v49  ;;  %v6143_v44 = vadd.f32 %v811_v40, %v5922_v34  ;;  %v6146_v45 = vadd.f32 %v812_v1, %v5925_v33  ;;  %10810 = vst [vmem:[#allocation144_spill] sm:$0xff] %v6149_v47  ;;  %v6158_v48 = vld [vmem:[%s5300_s19 + $0x54] sm:$0xff]  ;;  %v10814_v10 = vld [vmem:[#allocation47_spill] sm:$0xff]  ;;  %v10816_v40 = vld [vmem:[#allocation48_spill] sm:$0xff] }
  0x75   : > { %10811 = vst [vmem:[#allocation145_spill] sm:$0xff] %v6152_v63  ;;  %10812 = vst [vmem:[#allocation146_spill] sm:$0xff] %v6155_v0  ;;  %v6161_v49 = vadd.f32 %v813_v50, %v5940_v57  ;;  %v6164_v34 = vadd.f32 %v814_v12, %v10814_v10  ;;  %v6167_v33 = vadd.f32 %v815_v17, %v10816_v40  ;;  %v10818_v16 = vld [vmem:[#allocation49_spill] sm:$0xff]  ;;  %v6173_v3 = vld [vmem:[%s5300_s19 + $0x64] sm:$0xff] }
  0x76   : > { %10813 = vst [vmem:[#allocation147_spill] sm:$0xff] %v6158_v48  ;;  %v6170_v58 = vadd.f32 %v816_v61, %v10818_v16  ;;  %10820 = vst [vmem:[#allocation148_spill] sm:$0xff] %v6173_v3  ;;  %v6176_v1 = vld [vmem:[%s5300_s19 + $0x6c] sm:$0xff]  ;;  %v6179_v60 = vld [vmem:[%s5300_s19 + $0x7c] sm:$0xff]  ;;  %v6194_v54 = vadd.f32 %v820_v39, %v10829_v14 }
  0x77   : > { %10815 = vst [vmem:[#allocation47_spill] sm:$0xff] %v6164_v34  ;;  %10817 = vst [vmem:[#allocation48_spill] sm:$0xff] %v6167_v33  ;;  %v4302_v57 = vld [vmem:[%s10278_s3 + $0x4] ss:$0 sm:$0xff]  ;;  %v10823_v50 = vld [vmem:[#allocation54_spill] sm:$0xff] }
  0x78   : > { %10819 = vst [vmem:[#allocation49_spill] sm:$0xff] %v6170_v58  ;;  %10821 = vst [vmem:[#allocation149_spill] sm:$0xff] %v6176_v1  ;;  %v6185_v52 = vadd.f32 %v817_v62, %v10823_v50  ;;  %v10825_v61 = vld [vmem:[#allocation55_spill] sm:$0xff]  ;;  %v10827_v12 = vld [vmem:[#allocation56_spill] sm:$0xff]  ;;  %v898_v35 = vmul.f32 %v4302_v57, %v6149_v47  ;;  %v899_v46 = vmul.f32 %v4302_v57, %v6152_v63 }
  0x79   : > { %10822 = vst [vmem:[#allocation150_spill] sm:$0xff] %v6179_v60  ;;  %v6188_v2 = vadd.f32 %v818_v29, %v10825_v61  ;;  %v6191_v17 = vadd.f32 %v819_v26, %v10827_v12  ;;  %10830 = vst [vmem:[#allocation57_spill] sm:$0xff] %v6194_v54  ;;  %v10834_v42 = vld [vmem:[#allocation90_spill] sm:$0xff]  ;;  %v10836_v10 = vld [vmem:[#allocation91_spill] sm:$0xff]  ;;  %v902_v38 = vmul.f32 %v4302_v57, %v6173_v3 }
  0x7a   : > { %10824 = vst [vmem:[#allocation54_spill] sm:$0xff] %v6185_v52  ;;  %10832 = vst [vmem:[#allocation152_spill] sm:$0xff] %v6200_v23  ;;  %v6206_v62 = vadd.f32 %v821_v59, %v10834_v42  ;;  %v6209_v29 = vadd.f32 %v822_v15, %v10836_v10  ;;  %v10838_v26 = vld [vmem:[#allocation92_spill] sm:$0xff]  ;;  %v10840_v39 = vld [vmem:[#allocation93_spill] sm:$0xff]  ;;  %v895_v42 = vmul.f32 %v4302_v57, %v858_v7 }
  0x7b   : > { %10826 = vst [vmem:[#allocation55_spill] sm:$0xff] %v6188_v2  ;;  %10828 = vst [vmem:[#allocation56_spill] sm:$0xff] %v6191_v17  ;;  %v6212_v40 = vadd.f32 %v823_v22, %v10838_v26  ;;  %v6215_v16 = vadd.f32 %v824_v6, %v10840_v39  ;;  %v6218_v50 = vld [vmem:[%s5300_s19 + $0xac] sm:$0xff]  ;;  %v6221_v61 = vld [vmem:[%s5300_s19 + $0xb4] sm:$0xff]  ;;  %v894_v22 = vmul.f32 %v4302_v57, %v857_v37 }
  0x7c   : > { %10833 = vst [vmem:[#allocation153_spill] sm:$0xff] %v6203_v43  ;;  %10835 = vst [vmem:[#allocation90_spill] sm:$0xff] %v6206_v62  ;;  %v6224_v12 = vld [vmem:[%s5300_s19 + $0xc4] sm:$0xff]  ;;  %v6227_v59 = vld [vmem:[%s5300_s19 + $0xcc] sm:$0xff]  ;;  %v896_v6 = vmul.f32 %v4302_v57, %v6131_v41  ;;  %v897_v10 = vmul.f32 %v4302_v57, %v6134_v4  ;;  %v900_v37 = vmul.f32 %v4302_v57, %v6155_v0 }
  0x7d   : > { %10837 = vst [vmem:[#allocation91_spill] sm:$0xff] %v6209_v29  ;;  %10839 = vst [vmem:[#allocation92_spill] sm:$0xff] %v6212_v40  ;;  %v6230_v14 = vld [vmem:[%s5300_s19 + $0xdc] sm:$0xff]  ;;  %v6233_v15 = vld [vmem:[%s5300_s19 + $0xe4] sm:$0xff]  ;;  %v901_v7 = vmul.f32 %v4302_v57, %v6158_v48  ;;  %v904_v47 = vmul.f32 %v4302_v57, %v6179_v60  ;;  %v905_v63 = vmul.f32 %v4302_v57, %v6197_v25 }
  0x7e   : > { %10841 = vst [vmem:[#allocation93_spill] sm:$0xff] %v6215_v16  ;;  %10842 = vst [vmem:[#allocation154_spill] sm:$0xff] %v6218_v50  ;;  %v6238_v26 = vld [vmem:[%s5300_s19 + $0xf4] sm:$0xff]  ;;  %v6241_v39 = vld [vmem:[%s5300_s19 + $0xfc] sm:$0xff]  ;;  %v903_v16 = vmul.f32 %v4302_v57, %v6176_v1  ;;  %v906_v29 = vmul.f32 %v4302_v57, %v6200_v23  ;;  %v907_v62 = vmul.f32 %v4302_v57, %v6203_v43 }
  0x7f   : > { %10843 = vst [vmem:[#allocation155_spill] sm:$0xff] %v6221_v61  ;;  %10844 = vst [vmem:[#allocation156_spill] sm:$0xff] %v6224_v12  ;;  %v6244_v13 = vld [vmem:[%s5300_s19 + $0x10c] sm:$0xff]  ;;  %v6251_v41 = vld [vmem:[%s5300_s19 + $0x114] sm:$0xff]  ;;  %v908_v54 = vmul.f32 %v4302_v57, %v6218_v50  ;;  %v909_v3 = vmul.f32 %v4302_v57, %v6221_v61  ;;  %v910_v25 = vmul.f32 %v4302_v57, %v6224_v12 }
  0x80   : > { %10845 = vst [vmem:[#allocation157_spill] sm:$0xff] %v6227_v59  ;;  %10846 = vst [vmem:[#allocation158_spill] sm:$0xff] %v6230_v14  ;;  %v6254_v4 = vld [vmem:[%s5300_s19 + $0x124] sm:$0xff]  ;;  %v6257_v24 = vld [vmem:[%s5300_s19 + $0x12c] sm:$0xff]  ;;  %v911_v2 = vmul.f32 %v4302_v57, %v6227_v59  ;;  %v912_v52 = vmul.f32 %v4302_v57, %v6230_v14  ;;  %v913_v23 = vmul.f32 %v4302_v57, %v6233_v15 }
  0x81   : > { %10847 = vst [vmem:[#allocation159_spill] sm:$0xff] %v6233_v15  ;;  %10848 = vst [vmem:[#allocation160_spill] sm:$0xff] %v6238_v26  ;;  %v6264_v0 = vld [vmem:[%s5300_s19 + $0x13c] sm:$0xff]  ;;  %v6267_v40 = vld [vmem:[%s5300_s19 + $0x144] sm:$0xff]  ;;  %v914_v43 = vmul.f32 %v4302_v57, %v6238_v26  ;;  %v915_v50 = vmul.f32 %v4302_v57, %v6241_v39  ;;  %v916_v61 = vmul.f32 %v4302_v57, %v6244_v13 }
  0x82   : > { %10849 = vst [vmem:[#allocation161_spill] sm:$0xff] %v6241_v39  ;;  %10850 = vst [vmem:[#allocation162_spill] sm:$0xff] %v6244_v13  ;;  %v6270_v48 = vld [vmem:[%s5300_s19 + $0x154] sm:$0xff]  ;;  %v6277_v17 = vld [vmem:[%s5300_s19 + $0x15c] sm:$0xff]  ;;  %v917_v58 = vmul.f32 %v4302_v57, %v6251_v41  ;;  %v918_v33 = vmul.f32 %v4302_v57, %v6254_v4  ;;  %v919_v34 = vmul.f32 %v4302_v57, %v6257_v24 }
  0x83   : > { %10851 = vst [vmem:[#allocation163_spill] sm:$0xff] %v6251_v41  ;;  %10852 = vst [vmem:[#allocation164_spill] sm:$0xff] %v6254_v4  ;;  %v6280_v1 = vld [vmem:[%s5300_s19 + $0x16c] sm:$0xff]  ;;  %v6283_v60 = vld [vmem:[%s5300_s19 + $0x174] sm:$0xff]  ;;  %v920_v12 = vmul.f32 %v4302_v57, %v6264_v0  ;;  %v921_v59 = vmul.f32 %v4302_v57, %v6267_v40  ;;  %v922_v14 = vmul.f32 %v4302_v57, %v6270_v48 }
  0x84   : > { %10853 = vst [vmem:[#allocation165_spill] sm:$0xff] %v6257_v24  ;;  %10854 = vst [vmem:[#allocation166_spill] sm:$0xff] %v6264_v0  ;;  %v923_v15 = vmul.f32 %v4302_v57, %v6277_v17  ;;  %v924_v26 = vmul.f32 %v4302_v57, %v6280_v1  ;;  %v925_v39 = vmul.f32 %v4302_v57, %v6283_v60  ;;  %v10904_v4 = vld [vmem:[#allocation31_spill] sm:$0xff] }
  0x85   : > { %10855 = vst [vmem:[#allocation167_spill] sm:$0xff] %v6267_v40  ;;  %10856 = vst [vmem:[#allocation168_spill] sm:$0xff] %v6270_v48  ;;  %v6302_v13 = vadd.f32 %v894_v22, %v6081_v21  ;;  %v6305_v41 = vadd.f32 %v895_v42, %v6084_v36  ;;  %v6308_v24 = vadd.f32 %v896_v6, %v6087_v18  ;;  %v10885_v22 = vld [vmem:[#allocation14_spill] sm:$0xff]  ;;  %v10886_v42 = vld [vmem:[#allocation15_spill] sm:$0xff] }
  0x86   : > { %10857 = vst [vmem:[#allocation169_spill] sm:$0xff] %v6277_v17  ;;  %10858 = vst [vmem:[#allocation170_spill] sm:$0xff] %v6280_v1  ;;  %v6311_v0 = vadd.f32 %v897_v10, %v6090_v30  ;;  %v6314_v48 = vadd.f32 %v898_v35, %v6093_v53  ;;  %v6317_v17 = vadd.f32 %v899_v46, %v6096_v11  ;;  %v10902_v1 = vld [vmem:[#allocation29_spill] sm:$0xff]  ;;  %v10903_v40 = vld [vmem:[#allocation30_spill] sm:$0xff] }
  0x87   : > { %10859 = vst [vmem:[#allocation171_spill] sm:$0xff] %v6283_v60  ;;  %v6320_v57 = vadd.f32 %v900_v37, %v6099_v28  ;;  %v6323_v21 = vadd.f32 %v901_v7, %v6102_v56  ;;  %v6326_v36 = vadd.f32 %v902_v38, %v6105_v8  ;;  %v6329_v18 = vadd.f32 %v903_v16, %v6108_v9  ;;  %v10888_v37 = vld [vmem:[#allocation17_spill] sm:$0xff]  ;;  %v10889_v7 = vld [vmem:[#allocation18_spill] sm:$0xff]  ;;  %v10901_v60 = vld [vmem:[#allocation28_spill] sm:$0xff] }
  0x88   : > { %v6332_v30 = vadd.f32 %v904_v47, %v6111_v19  ;;  %v6335_v53 = vadd.f32 %v905_v63, %v6114_v31  ;;  %v6338_v35 = vadd.f32 %v906_v29, %v6117_v27  ;;  %v6341_v46 = vadd.f32 %v907_v62, %v6120_v51  ;;  %v10860_v31 = vld [vmem:[#allocation47_spill] sm:$0xff]  ;;  %v10862_v51 = vld [vmem:[#allocation48_spill] sm:$0xff] }
  0x89   : > { %v6344_v11 = vadd.f32 %v908_v54, %v6123_v55  ;;  %v6347_v38 = vadd.f32 %v909_v3, %v6126_v20  ;;  %v6350_v28 = vadd.f32 %v910_v25, %v6137_v32  ;;  %v6353_v56 = vadd.f32 %v911_v2, %v6140_v5  ;;  %v10864_v20 = vld [vmem:[#allocation49_spill] sm:$0xff]  ;;  %v4336_v5 = vld [vmem:[%s10278_s3 + $0x8] ss:$0 sm:$0xff]  ;;  %v10874_v54 = vld [vmem:[#allocation90_spill] sm:$0xff] }
  0x8a   : > { %v6356_v8 = vadd.f32 %v912_v52, %v6143_v44  ;;  %v6359_v9 = vadd.f32 %v913_v23, %v6146_v45  ;;  %v6362_v19 = vadd.f32 %v914_v43, %v6161_v49  ;;  %v6365_v27 = vadd.f32 %v915_v50, %v10860_v31  ;;  %v10866_v44 = vld [vmem:[#allocation54_spill] sm:$0xff]  ;;  %v10868_v45 = vld [vmem:[#allocation55_spill] sm:$0xff]  ;;  %v10870_v49 = vld [vmem:[#allocation56_spill] sm:$0xff] }
  0x8b   : > { %v6368_v55 = vadd.f32 %v916_v61, %v10862_v51  ;;  %v6371_v32 = vadd.f32 %v917_v58, %v10864_v20  ;;  %v6377_v47 = vadd.f32 %v918_v33, %v10866_v44  ;;  %v6380_v63 = vadd.f32 %v919_v34, %v10868_v45  ;;  %v10872_v52 = vld [vmem:[#allocation57_spill] sm:$0xff]  ;;  %v10876_v58 = vld [vmem:[#allocation91_spill] sm:$0xff]  ;;  %v10878_v43 = vld [vmem:[#allocation92_spill] sm:$0xff] }
  0x8c   : > { %10861 = vst [vmem:[#allocation47_spill] sm:$0xff] %v6365_v27  ;;  %v6383_v3 = vadd.f32 %v920_v12, %v10870_v49  ;;  %v6386_v2 = vadd.f32 %v921_v59, %v10872_v52  ;;  %v6389_v25 = vadd.f32 %v922_v14, %v10874_v54  ;;  %v6392_v23 = vadd.f32 %v923_v15, %v10876_v58  ;;  %v10880_v33 = vld [vmem:[#allocation93_spill] sm:$0xff]  ;;  %v10882_v34 = vld [vmem:[#allocation11_spill] sm:$0xff]  ;;  %v10883_v50 = vld [vmem:[#allocation12_spill] sm:$0xff] }
  0x8d   : > { %10863 = vst [vmem:[#allocation48_spill] sm:$0xff] %v6368_v55  ;;  %10865 = vst [vmem:[#allocation49_spill] sm:$0xff] %v6371_v32  ;;  %v6395_v62 = vadd.f32 %v924_v26, %v10878_v43  ;;  %v6398_v29 = vadd.f32 %v925_v39, %v10880_v33  ;;  %v997_v16 = vmul.f32 %v4336_v5, %v10882_v34  ;;  %v10884_v12 = vld [vmem:[#allocation13_spill] sm:$0xff]  ;;  %v10887_v15 = vld [vmem:[#allocation16_spill] sm:$0xff] }
  0x8e   : > { %10867 = vst [vmem:[#allocation54_spill] sm:$0xff] %v6377_v47  ;;  %10869 = vst [vmem:[#allocation55_spill] sm:$0xff] %v6380_v63  ;;  %v998_v61 = vmul.f32 %v4336_v5, %v10883_v50  ;;  %v999_v59 = vmul.f32 %v4336_v5, %v10884_v12  ;;  %v1000_v14 = vmul.f32 %v4336_v5, %v10885_v22  ;;  %v10890_v39 = vld [vmem:[#allocation19_spill] sm:$0xff]  ;;  %v10891_v20 = vld [vmem:[#allocation20_spill] sm:$0xff] }
  0x8f   : > { %10871 = vst [vmem:[#allocation56_spill] sm:$0xff] %v6383_v3  ;;  %10873 = vst [vmem:[#allocation57_spill] sm:$0xff] %v6386_v2  ;;  %v1001_v6 = vmul.f32 %v4336_v5, %v10886_v42  ;;  %v1002_v10 = vmul.f32 %v4336_v5, %v10887_v15  ;;  %v1003_v26 = vmul.f32 %v4336_v5, %v10888_v37  ;;  %v10892_v45 = vld [vmem:[#allocation21_spill] sm:$0xff]  ;;  %v10893_v52 = vld [vmem:[#allocation22_spill] sm:$0xff] }
  0x90   : > { %10875 = vst [vmem:[#allocation90_spill] sm:$0xff] %v6389_v25  ;;  %10877 = vst [vmem:[#allocation91_spill] sm:$0xff] %v6392_v23  ;;  %v1004_v31 = vmul.f32 %v4336_v5, %v10889_v7  ;;  %v1005_v51 = vmul.f32 %v4336_v5, %v10890_v39  ;;  %v1006_v44 = vmul.f32 %v4336_v5, %v10891_v20  ;;  %v10894_v58 = vld [vmem:[#allocation23_spill] sm:$0xff]  ;;  %v10895_v33 = vld [vmem:[#allocation24_spill] sm:$0xff] }
  0x91   : > { %10879 = vst [vmem:[#allocation92_spill] sm:$0xff] %v6395_v62  ;;  %10881 = vst [vmem:[#allocation93_spill] sm:$0xff] %v6398_v29  ;;  %v1007_v49 = vmul.f32 %v4336_v5, %v10892_v45  ;;  %v1008_v54 = vmul.f32 %v4336_v5, %v10893_v52  ;;  %v1009_v43 = vmul.f32 %v4336_v5, %v10894_v58  ;;  %v10896_v50 = vld [vmem:[#allocation25_spill] sm:$0xff]  ;;  %v10897_v22 = vld [vmem:[#allocation26_spill] sm:$0xff] }
  0x92   : > { %v1010_v34 = vmul.f32 %v4336_v5, %v10895_v33  ;;  %v1011_v12 = vmul.f32 %v4336_v5, %v10896_v50  ;;  %v1012_v42 = vmul.f32 %v4336_v5, %v10897_v22  ;;  %v6417_v15 = vld [vmem:[%s5300_s19 + $0x180] sm:$0xff]  ;;  %v6420_v37 = vld [vmem:[%s5300_s19 + $0x188] sm:$0xff]  ;;  %v1014_v20 = vmul.f32 %v4336_v5, %v10901_v60  ;;  %v10908_v25 = vld [vmem:[#allocation37_spill] sm:$0xff] }
  0x93   : > { %10898 = vst [vmem:[#allocation11_spill] sm:$0xff] %v6417_v15  ;;  %10899 = vst [vmem:[#allocation12_spill] sm:$0xff] %v6420_v37  ;;  %v10900_v7 = vld [vmem:[#allocation27_spill] sm:$0xff]  ;;  %v1015_v45 = vmul.f32 %v4336_v5, %v10902_v1  ;;  %v1016_v52 = vmul.f32 %v4336_v5, %v10903_v40  ;;  %v1017_v58 = vmul.f32 %v4336_v5, %v10904_v4  ;;  %v10905_v29 = vld [vmem:[#allocation32_spill] sm:$0xff] }
  0x94   : > { %v1013_v39 = vmul.f32 %v4336_v5, %v10900_v7  ;;  %v1018_v33 = vmul.f32 %v4336_v5, %v10905_v29  ;;  %v10906_v62 = vld [vmem:[#allocation35_spill] sm:$0xff]  ;;  %v10907_v23 = vld [vmem:[#allocation36_spill] sm:$0xff]  ;;  %v1021_v2 = vmul.f32 %v4336_v5, %v10908_v25  ;;  %v10909_v3 = vld [vmem:[#allocation42_spill] sm:$0xff]  ;;  %v1027_v4 = vmul.f32 %v4336_v5, %v6417_v15 }
  0x95   : > { %v1019_v50 = vmul.f32 %v4336_v5, %v10906_v62  ;;  %v1020_v22 = vmul.f32 %v4336_v5, %v10907_v23  ;;  %v1022_v63 = vmul.f32 %v4336_v5, %v10909_v3  ;;  %v10910_v47 = vld [vmem:[#allocation72_spill] sm:$0xff]  ;;  %v10911_v32 = vld [vmem:[#allocation73_spill] sm:$0xff]  ;;  %v10912_v55 = vld [vmem:[#allocation74_spill] sm:$0xff]  ;;  %v1028_v29 = vmul.f32 %v4336_v5, %v6420_v37 }
  0x96   : > { %v1023_v7 = vmul.f32 %v4336_v5, %v10910_v47  ;;  %v1024_v60 = vmul.f32 %v4336_v5, %v10911_v32  ;;  %v1025_v1 = vmul.f32 %v4336_v5, %v10912_v55  ;;  %v10913_v27 = vld [vmem:[#allocation75_spill] sm:$0xff]  ;;  %v6439_v62 = vadd.f32 %v997_v16, %v6302_v13  ;;  %v10957_v37 = vld [vmem:[#allocation65_spill] sm:$0xff]  ;;  %v10958_v15 = vld [vmem:[#allocation66_spill] sm:$0xff] }
  0x97   : > { %v1026_v40 = vmul.f32 %v4336_v5, %v10913_v27  ;;  %v6442_v23 = vadd.f32 %v998_v61, %v6305_v41  ;;  %v6445_v3 = vadd.f32 %v999_v59, %v6308_v24  ;;  %v6448_v47 = vadd.f32 %v1000_v14, %v6311_v0 }
  0x98   : > { %v6451_v55 = vadd.f32 %v1001_v6, %v6314_v48  ;;  %v6454_v27 = vadd.f32 %v1002_v10, %v6317_v17  ;;  %v6457_v32 = vadd.f32 %v1003_v26, %v6320_v57  ;;  %v6460_v13 = vadd.f32 %v1004_v31, %v6323_v21  ;;  %v10926_v6 = vld [vmem:[#allocation57_spill] sm:$0xff]  ;;  %v10928_v26 = vld [vmem:[#allocation90_spill] sm:$0xff] }
  0x99   : > { %v6463_v41 = vadd.f32 %v1005_v51, %v6326_v36  ;;  %v6466_v24 = vadd.f32 %v1006_v44, %v6329_v18  ;;  %v6469_v0 = vadd.f32 %v1007_v49, %v6332_v30  ;;  %v6472_v48 = vadd.f32 %v1008_v54, %v6335_v53  ;;  %v10930_v51 = vld [vmem:[#allocation91_spill] sm:$0xff]  ;;  %v10932_v49 = vld [vmem:[#allocation92_spill] sm:$0xff] }
  0x9a   : > { %v6475_v17 = vadd.f32 %v1009_v43, %v6338_v35  ;;  %v6478_v57 = vadd.f32 %v1010_v34, %v6341_v46  ;;  %v6481_v21 = vadd.f32 %v1011_v12, %v6344_v11  ;;  %v6484_v36 = vadd.f32 %v1012_v42, %v6347_v38  ;;  %v10914_v11 = vld [vmem:[#allocation47_spill] sm:$0xff]  ;;  %v10916_v38 = vld [vmem:[#allocation48_spill] sm:$0xff]  ;;  %v10937_v12 = vld [vmem:[#allocation34_spill] sm:$0xff] }
  0x9b   : > { %v6487_v18 = vadd.f32 %v1013_v39, %v6350_v28  ;;  %v6490_v30 = vadd.f32 %v1014_v20, %v6353_v56  ;;  %v6493_v53 = vadd.f32 %v1015_v45, %v6356_v8  ;;  %v6496_v35 = vadd.f32 %v1016_v52, %v6359_v9  ;;  %v10918_v28 = vld [vmem:[#allocation49_spill] sm:$0xff]  ;;  %v4370_v56 = vld [vmem:[%s10278_s3 + $0x9] ss:$0 sm:$0xff]  ;;  %v10920_v8 = vld [vmem:[#allocation54_spill] sm:$0xff] }
  0x9c   : > { %v6499_v46 = vadd.f32 %v1017_v58, %v6362_v19  ;;  %v6502_v5 = vadd.f32 %v1018_v33, %v10914_v11  ;;  %v6505_v25 = vadd.f32 %v1019_v50, %v10916_v38  ;;  %v6508_v16 = vadd.f32 %v1020_v22, %v10918_v28  ;;  %v10922_v9 = vld [vmem:[#allocation55_spill] sm:$0xff]  ;;  %v10924_v19 = vld [vmem:[#allocation56_spill] sm:$0xff]  ;;  %v10938_v39 = vld [vmem:[#allocation38_spill] sm:$0xff] }
  0x9d   : > { %v6514_v61 = vadd.f32 %v1021_v2, %v10920_v8  ;;  %v6517_v59 = vadd.f32 %v1022_v63, %v10922_v9  ;;  %v6520_v14 = vadd.f32 %v1023_v7, %v10924_v19  ;;  %v6523_v10 = vadd.f32 %v1024_v60, %v10926_v6  ;;  %v10934_v2 = vld [vmem:[#allocation93_spill] sm:$0xff]  ;;  %v10939_v45 = vld [vmem:[#allocation39_spill] sm:$0xff]  ;;  %v10940_v58 = vld [vmem:[#allocation40_spill] sm:$0xff] }
  0x9e   : > { %10915 = vst [vmem:[#allocation13_spill] sm:$0xff] %v6502_v5  ;;  %10917 = vst [vmem:[#allocation14_spill] sm:$0xff] %v6505_v25  ;;  %v6526_v31 = vadd.f32 %v1025_v1, %v10928_v26  ;;  %v6529_v44 = vadd.f32 %v1026_v40, %v10930_v51  ;;  %v6532_v54 = vadd.f32 %v1027_v4, %v10932_v49  ;;  %v10936_v63 = vld [vmem:[#allocation33_spill] sm:$0xff]  ;;  %v10942_v7 = vld [vmem:[#allocation44_spill] sm:$0xff] }
  0x9f   : > { %10919 = vst [vmem:[#allocation15_spill] sm:$0xff] %v6508_v16  ;;  %10921 = vst [vmem:[#allocation16_spill] sm:$0xff] %v6514_v61  ;;  %v6535_v43 = vadd.f32 %v1028_v29, %v10934_v2  ;;  %v1098_v34 = vmul.f32 %v4370_v56, %v10936_v63  ;;  %v1099_v42 = vmul.f32 %v4370_v56, %v10937_v12  ;;  %v10941_v50 = vld [vmem:[#allocation41_spill] sm:$0xff]  ;;  %v10944_v4 = vld [vmem:[#allocation46_spill] sm:$0xff] }
  0xa0   : > { %10923 = vst [vmem:[#allocation17_spill] sm:$0xff] %v6517_v59  ;;  %10925 = vst [vmem:[#allocation18_spill] sm:$0xff] %v6520_v14  ;;  %v1100_v20 = vmul.f32 %v4370_v56, %v10938_v39  ;;  %v1101_v52 = vmul.f32 %v4370_v56, %v10939_v45  ;;  %v1102_v33 = vmul.f32 %v4370_v56, %v10940_v58  ;;  %v10943_v1 = vld [vmem:[#allocation45_spill] sm:$0xff]  ;;  %v10945_v11 = vld [vmem:[#allocation51_spill] sm:$0xff] }
  0xa1   : > { %10927 = vst [vmem:[#allocation19_spill] sm:$0xff] %v6523_v10  ;;  %10929 = vst [vmem:[#allocation20_spill] sm:$0xff] %v6526_v31  ;;  %v1103_v22 = vmul.f32 %v4370_v56, %v10941_v50  ;;  %v1104_v60 = vmul.f32 %v4370_v56, %v10942_v7  ;;  %v1105_v40 = vmul.f32 %v4370_v56, %v10943_v1  ;;  %v10946_v28 = vld [vmem:[#allocation52_spill] sm:$0xff]  ;;  %v10947_v9 = vld [vmem:[#allocation53_spill] sm:$0xff] }
  0xa2   : > { %10931 = vst [vmem:[#allocation21_spill] sm:$0xff] %v6529_v44  ;;  %10933 = vst [vmem:[#allocation22_spill] sm:$0xff] %v6532_v54  ;;  %v1106_v29 = vmul.f32 %v4370_v56, %v10944_v4  ;;  %v1107_v38 = vmul.f32 %v4370_v56, %v10945_v11  ;;  %v1108_v8 = vmul.f32 %v4370_v56, %v10946_v28  ;;  %v10948_v6 = vld [vmem:[#allocation58_spill] sm:$0xff]  ;;  %v10949_v51 = vld [vmem:[#allocation59_spill] sm:$0xff] }
  0xa3   : > { %10935 = vst [vmem:[#allocation23_spill] sm:$0xff] %v6535_v43  ;;  %v1109_v19 = vmul.f32 %v4370_v56, %v10947_v9  ;;  %v1110_v26 = vmul.f32 %v4370_v56, %v10948_v6  ;;  %v1111_v49 = vmul.f32 %v4370_v56, %v10949_v51  ;;  %v10950_v2 = vld [vmem:[#allocation60_spill] sm:$0xff]  ;;  %v10951_v12 = vld [vmem:[#allocation61_spill] sm:$0xff]  ;;  %v6554_v45 = vld [vmem:[%s5300_s19 + $0x181] sm:$0xff]  ;;  %v1117_v9 = vmul.f32 %v4370_v56, %v10957_v37 }
  0xa4   : > { %v1112_v63 = vmul.f32 %v4370_v56, %v10950_v2  ;;  %v1113_v39 = vmul.f32 %v4370_v56, %v10951_v12  ;;  %10952 = vst [vmem:[#allocation24_spill] sm:$0xff] %v6554_v45  ;;  %v6557_v58 = vld [vmem:[%s5300_s19 + $0x189] sm:$0xff]  ;;  %v10954_v50 = vld [vmem:[#allocation62_spill] sm:$0xff]  ;;  %v1118_v6 = vmul.f32 %v4370_v56, %v10958_v15  ;;  %v10961_v44 = vld [vmem:[#allocation69_spill] sm:$0xff]  ;;  %v1128_v15 = vmul.f32 %v4370_v56, %v6554_v45 }
  0xa5   : > { %10953 = vst [vmem:[#allocation25_spill] sm:$0xff] %v6557_v58  ;;  %v1114_v7 = vmul.f32 %v4370_v56, %v10954_v50  ;;  %v10955_v1 = vld [vmem:[#allocation63_spill] sm:$0xff]  ;;  %v10956_v11 = vld [vmem:[#allocation64_spill] sm:$0xff]  ;;  %v1121_v12 = vmul.f32 %v4370_v56, %v10961_v44  ;;  %v10962_v31 = vld [vmem:[#allocation70_spill] sm:$0xff]  ;;  %v6579_v44 = vadd.f32 %v1099_v42, %v6442_v23  ;;  %v6600_v23 = vadd.f32 %v1106_v29, %v6463_v41 }
  0xa6   : > { %v1115_v4 = vmul.f32 %v4370_v56, %v10955_v1  ;;  %v1116_v28 = vmul.f32 %v4370_v56, %v10956_v11  ;;  %v10959_v43 = vld [vmem:[#allocation67_spill] sm:$0xff]  ;;  %v10960_v54 = vld [vmem:[#allocation68_spill] sm:$0xff]  ;;  %v1122_v10 = vmul.f32 %v4370_v56, %v10962_v31  ;;  %v10965_v16 = vld [vmem:[#allocation77_spill] sm:$0xff]  ;;  %v6621_v41 = vadd.f32 %v1113_v39, %v6484_v36 }
  0xa7   : > { %v1119_v51 = vmul.f32 %v4370_v56, %v10959_v43  ;;  %v1120_v2 = vmul.f32 %v4370_v56, %v10960_v54  ;;  %v10963_v14 = vld [vmem:[#allocation71_spill] sm:$0xff]  ;;  %v10964_v61 = vld [vmem:[#allocation76_spill] sm:$0xff]  ;;  %v1125_v1 = vmul.f32 %v4370_v56, %v10965_v16  ;;  %v10966_v25 = vld [vmem:[#allocation78_spill] sm:$0xff]  ;;  %v1129_v43 = vmul.f32 %v4370_v56, %v6557_v58 }
  0xa8   : > { %v1123_v59 = vmul.f32 %v4370_v56, %v10963_v14  ;;  %v1124_v50 = vmul.f32 %v4370_v56, %v10964_v61  ;;  %v1126_v11 = vmul.f32 %v4370_v56, %v10966_v25  ;;  %v10967_v5 = vld [vmem:[#allocation79_spill] sm:$0xff]  ;;  %v6576_v54 = vadd.f32 %v1098_v34, %v6439_v62  ;;  %v10970_v36 = vld [vmem:[#allocation14_spill] sm:$0xff]  ;;  %v11011_v58 = vld [vmem:[#allocation101_spill] sm:$0xff] }
  0xa9   : > { %v1127_v37 = vmul.f32 %v4370_v56, %v10967_v5  ;;  %v6582_v14 = vadd.f32 %v1100_v20, %v6445_v3  ;;  %v6585_v61 = vadd.f32 %v1101_v52, %v6448_v47  ;;  %v6588_v25 = vadd.f32 %v1102_v33, %v6451_v55  ;;  %v10980_v33 = vld [vmem:[#allocation19_spill] sm:$0xff]  ;;  %v10984_v29 = vld [vmem:[#allocation21_spill] sm:$0xff]  ;;  %v11012_v45 = vld [vmem:[#allocation102_spill] sm:$0xff] }
  0xaa   : > { %v6591_v5 = vadd.f32 %v1103_v22, %v6454_v27  ;;  %v6594_v16 = vadd.f32 %v1104_v60, %v6457_v32  ;;  %v6597_v62 = vadd.f32 %v1105_v40, %v6460_v13  ;;  %v6603_v3 = vadd.f32 %v1107_v38, %v6466_v24  ;;  %v10982_v60 = vld [vmem:[#allocation20_spill] sm:$0xff] }
  0xab   : > { %v6606_v47 = vadd.f32 %v1108_v8, %v6469_v0  ;;  %v6609_v55 = vadd.f32 %v1109_v19, %v6472_v48  ;;  %v6612_v27 = vadd.f32 %v1110_v26, %v6475_v17  ;;  %v6615_v32 = vadd.f32 %v1111_v49, %v6478_v57  ;;  %v10986_v8 = vld [vmem:[#allocation22_spill] sm:$0xff] }
  0xac   : > { %v6618_v13 = vadd.f32 %v1112_v63, %v6481_v21  ;;  %v6624_v24 = vadd.f32 %v1114_v7, %v6487_v18  ;;  %v6627_v0 = vadd.f32 %v1115_v4, %v6490_v30  ;;  %v6630_v48 = vadd.f32 %v1116_v28, %v6493_v53  ;;  %v10968_v21 = vld [vmem:[#allocation13_spill] sm:$0xff]  ;;  %v10972_v18 = vld [vmem:[#allocation15_spill] sm:$0xff]  ;;  %v10974_v53 = vld [vmem:[#allocation16_spill] sm:$0xff] }
  0xad   : > { %v6633_v17 = vadd.f32 %v1117_v9, %v6496_v35  ;;  %v6636_v57 = vadd.f32 %v1118_v6, %v6499_v46  ;;  %v6639_v56 = vadd.f32 %v1119_v51, %v10968_v21  ;;  %v6642_v31 = vadd.f32 %v1120_v2, %v10970_v36  ;;  %v4404_v30 = vld [vmem:[%s10278_s3 + $0xa] ss:$0 sm:$0xff]  ;;  %v10976_v35 = vld [vmem:[#allocation17_spill] sm:$0xff]  ;;  %v10978_v46 = vld [vmem:[#allocation18_spill] sm:$0xff] }
  0xae   : > { %v6645_v34 = vadd.f32 %v1121_v12, %v10972_v18  ;;  %v6651_v42 = vadd.f32 %v1122_v10, %v10974_v53  ;;  %v6654_v20 = vadd.f32 %v1123_v59, %v10976_v35  ;;  %v6657_v52 = vadd.f32 %v1124_v50, %v10978_v46  ;;  %v10988_v10 = vld [vmem:[#allocation23_spill] sm:$0xff]  ;;  %v10990_v59 = vld [vmem:[#allocation80_spill] sm:$0xff]  ;;  %v10991_v63 = vld [vmem:[#allocation81_spill] sm:$0xff] }
  0xaf   : > { %10969 = vst [vmem:[#allocation26_spill] sm:$0xff] %v6639_v56  ;;  %10971 = vst [vmem:[#allocation27_spill] sm:$0xff] %v6642_v31  ;;  %v6660_v22 = vadd.f32 %v1125_v1, %v10980_v33  ;;  %v6663_v40 = vadd.f32 %v1126_v11, %v10982_v60  ;;  %v6666_v38 = vadd.f32 %v1127_v37, %v10984_v29  ;;  %v10992_v7 = vld [vmem:[#allocation43_spill] sm:$0xff]  ;;  %v10993_v28 = vld [vmem:[#allocation82_spill] sm:$0xff] }
  0xb0   : > { %10973 = vst [vmem:[#allocation28_spill] sm:$0xff] %v6645_v34  ;;  %10975 = vst [vmem:[#allocation29_spill] sm:$0xff] %v6651_v42  ;;  %v6669_v19 = vadd.f32 %v1128_v15, %v10986_v8  ;;  %v6672_v26 = vadd.f32 %v1129_v43, %v10988_v10  ;;  %v1199_v49 = vmul.f32 %v4404_v30, %v10990_v59  ;;  %v10994_v6 = vld [vmem:[#allocation83_spill] sm:$0xff]  ;;  %v10995_v2 = vld [vmem:[#allocation84_spill] sm:$0xff] }
  0xb1   : > { %10977 = vst [vmem:[#allocation30_spill] sm:$0xff] %v6654_v20  ;;  %10979 = vst [vmem:[#allocation31_spill] sm:$0xff] %v6657_v52  ;;  %v1200_v39 = vmul.f32 %v4404_v30, %v10991_v63  ;;  %v1201_v4 = vmul.f32 %v4404_v30, %v10992_v7  ;;  %v1202_v9 = vmul.f32 %v4404_v30, %v10993_v28  ;;  %v10996_v50 = vld [vmem:[#allocation50_spill] sm:$0xff]  ;;  %v10997_v11 = vld [vmem:[#allocation85_spill] sm:$0xff] }
  0xb2   : > { %10981 = vst [vmem:[#allocation32_spill] sm:$0xff] %v6660_v22  ;;  %10983 = vst [vmem:[#allocation35_spill] sm:$0xff] %v6663_v40  ;;  %v1203_v51 = vmul.f32 %v4404_v30, %v10994_v6  ;;  %v1204_v12 = vmul.f32 %v4404_v30, %v10995_v2  ;;  %v1205_v1 = vmul.f32 %v4404_v30, %v10996_v50  ;;  %v10998_v15 = vld [vmem:[#allocation86_spill] sm:$0xff]  ;;  %v10999_v21 = vld [vmem:[#allocation87_spill] sm:$0xff] }
  0xb3   : > { %10985 = vst [vmem:[#allocation36_spill] sm:$0xff] %v6666_v38  ;;  %10987 = vst [vmem:[#allocation37_spill] sm:$0xff] %v6669_v19  ;;  %v1206_v37 = vmul.f32 %v4404_v30, %v10997_v11  ;;  %v1207_v43 = vmul.f32 %v4404_v30, %v10998_v15  ;;  %v1208_v36 = vmul.f32 %v4404_v30, %v10999_v21  ;;  %v11000_v18 = vld [vmem:[#allocation88_spill] sm:$0xff]  ;;  %v11001_v35 = vld [vmem:[#allocation89_spill] sm:$0xff] }
  0xb4   : > { %10989 = vst [vmem:[#allocation42_spill] sm:$0xff] %v6672_v26  ;;  %v1209_v53 = vmul.f32 %v4404_v30, %v11000_v18  ;;  %v1210_v46 = vmul.f32 %v4404_v30, %v11001_v35  ;;  %v11002_v33 = vld [vmem:[#allocation94_spill] sm:$0xff]  ;;  %v11003_v29 = vld [vmem:[#allocation95_spill] sm:$0xff]  ;;  %v11004_v10 = vld [vmem:[#allocation96_spill] sm:$0xff]  ;;  %v1218_v35 = vmul.f32 %v4404_v30, %v11011_v58 }
  0xb5   : > { %v1211_v60 = vmul.f32 %v4404_v30, %v11002_v33  ;;  %v1212_v8 = vmul.f32 %v4404_v30, %v11003_v29  ;;  %v1213_v59 = vmul.f32 %v4404_v30, %v11004_v10  ;;  %v11005_v63 = vld [vmem:[#allocation97_spill] sm:$0xff]  ;;  %v6691_v28 = vld [vmem:[%s5300_s19 + $0x182] sm:$0xff]  ;;  %v6694_v6 = vld [vmem:[%s5300_s19 + $0x18a] sm:$0xff]  ;;  %v1219_v33 = vmul.f32 %v4404_v30, %v11012_v45 }
  0xb6   : > { %v1214_v7 = vmul.f32 %v4404_v30, %v11005_v63  ;;  %11006 = vst [vmem:[#allocation72_spill] sm:$0xff] %v6691_v28  ;;  %11007 = vst [vmem:[#allocation73_spill] sm:$0xff] %v6694_v6  ;;  %v11008_v2 = vld [vmem:[#allocation98_spill] sm:$0xff]  ;;  %v11009_v11 = vld [vmem:[#allocation99_spill] sm:$0xff]  ;;  %v1229_v45 = vmul.f32 %v4404_v30, %v6691_v28 }
  0xb7   : > { %v1215_v50 = vmul.f32 %v4404_v30, %v11008_v2  ;;  %v1216_v15 = vmul.f32 %v4404_v30, %v11009_v11  ;;  %v11010_v21 = vld [vmem:[#allocation100_spill] sm:$0xff]  ;;  %v11013_v26 = vld [vmem:[#allocation103_spill] sm:$0xff]  ;;  %v11015_v38 = vld [vmem:[#allocation105_spill] sm:$0xff] }
  0xb8   : > { %v1217_v18 = vmul.f32 %v4404_v30, %v11010_v21  ;;  %v1220_v29 = vmul.f32 %v4404_v30, %v11013_v26  ;;  %v11014_v19 = vld [vmem:[#allocation104_spill] sm:$0xff]  ;;  %v1222_v63 = vmul.f32 %v4404_v30, %v11015_v38  ;;  %v11016_v40 = vld [vmem:[#allocation106_spill] sm:$0xff]  ;;  %v11017_v52 = vld [vmem:[#allocation107_spill] sm:$0xff]  ;;  %v1230_v26 = vmul.f32 %v4404_v30, %v6694_v6 }
  0xb9   : > { %v1221_v10 = vmul.f32 %v4404_v30, %v11014_v19  ;;  %v1223_v22 = vmul.f32 %v4404_v30, %v11016_v40  ;;  %v1224_v20 = vmul.f32 %v4404_v30, %v11017_v52  ;;  %v11018_v42 = vld [vmem:[#allocation108_spill] sm:$0xff]  ;;  %v11019_v34 = vld [vmem:[#allocation109_spill] sm:$0xff]  ;;  %v11020_v31 = vld [vmem:[#allocation110_spill] sm:$0xff]  ;;  %v6713_v19 = vadd.f32 %v1199_v49, %v6576_v54 }
  0xba   : > { %v1225_v2 = vmul.f32 %v4404_v30, %v11018_v42  ;;  %v1226_v11 = vmul.f32 %v4404_v30, %v11019_v34  ;;  %v1227_v21 = vmul.f32 %v4404_v30, %v11020_v31  ;;  %v11021_v56 = vld [vmem:[#allocation111_spill] sm:$0xff]  ;;  %v6716_v38 = vadd.f32 %v1200_v39, %v6579_v44 }
  0xbb   : > { %v1228_v58 = vmul.f32 %v4404_v30, %v11021_v56  ;;  %v6719_v52 = vadd.f32 %v1201_v4, %v6582_v14  ;;  %v6722_v42 = vadd.f32 %v1202_v9, %v6585_v61  ;;  %v6725_v31 = vadd.f32 %v1203_v51, %v6588_v25  ;;  %v11037_v51 = vld [vmem:[#allocation32_spill] sm:$0xff] }
  0xbc   : > { %v6728_v56 = vadd.f32 %v1204_v12, %v6591_v5  ;;  %v6731_v34 = vadd.f32 %v1205_v1, %v6594_v16  ;;  %v6734_v54 = vadd.f32 %v1206_v37, %v6597_v62  ;;  %v6737_v44 = vadd.f32 %v1207_v43, %v6600_v23  ;;  %v11039_v1 = vld [vmem:[#allocation35_spill] sm:$0xff]  ;;  %v11041_v43 = vld [vmem:[#allocation36_spill] sm:$0xff] }
  0xbd   : > { %v6740_v14 = vadd.f32 %v1208_v36, %v6603_v3  ;;  %v6743_v61 = vadd.f32 %v1209_v53, %v6606_v47  ;;  %v6746_v25 = vadd.f32 %v1210_v46, %v6609_v55  ;;  %v6749_v5 = vadd.f32 %v1211_v60, %v6612_v27  ;;  %v11043_v53 = vld [vmem:[#allocation37_spill] sm:$0xff] }
  0xbe   : > { %v6752_v16 = vadd.f32 %v1212_v8, %v6615_v32  ;;  %v6755_v62 = vadd.f32 %v1213_v59, %v6618_v13  ;;  %v6758_v23 = vadd.f32 %v1214_v7, %v6621_v41  ;;  %v6761_v3 = vadd.f32 %v1215_v50, %v6624_v24  ;;  %v11025_v13 = vld [vmem:[#allocation26_spill] sm:$0xff]  ;;  %v11027_v41 = vld [vmem:[#allocation27_spill] sm:$0xff]  ;;  %v11029_v24 = vld [vmem:[#allocation28_spill] sm:$0xff] }
  0xbf   : > { %v6764_v47 = vadd.f32 %v1216_v15, %v6627_v0  ;;  %v6767_v55 = vadd.f32 %v1217_v18, %v6630_v48  ;;  %v6770_v27 = vadd.f32 %v1218_v35, %v6633_v17  ;;  %v6773_v32 = vadd.f32 %v1219_v33, %v6636_v57  ;;  %v4438_v0 = vld [vmem:[%s10278_s3 + $0xb] ss:$0 sm:$0xff]  ;;  %v11031_v48 = vld [vmem:[#allocation29_spill] sm:$0xff]  ;;  %v11033_v17 = vld [vmem:[#allocation30_spill] sm:$0xff] }
  0xc0   : > { %v6776_v30 = vadd.f32 %v1220_v29, %v11025_v13  ;;  %v6779_v40 = vadd.f32 %v1221_v10, %v11027_v41  ;;  %v6782_v49 = vadd.f32 %v1222_v63, %v11029_v24  ;;  %v6788_v39 = vadd.f32 %v1223_v22, %v11031_v48  ;;  %v11035_v57 = vld [vmem:[#allocation31_spill] sm:$0xff]  ;;  %v11045_v22 = vld [vmem:[#allocation42_spill] sm:$0xff]  ;;  %v11048_v59 = vld [vmem:[#allocation113_spill] sm:$0xff] }
  0xc1   : > { %11022 = vst [vmem:[#allocation74_spill] sm:$0xff] %v6767_v55  ;;  %11023 = vst [vmem:[#allocation75_spill] sm:$0xff] %v6770_v27  ;;  %v6791_v4 = vadd.f32 %v1224_v20, %v11033_v17  ;;  %v6794_v9 = vadd.f32 %v1225_v2, %v11035_v57  ;;  %v6797_v12 = vadd.f32 %v1226_v11, %v11037_v51  ;;  %v11047_v20 = vld [vmem:[#allocation112_spill] sm:$0xff]  ;;  %v11049_v50 = vld [vmem:[#allocation114_spill] sm:$0xff]  ;;  %v4094_v51 = vpop.xlane.xlu1 %4093 }
  0xc2   : > { %11024 = vst [vmem:[#allocation47_spill] sm:$0xff] %v6773_v32  ;;  %11026 = vst [vmem:[#allocation48_spill] sm:$0xff] %v6776_v30  ;;  %v6800_v37 = vadd.f32 %v1227_v21, %v11039_v1  ;;  %v6803_v36 = vadd.f32 %v1228_v58, %v11041_v43  ;;  %v6806_v46 = vadd.f32 %v1229_v45, %v11043_v53  ;;  %v11050_v18 = vld [vmem:[#allocation115_spill] sm:$0xff]  ;;  %v11051_v33 = vld [vmem:[#allocation116_spill] sm:$0xff]  ;;  %v4067_v1 = vpop.xlane.xlu0 %4066 }
  0xc3   : > { %11028 = vst [vmem:[#allocation49_spill] sm:$0xff] %v6779_v40  ;;  %11030 = vst [vmem:[#allocation54_spill] sm:$0xff] %v6782_v49  ;;  %v6809_v60 = vadd.f32 %v1230_v26, %v11045_v22  ;;  %v1300_v8 = vmul.f32 %v4438_v0, %v11047_v20  ;;  %v1301_v7 = vmul.f32 %v4438_v0, %v11048_v59  ;;  %v11052_v10 = vld [vmem:[#allocation117_spill] sm:$0xff]  ;;  %v11053_v2 = vld [vmem:[#allocation118_spill] sm:$0xff] }
  0xc4   : > { %11032 = vst [vmem:[#allocation55_spill] sm:$0xff] %v6788_v39  ;;  %11034 = vst [vmem:[#allocation56_spill] sm:$0xff] %v6791_v4  ;;  %v1302_v15 = vmul.f32 %v4438_v0, %v11049_v50  ;;  %v1303_v35 = vmul.f32 %v4438_v0, %v11050_v18  ;;  %v1304_v29 = vmul.f32 %v4438_v0, %v11051_v33  ;;  %v11054_v21 = vld [vmem:[#allocation119_spill] sm:$0xff]  ;;  %v11055_v45 = vld [vmem:[#allocation120_spill] sm:$0xff] }
  0xc5   : > { %11036 = vst [vmem:[#allocation57_spill] sm:$0xff] %v6794_v9  ;;  %11038 = vst [vmem:[#allocation90_spill] sm:$0xff] %v6797_v12  ;;  %v1305_v63 = vmul.f32 %v4438_v0, %v11052_v10  ;;  %v1306_v11 = vmul.f32 %v4438_v0, %v11053_v2  ;;  %v1307_v58 = vmul.f32 %v4438_v0, %v11054_v21  ;;  %v11056_v13 = vld [vmem:[#allocation121_spill] sm:$0xff]  ;;  %v11057_v24 = vld [vmem:[#allocation122_spill] sm:$0xff]  ;;  %v4097_v39 = vpop.xlane.xlu1 %4096 }
  0xc6   : > { %11040 = vst [vmem:[#allocation91_spill] sm:$0xff] %v6800_v37  ;;  %11042 = vst [vmem:[#allocation92_spill] sm:$0xff] %v6803_v36  ;;  %v1308_v26 = vmul.f32 %v4438_v0, %v11055_v45  ;;  %v1309_v41 = vmul.f32 %v4438_v0, %v11056_v13  ;;  %v1310_v48 = vmul.f32 %v4438_v0, %v11057_v24  ;;  %v11058_v17 = vld [vmem:[#allocation123_spill] sm:$0xff]  ;;  %v6823_v43 = vld [vmem:[#allocation5] ss:$0 sm:$0xff]  ;;  %v4070_v49 = vpop.xlane.xlu0 %4069 }
  0xc7   : > { %11044 = vst [vmem:[#allocation93_spill] sm:$0xff] %v6806_v46  ;;  %11046 = vst [vmem:[#allocation33_spill] sm:$0xff] %v6809_v60  ;;  %v1311_v57 = vmul.f32 %v4438_v0, %v11058_v17  ;;  %v11059_v53 = vld [vmem:[#allocation124_spill] sm:$0xff]  ;;  %v11060_v20 = vld [vmem:[#allocation125_spill] sm:$0xff]  ;;  %v4104_v2 = vadd.f32 %v4094_v51, %v4067_v1 }
  0xc8   : > { %v1312_v22 = vmul.f32 %v4438_v0, %v11059_v53  ;;  %v1313_v59 = vmul.f32 %v4438_v0, %v11060_v20  ;;  %v11061_v50 = vld [vmem:[#allocation126_spill] sm:$0xff]  ;;  %v11062_v33 = vld [vmem:[#allocation127_spill] sm:$0xff]  ;;  %v11063_v21 = vld [vmem:[#allocation128_spill] sm:$0xff] }
  0xc9   : > { %v1314_v18 = vmul.f32 %v4438_v0, %v11061_v50  ;;  %v1315_v10 = vmul.f32 %v4438_v0, %v11062_v33  ;;  %v1316_v45 = vmul.f32 %v4438_v0, %v11063_v21  ;;  %v11064_v13 = vld [vmem:[#allocation129_spill] sm:$0xff]  ;;  %v11065_v24 = vld [vmem:[#allocation130_spill] sm:$0xff]  ;;  %v6833_v17 = vld [vmem:[%s5300_s19 + $0x183] sm:$0xff]  ;;  %v4115_v51 = vadd.f32 %v6823_v43, %v4104_v2 }
  0xca   : > { %v1317_v6 = vmul.f32 %v4438_v0, %v11064_v13  ;;  %v1318_v28 = vmul.f32 %v4438_v0, %v11065_v24  ;;  %11066 = vst [vmem:[#allocation34_spill] sm:$0xff] %v6833_v17  ;;  %v6836_v60 = vld [vmem:[%s5300_s19 + $0x18b] sm:$0xff]  ;;  %v11068_v46 = vld [vmem:[#allocation131_spill] sm:$0xff]  ;;  %v11070_v20 = vld [vmem:[#allocation133_spill] sm:$0xff]  ;;  %v1330_v2 = vmul.f32 %v4438_v0, %v6833_v17 }
  0xcb   : > { %11067 = vst [vmem:[#allocation38_spill] sm:$0xff] %v6836_v60  ;;  %v1319_v36 = vmul.f32 %v4438_v0, %v11068_v46  ;;  %v11069_v53 = vld [vmem:[#allocation132_spill] sm:$0xff]  ;;  %v1321_v12 = vmul.f32 %v4438_v0, %v11070_v20  ;;  %v11071_v50 = vld [vmem:[#allocation134_spill] sm:$0xff]  ;;  %v11072_v1 = vld [vmem:[#allocation135_spill] sm:$0xff]  ;;  %4121 = vperm.xlu0 %5082, %v4115_v51  }
  0xcc   : > { %v1320_v37 = vmul.f32 %v4438_v0, %v11069_v53  ;;  %v1322_v9 = vmul.f32 %v4438_v0, %v11071_v50  ;;  %v1323_v33 = vmul.f32 %v4438_v0, %v11072_v1  ;;  %v11073_v21 = vld [vmem:[#allocation136_spill] sm:$0xff]  ;;  %v11074_v4 = vld [vmem:[#allocation137_spill] sm:$0xff]  ;;  %v11075_v40 = vld [vmem:[#allocation138_spill] sm:$0xff]  ;;  %v4105_v50 = vadd.f32 %v4097_v39, %v4070_v49 }
  0xcd   : > { %v1324_v13 = vmul.f32 %v4438_v0, %v11073_v21  ;;  %v1325_v24 = vmul.f32 %v4438_v0, %v11074_v4  ;;  %v1326_v30 = vmul.f32 %v4438_v0, %v11075_v40  ;;  %v11076_v32 = vld [vmem:[#allocation139_spill] sm:$0xff]  ;;  %v11077_v27 = vld [vmem:[#allocation140_spill] sm:$0xff]  ;;  %v11078_v55 = vld [vmem:[#allocation141_spill] sm:$0xff]  ;;  %v1331_v1 = vmul.f32 %v4438_v0, %v6836_v60 }
  0xce   : > { %v1327_v46 = vmul.f32 %v4438_v0, %v11076_v32  ;;  %v1328_v53 = vmul.f32 %v4438_v0, %v11077_v27  ;;  %v1329_v20 = vmul.f32 %v4438_v0, %v11078_v55  ;;  %v6853_v21 = vadd.f32 %v1300_v8, %v6713_v19  ;;  %v4100_v0 = vpop.xlane.xlu1 %4099  ;;  %v11125_v60 = vld [vmem:[#allocation161_spill] sm:$0xff]  ;;  %v11126_v17 = vld [vmem:[#allocation162_spill] sm:$0xff] }
  0xcf   : > { %v6856_v4 = vadd.f32 %v1301_v7, %v6716_v38  ;;  %v6859_v40 = vadd.f32 %v1302_v15, %v6719_v52  ;;  %v6862_v32 = vadd.f32 %v1303_v35, %v6722_v42  ;;  %v6865_v55 = vadd.f32 %v1304_v29, %v6725_v31  ;;  %v4073_v52 = vpop.xlane.xlu0 %4072  ;;  %v11079_v7 = vld [vmem:[#allocation74_spill] sm:$0xff]  ;;  %v11080_v35 = vld [vmem:[#allocation75_spill] sm:$0xff] }
  0xd0   : > { %v4116_v27 = vadd.f32 %v6823_v43, %v4105_v50  ;;  %v6869_v49 = vadd.f32 %v1305_v63, %v6728_v56  ;;  %v6872_v19 = vadd.f32 %v1306_v11, %v6731_v34  ;;  %v6875_v38 = vadd.f32 %v1307_v58, %v6734_v54  ;;  %v11081_v29 = vld [vmem:[#allocation47_spill] sm:$0xff]  ;;  %v11082_v63 = vld [vmem:[#allocation48_spill] sm:$0xff]  ;;  %v11084_v11 = vld [vmem:[#allocation49_spill] sm:$0xff] }
  0xd1   : > { %v6878_v39 = vadd.f32 %v1308_v26, %v6737_v44  ;;  %v6881_v42 = vadd.f32 %v1309_v41, %v6740_v14  ;;  %v6884_v31 = vadd.f32 %v1310_v48, %v6743_v61  ;;  %v6887_v56 = vadd.f32 %v1311_v57, %v6746_v25  ;;  %v11086_v58 = vld [vmem:[#allocation54_spill] sm:$0xff]  ;;  %v11092_v57 = vld [vmem:[#allocation57_spill] sm:$0xff] }
  0xd2   : > { %4126 = vperm.xlu1 %5083, %v4116_v27   ;;  %v4106_v34 = vadd.f32 %v4100_v0, %v4073_v52  ;;  %v6890_v8 = vadd.f32 %v1312_v22, %v6749_v5  ;;  %v6893_v54 = vadd.f32 %v1313_v59, %v6752_v16  ;;  %v6896_v44 = vadd.f32 %v1314_v18, %v6755_v62  ;;  %v11094_v59 = vld [vmem:[#allocation90_spill] sm:$0xff]  ;;  %v11102_v50 = vld [vmem:[#allocation33_spill] sm:$0xff]  ;;  %v11105_v52 = vld [vmem:[#allocation143_spill] sm:$0xff] }
  0xd3   : > { %v6899_v14 = vadd.f32 %v1315_v10, %v6758_v23  ;;  %v6902_v61 = vadd.f32 %v1316_v45, %v6761_v3  ;;  %v6905_v25 = vadd.f32 %v1317_v6, %v6764_v47  ;;  %v6908_v15 = vadd.f32 %v1318_v28, %v11079_v7  ;;  %v4472_v3 = vld [vmem:[%s10278_s3 + $0xc] ss:$0 sm:$0xff]  ;;  %v4103_v6 = vpop.xlane.xlu1 %4102  ;;  %v4076_v47 = vpop.xlane.xlu0 %4075  ;;  %v11096_v10 = vld [vmem:[#allocation91_spill] sm:$0xff]  ;;  %v11104_v27 = vld [vmem:[#allocation142_spill] sm:$0xff] }
  0xd4   : > { %v4117_v5 = vadd.f32 %v6823_v43, %v4106_v34  ;;  %v6912_v16 = vadd.f32 %v1319_v36, %v11080_v35  ;;  %v6915_v62 = vadd.f32 %v1320_v37, %v11081_v29  ;;  %v6918_v23 = vadd.f32 %v1321_v12, %v11082_v63  ;;  %v11088_v36 = vld [vmem:[#allocation55_spill] sm:$0xff]  ;;  %v11090_v37 = vld [vmem:[#allocation56_spill] sm:$0xff] }
  0xd5   : > { %v6924_v28 = vadd.f32 %v1322_v9, %v11084_v11  ;;  %v6927_v26 = vadd.f32 %v1323_v33, %v11086_v58  ;;  %v6930_v41 = vadd.f32 %v1324_v13, %v11088_v36  ;;  %v6933_v48 = vadd.f32 %v1325_v24, %v11090_v37  ;;  %v11098_v45 = vld [vmem:[#allocation92_spill] sm:$0xff]  ;;  %v11100_v33 = vld [vmem:[#allocation93_spill] sm:$0xff]  ;;  %v11109_v29 = vld [vmem:[#allocation147_spill] sm:$0xff] }
  0xd6   : > { %11083 = vst [vmem:[#allocation39_spill] sm:$0xff] %v6918_v23  ;;  %4131 = vperm.xlu1 %5083, %v4117_v5   ;;  %v4107_v12 = vadd.f32 %v4103_v6, %v4076_v47  ;;  %v6936_v22 = vadd.f32 %v1326_v30, %v11092_v57  ;;  %v6939_v18 = vadd.f32 %v1327_v46, %v11094_v59  ;;  %v11106_v46 = vld [vmem:[#allocation144_spill] sm:$0xff]  ;;  %v11112_v11 = vld [vmem:[#allocation150_spill] sm:$0xff]  ;;  %v11115_v57 = vld [vmem:[#allocation153_spill] sm:$0xff] }
  0xd7   : > { %11085 = vst [vmem:[#allocation40_spill] sm:$0xff] %v6924_v28  ;;  %11087 = vst [vmem:[#allocation41_spill] sm:$0xff] %v6927_v26  ;;  %v6942_v9 = vadd.f32 %v1328_v53, %v11096_v10  ;;  %v6945_v51 = vadd.f32 %v1329_v20, %v11098_v45  ;;  %v6948_v13 = vadd.f32 %v1330_v2, %v11100_v33  ;;  %v11107_v53 = vld [vmem:[#allocation145_spill] sm:$0xff]  ;;  %v11108_v20 = vld [vmem:[#allocation146_spill] sm:$0xff] }
  0xd8   : > { %11089 = vst [vmem:[#allocation44_spill] sm:$0xff] %v6930_v41  ;;  %11091 = vst [vmem:[#allocation45_spill] sm:$0xff] %v6933_v48  ;;  %v6951_v24 = vadd.f32 %v1331_v1, %v11102_v50  ;;  %v1401_v0 = vmul.f32 %v4472_v3, %v11104_v27  ;;  %v4118_v30 = vadd.f32 %v6823_v43, %v4107_v12  ;;  %v11110_v63 = vld [vmem:[#allocation148_spill] sm:$0xff]  ;;  %v11111_v1 = vld [vmem:[#allocation149_spill] sm:$0xff] }
  0xd9   : > { %11093 = vst [vmem:[#allocation46_spill] sm:$0xff] %v6936_v22  ;;  %11095 = vst [vmem:[#allocation51_spill] sm:$0xff] %v6939_v18  ;;  %v1402_v34 = vmul.f32 %v4472_v3, %v11105_v52  ;;  %v1403_v7 = vmul.f32 %v4472_v3, %v11106_v46  ;;  %v1404_v5 = vmul.f32 %v4472_v3, %v11107_v53  ;;  %v11113_v43 = vld [vmem:[#allocation151_spill] sm:$0xff]  ;;  %v11114_v37 = vld [vmem:[#allocation152_spill] sm:$0xff] }
  0xda   : > { %11097 = vst [vmem:[#allocation52_spill] sm:$0xff] %v6942_v9  ;;  %11099 = vst [vmem:[#allocation53_spill] sm:$0xff] %v6945_v51  ;;  %v1405_v35 = vmul.f32 %v4472_v3, %v11108_v20  ;;  %v1406_v2 = vmul.f32 %v4472_v3, %v11109_v29  ;;  %v1407_v6 = vmul.f32 %v4472_v3, %v11110_v63  ;;  %4136 = vperm.xlu1 %5083, %v4118_v30   ;;  %v11116_v10 = vld [vmem:[#allocation154_spill] sm:$0xff]  ;;  %v11117_v33 = vld [vmem:[#allocation155_spill] sm:$0xff] }
  0xdb   : > { %11101 = vst [vmem:[#allocation58_spill] sm:$0xff] %v6948_v13  ;;  %11103 = vst [vmem:[#allocation59_spill] sm:$0xff] %v6951_v24  ;;  %v1408_v47 = vmul.f32 %v4472_v3, %v11111_v1  ;;  %v1409_v58 = vmul.f32 %v4472_v3, %v11112_v11  ;;  %v1410_v36 = vmul.f32 %v4472_v3, %v11113_v43  ;;  %v11118_v27 = vld [vmem:[#allocation156_spill] sm:$0xff]  ;;  %v11119_v46 = vld [vmem:[#allocation157_spill] sm:$0xff] }
  0xdc   : > { %v1411_v12 = vmul.f32 %v4472_v3, %v11114_v37  ;;  %v1412_v59 = vmul.f32 %v4472_v3, %v11115_v57  ;;  %v1413_v45 = vmul.f32 %v4472_v3, %v11116_v10  ;;  %v1414_v50 = vmul.f32 %v4472_v3, %v11117_v33  ;;  %v6971_v20 = vld [vmem:[%s5300_s19 + $0x184] sm:$0xff]  ;;  %v6974_v29 = vld [vmem:[%s5300_s19 + $0x18c] sm:$0xff]  ;;  %v11122_v30 = vld [vmem:[#allocation158_spill] sm:$0xff] }
  0xdd   : > { %v1415_v52 = vmul.f32 %v4472_v3, %v11118_v27  ;;  %v1416_v53 = vmul.f32 %v4472_v3, %v11119_v46  ;;  %11120 = vst [vmem:[#allocation60_spill] sm:$0xff] %v6971_v20  ;;  %11121 = vst [vmem:[#allocation61_spill] sm:$0xff] %v6974_v29  ;;  %v1417_v63 = vmul.f32 %v4472_v3, %v11122_v30  ;;  %v11123_v1 = vld [vmem:[#allocation159_spill] sm:$0xff]  ;;  %v11124_v43 = vld [vmem:[#allocation160_spill] sm:$0xff] }
  0xde   : > { %v1418_v11 = vmul.f32 %v4472_v3, %v11123_v1  ;;  %v1419_v37 = vmul.f32 %v4472_v3, %v11124_v43  ;;  %v1420_v57 = vmul.f32 %v4472_v3, %v11125_v60  ;;  %v1421_v10 = vmul.f32 %v4472_v3, %v11126_v17  ;;  %v11127_v24 = vld [vmem:[#allocation163_spill] sm:$0xff]  ;;  %v11128_v13 = vld [vmem:[#allocation164_spill] sm:$0xff]  ;;  %v11129_v51 = vld [vmem:[#allocation165_spill] sm:$0xff] }
  0xdf   : > { %v1422_v33 = vmul.f32 %v4472_v3, %v11127_v24  ;;  %v1423_v27 = vmul.f32 %v4472_v3, %v11128_v13  ;;  %v1424_v46 = vmul.f32 %v4472_v3, %v11129_v51  ;;  %v11130_v9 = vld [vmem:[#allocation166_spill] sm:$0xff]  ;;  %v11131_v22 = vld [vmem:[#allocation167_spill] sm:$0xff]  ;;  %v11132_v41 = vld [vmem:[#allocation168_spill] sm:$0xff]  ;;  %v1431_v17 = vmul.f32 %v4472_v3, %v6971_v20 }
  0xe0   : > { %v1425_v18 = vmul.f32 %v4472_v3, %v11130_v9  ;;  %v1426_v48 = vmul.f32 %v4472_v3, %v11131_v22  ;;  %v1427_v30 = vmul.f32 %v4472_v3, %v11132_v41  ;;  %v11133_v26 = vld [vmem:[#allocation169_spill] sm:$0xff]  ;;  %v11134_v28 = vld [vmem:[#allocation170_spill] sm:$0xff]  ;;  %v11135_v23 = vld [vmem:[#allocation171_spill] sm:$0xff]  ;;  %v1432_v24 = vmul.f32 %v4472_v3, %v6974_v29 }
  0xe1   : > { %v1428_v1 = vmul.f32 %v4472_v3, %v11133_v26  ;;  %v1429_v43 = vmul.f32 %v4472_v3, %v11134_v28  ;;  %v1430_v60 = vmul.f32 %v4472_v3, %v11135_v23  ;;  %v6993_v13 = vadd.f32 %v1401_v0, %v6853_v21  ;;  %v4473_v26 = vld [vmem:[%s5300_s19 + $0x30] sm:$0xff]  ;;  %v7043_v22 = vld [vmem:[%s5300_s19 + $0x48] sm:$0xff]  ;;  %v7061_v51 = vld [vmem:[%s5300_s19 + $0x60] sm:$0xff] }
  0xe2   : > { %v6996_v9 = vadd.f32 %v1402_v34, %v6856_v4  ;;  %v6999_v41 = vadd.f32 %v1403_v7, %v6859_v40  ;;  %v7002_v28 = vadd.f32 %v1404_v5, %v6862_v32  ;;  %v7005_v23 = vadd.f32 %v1405_v35, %v6865_v55  ;;  %11136 = vst [vmem:[#allocation62_spill] sm:$0xff] %v7043_v22  ;;  %v7064_v0 = vld [vmem:[%s5300_s19 + $0x68] sm:$0xff]  ;;  %v7067_v34 = vld [vmem:[%s5300_s19 + $0x78] sm:$0xff] }
  0xe3   : > { %v7008_v3 = vadd.f32 %v1406_v2, %v6869_v49  ;;  %v7011_v21 = vadd.f32 %v1407_v6, %v6872_v19  ;;  %v7014_v4 = vadd.f32 %v1408_v47, %v6875_v38  ;;  %v7017_v40 = vadd.f32 %v1409_v58, %v6878_v39  ;;  %11138 = vst [vmem:[#allocation64_spill] sm:$0xff] %v7061_v51  ;;  %v11142_v7 = vld [vmem:[#allocation39_spill] sm:$0xff]  ;;  %v11144_v5 = vld [vmem:[#allocation40_spill] sm:$0xff]  ;;  %v11146_v35 = vld [vmem:[#allocation41_spill] sm:$0xff] }
  0xe4   : > { %v7020_v32 = vadd.f32 %v1410_v36, %v6881_v42  ;;  %v7023_v55 = vadd.f32 %v1411_v12, %v6884_v31  ;;  %v7026_v49 = vadd.f32 %v1412_v59, %v6887_v56  ;;  %v7029_v19 = vadd.f32 %v1413_v45, %v6890_v8  ;;  %v4474_v31 = vld [vmem:[%s5300_s19 + $0x38] sm:$0xff]  ;;  %v7046_v56 = vld [vmem:[%s5300_s19 + $0x50] sm:$0xff]  ;;  %11139 = vst [vmem:[#allocation65_spill] sm:$0xff] %v7064_v0 }
  0xe5   : > { %v7032_v38 = vadd.f32 %v1414_v50, %v6893_v54  ;;  %v7035_v39 = vadd.f32 %v1415_v52, %v6896_v44  ;;  %v7038_v42 = vadd.f32 %v1416_v53, %v6899_v14  ;;  %11137 = vst [vmem:[#allocation63_spill] sm:$0xff] %v7046_v56  ;;  %v7049_v8 = vadd.f32 %v1417_v63, %v6902_v61  ;;  %v7070_v61 = vld [vmem:[%s5300_s19 + $0x80] sm:$0xff]  ;;  %v7085_v6 = vld [vmem:[%s5300_s19 + $0x90] sm:$0xff]  ;;  %v7088_v47 = vld [vmem:[%s5300_s19 + $0x98] sm:$0xff] }
  0xe6   : > { %v7052_v54 = vadd.f32 %v1418_v11, %v6905_v25  ;;  %v7055_v44 = vadd.f32 %v1419_v37, %v6908_v15  ;;  %v7058_v14 = vadd.f32 %v1420_v57, %v6912_v16  ;;  %11140 = vst [vmem:[#allocation66_spill] sm:$0xff] %v7067_v34  ;;  %11141 = vst [vmem:[#allocation67_spill] sm:$0xff] %v7070_v61  ;;  %v11150_v58 = vld [vmem:[#allocation44_spill] sm:$0xff]  ;;  %v11152_v12 = vld [vmem:[#allocation45_spill] sm:$0xff] }
  0xe7   : > { %v7073_v25 = vadd.f32 %v1421_v10, %v6915_v62  ;;  %v7076_v15 = vadd.f32 %v1422_v33, %v11142_v7  ;;  %v7079_v16 = vadd.f32 %v1423_v27, %v11144_v5  ;;  %v7082_v2 = vadd.f32 %v1424_v46, %v11146_v35  ;;  %11148 = vst [vmem:[#allocation71_spill] sm:$0xff] %v7085_v6  ;;  %v4506_v62 = vld [vmem:[%s10278_s3 + $0x10] ss:$0 sm:$0xff]  ;;  %v11154_v45 = vld [vmem:[#allocation46_spill] sm:$0xff]  ;;  %v11156_v52 = vld [vmem:[#allocation51_spill] sm:$0xff] }
  0xe8   : > { %11149 = vst [vmem:[#allocation76_spill] sm:$0xff] %v7088_v47  ;;  %v7094_v36 = vadd.f32 %v1425_v18, %v11150_v58  ;;  %v7097_v59 = vadd.f32 %v1426_v48, %v11152_v12  ;;  %v7100_v50 = vadd.f32 %v1427_v30, %v11154_v45  ;;  %v7103_v53 = vadd.f32 %v1428_v1, %v11156_v52  ;;  %v7106_v63 = vld [vmem:[%s5300_s19 + $0xa8] sm:$0xff]  ;;  %v7109_v11 = vld [vmem:[%s5300_s19 + $0xb0] sm:$0xff]  ;;  %v7112_v37 = vld [vmem:[%s5300_s19 + $0xc0] sm:$0xff] }
  0xe9   : > { %11143 = vst [vmem:[#allocation68_spill] sm:$0xff] %v7076_v15  ;;  %11145 = vst [vmem:[#allocation69_spill] sm:$0xff] %v7079_v16  ;;  %v11161_v57 = vld [vmem:[#allocation52_spill] sm:$0xff]  ;;  %v11163_v10 = vld [vmem:[#allocation53_spill] sm:$0xff]  ;;  %v1505_v58 = vmul.f32 %v4506_v62, %v4474_v31  ;;  %v1507_v12 = vmul.f32 %v4506_v62, %v7046_v56  ;;  %v1511_v31 = vmul.f32 %v4506_v62, %v7070_v61 }
  0xea   : > { %11147 = vst [vmem:[#allocation70_spill] sm:$0xff] %v7082_v2  ;;  %11151 = vst [vmem:[#allocation77_spill] sm:$0xff] %v7094_v36  ;;  %v7115_v18 = vadd.f32 %v1429_v43, %v11161_v57  ;;  %v7118_v48 = vadd.f32 %v1430_v60, %v11163_v10  ;;  %v11165_v33 = vld [vmem:[#allocation58_spill] sm:$0xff]  ;;  %v11167_v46 = vld [vmem:[#allocation59_spill] sm:$0xff]  ;;  %v1508_v10 = vmul.f32 %v4506_v62, %v7061_v51 }
  0xeb   : > { %11153 = vst [vmem:[#allocation78_spill] sm:$0xff] %v7097_v59  ;;  %11155 = vst [vmem:[#allocation79_spill] sm:$0xff] %v7100_v50  ;;  %v7121_v27 = vadd.f32 %v1431_v17, %v11165_v33  ;;  %v7124_v30 = vadd.f32 %v1432_v24, %v11167_v46  ;;  %v7127_v1 = vld [vmem:[%s5300_s19 + $0xc8] sm:$0xff]  ;;  %v7130_v7 = vld [vmem:[%s5300_s19 + $0xd8] sm:$0xff]  ;;  %v1504_v17 = vmul.f32 %v4506_v62, %v4473_v26 }
  0xec   : > { %11157 = vst [vmem:[#allocation13_spill] sm:$0xff] %v7103_v53  ;;  %11158 = vst [vmem:[#allocation14_spill] sm:$0xff] %v7106_v63  ;;  %v7133_v5 = vld [vmem:[%s5300_s19 + $0xe0] sm:$0xff]  ;;  %v7136_v43 = vld [vmem:[%s5300_s19 + $0xf0] sm:$0xff]  ;;  %v1506_v24 = vmul.f32 %v4506_v62, %v7043_v22  ;;  %v1509_v33 = vmul.f32 %v4506_v62, %v7064_v0  ;;  %v1510_v26 = vmul.f32 %v4506_v62, %v7067_v34 }
  0xed   : > { %11159 = vst [vmem:[#allocation15_spill] sm:$0xff] %v7109_v11  ;;  %11160 = vst [vmem:[#allocation16_spill] sm:$0xff] %v7112_v37  ;;  %v7139_v35 = vld [vmem:[%s5300_s19 + $0xf8] sm:$0xff]  ;;  %v7142_v60 = vld [vmem:[%s5300_s19 + $0x108] sm:$0xff]  ;;  %v1512_v29 = vmul.f32 %v4506_v62, %v7085_v6  ;;  %v1513_v20 = vmul.f32 %v4506_v62, %v7088_v47  ;;  %v1514_v51 = vmul.f32 %v4506_v62, %v7106_v63 }
  0xee   : > { %11162 = vst [vmem:[#allocation17_spill] sm:$0xff] %v7115_v18  ;;  %11164 = vst [vmem:[#allocation18_spill] sm:$0xff] %v7118_v48  ;;  %v7147_v45 = vld [vmem:[%s5300_s19 + $0x110] sm:$0xff]  ;;  %v7150_v52 = vld [vmem:[%s5300_s19 + $0x120] sm:$0xff]  ;;  %v1515_v0 = vmul.f32 %v4506_v62, %v7109_v11  ;;  %v1517_v48 = vmul.f32 %v4506_v62, %v7127_v1  ;;  %v1518_v18 = vmul.f32 %v4506_v62, %v7130_v7 }
  0xef   : > { %11166 = vst [vmem:[#allocation19_spill] sm:$0xff] %v7121_v27  ;;  %11168 = vst [vmem:[#allocation20_spill] sm:$0xff] %v7124_v30  ;;  %v7153_v57 = vld [vmem:[%s5300_s19 + $0x128] sm:$0xff]  ;;  %v7160_v46 = vld [vmem:[%s5300_s19 + $0x138] sm:$0xff]  ;;  %v1516_v27 = vmul.f32 %v4506_v62, %v7112_v37  ;;  %v1519_v6 = vmul.f32 %v4506_v62, %v7133_v5  ;;  %v1520_v11 = vmul.f32 %v4506_v62, %v7136_v43 }
  0xf0   : > { %11169 = vst [vmem:[#allocation21_spill] sm:$0xff] %v7127_v1  ;;  %11170 = vst [vmem:[#allocation22_spill] sm:$0xff] %v7130_v7  ;;  %v7163_v56 = vld [vmem:[%s5300_s19 + $0x140] sm:$0xff]  ;;  %v7166_v22 = vld [vmem:[%s5300_s19 + $0x150] sm:$0xff]  ;;  %v1521_v63 = vmul.f32 %v4506_v62, %v7139_v35  ;;  %v1522_v50 = vmul.f32 %v4506_v62, %v7142_v60  ;;  %v1523_v59 = vmul.f32 %v4506_v62, %v7147_v45 }
  0xf1   : > { %11171 = vst [vmem:[#allocation23_spill] sm:$0xff] %v7133_v5  ;;  %11172 = vst [vmem:[#allocation80_spill] sm:$0xff] %v7136_v43  ;;  %v7173_v30 = vld [vmem:[%s5300_s19 + $0x158] sm:$0xff]  ;;  %v7176_v34 = vld [vmem:[%s5300_s19 + $0x168] sm:$0xff]  ;;  %v1524_v37 = vmul.f32 %v4506_v62, %v7150_v52  ;;  %v1525_v1 = vmul.f32 %v4506_v62, %v7153_v57  ;;  %v1526_v7 = vmul.f32 %v4506_v62, %v7160_v46 }
  0xf2   : > { %11173 = vst [vmem:[#allocation81_spill] sm:$0xff] %v7139_v35  ;;  %11174 = vst [vmem:[#allocation43_spill] sm:$0xff] %v7142_v60  ;;  %v7179_v61 = vld [vmem:[%s5300_s19 + $0x170] sm:$0xff]  ;;  %v7186_v53 = vld [vmem:[%s5300_s19 + $0x198] sm:$0xff]  ;;  %v1527_v5 = vmul.f32 %v4506_v62, %v7163_v56  ;;  %v1528_v36 = vmul.f32 %v4506_v62, %v7166_v22  ;;  %v1529_v2 = vmul.f32 %v4506_v62, %v7173_v30 }
  0xf3   : > { %11175 = vst [vmem:[#allocation82_spill] sm:$0xff] %v7147_v45  ;;  %11176 = vst [vmem:[#allocation83_spill] sm:$0xff] %v7150_v52  ;;  %v7189_v47 = vld [vmem:[%s5300_s19 + $0x1a0] sm:$0xff]  ;;  %v1530_v43 = vmul.f32 %v4506_v62, %v7176_v34  ;;  %v1531_v35 = vmul.f32 %v4506_v62, %v7179_v61  ;;  %v11187_v15 = vld [vmem:[#allocation12_spill] sm:$0xff]  ;;  %v1534_v52 = vmul.f32 %v4506_v62, %v7186_v53 }
  0xf4   : > { %11177 = vst [vmem:[#allocation84_spill] sm:$0xff] %v7153_v57  ;;  %11178 = vst [vmem:[#allocation50_spill] sm:$0xff] %v7160_v46  ;;  %v11186_v16 = vld [vmem:[#allocation11_spill] sm:$0xff]  ;;  %v1533_v45 = vmul.f32 %v4506_v62, %v11187_v15  ;;  %v1535_v57 = vmul.f32 %v4506_v62, %v7189_v47  ;;  %v7208_v46 = vadd.f32 %v1504_v17, %v6993_v13 }
  0xf5   : > { %11179 = vst [vmem:[#allocation85_spill] sm:$0xff] %v7163_v56  ;;  %11180 = vst [vmem:[#allocation86_spill] sm:$0xff] %v7166_v22  ;;  %v1532_v60 = vmul.f32 %v4506_v62, %v11186_v16  ;;  %v7211_v22 = vadd.f32 %v1505_v58, %v6996_v9  ;;  %v7217_v16 = vadd.f32 %v1507_v12, %v7002_v28  ;;  %v11208_v58 = vld [vmem:[#allocation13_spill] sm:$0xff]  ;;  %v7321_v12 = vld [vmem:[%s5300_s19 + $0xa9] sm:$0xff] }
  0xf6   : > { %11181 = vst [vmem:[#allocation87_spill] sm:$0xff] %v7173_v30  ;;  %11182 = vst [vmem:[#allocation88_spill] sm:$0xff] %v7176_v34  ;;  %v7214_v34 = vadd.f32 %v1506_v24, %v6999_v41  ;;  %v7220_v15 = vadd.f32 %v1508_v10, %v7005_v23  ;;  %v7223_v62 = vadd.f32 %v1509_v33, %v7008_v3  ;;  %v7324_v10 = vld [vmem:[%s5300_s19 + $0xb1] sm:$0xff]  ;;  %v7327_v33 = vld [vmem:[%s5300_s19 + $0xc1] sm:$0xff] }
  0xf7   : > { %11183 = vst [vmem:[#allocation89_spill] sm:$0xff] %v7179_v61  ;;  %11184 = vst [vmem:[#allocation94_spill] sm:$0xff] %v7186_v53  ;;  %v7226_v13 = vadd.f32 %v1510_v26, %v7011_v21  ;;  %v7229_v9 = vadd.f32 %v1511_v31, %v7014_v4  ;;  %v7232_v41 = vadd.f32 %v1512_v29, %v7017_v40  ;;  %v4507_v40 = vld [vmem:[%s5300_s19 + $0x31] sm:$0xff]  ;;  %v11215_v31 = vld [vmem:[#allocation18_spill] sm:$0xff] }
  0xf8   : > { %11185 = vst [vmem:[#allocation95_spill] sm:$0xff] %v7189_v47  ;;  %v7235_v28 = vadd.f32 %v1513_v20, %v7020_v32  ;;  %v7238_v23 = vadd.f32 %v1514_v51, %v7023_v55  ;;  %v7241_v3 = vadd.f32 %v1515_v0, %v7026_v49  ;;  %v7244_v21 = vadd.f32 %v1516_v27, %v7029_v19  ;;  %v4508_v32 = vld [vmem:[%s5300_s19 + $0x39] sm:$0xff]  ;;  %v7258_v55 = vld [vmem:[%s5300_s19 + $0x49] sm:$0xff]  ;;  %v7261_v49 = vld [vmem:[%s5300_s19 + $0x51] sm:$0xff] }
  0xf9   : > { %v7247_v4 = vadd.f32 %v1517_v48, %v7032_v38  ;;  %v7250_v29 = vadd.f32 %v1518_v18, %v7035_v39  ;;  %v7253_v20 = vadd.f32 %v1519_v6, %v7038_v42  ;;  %11188 = vst [vmem:[#allocation96_spill] sm:$0xff] %v7258_v55  ;;  %11189 = vst [vmem:[#allocation97_spill] sm:$0xff] %v7261_v49  ;;  %v7276_v51 = vld [vmem:[%s5300_s19 + $0x61] sm:$0xff]  ;;  %v7279_v0 = vld [vmem:[%s5300_s19 + $0x69] sm:$0xff] }
  0xfa   : > { %v7264_v19 = vadd.f32 %v1520_v11, %v7049_v8  ;;  %v7267_v38 = vadd.f32 %v1521_v63, %v7052_v54  ;;  %v7270_v39 = vadd.f32 %v1522_v50, %v7055_v44  ;;  %v7273_v42 = vadd.f32 %v1523_v59, %v7058_v14  ;;  %11190 = vst [vmem:[#allocation98_spill] sm:$0xff] %v7276_v51  ;;  %v7282_v6 = vld [vmem:[%s5300_s19 + $0x79] sm:$0xff]  ;;  %v7285_v8 = vld [vmem:[%s5300_s19 + $0x81] sm:$0xff]  ;;  %v11194_v63 = vld [vmem:[#allocation68_spill] sm:$0xff] }
  0xfb   : > { %11191 = vst [vmem:[#allocation99_spill] sm:$0xff] %v7279_v0  ;;  %11192 = vst [vmem:[#allocation100_spill] sm:$0xff] %v7282_v6  ;;  %v7288_v54 = vadd.f32 %v1524_v37, %v7073_v25  ;;  %v7291_v44 = vadd.f32 %v1525_v1, %v11194_v63  ;;  %v11196_v50 = vld [vmem:[#allocation69_spill] sm:$0xff]  ;;  %v11198_v59 = vld [vmem:[#allocation70_spill] sm:$0xff]  ;;  %v7318_v24 = vadd.f32 %v1531_v35, %v11208_v58 }
  0xfc   : > { %11193 = vst [vmem:[#allocation101_spill] sm:$0xff] %v7285_v8  ;;  %v7294_v14 = vadd.f32 %v1526_v7, %v11196_v50  ;;  %v7297_v11 = vadd.f32 %v1527_v5, %v11198_v59  ;;  %v7300_v18 = vld [vmem:[%s5300_s19 + $0x91] sm:$0xff]  ;;  %v7303_v48 = vld [vmem:[%s5300_s19 + $0x99] sm:$0xff]  ;;  %v11206_v5 = vld [vmem:[#allocation79_spill] sm:$0xff] }
  0xfd   : > { %11195 = vst [vmem:[#allocation102_spill] sm:$0xff] %v7291_v44  ;;  %11200 = vst [vmem:[#allocation105_spill] sm:$0xff] %v7300_v18  ;;  %v4540_v25 = vld [vmem:[%s10278_s3 + $0x11] ss:$0 sm:$0xff]  ;;  %v11202_v37 = vld [vmem:[#allocation77_spill] sm:$0xff]  ;;  %v7315_v17 = vadd.f32 %v1530_v43, %v11206_v5 }
  0xfe   : > { %11197 = vst [vmem:[#allocation103_spill] sm:$0xff] %v7294_v14  ;;  %11199 = vst [vmem:[#allocation104_spill] sm:$0xff] %v7297_v11  ;;  %v7309_v27 = vadd.f32 %v1528_v36, %v11202_v37  ;;  %v11204_v1 = vld [vmem:[#allocation78_spill] sm:$0xff]  ;;  %v11213_v26 = vld [vmem:[#allocation17_spill] sm:$0xff]  ;;  %v1606_v58 = vmul.f32 %v4540_v25, %v4508_v32  ;;  %v1609_v47 = vmul.f32 %v4540_v25, %v7276_v51 }
  0xff   : > { %11201 = vst [vmem:[#allocation106_spill] sm:$0xff] %v7303_v48  ;;  %v7312_v7 = vadd.f32 %v1529_v2, %v11204_v1  ;;  %11207 = vst [vmem:[#allocation109_spill] sm:$0xff] %v7315_v17  ;;  %v7330_v36 = vadd.f32 %v1532_v60, %v11213_v26  ;;  %v7333_v2 = vadd.f32 %v1533_v45, %v11215_v31  ;;  %v11217_v43 = vld [vmem:[#allocation19_spill] sm:$0xff]  ;;  %v11219_v35 = vld [vmem:[#allocation20_spill] sm:$0xff] }
 0x100   : > { %11203 = vst [vmem:[#allocation107_spill] sm:$0xff] %v7309_v27  ;;  %11209 = vst [vmem:[#allocation110_spill] sm:$0xff] %v7318_v24  ;;  %v7336_v63 = vadd.f32 %v1534_v52, %v11217_v43  ;;  %v7339_v50 = vadd.f32 %v1535_v57, %v11219_v35  ;;  %v7342_v59 = vld [vmem:[%s5300_s19 + $0xc9] sm:$0xff]  ;;  %v7345_v37 = vld [vmem:[%s5300_s19 + $0xd9] sm:$0xff]  ;;  %v1605_v52 = vmul.f32 %v4540_v25, %v4507_v40 }
 0x101   : > { %11205 = vst [vmem:[#allocation108_spill] sm:$0xff] %v7312_v7  ;;  %11210 = vst [vmem:[#allocation111_spill] sm:$0xff] %v7321_v12  ;;  %v7348_v1 = vld [vmem:[%s5300_s19 + $0xe1] sm:$0xff]  ;;  %v7351_v60 = vld [vmem:[%s5300_s19 + $0xf1] sm:$0xff]  ;;  %v1607_v57 = vmul.f32 %v4540_v25, %v7258_v55  ;;  %v1608_v26 = vmul.f32 %v4540_v25, %v7261_v49  ;;  %v1610_v53 = vmul.f32 %v4540_v25, %v7279_v0 }
 0x102   : > { %11211 = vst [vmem:[#allocation26_spill] sm:$0xff] %v7324_v10  ;;  %11212 = vst [vmem:[#allocation27_spill] sm:$0xff] %v7327_v33  ;;  %v7354_v5 = vld [vmem:[%s5300_s19 + $0xf9] sm:$0xff]  ;;  %v7357_v45 = vld [vmem:[%s5300_s19 + $0x109] sm:$0xff]  ;;  %v1611_v40 = vmul.f32 %v4540_v25, %v7282_v6  ;;  %v1612_v32 = vmul.f32 %v4540_v25, %v7285_v8  ;;  %v1613_v30 = vmul.f32 %v4540_v25, %v7300_v18 }
 0x103   : > { %11214 = vst [vmem:[#allocation28_spill] sm:$0xff] %v7330_v36  ;;  %11216 = vst [vmem:[#allocation29_spill] sm:$0xff] %v7333_v2  ;;  %v7362_v31 = vld [vmem:[%s5300_s19 + $0x111] sm:$0xff]  ;;  %v7365_v43 = vld [vmem:[%s5300_s19 + $0x121] sm:$0xff]  ;;  %v1614_v56 = vmul.f32 %v4540_v25, %v7303_v48  ;;  %v1615_v51 = vmul.f32 %v4540_v25, %v7321_v12  ;;  %v1616_v0 = vmul.f32 %v4540_v25, %v7324_v10 }
 0x104   : > { %11218 = vst [vmem:[#allocation30_spill] sm:$0xff] %v7336_v63  ;;  %11220 = vst [vmem:[#allocation31_spill] sm:$0xff] %v7339_v50  ;;  %v7368_v35 = vld [vmem:[%s5300_s19 + $0x129] sm:$0xff]  ;;  %v7375_v55 = vld [vmem:[%s5300_s19 + $0x139] sm:$0xff]  ;;  %v1617_v63 = vmul.f32 %v4540_v25, %v7327_v33  ;;  %v1618_v2 = vmul.f32 %v4540_v25, %v7342_v59  ;;  %v1619_v36 = vmul.f32 %v4540_v25, %v7345_v37 }
 0x105   : > { %11221 = vst [vmem:[#allocation32_spill] sm:$0xff] %v7342_v59  ;;  %11222 = vst [vmem:[#allocation35_spill] sm:$0xff] %v7345_v37  ;;  %v7378_v49 = vld [vmem:[%s5300_s19 + $0x141] sm:$0xff]  ;;  %v7381_v61 = vld [vmem:[%s5300_s19 + $0x151] sm:$0xff]  ;;  %v1620_v18 = vmul.f32 %v4540_v25, %v7348_v1  ;;  %v1621_v10 = vmul.f32 %v4540_v25, %v7351_v60  ;;  %v1622_v12 = vmul.f32 %v4540_v25, %v7354_v5 }
 0x106   : > { %11223 = vst [vmem:[#allocation36_spill] sm:$0xff] %v7348_v1  ;;  %11224 = vst [vmem:[#allocation37_spill] sm:$0xff] %v7351_v60  ;;  %v7388_v50 = vld [vmem:[%s5300_s19 + $0x159] sm:$0xff]  ;;  %v7391_v6 = vld [vmem:[%s5300_s19 + $0x169] sm:$0xff]  ;;  %v1623_v17 = vmul.f32 %v4540_v25, %v7357_v45  ;;  %v1624_v7 = vmul.f32 %v4540_v25, %v7362_v31  ;;  %v1625_v33 = vmul.f32 %v4540_v25, %v7365_v43 }
 0x107   : > { %11225 = vst [vmem:[#allocation42_spill] sm:$0xff] %v7354_v5  ;;  %11226 = vst [vmem:[#allocation112_spill] sm:$0xff] %v7357_v45  ;;  %v7394_v8 = vld [vmem:[%s5300_s19 + $0x171] sm:$0xff]  ;;  %v7401_v24 = vld [vmem:[%s5300_s19 + $0x199] sm:$0xff]  ;;  %v1626_v59 = vmul.f32 %v4540_v25, %v7368_v35  ;;  %v1627_v37 = vmul.f32 %v4540_v25, %v7375_v55  ;;  %v1628_v1 = vmul.f32 %v4540_v25, %v7378_v49 }
 0x108   : > { %11227 = vst [vmem:[#allocation113_spill] sm:$0xff] %v7362_v31  ;;  %11228 = vst [vmem:[#allocation114_spill] sm:$0xff] %v7365_v43  ;;  %v7404_v48 = vld [vmem:[%s5300_s19 + $0x1a1] sm:$0xff]  ;;  %v1629_v27 = vmul.f32 %v4540_v25, %v7381_v61  ;;  %v1630_v11 = vmul.f32 %v4540_v25, %v7388_v50  ;;  %v1631_v60 = vmul.f32 %v4540_v25, %v7391_v6  ;;  %v11238_v14 = vld [vmem:[#allocation24_spill] sm:$0xff] }
 0x109   : > { %11229 = vst [vmem:[#allocation115_spill] sm:$0xff] %v7368_v35  ;;  %11230 = vst [vmem:[#allocation116_spill] sm:$0xff] %v7375_v55  ;;  %v1632_v5 = vmul.f32 %v4540_v25, %v7394_v8  ;;  %v1633_v45 = vmul.f32 %v4540_v25, %v11238_v14  ;;  %v11239_v44 = vld [vmem:[#allocation25_spill] sm:$0xff]  ;;  %v1635_v43 = vmul.f32 %v4540_v25, %v7401_v24 }
 0x10a   : > { %11231 = vst [vmem:[#allocation117_spill] sm:$0xff] %v7378_v49  ;;  %11232 = vst [vmem:[#allocation118_spill] sm:$0xff] %v7381_v61  ;;  %v1634_v31 = vmul.f32 %v4540_v25, %v11239_v44  ;;  %v1636_v35 = vmul.f32 %v4540_v25, %v7404_v48  ;;  %v7423_v55 = vadd.f32 %v1605_v52, %v7208_v46 }
 0x10b   : > { %11233 = vst [vmem:[#allocation119_spill] sm:$0xff] %v7388_v50  ;;  %11234 = vst [vmem:[#allocation120_spill] sm:$0xff] %v7391_v6  ;;  %v7426_v61 = vadd.f32 %v1606_v58, %v7211_v22  ;;  %v7429_v6 = vadd.f32 %v1607_v57, %v7214_v34  ;;  %v7432_v14 = vadd.f32 %v1608_v26, %v7217_v16  ;;  %v7536_v58 = vld [vmem:[%s5300_s19 + $0xaa] sm:$0xff]  ;;  %v7539_v57 = vld [vmem:[%s5300_s19 + $0xb2] sm:$0xff] }
 0x10c   : > { %11235 = vst [vmem:[#allocation121_spill] sm:$0xff] %v7394_v8  ;;  %11236 = vst [vmem:[#allocation122_spill] sm:$0xff] %v7401_v24  ;;  %v7435_v44 = vadd.f32 %v1609_v47, %v7220_v15  ;;  %v7438_v25 = vadd.f32 %v1610_v53, %v7223_v62  ;;  %v7441_v46 = vadd.f32 %v1611_v40, %v7226_v13  ;;  %v4541_v13 = vld [vmem:[%s5300_s19 + $0x32] sm:$0xff]  ;;  %v7542_v26 = vld [vmem:[%s5300_s19 + $0xc2] sm:$0xff] }
 0x10d   : > { %11237 = vst [vmem:[#allocation123_spill] sm:$0xff] %v7404_v48  ;;  %v7444_v22 = vadd.f32 %v1612_v32, %v7229_v9  ;;  %v7447_v34 = vadd.f32 %v1613_v30, %v7232_v41  ;;  %v7450_v16 = vadd.f32 %v1614_v56, %v7235_v28  ;;  %v7453_v47 = vadd.f32 %v1615_v51, %v7238_v23  ;;  %v4542_v9 = vld [vmem:[%s5300_s19 + $0x3a] sm:$0xff]  ;;  %v7473_v41 = vld [vmem:[%s5300_s19 + $0x4a] sm:$0xff]  ;;  %v7476_v28 = vld [vmem:[%s5300_s19 + $0x52] sm:$0xff] }
 0x10e   : > { %v7456_v53 = vadd.f32 %v1616_v0, %v7241_v3  ;;  %v7459_v15 = vadd.f32 %v1617_v63, %v7244_v21  ;;  %v7462_v62 = vadd.f32 %v1618_v2, %v7247_v4  ;;  %v7465_v30 = vadd.f32 %v1619_v36, %v7250_v29  ;;  %11240 = vst [vmem:[#allocation124_spill] sm:$0xff] %v7473_v41  ;;  %v7491_v29 = vld [vmem:[%s5300_s19 + $0x62] sm:$0xff]  ;;  %v7497_v51 = vld [vmem:[%s5300_s19 + $0x7a] sm:$0xff]  ;;  %v11256_v2 = vld [vmem:[#allocation108_spill] sm:$0xff] }
 0x10f   : > { %v7468_v56 = vadd.f32 %v1620_v18, %v7253_v20  ;;  %11241 = vst [vmem:[#allocation125_spill] sm:$0xff] %v7476_v28  ;;  %v7479_v23 = vadd.f32 %v1621_v10, %v7264_v19  ;;  %v7482_v3 = vadd.f32 %v1622_v12, %v7267_v38  ;;  %v7485_v21 = vadd.f32 %v1623_v17, %v7270_v39  ;;  %v7494_v20 = vld [vmem:[%s5300_s19 + $0x6a] sm:$0xff]  ;;  %v7500_v19 = vld [vmem:[%s5300_s19 + $0x82] sm:$0xff]  ;;  %v7515_v12 = vld [vmem:[%s5300_s19 + $0x92] sm:$0xff] }
 0x110   : > { %v7488_v4 = vadd.f32 %v1624_v7, %v7273_v42  ;;  %11242 = vst [vmem:[#allocation126_spill] sm:$0xff] %v7491_v29  ;;  %11243 = vst [vmem:[#allocation127_spill] sm:$0xff] %v7494_v20  ;;  %v7503_v38 = vadd.f32 %v1625_v33, %v7288_v54  ;;  %v11246_v0 = vld [vmem:[#allocation102_spill] sm:$0xff]  ;;  %v11248_v18 = vld [vmem:[#allocation103_spill] sm:$0xff]  ;;  %v7527_v63 = vadd.f32 %v1630_v11, %v11256_v2 }
 0x111   : > { %11244 = vst [vmem:[#allocation128_spill] sm:$0xff] %v7497_v51  ;;  %11245 = vst [vmem:[#allocation129_spill] sm:$0xff] %v7500_v19  ;;  %v7506_v39 = vadd.f32 %v1626_v59, %v11246_v0  ;;  %v7509_v42 = vadd.f32 %v1627_v37, %v11248_v18  ;;  %v11250_v7 = vld [vmem:[#allocation104_spill] sm:$0xff]  ;;  %v7518_v10 = vld [vmem:[%s5300_s19 + $0x9a] sm:$0xff] }
 0x112   : > { %v7512_v17 = vadd.f32 %v1628_v1, %v11250_v7  ;;  %11252 = vst [vmem:[#allocation133_spill] sm:$0xff] %v7515_v12  ;;  %11253 = vst [vmem:[#allocation134_spill] sm:$0xff] %v7518_v10  ;;  %v4574_v54 = vld [vmem:[%s10278_s3 + $0x12] ss:$0 sm:$0xff]  ;;  %v11254_v33 = vld [vmem:[#allocation107_spill] sm:$0xff] }
 0x113   : > { %11247 = vst [vmem:[#allocation130_spill] sm:$0xff] %v7506_v39  ;;  %11249 = vst [vmem:[#allocation131_spill] sm:$0xff] %v7509_v42  ;;  %v7524_v36 = vadd.f32 %v1629_v27, %v11254_v33  ;;  %v11258_v59 = vld [vmem:[#allocation109_spill] sm:$0xff]  ;;  %v11260_v1 = vld [vmem:[#allocation110_spill] sm:$0xff]  ;;  %v1710_v48 = vmul.f32 %v4574_v54, %v7491_v29  ;;  %v1711_v24 = vmul.f32 %v4574_v54, %v7494_v20 }
 0x114   : > { %11251 = vst [vmem:[#allocation132_spill] sm:$0xff] %v7512_v17  ;;  %11257 = vst [vmem:[#allocation136_spill] sm:$0xff] %v7527_v63  ;;  %v7530_v37 = vadd.f32 %v1631_v60, %v11258_v59  ;;  %v7533_v52 = vadd.f32 %v1632_v5, %v11260_v1  ;;  %v11265_v40 = vld [vmem:[#allocation28_spill] sm:$0xff]  ;;  %v11267_v32 = vld [vmem:[#allocation29_spill] sm:$0xff]  ;;  %v1707_v1 = vmul.f32 %v4574_v54, %v4542_v9 }
 0x115   : > { %11255 = vst [vmem:[#allocation135_spill] sm:$0xff] %v7524_v36  ;;  %11262 = vst [vmem:[#allocation139_spill] sm:$0xff] %v7536_v58  ;;  %v7545_v27 = vadd.f32 %v1633_v45, %v11265_v40  ;;  %v7548_v11 = vadd.f32 %v1634_v31, %v11267_v32  ;;  %v11269_v60 = vld [vmem:[#allocation30_spill] sm:$0xff]  ;;  %v11271_v5 = vld [vmem:[#allocation31_spill] sm:$0xff]  ;;  %v1709_v40 = vmul.f32 %v4574_v54, %v7476_v28 }
 0x116   : > { %11259 = vst [vmem:[#allocation137_spill] sm:$0xff] %v7530_v37  ;;  %11261 = vst [vmem:[#allocation138_spill] sm:$0xff] %v7533_v52  ;;  %v7551_v0 = vadd.f32 %v1635_v43, %v11269_v60  ;;  %v7554_v18 = vadd.f32 %v1636_v35, %v11271_v5  ;;  %v7557_v7 = vld [vmem:[%s5300_s19 + $0xca] sm:$0xff]  ;;  %v7560_v33 = vld [vmem:[%s5300_s19 + $0xda] sm:$0xff]  ;;  %v1706_v43 = vmul.f32 %v4574_v54, %v4541_v13 }
 0x117   : > { %11263 = vst [vmem:[#allocation140_spill] sm:$0xff] %v7539_v57  ;;  %11264 = vst [vmem:[#allocation141_spill] sm:$0xff] %v7542_v26  ;;  %v7563_v2 = vld [vmem:[%s5300_s19 + $0xe2] sm:$0xff]  ;;  %v7566_v45 = vld [vmem:[%s5300_s19 + $0xf2] sm:$0xff]  ;;  %v1708_v35 = vmul.f32 %v4574_v54, %v7473_v41  ;;  %v1712_v13 = vmul.f32 %v4574_v54, %v7497_v51  ;;  %v1713_v9 = vmul.f32 %v4574_v54, %v7500_v19 }
 0x118   : > { %11266 = vst [vmem:[#allocation74_spill] sm:$0xff] %v7545_v27  ;;  %11268 = vst [vmem:[#allocation75_spill] sm:$0xff] %v7548_v11  ;;  %v7569_v59 = vld [vmem:[%s5300_s19 + $0xfa] sm:$0xff]  ;;  %v7572_v31 = vld [vmem:[%s5300_s19 + $0x10a] sm:$0xff]  ;;  %v1714_v50 = vmul.f32 %v4574_v54, %v7515_v12  ;;  %v1715_v49 = vmul.f32 %v4574_v54, %v7518_v10  ;;  %v1716_v29 = vmul.f32 %v4574_v54, %v7536_v58 }
 0x119   : > { %11270 = vst [vmem:[#allocation47_spill] sm:$0xff] %v7551_v0  ;;  %11272 = vst [vmem:[#allocation48_spill] sm:$0xff] %v7554_v18  ;;  %v7577_v32 = vld [vmem:[%s5300_s19 + $0x112] sm:$0xff]  ;;  %v7580_v60 = vld [vmem:[%s5300_s19 + $0x122] sm:$0xff]  ;;  %v1717_v20 = vmul.f32 %v4574_v54, %v7539_v57  ;;  %v1718_v0 = vmul.f32 %v4574_v54, %v7542_v26  ;;  %v1719_v11 = vmul.f32 %v4574_v54, %v7557_v7 }
 0x11a   : > { %11273 = vst [vmem:[#allocation49_spill] sm:$0xff] %v7557_v7  ;;  %11274 = vst [vmem:[#allocation54_spill] sm:$0xff] %v7560_v33  ;;  %v7583_v5 = vld [vmem:[%s5300_s19 + $0x12a] sm:$0xff]  ;;  %v7590_v41 = vld [vmem:[%s5300_s19 + $0x13a] sm:$0xff]  ;;  %v1720_v27 = vmul.f32 %v4574_v54, %v7560_v33  ;;  %v1721_v12 = vmul.f32 %v4574_v54, %v7563_v2  ;;  %v1722_v57 = vmul.f32 %v4574_v54, %v7566_v45 }
 0x11b   : > { %11275 = vst [vmem:[#allocation55_spill] sm:$0xff] %v7563_v2  ;;  %11276 = vst [vmem:[#allocation56_spill] sm:$0xff] %v7566_v45  ;;  %v7593_v28 = vld [vmem:[%s5300_s19 + $0x142] sm:$0xff]  ;;  %v7596_v8 = vld [vmem:[%s5300_s19 + $0x152] sm:$0xff]  ;;  %v1723_v58 = vmul.f32 %v4574_v54, %v7569_v59  ;;  %v1724_v37 = vmul.f32 %v4574_v54, %v7572_v31  ;;  %v1725_v63 = vmul.f32 %v4574_v54, %v7577_v32 }
 0x11c   : > { %11277 = vst [vmem:[#allocation57_spill] sm:$0xff] %v7569_v59  ;;  %11278 = vst [vmem:[#allocation90_spill] sm:$0xff] %v7572_v31  ;;  %v7603_v18 = vld [vmem:[%s5300_s19 + $0x15a] sm:$0xff]  ;;  %v7606_v51 = vld [vmem:[%s5300_s19 + $0x16a] sm:$0xff]  ;;  %v1726_v26 = vmul.f32 %v4574_v54, %v7580_v60  ;;  %v1727_v7 = vmul.f32 %v4574_v54, %v7583_v5  ;;  %v1728_v33 = vmul.f32 %v4574_v54, %v7590_v41 }
 0x11d   : > { %11279 = vst [vmem:[#allocation91_spill] sm:$0xff] %v7577_v32  ;;  %11280 = vst [vmem:[#allocation92_spill] sm:$0xff] %v7580_v60  ;;  %v7609_v19 = vld [vmem:[%s5300_s19 + $0x172] sm:$0xff]  ;;  %v7616_v52 = vld [vmem:[%s5300_s19 + $0x19a] sm:$0xff]  ;;  %v1729_v2 = vmul.f32 %v4574_v54, %v7593_v28  ;;  %v1730_v36 = vmul.f32 %v4574_v54, %v7596_v8  ;;  %v1731_v17 = vmul.f32 %v4574_v54, %v7603_v18 }
 0x11e   : > { %11281 = vst [vmem:[#allocation93_spill] sm:$0xff] %v7583_v5  ;;  %11282 = vst [vmem:[#allocation33_spill] sm:$0xff] %v7590_v41  ;;  %v7619_v10 = vld [vmem:[%s5300_s19 + $0x1a2] sm:$0xff]  ;;  %v1732_v45 = vmul.f32 %v4574_v54, %v7606_v51  ;;  %v1733_v59 = vmul.f32 %v4574_v54, %v7609_v19  ;;  %v11290_v42 = vld [vmem:[#allocation72_spill] sm:$0xff]  ;;  %v1736_v60 = vmul.f32 %v4574_v54, %v7616_v52 }
 0x11f   : > { %11283 = vst [vmem:[#allocation142_spill] sm:$0xff] %v7593_v28  ;;  %11284 = vst [vmem:[#allocation143_spill] sm:$0xff] %v7596_v8  ;;  %v1734_v31 = vmul.f32 %v4574_v54, %v11290_v42  ;;  %v11291_v39 = vld [vmem:[#allocation73_spill] sm:$0xff]  ;;  %v1737_v5 = vmul.f32 %v4574_v54, %v7619_v10  ;;  %v7638_v41 = vadd.f32 %v1706_v43, %v7423_v55 }
 0x120   : > { %11285 = vst [vmem:[#allocation144_spill] sm:$0xff] %v7603_v18  ;;  %11286 = vst [vmem:[#allocation145_spill] sm:$0xff] %v7606_v51  ;;  %v1735_v32 = vmul.f32 %v4574_v54, %v11291_v39  ;;  %v7641_v8 = vadd.f32 %v1707_v1, %v7426_v61  ;;  %v7644_v51 = vadd.f32 %v1708_v35, %v7429_v6  ;;  %v7751_v1 = vld [vmem:[%s5300_s19 + $0xab] sm:$0xff]  ;;  %v7754_v35 = vld [vmem:[%s5300_s19 + $0xb3] sm:$0xff] }
 0x121   : > { %11287 = vst [vmem:[#allocation146_spill] sm:$0xff] %v7609_v19  ;;  %11288 = vst [vmem:[#allocation147_spill] sm:$0xff] %v7616_v52  ;;  %v7647_v42 = vadd.f32 %v1709_v40, %v7432_v14  ;;  %v7650_v39 = vadd.f32 %v1710_v48, %v7435_v44  ;;  %v7653_v54 = vadd.f32 %v1711_v24, %v7438_v25  ;;  %v7757_v40 = vld [vmem:[%s5300_s19 + $0xc3] sm:$0xff]  ;;  %v7811_v19 = vld [vmem:[%s5300_s19 + $0x153] sm:$0xff] }
 0x122   : > { %11289 = vst [vmem:[#allocation148_spill] sm:$0xff] %v7619_v10  ;;  %v7656_v55 = vadd.f32 %v1712_v13, %v7441_v46  ;;  %v7659_v61 = vadd.f32 %v1713_v9, %v7444_v22  ;;  %v7662_v6 = vadd.f32 %v1714_v50, %v7447_v34  ;;  %v7665_v14 = vadd.f32 %v1715_v49, %v7450_v16  ;;  %v4575_v46 = vld [vmem:[%s5300_s19 + $0x33] sm:$0xff]  ;;  %v4576_v22 = vld [vmem:[%s5300_s19 + $0x3b] sm:$0xff]  ;;  %v7688_v34 = vld [vmem:[%s5300_s19 + $0x4b] sm:$0xff] }
 0x123   : > { %v7668_v48 = vadd.f32 %v1716_v29, %v7453_v47  ;;  %v7671_v24 = vadd.f32 %v1717_v20, %v7456_v53  ;;  %v7674_v44 = vadd.f32 %v1718_v0, %v7459_v15  ;;  %v7677_v25 = vadd.f32 %v1719_v11, %v7462_v62  ;;  %11292 = vst [vmem:[#allocation149_spill] sm:$0xff] %v7688_v34  ;;  %v7691_v16 = vld [vmem:[%s5300_s19 + $0x53] sm:$0xff]  ;;  %v7712_v29 = vld [vmem:[%s5300_s19 + $0x7b] sm:$0xff]  ;;  %v11308_v11 = vld [vmem:[#allocation136_spill] sm:$0xff] }
 0x124   : > { %v7680_v50 = vadd.f32 %v1720_v27, %v7465_v30  ;;  %v7683_v49 = vadd.f32 %v1721_v12, %v7468_v56  ;;  %11293 = vst [vmem:[#allocation150_spill] sm:$0xff] %v7691_v16  ;;  %v7694_v47 = vadd.f32 %v1722_v57, %v7479_v23  ;;  %v7697_v53 = vadd.f32 %v1723_v58, %v7482_v3  ;;  %v7706_v30 = vld [vmem:[%s5300_s19 + $0x63] sm:$0xff]  ;;  %v7709_v56 = vld [vmem:[%s5300_s19 + $0x6b] sm:$0xff]  ;;  %v11298_v20 = vld [vmem:[#allocation130_spill] sm:$0xff] }
 0x125   : > { %v7700_v15 = vadd.f32 %v1724_v37, %v7485_v21  ;;  %v7703_v62 = vadd.f32 %v1725_v63, %v7488_v4  ;;  %11294 = vst [vmem:[#allocation151_spill] sm:$0xff] %v7706_v30  ;;  %11295 = vst [vmem:[#allocation152_spill] sm:$0xff] %v7709_v56  ;;  %v7715_v23 = vld [vmem:[%s5300_s19 + $0x83] sm:$0xff]  ;;  %v7718_v3 = vadd.f32 %v1726_v26, %v7503_v38  ;;  %v11302_v63 = vld [vmem:[#allocation132_spill] sm:$0xff] }
 0x126   : > { %11296 = vst [vmem:[#allocation153_spill] sm:$0xff] %v7712_v29  ;;  %11297 = vst [vmem:[#allocation154_spill] sm:$0xff] %v7715_v23  ;;  %v7721_v21 = vadd.f32 %v1727_v7, %v11298_v20  ;;  %v11300_v12 = vld [vmem:[#allocation131_spill] sm:$0xff]  ;;  %v7727_v37 = vadd.f32 %v1729_v2, %v11302_v63  ;;  %v7730_v58 = vld [vmem:[%s5300_s19 + $0x93] sm:$0xff]  ;;  %v7742_v0 = vadd.f32 %v1731_v17, %v11308_v11 }
 0x127   : > { %v7724_v4 = vadd.f32 %v1728_v33, %v11300_v12  ;;  %11304 = vst [vmem:[#allocation158_spill] sm:$0xff] %v7730_v58  ;;  %v7733_v57 = vld [vmem:[%s5300_s19 + $0x9b] sm:$0xff]  ;;  %v4608_v38 = vld [vmem:[%s10278_s3 + $0x13] ss:$0 sm:$0xff]  ;;  %v11306_v26 = vld [vmem:[#allocation135_spill] sm:$0xff] }
 0x128   : > { %11299 = vst [vmem:[#allocation155_spill] sm:$0xff] %v7721_v21  ;;  %11303 = vst [vmem:[#allocation157_spill] sm:$0xff] %v7727_v37  ;;  %v7739_v27 = vadd.f32 %v1730_v36, %v11306_v26  ;;  %v11310_v7 = vld [vmem:[#allocation137_spill] sm:$0xff]  ;;  %v11312_v2 = vld [vmem:[#allocation138_spill] sm:$0xff]  ;;  %v1811_v10 = vmul.f32 %v4608_v38, %v7706_v30  ;;  %v1812_v52 = vmul.f32 %v4608_v38, %v7709_v56 }
 0x129   : > { %11301 = vst [vmem:[#allocation156_spill] sm:$0xff] %v7724_v4  ;;  %11305 = vst [vmem:[#allocation159_spill] sm:$0xff] %v7733_v57  ;;  %v7745_v33 = vadd.f32 %v1732_v45, %v11310_v7  ;;  %v7748_v43 = vadd.f32 %v1733_v59, %v11312_v2  ;;  %v11317_v13 = vld [vmem:[#allocation74_spill] sm:$0xff]  ;;  %v11319_v9 = vld [vmem:[#allocation75_spill] sm:$0xff]  ;;  %v1808_v2 = vmul.f32 %v4608_v38, %v4576_v22 }
 0x12a   : > { %11307 = vst [vmem:[#allocation160_spill] sm:$0xff] %v7739_v27  ;;  %11309 = vst [vmem:[#allocation161_spill] sm:$0xff] %v7742_v0  ;;  %v7760_v36 = vadd.f32 %v1734_v31, %v11317_v13  ;;  %v7763_v17 = vadd.f32 %v1735_v32, %v11319_v9  ;;  %v11321_v45 = vld [vmem:[#allocation47_spill] sm:$0xff]  ;;  %v11323_v59 = vld [vmem:[#allocation48_spill] sm:$0xff]  ;;  %v1810_v13 = vmul.f32 %v4608_v38, %v7691_v16 }
 0x12b   : > { %11311 = vst [vmem:[#allocation162_spill] sm:$0xff] %v7745_v33  ;;  %11313 = vst [vmem:[#allocation163_spill] sm:$0xff] %v7748_v43  ;;  %v7766_v20 = vadd.f32 %v1736_v60, %v11321_v45  ;;  %v7769_v12 = vadd.f32 %v1737_v5, %v11323_v59  ;;  %v7772_v63 = vld [vmem:[%s5300_s19 + $0xcb] sm:$0xff]  ;;  %v7775_v26 = vld [vmem:[%s5300_s19 + $0xdb] sm:$0xff]  ;;  %v1807_v60 = vmul.f32 %v4608_v38, %v4575_v46 }
 0x12c   : > { %11314 = vst [vmem:[#allocation164_spill] sm:$0xff] %v7751_v1  ;;  %11315 = vst [vmem:[#allocation165_spill] sm:$0xff] %v7754_v35  ;;  %v7778_v11 = vld [vmem:[%s5300_s19 + $0xe3] sm:$0xff]  ;;  %v7781_v31 = vld [vmem:[%s5300_s19 + $0xf3] sm:$0xff]  ;;  %v1809_v5 = vmul.f32 %v4608_v38, %v7688_v34  ;;  %v1813_v46 = vmul.f32 %v4608_v38, %v7712_v29  ;;  %v1814_v22 = vmul.f32 %v4608_v38, %v7715_v23 }
 0x12d   : > { %11316 = vst [vmem:[#allocation166_spill] sm:$0xff] %v7757_v40  ;;  %11318 = vst [vmem:[#allocation167_spill] sm:$0xff] %v7760_v36  ;;  %v7784_v7 = vld [vmem:[%s5300_s19 + $0xfb] sm:$0xff]  ;;  %v7787_v32 = vld [vmem:[%s5300_s19 + $0x10b] sm:$0xff]  ;;  %v1815_v18 = vmul.f32 %v4608_v38, %v7730_v58  ;;  %v1816_v28 = vmul.f32 %v4608_v38, %v7733_v57  ;;  %v1817_v30 = vmul.f32 %v4608_v38, %v7751_v1 }
 0x12e   : > { %11320 = vst [vmem:[#allocation168_spill] sm:$0xff] %v7763_v17  ;;  %11322 = vst [vmem:[#allocation169_spill] sm:$0xff] %v7766_v20  ;;  %v7792_v9 = vld [vmem:[%s5300_s19 + $0x113] sm:$0xff]  ;;  %v7795_v45 = vld [vmem:[%s5300_s19 + $0x123] sm:$0xff]  ;;  %v1818_v56 = vmul.f32 %v4608_v38, %v7754_v35  ;;  %v1819_v20 = vmul.f32 %v4608_v38, %v7757_v40  ;;  %v1820_v17 = vmul.f32 %v4608_v38, %v7772_v63 }
 0x12f   : > { %11324 = vst [vmem:[#allocation170_spill] sm:$0xff] %v7769_v12  ;;  %11325 = vst [vmem:[#allocation171_spill] sm:$0xff] %v7772_v63  ;;  %v7798_v59 = vld [vmem:[%s5300_s19 + $0x12b] sm:$0xff]  ;;  %v7805_v34 = vld [vmem:[%s5300_s19 + $0x13b] sm:$0xff]  ;;  %v1821_v36 = vmul.f32 %v4608_v38, %v7775_v26  ;;  %v1822_v58 = vmul.f32 %v4608_v38, %v7778_v11  ;;  %v1823_v35 = vmul.f32 %v4608_v38, %v7781_v31 }
 0x130   : > { %11326 = vst [vmem:[#allocation39_spill] sm:$0xff] %v7775_v26  ;;  %11327 = vst [vmem:[#allocation40_spill] sm:$0xff] %v7778_v11  ;;  %v7808_v16 = vld [vmem:[%s5300_s19 + $0x143] sm:$0xff]  ;;  %v7818_v12 = vld [vmem:[%s5300_s19 + $0x15b] sm:$0xff]  ;;  %v1824_v1 = vmul.f32 %v4608_v38, %v7784_v7  ;;  %v1825_v33 = vmul.f32 %v4608_v38, %v7787_v32  ;;  %v1826_v0 = vmul.f32 %v4608_v38, %v7792_v9 }
 0x131   : > { %11328 = vst [vmem:[#allocation41_spill] sm:$0xff] %v7781_v31  ;;  %11329 = vst [vmem:[#allocation44_spill] sm:$0xff] %v7784_v7  ;;  %v7821_v29 = vld [vmem:[%s5300_s19 + $0x16b] sm:$0xff]  ;;  %v7824_v23 = vld [vmem:[%s5300_s19 + $0x173] sm:$0xff]  ;;  %v1827_v40 = vmul.f32 %v4608_v38, %v7795_v45  ;;  %v1828_v63 = vmul.f32 %v4608_v38, %v7798_v59  ;;  %v1829_v26 = vmul.f32 %v4608_v38, %v7805_v34 }
 0x132   : > { %11330 = vst [vmem:[#allocation45_spill] sm:$0xff] %v7787_v32  ;;  %11331 = vst [vmem:[#allocation46_spill] sm:$0xff] %v7792_v9  ;;  %v7831_v43 = vld [vmem:[%s5300_s19 + $0x19b] sm:$0xff]  ;;  %v7834_v57 = vld [vmem:[%s5300_s19 + $0x1a3] sm:$0xff]  ;;  %v1830_v11 = vmul.f32 %v4608_v38, %v7808_v16  ;;  %v1831_v27 = vmul.f32 %v4608_v38, %v7811_v19  ;;  %v1832_v37 = vmul.f32 %v4608_v38, %v7818_v12 }
 0x133   : > { %11332 = vst [vmem:[#allocation51_spill] sm:$0xff] %v7795_v45  ;;  %11333 = vst [vmem:[#allocation52_spill] sm:$0xff] %v7798_v59  ;;  %v1833_v31 = vmul.f32 %v4608_v38, %v7821_v29  ;;  %v1834_v7 = vmul.f32 %v4608_v38, %v7824_v23  ;;  %v11342_v4 = vld [vmem:[#allocation34_spill] sm:$0xff]  ;;  %v1837_v45 = vmul.f32 %v4608_v38, %v7831_v43 }
 0x134   : > { %11334 = vst [vmem:[#allocation53_spill] sm:$0xff] %v7805_v34  ;;  %11335 = vst [vmem:[#allocation58_spill] sm:$0xff] %v7808_v16  ;;  %v1835_v32 = vmul.f32 %v4608_v38, %v11342_v4  ;;  %v11343_v21 = vld [vmem:[#allocation38_spill] sm:$0xff]  ;;  %v1838_v59 = vmul.f32 %v4608_v38, %v7834_v57  ;;  %v7853_v34 = vadd.f32 %v1807_v60, %v7638_v41 }
 0x135   : > { %11336 = vst [vmem:[#allocation59_spill] sm:$0xff] %v7811_v19  ;;  %11337 = vst [vmem:[#allocation11_spill] sm:$0xff] %v7818_v12  ;;  %v1836_v9 = vmul.f32 %v4608_v38, %v11343_v21  ;;  %v7856_v19 = vadd.f32 %v1808_v2, %v7641_v8  ;;  %v7862_v4 = vadd.f32 %v1810_v13, %v7647_v42  ;;  %v7966_v2 = vld [vmem:[%s5300_s19 + $0xac] sm:$0xff]  ;;  %v7972_v13 = vld [vmem:[%s5300_s19 + $0xc4] sm:$0xff] }
 0x136   : > { %11338 = vst [vmem:[#allocation12_spill] sm:$0xff] %v7821_v29  ;;  %11339 = vst [vmem:[#allocation68_spill] sm:$0xff] %v7824_v23  ;;  %v7859_v29 = vadd.f32 %v1809_v5, %v7644_v51  ;;  %v7865_v21 = vadd.f32 %v1811_v10, %v7650_v39  ;;  %v7868_v38 = vadd.f32 %v1812_v52, %v7653_v54  ;;  %v7969_v5 = vld [vmem:[%s5300_s19 + $0xb4] sm:$0xff] }
 0x137   : > { %11340 = vst [vmem:[#allocation69_spill] sm:$0xff] %v7831_v43  ;;  %11341 = vst [vmem:[#allocation70_spill] sm:$0xff] %v7834_v57  ;;  %v7871_v41 = vadd.f32 %v1813_v46, %v7656_v55  ;;  %v7874_v8 = vadd.f32 %v1814_v22, %v7659_v61  ;;  %v7877_v51 = vadd.f32 %v1815_v18, %v7662_v6  ;;  %v4609_v55 = vld [vmem:[%s5300_s19 + $0x34] sm:$0xff]  ;;  %v4610_v61 = vld [vmem:[%s5300_s19 + $0x3c] sm:$0xff] }
 0x138   : > { %v7880_v42 = vadd.f32 %v1816_v28, %v7665_v14  ;;  %v7883_v10 = vadd.f32 %v1817_v30, %v7668_v48  ;;  %v7886_v52 = vadd.f32 %v1818_v56, %v7671_v24  ;;  %v7889_v39 = vadd.f32 %v1819_v20, %v7674_v44  ;;  %v7903_v6 = vld [vmem:[%s5300_s19 + $0x4c] sm:$0xff]  ;;  %v7906_v14 = vld [vmem:[%s5300_s19 + $0x54] sm:$0xff]  ;;  %v7927_v30 = vld [vmem:[%s5300_s19 + $0x7c] sm:$0xff]  ;;  %11366 = vst [vmem:[#allocation109_spill] sm:$0xff] %v7966_v2 }
 0x139   : > { %v7892_v54 = vadd.f32 %v1820_v17, %v7677_v25  ;;  %v7895_v18 = vadd.f32 %v1821_v36, %v7680_v50  ;;  %v7898_v28 = vadd.f32 %v1822_v58, %v7683_v49  ;;  %11344 = vst [vmem:[#allocation77_spill] sm:$0xff] %v7903_v6  ;;  %11345 = vst [vmem:[#allocation78_spill] sm:$0xff] %v7906_v14  ;;  %v7921_v50 = vld [vmem:[%s5300_s19 + $0x64] sm:$0xff]  ;;  %v7924_v49 = vld [vmem:[%s5300_s19 + $0x6c] sm:$0xff] }
 0x13a   : > { %v7909_v48 = vadd.f32 %v1823_v35, %v7694_v47  ;;  %v7912_v24 = vadd.f32 %v1824_v1, %v7697_v53  ;;  %v7915_v44 = vadd.f32 %v1825_v33, %v7700_v15  ;;  %v7918_v25 = vadd.f32 %v1826_v0, %v7703_v62  ;;  %11346 = vst [vmem:[#allocation79_spill] sm:$0xff] %v7921_v50  ;;  %v7930_v47 = vld [vmem:[%s5300_s19 + $0x84] sm:$0xff]  ;;  %v11354_v0 = vld [vmem:[#allocation157_spill] sm:$0xff]  ;;  %v7948_v35 = vld [vmem:[%s5300_s19 + $0x9c] sm:$0xff] }
 0x13b   : > { %11347 = vst [vmem:[#allocation13_spill] sm:$0xff] %v7924_v49  ;;  %11348 = vst [vmem:[#allocation17_spill] sm:$0xff] %v7927_v30  ;;  %v7933_v53 = vadd.f32 %v1827_v40, %v7718_v3  ;;  %v11350_v56 = vld [vmem:[#allocation155_spill] sm:$0xff]  ;;  %v11352_v58 = vld [vmem:[#allocation156_spill] sm:$0xff]  ;;  %v7942_v33 = vadd.f32 %v1830_v11, %v11354_v0 }
 0x13c   : > { %11349 = vst [vmem:[#allocation18_spill] sm:$0xff] %v7930_v47  ;;  %v7936_v15 = vadd.f32 %v1828_v63, %v11350_v56  ;;  %v7939_v62 = vadd.f32 %v1829_v26, %v11352_v58  ;;  %v7945_v1 = vld [vmem:[%s5300_s19 + $0x94] sm:$0xff]  ;;  %11357 = vst [vmem:[#allocation102_spill] sm:$0xff] %v7948_v35  ;;  %v11358_v40 = vld [vmem:[#allocation160_spill] sm:$0xff] }
 0x13d   : > { %11355 = vst [vmem:[#allocation24_spill] sm:$0xff] %v7942_v33  ;;  %11356 = vst [vmem:[#allocation25_spill] sm:$0xff] %v7945_v1  ;;  %v4642_v3 = vld [vmem:[%s10278_s3 + $0x14] ss:$0 sm:$0xff]  ;;  %v7954_v36 = vadd.f32 %v1831_v27, %v11358_v40  ;;  %v11362_v63 = vld [vmem:[#allocation162_spill] sm:$0xff] }
 0x13e   : > { %11351 = vst [vmem:[#allocation19_spill] sm:$0xff] %v7936_v15  ;;  %11353 = vst [vmem:[#allocation20_spill] sm:$0xff] %v7939_v62  ;;  %v11360_v17 = vld [vmem:[#allocation161_spill] sm:$0xff]  ;;  %v7960_v26 = vadd.f32 %v1833_v31, %v11362_v63  ;;  %v11364_v11 = vld [vmem:[#allocation163_spill] sm:$0xff]  ;;  %v1912_v57 = vmul.f32 %v4642_v3, %v7921_v50  ;;  %v1913_v43 = vmul.f32 %v4642_v3, %v7924_v49 }
 0x13f   : > { %11359 = vst [vmem:[#allocation103_spill] sm:$0xff] %v7954_v36  ;;  %v7957_v20 = vadd.f32 %v1832_v37, %v11360_v17  ;;  %v7963_v60 = vadd.f32 %v1834_v7, %v11364_v11  ;;  %11367 = vst [vmem:[#allocation110_spill] sm:$0xff] %v7969_v5  ;;  %v11369_v46 = vld [vmem:[#allocation167_spill] sm:$0xff]  ;;  %v11371_v22 = vld [vmem:[#allocation168_spill] sm:$0xff]  ;;  %v1909_v11 = vmul.f32 %v4642_v3, %v4610_v61 }
 0x140   : > { %11363 = vst [vmem:[#allocation107_spill] sm:$0xff] %v7960_v26  ;;  %11368 = vst [vmem:[#allocation28_spill] sm:$0xff] %v7972_v13  ;;  %v7975_v27 = vadd.f32 %v1835_v32, %v11369_v46  ;;  %v7978_v37 = vadd.f32 %v1836_v9, %v11371_v22  ;;  %v11373_v31 = vld [vmem:[#allocation169_spill] sm:$0xff]  ;;  %v11375_v7 = vld [vmem:[#allocation170_spill] sm:$0xff]  ;;  %v1911_v46 = vmul.f32 %v4642_v3, %v7906_v14 }
 0x141   : > { %11361 = vst [vmem:[#allocation104_spill] sm:$0xff] %v7957_v20  ;;  %11365 = vst [vmem:[#allocation108_spill] sm:$0xff] %v7963_v60  ;;  %v7981_v56 = vadd.f32 %v1837_v45, %v11373_v31  ;;  %v7984_v58 = vadd.f32 %v1838_v59, %v11375_v7  ;;  %v7987_v0 = vld [vmem:[%s5300_s19 + $0xcc] sm:$0xff]  ;;  %v7990_v40 = vld [vmem:[%s5300_s19 + $0xdc] sm:$0xff]  ;;  %v1908_v45 = vmul.f32 %v4642_v3, %v4609_v55 }
 0x142   : > { %11370 = vst [vmem:[#allocation29_spill] sm:$0xff] %v7975_v27  ;;  %11372 = vst [vmem:[#allocation30_spill] sm:$0xff] %v7978_v37  ;;  %v7993_v17 = vld [vmem:[%s5300_s19 + $0xe4] sm:$0xff]  ;;  %v7996_v32 = vld [vmem:[%s5300_s19 + $0xf4] sm:$0xff]  ;;  %v1910_v59 = vmul.f32 %v4642_v3, %v7903_v6  ;;  %v1914_v55 = vmul.f32 %v4642_v3, %v7927_v30  ;;  %v1915_v61 = vmul.f32 %v4642_v3, %v7930_v47 }
 0x143   : > { %11374 = vst [vmem:[#allocation31_spill] sm:$0xff] %v7981_v56  ;;  %11376 = vst [vmem:[#allocation72_spill] sm:$0xff] %v7984_v58  ;;  %v7999_v63 = vld [vmem:[%s5300_s19 + $0xfc] sm:$0xff]  ;;  %v8002_v9 = vld [vmem:[%s5300_s19 + $0x10c] sm:$0xff]  ;;  %v1916_v12 = vmul.f32 %v4642_v3, %v7945_v1  ;;  %v1917_v16 = vmul.f32 %v4642_v3, %v7948_v35  ;;  %v1918_v50 = vmul.f32 %v4642_v3, %v7966_v2 }
 0x144   : > { %11377 = vst [vmem:[#allocation73_spill] sm:$0xff] %v7987_v0  ;;  %11378 = vst [vmem:[#allocation130_spill] sm:$0xff] %v7990_v40  ;;  %v8007_v22 = vld [vmem:[%s5300_s19 + $0x114] sm:$0xff]  ;;  %v8010_v31 = vld [vmem:[%s5300_s19 + $0x124] sm:$0xff]  ;;  %v1919_v49 = vmul.f32 %v4642_v3, %v7969_v5  ;;  %v1920_v56 = vmul.f32 %v4642_v3, %v7972_v13  ;;  %v1921_v37 = vmul.f32 %v4642_v3, %v7987_v0 }
 0x145   : > { %11379 = vst [vmem:[#allocation131_spill] sm:$0xff] %v7993_v17  ;;  %11380 = vst [vmem:[#allocation132_spill] sm:$0xff] %v7996_v32  ;;  %v8013_v7 = vld [vmem:[%s5300_s19 + $0x12c] sm:$0xff]  ;;  %v8020_v6 = vld [vmem:[%s5300_s19 + $0x13c] sm:$0xff]  ;;  %v1922_v27 = vmul.f32 %v4642_v3, %v7990_v40  ;;  %v1923_v1 = vmul.f32 %v4642_v3, %v7993_v17  ;;  %v1924_v5 = vmul.f32 %v4642_v3, %v7996_v32 }
 0x146   : > { %11381 = vst [vmem:[#allocation135_spill] sm:$0xff] %v7999_v63  ;;  %11382 = vst [vmem:[#allocation136_spill] sm:$0xff] %v8002_v9  ;;  %v8023_v14 = vld [vmem:[%s5300_s19 + $0x144] sm:$0xff]  ;;  %v8026_v23 = vld [vmem:[%s5300_s19 + $0x154] sm:$0xff]  ;;  %v1925_v2 = vmul.f32 %v4642_v3, %v7999_v63  ;;  %v1926_v26 = vmul.f32 %v4642_v3, %v8002_v9  ;;  %v1927_v20 = vmul.f32 %v4642_v3, %v8007_v22 }
 0x147   : > { %11383 = vst [vmem:[#allocation137_spill] sm:$0xff] %v8007_v22  ;;  %11384 = vst [vmem:[#allocation138_spill] sm:$0xff] %v8010_v31  ;;  %v8033_v58 = vld [vmem:[%s5300_s19 + $0x15c] sm:$0xff]  ;;  %v8036_v30 = vld [vmem:[%s5300_s19 + $0x16c] sm:$0xff]  ;;  %v1928_v13 = vmul.f32 %v4642_v3, %v8010_v31  ;;  %v1929_v0 = vmul.f32 %v4642_v3, %v8013_v7  ;;  %v1930_v40 = vmul.f32 %v4642_v3, %v8020_v6 }
 0x148   : > { %11385 = vst [vmem:[#allocation74_spill] sm:$0xff] %v8013_v7  ;;  %11386 = vst [vmem:[#allocation75_spill] sm:$0xff] %v8020_v6  ;;  %v8039_v47 = vld [vmem:[%s5300_s19 + $0x174] sm:$0xff]  ;;  %v8046_v60 = vld [vmem:[%s5300_s19 + $0x19c] sm:$0xff]  ;;  %v1931_v17 = vmul.f32 %v4642_v3, %v8023_v14  ;;  %v1932_v36 = vmul.f32 %v4642_v3, %v8026_v23  ;;  %v1933_v33 = vmul.f32 %v4642_v3, %v8033_v58 }
 0x149   : > { %11387 = vst [vmem:[#allocation47_spill] sm:$0xff] %v8023_v14  ;;  %11388 = vst [vmem:[#allocation48_spill] sm:$0xff] %v8026_v23  ;;  %v8049_v35 = vld [vmem:[%s5300_s19 + $0x1a4] sm:$0xff]  ;;  %v1934_v32 = vmul.f32 %v4642_v3, %v8036_v30  ;;  %v1935_v63 = vmul.f32 %v4642_v3, %v8039_v47  ;;  %v11395_v15 = vld [vmem:[#allocation61_spill] sm:$0xff]  ;;  %v1938_v31 = vmul.f32 %v4642_v3, %v8046_v60 }
 0x14a   : > { %11389 = vst [vmem:[#allocation34_spill] sm:$0xff] %v8033_v58  ;;  %11390 = vst [vmem:[#allocation38_spill] sm:$0xff] %v8036_v30  ;;  %v11394_v62 = vld [vmem:[#allocation60_spill] sm:$0xff]  ;;  %v1937_v22 = vmul.f32 %v4642_v3, %v11395_v15  ;;  %v1939_v7 = vmul.f32 %v4642_v3, %v8049_v35  ;;  %v8068_v6 = vadd.f32 %v1908_v45, %v7853_v34  ;;  %v11421_v45 = vld [vmem:[#allocation65_spill] sm:$0xff] }
 0x14b   : > { %11391 = vst [vmem:[#allocation155_spill] sm:$0xff] %v8039_v47  ;;  %11392 = vst [vmem:[#allocation156_spill] sm:$0xff] %v8046_v60  ;;  %v1936_v9 = vmul.f32 %v4642_v3, %v11394_v62  ;;  %v8071_v14 = vadd.f32 %v1909_v11, %v7856_v19  ;;  %v8074_v58 = vadd.f32 %v1910_v59, %v7859_v29  ;;  %v11422_v11 = vld [vmem:[#allocation66_spill] sm:$0xff]  ;;  %v11440_v60 = vld [vmem:[#allocation83_spill] sm:$0xff] }
 0x14c   : > { %11393 = vst [vmem:[#allocation157_spill] sm:$0xff] %v8049_v35  ;;  %v8077_v30 = vadd.f32 %v1911_v46, %v7862_v4  ;;  %v8080_v62 = vadd.f32 %v1912_v57, %v7865_v21  ;;  %v8083_v15 = vadd.f32 %v1913_v43, %v7868_v38  ;;  %v8086_v3 = vadd.f32 %v1914_v55, %v7871_v41  ;;  %v11423_v46 = vld [vmem:[#allocation67_spill] sm:$0xff]  ;;  %v11439_v35 = vld [vmem:[#allocation82_spill] sm:$0xff]  ;;  %v11441_v23 = vld [vmem:[#allocation84_spill] sm:$0xff] }
 0x14d   : > { %v8089_v34 = vadd.f32 %v1915_v61, %v7874_v8  ;;  %v8092_v19 = vadd.f32 %v1916_v12, %v7877_v51  ;;  %v8095_v29 = vadd.f32 %v1917_v16, %v7880_v42  ;;  %v8098_v4 = vadd.f32 %v1918_v50, %v7883_v10  ;;  %v11396_v10 = vld [vmem:[#allocation19_spill] sm:$0xff]  ;;  %v11425_v61 = vld [vmem:[#allocation76_spill] sm:$0xff] }
 0x14e   : > { %v8101_v57 = vadd.f32 %v1919_v49, %v7886_v52  ;;  %v8104_v43 = vadd.f32 %v1920_v56, %v7889_v39  ;;  %v8107_v21 = vadd.f32 %v1921_v37, %v7892_v54  ;;  %v8110_v38 = vadd.f32 %v1922_v27, %v7895_v18  ;;  %v11398_v39 = vld [vmem:[#allocation20_spill] sm:$0xff]  ;;  %v11406_v49 = vld [vmem:[#allocation107_spill] sm:$0xff]  ;;  %v11418_v56 = vld [vmem:[#allocation62_spill] sm:$0xff] }
 0x14f   : > { %v8113_v12 = vadd.f32 %v1923_v1, %v7898_v28  ;;  %v8116_v16 = vadd.f32 %v1924_v5, %v7909_v48  ;;  %v8119_v41 = vadd.f32 %v1925_v2, %v7912_v24  ;;  %v8122_v8 = vadd.f32 %v1926_v26, %v7915_v44  ;;  %v11400_v18 = vld [vmem:[#allocation24_spill] sm:$0xff]  ;;  %v4676_v48 = vld [vmem:[%s10278_s3 + $0x18] ss:$0 sm:$0xff]  ;;  %v11402_v24 = vld [vmem:[#allocation103_spill] sm:$0xff] }
 0x150   : > { %v8125_v51 = vadd.f32 %v1927_v20, %v7918_v25  ;;  %v8128_v42 = vadd.f32 %v1928_v13, %v7933_v53  ;;  %v8131_v52 = vadd.f32 %v1929_v0, %v11396_v10  ;;  %v8134_v54 = vadd.f32 %v1930_v40, %v11398_v39  ;;  %v11404_v25 = vld [vmem:[#allocation104_spill] sm:$0xff]  ;;  %v11410_v26 = vld [vmem:[#allocation29_spill] sm:$0xff]  ;;  %v11412_v5 = vld [vmem:[#allocation30_spill] sm:$0xff] }
 0x151   : > { %v8137_v28 = vadd.f32 %v1931_v17, %v11400_v18  ;;  %v8143_v44 = vadd.f32 %v1932_v36, %v11402_v24  ;;  %v8146_v50 = vadd.f32 %v1933_v33, %v11404_v25  ;;  %v8149_v53 = vadd.f32 %v1934_v32, %v11406_v49  ;;  %v11408_v1 = vld [vmem:[#allocation108_spill] sm:$0xff]  ;;  %v11414_v27 = vld [vmem:[#allocation31_spill] sm:$0xff] }
 0x152   : > { %11397 = vst [vmem:[#allocation160_spill] sm:$0xff] %v8131_v52  ;;  %11399 = vst [vmem:[#allocation161_spill] sm:$0xff] %v8134_v54  ;;  %v8152_v20 = vadd.f32 %v1935_v63, %v11408_v1  ;;  %v8155_v2 = vadd.f32 %v1936_v9, %v11410_v26  ;;  %v8158_v13 = vadd.f32 %v1937_v22, %v11412_v5  ;;  %v11416_v37 = vld [vmem:[#allocation72_spill] sm:$0xff]  ;;  %v11419_v40 = vld [vmem:[#allocation63_spill] sm:$0xff] }
 0x153   : > { %11401 = vst [vmem:[#allocation162_spill] sm:$0xff] %v8137_v28  ;;  %11403 = vst [vmem:[#allocation163_spill] sm:$0xff] %v8143_v44  ;;  %v8161_v36 = vadd.f32 %v1938_v31, %v11414_v27  ;;  %v8164_v33 = vadd.f32 %v1939_v7, %v11416_v37  ;;  %v2011_v0 = vmul.f32 %v4676_v48, %v11418_v56  ;;  %v11420_v32 = vld [vmem:[#allocation64_spill] sm:$0xff]  ;;  %v11424_v55 = vld [vmem:[#allocation71_spill] sm:$0xff] }
 0x154   : > { %11405 = vst [vmem:[#allocation167_spill] sm:$0xff] %v8146_v50  ;;  %11407 = vst [vmem:[#allocation168_spill] sm:$0xff] %v8149_v53  ;;  %v2012_v17 = vmul.f32 %v4676_v48, %v11419_v40  ;;  %v2013_v63 = vmul.f32 %v4676_v48, %v11420_v32  ;;  %v2014_v9 = vmul.f32 %v4676_v48, %v11421_v45  ;;  %v11426_v7 = vld [vmem:[#allocation14_spill] sm:$0xff]  ;;  %v11427_v18 = vld [vmem:[#allocation15_spill] sm:$0xff] }
 0x155   : > { %11409 = vst [vmem:[#allocation169_spill] sm:$0xff] %v8152_v20  ;;  %11411 = vst [vmem:[#allocation170_spill] sm:$0xff] %v8155_v2  ;;  %v2015_v59 = vmul.f32 %v4676_v48, %v11422_v11  ;;  %v2016_v22 = vmul.f32 %v4676_v48, %v11423_v46  ;;  %v2017_v31 = vmul.f32 %v4676_v48, %v11424_v55  ;;  %v11428_v25 = vld [vmem:[#allocation16_spill] sm:$0xff]  ;;  %v11429_v1 = vld [vmem:[#allocation21_spill] sm:$0xff] }
 0x156   : > { %11413 = vst [vmem:[#allocation60_spill] sm:$0xff] %v8158_v13  ;;  %11415 = vst [vmem:[#allocation61_spill] sm:$0xff] %v8161_v36  ;;  %v2018_v10 = vmul.f32 %v4676_v48, %v11425_v61  ;;  %v2019_v39 = vmul.f32 %v4676_v48, %v11426_v7  ;;  %v2020_v24 = vmul.f32 %v4676_v48, %v11427_v18  ;;  %v8179_v5 = vld [vmem:[%s5300_s19 + $0x180] sm:$0xff]  ;;  %v8182_v27 = vld [vmem:[%s5300_s19 + $0x188] sm:$0xff] }
 0x157   : > { %11417 = vst [vmem:[#allocation19_spill] sm:$0xff] %v8164_v33  ;;  %v2021_v49 = vmul.f32 %v4676_v48, %v11428_v25  ;;  %v2022_v26 = vmul.f32 %v4676_v48, %v11429_v1  ;;  %11430 = vst [vmem:[#allocation20_spill] sm:$0xff] %v8179_v5  ;;  %v11432_v37 = vld [vmem:[#allocation22_spill] sm:$0xff]  ;;  %v11433_v40 = vld [vmem:[#allocation23_spill] sm:$0xff]  ;;  %v2028_v1 = vmul.f32 %v4676_v48, %v11439_v35 }
 0x158   : > { %11431 = vst [vmem:[#allocation24_spill] sm:$0xff] %v8182_v27  ;;  %v2023_v56 = vmul.f32 %v4676_v48, %v11432_v37  ;;  %v2024_v32 = vmul.f32 %v4676_v48, %v11433_v40  ;;  %v11434_v45 = vld [vmem:[#allocation80_spill] sm:$0xff]  ;;  %v11435_v46 = vld [vmem:[#allocation81_spill] sm:$0xff]  ;;  %v11438_v18 = vld [vmem:[#allocation43_spill] sm:$0xff]  ;;  %v2029_v47 = vmul.f32 %v4676_v48, %v11440_v60  ;;  %v2030_v33 = vmul.f32 %v4676_v48, %v11441_v23 }
 0x159   : > { %v2025_v11 = vmul.f32 %v4676_v48, %v11434_v45  ;;  %v2026_v55 = vmul.f32 %v4676_v48, %v11435_v46  ;;  %v8189_v61 = vld [vmem:[%s5300_s19 + $0x1b0] sm:$0xff]  ;;  %v8192_v7 = vld [vmem:[%s5300_s19 + $0x1b8] sm:$0xff]  ;;  %v2027_v25 = vmul.f32 %v4676_v48, %v11438_v18  ;;  %v11445_v20 = vld [vmem:[#allocation87_spill] sm:$0xff]  ;;  %v2037_v18 = vmul.f32 %v4676_v48, %v8179_v5 }
 0x15a   : > { %11436 = vst [vmem:[#allocation103_spill] sm:$0xff] %v8189_v61  ;;  %11437 = vst [vmem:[#allocation104_spill] sm:$0xff] %v8192_v7  ;;  %v11442_v36 = vld [vmem:[#allocation50_spill] sm:$0xff]  ;;  %v11443_v13 = vld [vmem:[#allocation85_spill] sm:$0xff]  ;;  %v2034_v46 = vmul.f32 %v4676_v48, %v11445_v20  ;;  %v2038_v35 = vmul.f32 %v4676_v48, %v8182_v27  ;;  %v8214_v20 = vadd.f32 %v2012_v17, %v8071_v14 }
 0x15b   : > { %v2031_v37 = vmul.f32 %v4676_v48, %v11442_v36  ;;  %v2032_v40 = vmul.f32 %v4676_v48, %v11443_v13  ;;  %v11444_v2 = vld [vmem:[#allocation86_spill] sm:$0xff]  ;;  %v11446_v53 = vld [vmem:[#allocation88_spill] sm:$0xff]  ;;  %v11447_v44 = vld [vmem:[#allocation89_spill] sm:$0xff]  ;;  %v2041_v36 = vmul.f32 %v4676_v48, %v8189_v61  ;;  %v2042_v13 = vmul.f32 %v4676_v48, %v8192_v7 }
 0x15c   : > { %v2033_v45 = vmul.f32 %v4676_v48, %v11444_v2  ;;  %v2035_v50 = vmul.f32 %v4676_v48, %v11446_v53  ;;  %v2036_v28 = vmul.f32 %v4676_v48, %v11447_v44  ;;  %v11448_v54 = vld [vmem:[#allocation94_spill] sm:$0xff]  ;;  %v11449_v52 = vld [vmem:[#allocation95_spill] sm:$0xff]  ;;  %v8211_v2 = vadd.f32 %v2011_v0, %v8068_v6  ;;  %v11493_v7 = vld [vmem:[#allocation113_spill] sm:$0xff] }
 0x15d   : > { %v2039_v60 = vmul.f32 %v4676_v48, %v11448_v54  ;;  %v2040_v23 = vmul.f32 %v4676_v48, %v11449_v52  ;;  %v8217_v44 = vadd.f32 %v2013_v63, %v8074_v58  ;;  %v8220_v53 = vadd.f32 %v2014_v9, %v8077_v30  ;;  %v11494_v61 = vld [vmem:[#allocation114_spill] sm:$0xff]  ;;  %v11495_v5 = vld [vmem:[#allocation115_spill] sm:$0xff] }
 0x15e   : > { %v8223_v54 = vadd.f32 %v2015_v59, %v8080_v62  ;;  %v8226_v52 = vadd.f32 %v2016_v22, %v8083_v15  ;;  %v8229_v48 = vadd.f32 %v2017_v31, %v8086_v3  ;;  %v8232_v6 = vadd.f32 %v2018_v10, %v8089_v34  ;;  %v11462_v59 = vld [vmem:[#allocation169_spill] sm:$0xff]  ;;  %v11464_v31 = vld [vmem:[#allocation170_spill] sm:$0xff] }
 0x15f   : > { %v8235_v14 = vadd.f32 %v2019_v39, %v8092_v19  ;;  %v8238_v58 = vadd.f32 %v2020_v24, %v8095_v29  ;;  %v8241_v30 = vadd.f32 %v2021_v49, %v8098_v4  ;;  %v8244_v62 = vadd.f32 %v2022_v26, %v8101_v57  ;;  %v11466_v39 = vld [vmem:[#allocation60_spill] sm:$0xff]  ;;  %v11468_v49 = vld [vmem:[#allocation61_spill] sm:$0xff]  ;;  %v11470_v26 = vld [vmem:[#allocation19_spill] sm:$0xff] }
 0x160   : > { %v8247_v15 = vadd.f32 %v2023_v56, %v8104_v43  ;;  %v8250_v3 = vadd.f32 %v2024_v32, %v8107_v21  ;;  %v8253_v34 = vadd.f32 %v2025_v11, %v8110_v38  ;;  %v8256_v19 = vadd.f32 %v2026_v55, %v8113_v12  ;;  %v11450_v38 = vld [vmem:[#allocation160_spill] sm:$0xff]  ;;  %v11452_v12 = vld [vmem:[#allocation161_spill] sm:$0xff] }
 0x161   : > { %v8259_v29 = vadd.f32 %v2027_v25, %v8116_v16  ;;  %v8262_v4 = vadd.f32 %v2028_v1, %v8119_v41  ;;  %v8265_v57 = vadd.f32 %v2029_v47, %v8122_v8  ;;  %v8268_v43 = vadd.f32 %v2030_v33, %v8125_v51  ;;  %v11454_v16 = vld [vmem:[#allocation162_spill] sm:$0xff]  ;;  %v4710_v47 = vld [vmem:[%s10278_s3 + $0x19] ss:$0 sm:$0xff]  ;;  %v11456_v41 = vld [vmem:[#allocation163_spill] sm:$0xff] }
 0x162   : > { %v8271_v21 = vadd.f32 %v2031_v37, %v8128_v42  ;;  %v8274_v0 = vadd.f32 %v2032_v40, %v11450_v38  ;;  %v8277_v17 = vadd.f32 %v2033_v45, %v11452_v12  ;;  %v8280_v63 = vadd.f32 %v2034_v46, %v11454_v16  ;;  %v11458_v51 = vld [vmem:[#allocation167_spill] sm:$0xff]  ;;  %v11460_v42 = vld [vmem:[#allocation168_spill] sm:$0xff]  ;;  %v11473_v11 = vld [vmem:[#allocation97_spill] sm:$0xff] }
 0x163   : > { %v8286_v8 = vadd.f32 %v2035_v50, %v11456_v41  ;;  %v8289_v33 = vadd.f32 %v2036_v28, %v11458_v51  ;;  %v8292_v9 = vadd.f32 %v2037_v18, %v11460_v42  ;;  %v8295_v22 = vadd.f32 %v2038_v35, %v11462_v59  ;;  %v11472_v56 = vld [vmem:[#allocation96_spill] sm:$0xff]  ;;  %v11474_v25 = vld [vmem:[#allocation98_spill] sm:$0xff]  ;;  %v11475_v37 = vld [vmem:[#allocation99_spill] sm:$0xff] }
 0x164   : > { %11451 = vst [vmem:[#allocation107_spill] sm:$0xff] %v8274_v0  ;;  %11453 = vst [vmem:[#allocation108_spill] sm:$0xff] %v8277_v17  ;;  %v8298_v10 = vadd.f32 %v2039_v60, %v11464_v31  ;;  %v8301_v24 = vadd.f32 %v2040_v23, %v11466_v39  ;;  %v8304_v50 = vadd.f32 %v2041_v36, %v11468_v49  ;;  %v11476_v45 = vld [vmem:[#allocation100_spill] sm:$0xff]  ;;  %v11477_v18 = vld [vmem:[#allocation101_spill] sm:$0xff] }
 0x165   : > { %11455 = vst [vmem:[#allocation29_spill] sm:$0xff] %v8280_v63  ;;  %11457 = vst [vmem:[#allocation30_spill] sm:$0xff] %v8286_v8  ;;  %v8307_v28 = vadd.f32 %v2042_v13, %v11470_v26  ;;  %v2112_v32 = vmul.f32 %v4710_v47, %v11472_v56  ;;  %v2113_v55 = vmul.f32 %v4710_v47, %v11473_v11  ;;  %v11478_v60 = vld [vmem:[#allocation105_spill] sm:$0xff]  ;;  %v11479_v36 = vld [vmem:[#allocation106_spill] sm:$0xff] }
 0x166   : > { %11459 = vst [vmem:[#allocation31_spill] sm:$0xff] %v8289_v33  ;;  %11461 = vst [vmem:[#allocation72_spill] sm:$0xff] %v8292_v9  ;;  %v2114_v1 = vmul.f32 %v4710_v47, %v11474_v25  ;;  %v2115_v40 = vmul.f32 %v4710_v47, %v11475_v37  ;;  %v2116_v46 = vmul.f32 %v4710_v47, %v11476_v45  ;;  %v11480_v13 = vld [vmem:[#allocation111_spill] sm:$0xff]  ;;  %v11481_v16 = vld [vmem:[#allocation26_spill] sm:$0xff] }
 0x167   : > { %11463 = vst [vmem:[#allocation62_spill] sm:$0xff] %v8295_v22  ;;  %11465 = vst [vmem:[#allocation63_spill] sm:$0xff] %v8298_v10  ;;  %v2117_v35 = vmul.f32 %v4710_v47, %v11477_v18  ;;  %v2118_v23 = vmul.f32 %v4710_v47, %v11478_v60  ;;  %v2119_v38 = vmul.f32 %v4710_v47, %v11479_v36  ;;  %v11482_v51 = vld [vmem:[#allocation27_spill] sm:$0xff]  ;;  %v11483_v59 = vld [vmem:[#allocation32_spill] sm:$0xff] }
 0x168   : > { %11467 = vst [vmem:[#allocation64_spill] sm:$0xff] %v8301_v24  ;;  %11469 = vst [vmem:[#allocation65_spill] sm:$0xff] %v8304_v50  ;;  %v2120_v12 = vmul.f32 %v4710_v47, %v11480_v13  ;;  %v2121_v41 = vmul.f32 %v4710_v47, %v11481_v16  ;;  %v2122_v42 = vmul.f32 %v4710_v47, %v11482_v51  ;;  %v8322_v39 = vld [vmem:[%s5300_s19 + $0x181] sm:$0xff]  ;;  %v8325_v49 = vld [vmem:[%s5300_s19 + $0x189] sm:$0xff] }
 0x169   : > { %11471 = vst [vmem:[#allocation66_spill] sm:$0xff] %v8307_v28  ;;  %v2123_v31 = vmul.f32 %v4710_v47, %v11483_v59  ;;  %11484 = vst [vmem:[#allocation67_spill] sm:$0xff] %v8322_v39  ;;  %v11486_v26 = vld [vmem:[#allocation35_spill] sm:$0xff]  ;;  %v11487_v11 = vld [vmem:[#allocation36_spill] sm:$0xff]  ;;  %v2129_v59 = vmul.f32 %v4710_v47, %v11493_v7  ;;  %v2130_v27 = vmul.f32 %v4710_v47, %v11494_v61 }
 0x16a   : > { %11485 = vst [vmem:[#allocation71_spill] sm:$0xff] %v8325_v49  ;;  %v2124_v56 = vmul.f32 %v4710_v47, %v11486_v26  ;;  %v2125_v25 = vmul.f32 %v4710_v47, %v11487_v11  ;;  %v11488_v37 = vld [vmem:[#allocation37_spill] sm:$0xff]  ;;  %v11489_v18 = vld [vmem:[#allocation42_spill] sm:$0xff]  ;;  %v11492_v16 = vld [vmem:[#allocation112_spill] sm:$0xff]  ;;  %v2131_v28 = vmul.f32 %v4710_v47, %v11495_v5  ;;  %v2139_v7 = vmul.f32 %v4710_v47, %v8325_v49 }
 0x16b   : > { %v2126_v45 = vmul.f32 %v4710_v47, %v11488_v37  ;;  %v2127_v60 = vmul.f32 %v4710_v47, %v11489_v18  ;;  %v8332_v36 = vld [vmem:[%s5300_s19 + $0x1b1] sm:$0xff]  ;;  %v8335_v13 = vld [vmem:[%s5300_s19 + $0x1b9] sm:$0xff]  ;;  %v2128_v51 = vmul.f32 %v4710_v47, %v11492_v16  ;;  %v11499_v22 = vld [vmem:[#allocation119_spill] sm:$0xff]  ;;  %v2138_v16 = vmul.f32 %v4710_v47, %v8322_v39 }
 0x16c   : > { %11490 = vst [vmem:[#allocation76_spill] sm:$0xff] %v8332_v36  ;;  %11491 = vst [vmem:[#allocation14_spill] sm:$0xff] %v8335_v13  ;;  %v11496_v50 = vld [vmem:[#allocation116_spill] sm:$0xff]  ;;  %v11497_v24 = vld [vmem:[#allocation117_spill] sm:$0xff]  ;;  %v2135_v18 = vmul.f32 %v4710_v47, %v11499_v22  ;;  %v8357_v22 = vadd.f32 %v2113_v55, %v8214_v20  ;;  %v8378_v20 = vadd.f32 %v2120_v12, %v8235_v14 }
 0x16d   : > { %v2132_v26 = vmul.f32 %v4710_v47, %v11496_v50  ;;  %v2133_v11 = vmul.f32 %v4710_v47, %v11497_v24  ;;  %v11498_v10 = vld [vmem:[#allocation118_spill] sm:$0xff]  ;;  %v11500_v9 = vld [vmem:[#allocation120_spill] sm:$0xff]  ;;  %v11501_v8 = vld [vmem:[#allocation121_spill] sm:$0xff]  ;;  %v2142_v50 = vmul.f32 %v4710_v47, %v8332_v36  ;;  %v2143_v24 = vmul.f32 %v4710_v47, %v8335_v13 }
 0x16e   : > { %v2134_v37 = vmul.f32 %v4710_v47, %v11498_v10  ;;  %v2136_v33 = vmul.f32 %v4710_v47, %v11500_v9  ;;  %v2137_v63 = vmul.f32 %v4710_v47, %v11501_v8  ;;  %v11502_v17 = vld [vmem:[#allocation122_spill] sm:$0xff]  ;;  %v11503_v0 = vld [vmem:[#allocation123_spill] sm:$0xff]  ;;  %v8354_v10 = vadd.f32 %v2112_v32, %v8211_v2  ;;  %v11548_v36 = vld [vmem:[#allocation92_spill] sm:$0xff] }
 0x16f   : > { %v2140_v61 = vmul.f32 %v4710_v47, %v11502_v17  ;;  %v2141_v5 = vmul.f32 %v4710_v47, %v11503_v0  ;;  %v8360_v8 = vadd.f32 %v2114_v1, %v8217_v44  ;;  %v8363_v9 = vadd.f32 %v2115_v40, %v8220_v53  ;;  %v11520_v12 = vld [vmem:[#allocation64_spill] sm:$0xff]  ;;  %v11547_v13 = vld [vmem:[#allocation91_spill] sm:$0xff]  ;;  %v11549_v39 = vld [vmem:[#allocation93_spill] sm:$0xff] }
 0x170   : > { %v8366_v17 = vadd.f32 %v2116_v46, %v8223_v54  ;;  %v8369_v0 = vadd.f32 %v2117_v35, %v8226_v52  ;;  %v8372_v47 = vadd.f32 %v2118_v23, %v8229_v48  ;;  %v8375_v2 = vadd.f32 %v2119_v38, %v8232_v6  ;;  %v11516_v46 = vld [vmem:[#allocation62_spill] sm:$0xff]  ;;  %v11518_v23 = vld [vmem:[#allocation63_spill] sm:$0xff] }
 0x171   : > { %v8381_v44 = vadd.f32 %v2121_v41, %v8238_v58  ;;  %v8384_v53 = vadd.f32 %v2122_v42, %v8241_v30  ;;  %v8387_v54 = vadd.f32 %v2123_v31, %v8244_v62  ;;  %v8390_v52 = vadd.f32 %v2124_v56, %v8247_v15  ;;  %v11522_v42 = vld [vmem:[#allocation65_spill] sm:$0xff]  ;;  %v11524_v31 = vld [vmem:[#allocation66_spill] sm:$0xff]  ;;  %v11526_v56 = vld [vmem:[#allocation124_spill] sm:$0xff] }
 0x172   : > { %v8393_v48 = vadd.f32 %v2125_v25, %v8250_v3  ;;  %v8396_v6 = vadd.f32 %v2126_v45, %v8253_v34  ;;  %v8399_v14 = vadd.f32 %v2127_v60, %v8256_v19  ;;  %v8402_v58 = vadd.f32 %v2128_v51, %v8259_v29  ;;  %v11504_v34 = vld [vmem:[#allocation107_spill] sm:$0xff]  ;;  %v11506_v19 = vld [vmem:[#allocation108_spill] sm:$0xff]  ;;  %v11508_v29 = vld [vmem:[#allocation29_spill] sm:$0xff] }
 0x173   : > { %v8405_v30 = vadd.f32 %v2129_v59, %v8262_v4  ;;  %v8408_v62 = vadd.f32 %v2130_v27, %v8265_v57  ;;  %v8411_v15 = vadd.f32 %v2131_v28, %v8268_v43  ;;  %v8414_v3 = vadd.f32 %v2132_v26, %v8271_v21  ;;  %v4744_v27 = vld [vmem:[%s10278_s3 + $0x1a] ss:$0 sm:$0xff]  ;;  %v11510_v4 = vld [vmem:[#allocation30_spill] sm:$0xff]  ;;  %v11512_v43 = vld [vmem:[#allocation31_spill] sm:$0xff] }
 0x174   : > { %v8417_v32 = vadd.f32 %v2133_v11, %v11504_v34  ;;  %v8420_v55 = vadd.f32 %v2134_v37, %v11506_v19  ;;  %v8423_v1 = vadd.f32 %v2135_v18, %v11508_v29  ;;  %v8429_v57 = vadd.f32 %v2136_v33, %v11510_v4  ;;  %v11514_v21 = vld [vmem:[#allocation72_spill] sm:$0xff]  ;;  %v11527_v45 = vld [vmem:[#allocation125_spill] sm:$0xff]  ;;  %v11528_v51 = vld [vmem:[#allocation126_spill] sm:$0xff] }
 0x175   : > { %v8432_v28 = vadd.f32 %v2137_v63, %v11512_v43  ;;  %v8435_v40 = vadd.f32 %v2138_v16, %v11514_v21  ;;  %v8438_v35 = vadd.f32 %v2139_v7, %v11516_v46  ;;  %v8441_v38 = vadd.f32 %v2140_v61, %v11518_v23  ;;  %v11529_v26 = vld [vmem:[#allocation127_spill] sm:$0xff]  ;;  %v11530_v37 = vld [vmem:[#allocation128_spill] sm:$0xff]  ;;  %v11531_v16 = vld [vmem:[#allocation129_spill] sm:$0xff] }
 0x176   : > { %11505 = vst [vmem:[#allocation15_spill] sm:$0xff] %v8417_v32  ;;  %11507 = vst [vmem:[#allocation16_spill] sm:$0xff] %v8420_v55  ;;  %v8444_v41 = vadd.f32 %v2141_v5, %v11520_v12  ;;  %v8447_v33 = vadd.f32 %v2142_v50, %v11522_v42  ;;  %v8450_v63 = vadd.f32 %v2143_v24, %v11524_v31  ;;  %v11532_v61 = vld [vmem:[#allocation133_spill] sm:$0xff]  ;;  %v11533_v50 = vld [vmem:[#allocation134_spill] sm:$0xff] }
 0x177   : > { %11509 = vst [vmem:[#allocation21_spill] sm:$0xff] %v8423_v1  ;;  %11511 = vst [vmem:[#allocation22_spill] sm:$0xff] %v8429_v57  ;;  %v2213_v25 = vmul.f32 %v4744_v27, %v11526_v56  ;;  %v2214_v60 = vmul.f32 %v4744_v27, %v11527_v45  ;;  %v2215_v59 = vmul.f32 %v4744_v27, %v11528_v51  ;;  %v11534_v24 = vld [vmem:[#allocation139_spill] sm:$0xff]  ;;  %v11535_v29 = vld [vmem:[#allocation140_spill] sm:$0xff] }
 0x178   : > { %11513 = vst [vmem:[#allocation23_spill] sm:$0xff] %v8432_v28  ;;  %11515 = vst [vmem:[#allocation80_spill] sm:$0xff] %v8435_v40  ;;  %v2216_v11 = vmul.f32 %v4744_v27, %v11529_v26  ;;  %v2217_v18 = vmul.f32 %v4744_v27, %v11530_v37  ;;  %v2218_v7 = vmul.f32 %v4744_v27, %v11531_v16  ;;  %v11536_v43 = vld [vmem:[#allocation141_spill] sm:$0xff]  ;;  %v8465_v12 = vld [vmem:[%s5300_s19 + $0x182] sm:$0xff] }
 0x179   : > { %11517 = vst [vmem:[#allocation81_spill] sm:$0xff] %v8438_v35  ;;  %11519 = vst [vmem:[#allocation43_spill] sm:$0xff] %v8441_v38  ;;  %v2219_v5 = vmul.f32 %v4744_v27, %v11532_v61  ;;  %v2220_v34 = vmul.f32 %v4744_v27, %v11533_v50  ;;  %v2221_v19 = vmul.f32 %v4744_v27, %v11534_v24  ;;  %v11537_v46 = vld [vmem:[#allocation49_spill] sm:$0xff]  ;;  %v8468_v42 = vld [vmem:[%s5300_s19 + $0x18a] sm:$0xff] }
 0x17a   : > { %11521 = vst [vmem:[#allocation82_spill] sm:$0xff] %v8444_v41  ;;  %11523 = vst [vmem:[#allocation83_spill] sm:$0xff] %v8447_v33  ;;  %v2222_v4 = vmul.f32 %v4744_v27, %v11535_v29  ;;  %v2223_v21 = vmul.f32 %v4744_v27, %v11536_v43  ;;  %v2224_v23 = vmul.f32 %v4744_v27, %v11537_v46  ;;  %v11540_v31 = vld [vmem:[#allocation54_spill] sm:$0xff]  ;;  %v11541_v45 = vld [vmem:[#allocation55_spill] sm:$0xff] }
 0x17b   : > { %11525 = vst [vmem:[#allocation84_spill] sm:$0xff] %v8450_v63  ;;  %11538 = vst [vmem:[#allocation50_spill] sm:$0xff] %v8465_v12  ;;  %v2225_v56 = vmul.f32 %v4744_v27, %v11540_v31  ;;  %v2226_v51 = vmul.f32 %v4744_v27, %v11541_v45  ;;  %v11542_v26 = vld [vmem:[#allocation56_spill] sm:$0xff]  ;;  %v11543_v16 = vld [vmem:[#allocation57_spill] sm:$0xff]  ;;  %v2230_v46 = vmul.f32 %v4744_v27, %v11547_v13 }
 0x17c   : > { %11539 = vst [vmem:[#allocation85_spill] sm:$0xff] %v8468_v42  ;;  %v2227_v37 = vmul.f32 %v4744_v27, %v11542_v26  ;;  %v2228_v61 = vmul.f32 %v4744_v27, %v11543_v16  ;;  %v8475_v50 = vld [vmem:[%s5300_s19 + $0x1b2] sm:$0xff]  ;;  %v8478_v24 = vld [vmem:[%s5300_s19 + $0x1ba] sm:$0xff]  ;;  %v2231_v49 = vmul.f32 %v4744_v27, %v11548_v36  ;;  %v2232_v63 = vmul.f32 %v4744_v27, %v11549_v39  ;;  %v11552_v38 = vld [vmem:[#allocation143_spill] sm:$0xff] }
 0x17d   : > { %11544 = vst [vmem:[#allocation86_spill] sm:$0xff] %v8475_v50  ;;  %11545 = vst [vmem:[#allocation87_spill] sm:$0xff] %v8478_v24  ;;  %v11546_v29 = vld [vmem:[#allocation90_spill] sm:$0xff]  ;;  %v11550_v33 = vld [vmem:[#allocation33_spill] sm:$0xff]  ;;  %v2235_v26 = vmul.f32 %v4744_v27, %v11552_v38  ;;  %v2240_v13 = vmul.f32 %v4744_v27, %v8468_v42  ;;  %v8497_v38 = vadd.f32 %v2213_v25, %v8354_v10 }
 0x17e   : > { %v2229_v43 = vmul.f32 %v4744_v27, %v11546_v29  ;;  %v2233_v31 = vmul.f32 %v4744_v27, %v11550_v33  ;;  %v11551_v41 = vld [vmem:[#allocation142_spill] sm:$0xff]  ;;  %v11553_v35 = vld [vmem:[#allocation144_spill] sm:$0xff]  ;;  %v11554_v40 = vld [vmem:[#allocation145_spill] sm:$0xff]  ;;  %v2239_v29 = vmul.f32 %v4744_v27, %v8465_v12  ;;  %v2243_v33 = vmul.f32 %v4744_v27, %v8475_v50 }
 0x17f   : > { %v2234_v45 = vmul.f32 %v4744_v27, %v11551_v41  ;;  %v2236_v16 = vmul.f32 %v4744_v27, %v11553_v35  ;;  %v2237_v28 = vmul.f32 %v4744_v27, %v11554_v40  ;;  %v11555_v57 = vld [vmem:[#allocation146_spill] sm:$0xff]  ;;  %v11556_v55 = vld [vmem:[#allocation147_spill] sm:$0xff]  ;;  %v11557_v32 = vld [vmem:[#allocation148_spill] sm:$0xff]  ;;  %v2244_v41 = vmul.f32 %v4744_v27, %v8478_v24 }
 0x180   : > { %v2238_v1 = vmul.f32 %v4744_v27, %v11555_v57  ;;  %v2241_v36 = vmul.f32 %v4744_v27, %v11556_v55  ;;  %v2242_v39 = vmul.f32 %v4744_v27, %v11557_v32  ;;  %v8500_v35 = vadd.f32 %v2214_v60, %v8357_v22  ;;  %v11601_v24 = vld [vmem:[#allocation46_spill] sm:$0xff]  ;;  %v11602_v50 = vld [vmem:[#allocation51_spill] sm:$0xff]  ;;  %v11603_v12 = vld [vmem:[#allocation52_spill] sm:$0xff] }
 0x181   : > { %v8503_v57 = vadd.f32 %v2215_v59, %v8360_v8  ;;  %v8506_v40 = vadd.f32 %v2216_v11, %v8363_v9  ;;  %v8509_v55 = vadd.f32 %v2217_v18, %v8366_v17  ;;  %v8512_v32 = vadd.f32 %v2218_v7, %v8369_v0  ;;  %v11570_v18 = vld [vmem:[#allocation81_spill] sm:$0xff] }
 0x182   : > { %v8515_v27 = vadd.f32 %v2219_v5, %v8372_v47  ;;  %v8518_v10 = vadd.f32 %v2220_v34, %v8375_v2  ;;  %v8521_v22 = vadd.f32 %v2221_v19, %v8378_v20  ;;  %v8524_v8 = vadd.f32 %v2222_v4, %v8381_v44  ;;  %v11572_v5 = vld [vmem:[#allocation43_spill] sm:$0xff]  ;;  %v11574_v19 = vld [vmem:[#allocation82_spill] sm:$0xff] }
 0x183   : > { %v8527_v9 = vadd.f32 %v2223_v21, %v8384_v53  ;;  %v8530_v17 = vadd.f32 %v2224_v23, %v8387_v54  ;;  %v8533_v0 = vadd.f32 %v2225_v56, %v8390_v52  ;;  %v8536_v47 = vadd.f32 %v2226_v51, %v8393_v48  ;;  %v11576_v21 = vld [vmem:[#allocation83_spill] sm:$0xff]  ;;  %v11578_v23 = vld [vmem:[#allocation84_spill] sm:$0xff]  ;;  %v11580_v56 = vld [vmem:[#allocation149_spill] sm:$0xff] }
 0x184   : > { %v8539_v2 = vadd.f32 %v2227_v37, %v8396_v6  ;;  %v8542_v20 = vadd.f32 %v2228_v61, %v8399_v14  ;;  %v8545_v44 = vadd.f32 %v2229_v43, %v8402_v58  ;;  %v8548_v53 = vadd.f32 %v2230_v46, %v8405_v30  ;;  %v11558_v6 = vld [vmem:[#allocation15_spill] sm:$0xff]  ;;  %v11560_v14 = vld [vmem:[#allocation16_spill] sm:$0xff]  ;;  %v11562_v58 = vld [vmem:[#allocation21_spill] sm:$0xff] }
 0x185   : > { %v8551_v54 = vadd.f32 %v2231_v49, %v8408_v62  ;;  %v8554_v52 = vadd.f32 %v2232_v63, %v8411_v15  ;;  %v8557_v48 = vadd.f32 %v2233_v31, %v8414_v3  ;;  %v8560_v25 = vadd.f32 %v2234_v45, %v11558_v6  ;;  %v4778_v49 = vld [vmem:[%s10278_s3 + $0x1b] ss:$0 sm:$0xff]  ;;  %v11566_v15 = vld [vmem:[#allocation23_spill] sm:$0xff]  ;;  %v11568_v3 = vld [vmem:[#allocation80_spill] sm:$0xff] }
 0x186   : > { %v8563_v60 = vadd.f32 %v2235_v26, %v11560_v14  ;;  %v8566_v59 = vadd.f32 %v2236_v16, %v11562_v58  ;;  %v11564_v30 = vld [vmem:[#allocation22_spill] sm:$0xff]  ;;  %v8575_v63 = vadd.f32 %v2238_v1, %v11566_v15  ;;  %v8578_v11 = vadd.f32 %v2239_v29, %v11568_v3  ;;  %v11582_v43 = vld [vmem:[#allocation151_spill] sm:$0xff]  ;;  %v11583_v31 = vld [vmem:[#allocation152_spill] sm:$0xff] }
 0x187   : > { %11559 = vst [vmem:[#allocation88_spill] sm:$0xff] %v8560_v25  ;;  %v8572_v62 = vadd.f32 %v2237_v28, %v11564_v30  ;;  %v8581_v7 = vadd.f32 %v2240_v13, %v11570_v18  ;;  %v8584_v34 = vadd.f32 %v2241_v36, %v11572_v5  ;;  %v8587_v4 = vadd.f32 %v2242_v39, %v11574_v19  ;;  %v11581_v37 = vld [vmem:[#allocation150_spill] sm:$0xff]  ;;  %v11584_v26 = vld [vmem:[#allocation153_spill] sm:$0xff]  ;;  %v11591_v18 = vld [vmem:[#allocation171_spill] sm:$0xff] }
 0x188   : > { %11561 = vst [vmem:[#allocation89_spill] sm:$0xff] %v8563_v60  ;;  %11563 = vst [vmem:[#allocation94_spill] sm:$0xff] %v8566_v59  ;;  %v8590_v28 = vadd.f32 %v2243_v33, %v11576_v21  ;;  %v8593_v1 = vadd.f32 %v2244_v41, %v11578_v23  ;;  %v2314_v51 = vmul.f32 %v4778_v49, %v11580_v56  ;;  %v11585_v29 = vld [vmem:[#allocation154_spill] sm:$0xff]  ;;  %v11587_v33 = vld [vmem:[#allocation159_spill] sm:$0xff] }
 0x189   : > { %11565 = vst [vmem:[#allocation95_spill] sm:$0xff] %v8572_v62  ;;  %11567 = vst [vmem:[#allocation160_spill] sm:$0xff] %v8575_v63  ;;  %v2315_v61 = vmul.f32 %v4778_v49, %v11581_v37  ;;  %v2316_v46 = vmul.f32 %v4778_v49, %v11582_v43  ;;  %v2317_v45 = vmul.f32 %v4778_v49, %v11583_v31  ;;  %v11586_v36 = vld [vmem:[#allocation158_spill] sm:$0xff]  ;;  %v11588_v41 = vld [vmem:[#allocation164_spill] sm:$0xff] }
 0x18a   : > { %11569 = vst [vmem:[#allocation161_spill] sm:$0xff] %v8578_v11  ;;  %11571 = vst [vmem:[#allocation162_spill] sm:$0xff] %v8581_v7  ;;  %v2318_v16 = vmul.f32 %v4778_v49, %v11584_v26  ;;  %v2319_v13 = vmul.f32 %v4778_v49, %v11585_v29  ;;  %v2320_v39 = vmul.f32 %v4778_v49, %v11586_v36  ;;  %v11589_v58 = vld [vmem:[#allocation165_spill] sm:$0xff]  ;;  %v11590_v15 = vld [vmem:[#allocation166_spill] sm:$0xff] }
 0x18b   : > { %11573 = vst [vmem:[#allocation163_spill] sm:$0xff] %v8584_v34  ;;  %11575 = vst [vmem:[#allocation167_spill] sm:$0xff] %v8587_v4  ;;  %v2321_v6 = vmul.f32 %v4778_v49, %v11587_v33  ;;  %v2322_v14 = vmul.f32 %v4778_v49, %v11588_v41  ;;  %v2323_v30 = vmul.f32 %v4778_v49, %v11589_v58  ;;  %v8608_v19 = vld [vmem:[%s5300_s19 + $0x183] sm:$0xff]  ;;  %v8611_v21 = vld [vmem:[%s5300_s19 + $0x18b] sm:$0xff] }
 0x18c   : > { %11577 = vst [vmem:[#allocation168_spill] sm:$0xff] %v8590_v28  ;;  %11579 = vst [vmem:[#allocation169_spill] sm:$0xff] %v8593_v1  ;;  %v2324_v3 = vmul.f32 %v4778_v49, %v11590_v15  ;;  %v2325_v5 = vmul.f32 %v4778_v49, %v11591_v18  ;;  %v11594_v23 = vld [vmem:[#allocation39_spill] sm:$0xff]  ;;  %v11595_v37 = vld [vmem:[#allocation40_spill] sm:$0xff]  ;;  %v2331_v18 = vmul.f32 %v4778_v49, %v11601_v24 }
 0x18d   : > { %11592 = vst [vmem:[#allocation170_spill] sm:$0xff] %v8608_v19  ;;  %11593 = vst [vmem:[#allocation60_spill] sm:$0xff] %v8611_v21  ;;  %v2326_v56 = vmul.f32 %v4778_v49, %v11594_v23  ;;  %v2327_v43 = vmul.f32 %v4778_v49, %v11595_v37  ;;  %v11596_v31 = vld [vmem:[#allocation41_spill] sm:$0xff]  ;;  %v11597_v29 = vld [vmem:[#allocation44_spill] sm:$0xff]  ;;  %v2332_v42 = vmul.f32 %v4778_v49, %v11602_v50 }
 0x18e   : > { %v2328_v26 = vmul.f32 %v4778_v49, %v11596_v31  ;;  %v2329_v36 = vmul.f32 %v4778_v49, %v11597_v29  ;;  %v8618_v33 = vld [vmem:[%s5300_s19 + $0x1b3] sm:$0xff]  ;;  %v8621_v41 = vld [vmem:[%s5300_s19 + $0x1bb] sm:$0xff]  ;;  %v2333_v1 = vmul.f32 %v4778_v49, %v11603_v12  ;;  %v11606_v34 = vld [vmem:[#allocation59_spill] sm:$0xff]  ;;  %v2341_v24 = vmul.f32 %v4778_v49, %v8611_v21 }
 0x18f   : > { %11598 = vst [vmem:[#allocation61_spill] sm:$0xff] %v8618_v33  ;;  %11599 = vst [vmem:[#allocation19_spill] sm:$0xff] %v8621_v41  ;;  %v11600_v58 = vld [vmem:[#allocation45_spill] sm:$0xff]  ;;  %v11605_v4 = vld [vmem:[#allocation58_spill] sm:$0xff]  ;;  %v2336_v31 = vmul.f32 %v4778_v49, %v11606_v34  ;;  %v8640_v34 = vadd.f32 %v2314_v51, %v8497_v38  ;;  %v8661_v38 = vadd.f32 %v2321_v6, %v8518_v10 }
 0x190   : > { %v2330_v15 = vmul.f32 %v4778_v49, %v11600_v58  ;;  %v11604_v28 = vld [vmem:[#allocation53_spill] sm:$0xff]  ;;  %v2335_v37 = vmul.f32 %v4778_v49, %v11605_v4  ;;  %v11607_v7 = vld [vmem:[#allocation11_spill] sm:$0xff]  ;;  %v11608_v11 = vld [vmem:[#allocation12_spill] sm:$0xff]  ;;  %v2340_v58 = vmul.f32 %v4778_v49, %v8608_v19  ;;  %v2345_v4 = vmul.f32 %v4778_v49, %v8621_v41 }
 0x191   : > { %v2334_v23 = vmul.f32 %v4778_v49, %v11604_v28  ;;  %v2337_v29 = vmul.f32 %v4778_v49, %v11607_v7  ;;  %v2338_v63 = vmul.f32 %v4778_v49, %v11608_v11  ;;  %v11609_v62 = vld [vmem:[#allocation68_spill] sm:$0xff]  ;;  %v11610_v60 = vld [vmem:[#allocation69_spill] sm:$0xff]  ;;  %v11611_v25 = vld [vmem:[#allocation70_spill] sm:$0xff]  ;;  %v2344_v28 = vmul.f32 %v4778_v49, %v8618_v33 }
 0x192   : > { %v2339_v59 = vmul.f32 %v4778_v49, %v11609_v62  ;;  %v2342_v50 = vmul.f32 %v4778_v49, %v11610_v60  ;;  %v2343_v12 = vmul.f32 %v4778_v49, %v11611_v25  ;;  %v8643_v7 = vadd.f32 %v2315_v61, %v8500_v35  ;;  %v11655_v41 = vld [vmem:[#allocation137_spill] sm:$0xff]  ;;  %v11656_v33 = vld [vmem:[#allocation138_spill] sm:$0xff] }
 0x193   : > { %v8646_v62 = vadd.f32 %v2316_v46, %v8503_v57  ;;  %v8649_v11 = vadd.f32 %v2317_v45, %v8506_v40  ;;  %v8652_v60 = vadd.f32 %v2318_v16, %v8509_v55  ;;  %v8655_v25 = vadd.f32 %v2319_v13, %v8512_v32  ;;  %v11624_v16 = vld [vmem:[#allocation162_spill] sm:$0xff] }
 0x194   : > { %v8658_v49 = vadd.f32 %v2320_v39, %v8515_v27  ;;  %v8664_v35 = vadd.f32 %v2322_v14, %v8521_v22  ;;  %v8667_v57 = vadd.f32 %v2323_v30, %v8524_v8  ;;  %v8670_v40 = vadd.f32 %v2324_v3, %v8527_v9  ;;  %v11626_v39 = vld [vmem:[#allocation163_spill] sm:$0xff]  ;;  %v11630_v3 = vld [vmem:[#allocation168_spill] sm:$0xff]  ;;  %v11657_v19 = vld [vmem:[#allocation74_spill] sm:$0xff] }
 0x195   : > { %v8673_v55 = vadd.f32 %v2325_v5, %v8530_v17  ;;  %v8676_v32 = vadd.f32 %v2326_v56, %v8533_v0  ;;  %v8679_v27 = vadd.f32 %v2327_v43, %v8536_v47  ;;  %v8682_v10 = vadd.f32 %v2328_v26, %v8539_v2  ;;  %v11612_v2 = vld [vmem:[#allocation88_spill] sm:$0xff]  ;;  %v11628_v14 = vld [vmem:[#allocation167_spill] sm:$0xff]  ;;  %v11632_v5 = vld [vmem:[#allocation169_spill] sm:$0xff] }
 0x196   : > { %v8685_v22 = vadd.f32 %v2329_v36, %v8542_v20  ;;  %v8688_v8 = vadd.f32 %v2330_v15, %v8545_v44  ;;  %v8691_v9 = vadd.f32 %v2331_v18, %v8548_v53  ;;  %v8694_v17 = vadd.f32 %v2332_v42, %v8551_v54  ;;  %v11614_v20 = vld [vmem:[#allocation89_spill] sm:$0xff]  ;;  %v11616_v44 = vld [vmem:[#allocation94_spill] sm:$0xff]  ;;  %v11618_v53 = vld [vmem:[#allocation95_spill] sm:$0xff] }
 0x197   : > { %v8697_v0 = vadd.f32 %v2333_v1, %v8554_v52  ;;  %v8700_v47 = vadd.f32 %v2334_v23, %v8557_v48  ;;  %v8703_v51 = vadd.f32 %v2335_v37, %v11612_v2  ;;  %v8706_v61 = vadd.f32 %v2336_v31, %v11614_v20  ;;  %v4812_v42 = vld [vmem:[%s10278_s3 + $0x1c] ss:$0 sm:$0xff]  ;;  %v11620_v52 = vld [vmem:[#allocation160_spill] sm:$0xff]  ;;  %v11622_v48 = vld [vmem:[#allocation161_spill] sm:$0xff] }
 0x198   : > { %v8709_v46 = vadd.f32 %v2337_v29, %v11616_v44  ;;  %v8715_v54 = vadd.f32 %v2338_v63, %v11618_v53  ;;  %v8718_v1 = vadd.f32 %v2339_v59, %v11620_v52  ;;  %v8721_v45 = vadd.f32 %v2340_v58, %v11622_v48  ;;  %v11634_v56 = vld [vmem:[#allocation77_spill] sm:$0xff]  ;;  %v11635_v26 = vld [vmem:[#allocation78_spill] sm:$0xff]  ;;  %v11636_v15 = vld [vmem:[#allocation79_spill] sm:$0xff] }
 0x199   : > { %11613 = vst [vmem:[#allocation96_spill] sm:$0xff] %v8703_v51  ;;  %11615 = vst [vmem:[#allocation97_spill] sm:$0xff] %v8706_v61  ;;  %v8724_v13 = vadd.f32 %v2341_v24, %v11624_v16  ;;  %v8727_v6 = vadd.f32 %v2342_v50, %v11626_v39  ;;  %v8730_v30 = vadd.f32 %v2343_v12, %v11628_v14  ;;  %v11637_v23 = vld [vmem:[#allocation13_spill] sm:$0xff]  ;;  %v11639_v58 = vld [vmem:[#allocation18_spill] sm:$0xff] }
 0x19a   : > { %11617 = vst [vmem:[#allocation98_spill] sm:$0xff] %v8709_v46  ;;  %11619 = vst [vmem:[#allocation99_spill] sm:$0xff] %v8715_v54  ;;  %v8733_v63 = vadd.f32 %v2344_v28, %v11630_v3  ;;  %v8736_v59 = vadd.f32 %v2345_v4, %v11632_v5  ;;  %v2415_v43 = vmul.f32 %v4812_v42, %v11634_v56  ;;  %v11638_v31 = vld [vmem:[#allocation17_spill] sm:$0xff]  ;;  %v11641_v28 = vld [vmem:[#allocation102_spill] sm:$0xff] }
 0x19b   : > { %11621 = vst [vmem:[#allocation100_spill] sm:$0xff] %v8718_v1  ;;  %11623 = vst [vmem:[#allocation101_spill] sm:$0xff] %v8721_v45  ;;  %v2416_v36 = vmul.f32 %v4812_v42, %v11635_v26  ;;  %v2417_v18 = vmul.f32 %v4812_v42, %v11636_v15  ;;  %v2418_v37 = vmul.f32 %v4812_v42, %v11637_v23  ;;  %v11640_v50 = vld [vmem:[#allocation25_spill] sm:$0xff]  ;;  %v11643_v44 = vld [vmem:[#allocation110_spill] sm:$0xff] }
 0x19c   : > { %11625 = vst [vmem:[#allocation105_spill] sm:$0xff] %v8724_v13  ;;  %11627 = vst [vmem:[#allocation106_spill] sm:$0xff] %v8727_v6  ;;  %v2419_v29 = vmul.f32 %v4812_v42, %v11638_v31  ;;  %v2420_v24 = vmul.f32 %v4812_v42, %v11639_v58  ;;  %v2421_v12 = vmul.f32 %v4812_v42, %v11640_v50  ;;  %v11642_v4 = vld [vmem:[#allocation109_spill] sm:$0xff]  ;;  %v11644_v52 = vld [vmem:[#allocation28_spill] sm:$0xff] }
 0x19d   : > { %11629 = vst [vmem:[#allocation111_spill] sm:$0xff] %v8730_v30  ;;  %11631 = vst [vmem:[#allocation26_spill] sm:$0xff] %v8733_v63  ;;  %v2422_v2 = vmul.f32 %v4812_v42, %v11641_v28  ;;  %v2423_v20 = vmul.f32 %v4812_v42, %v11642_v4  ;;  %v2424_v53 = vmul.f32 %v4812_v42, %v11643_v44  ;;  %v11645_v16 = vld [vmem:[#allocation73_spill] sm:$0xff]  ;;  %v8751_v14 = vld [vmem:[%s5300_s19 + $0x184] sm:$0xff] }
 0x19e   : > { %11633 = vst [vmem:[#allocation27_spill] sm:$0xff] %v8736_v59  ;;  %v2425_v48 = vmul.f32 %v4812_v42, %v11644_v52  ;;  %v2426_v39 = vmul.f32 %v4812_v42, %v11645_v16  ;;  %11646 = vst [vmem:[#allocation32_spill] sm:$0xff] %v8751_v14  ;;  %v8754_v3 = vld [vmem:[%s5300_s19 + $0x18c] sm:$0xff]  ;;  %v11648_v5 = vld [vmem:[#allocation130_spill] sm:$0xff]  ;;  %v2432_v16 = vmul.f32 %v4812_v42, %v11655_v41 }
 0x19f   : > { %11647 = vst [vmem:[#allocation35_spill] sm:$0xff] %v8754_v3  ;;  %v2427_v56 = vmul.f32 %v4812_v42, %v11648_v5  ;;  %v11649_v26 = vld [vmem:[#allocation131_spill] sm:$0xff]  ;;  %v11650_v23 = vld [vmem:[#allocation132_spill] sm:$0xff]  ;;  %v8761_v28 = vld [vmem:[%s5300_s19 + $0x1b4] sm:$0xff]  ;;  %v2433_v21 = vmul.f32 %v4812_v42, %v11656_v33  ;;  %v2434_v59 = vmul.f32 %v4812_v42, %v11657_v19  ;;  %v2442_v41 = vmul.f32 %v4812_v42, %v8754_v3 }
 0x1a0   : > { %v2428_v15 = vmul.f32 %v4812_v42, %v11649_v26  ;;  %v2429_v31 = vmul.f32 %v4812_v42, %v11650_v23  ;;  %v11651_v58 = vld [vmem:[#allocation135_spill] sm:$0xff]  ;;  %11652 = vst [vmem:[#allocation36_spill] sm:$0xff] %v8761_v28  ;;  %v11654_v44 = vld [vmem:[#allocation136_spill] sm:$0xff]  ;;  %v11661_v13 = vld [vmem:[#allocation34_spill] sm:$0xff] }
 0x1a1   : > { %v2430_v50 = vmul.f32 %v4812_v42, %v11651_v58  ;;  %v8764_v4 = vld [vmem:[%s5300_s19 + $0x1bc] sm:$0xff]  ;;  %v2431_v52 = vmul.f32 %v4812_v42, %v11654_v44  ;;  %v11660_v6 = vld [vmem:[#allocation48_spill] sm:$0xff]  ;;  %v2438_v58 = vmul.f32 %v4812_v42, %v11661_v13  ;;  %v2441_v44 = vmul.f32 %v4812_v42, %v8751_v14  ;;  %v11665_v51 = vld [vmem:[#allocation157_spill] sm:$0xff] }
 0x1a2   : > { %11653 = vst [vmem:[#allocation37_spill] sm:$0xff] %v8764_v4  ;;  %v11658_v63 = vld [vmem:[#allocation75_spill] sm:$0xff]  ;;  %v2437_v23 = vmul.f32 %v4812_v42, %v11660_v6  ;;  %v11662_v45 = vld [vmem:[#allocation38_spill] sm:$0xff]  ;;  %v11664_v61 = vld [vmem:[#allocation156_spill] sm:$0xff]  ;;  %v2444_v19 = vmul.f32 %v4812_v42, %v11665_v51  ;;  %v8783_v6 = vadd.f32 %v2415_v43, %v8640_v34  ;;  %v8795_v51 = vadd.f32 %v2419_v29, %v8652_v60 }
 0x1a3   : > { %v2435_v5 = vmul.f32 %v4812_v42, %v11658_v63  ;;  %v11659_v30 = vld [vmem:[#allocation47_spill] sm:$0xff]  ;;  %v2439_v1 = vmul.f32 %v4812_v42, %v11662_v45  ;;  %v2443_v33 = vmul.f32 %v4812_v42, %v11664_v61  ;;  %v2445_v63 = vmul.f32 %v4812_v42, %v8761_v28  ;;  %v4815_v43 = vld [vmem:[%s5300_s19 + $0x78] sm:$0xff] }
 0x1a4   : > { %v2436_v26 = vmul.f32 %v4812_v42, %v11659_v30  ;;  %v11663_v54 = vld [vmem:[#allocation155_spill] sm:$0xff]  ;;  %v2446_v30 = vmul.f32 %v4812_v42, %v8764_v4  ;;  %v8786_v45 = vadd.f32 %v2416_v36, %v8643_v7  ;;  %v8792_v61 = vadd.f32 %v2418_v37, %v8649_v11  ;;  %v4834_v3 = vld [vmem:[%s5300_s19 + $0x158] sm:$0xff] }
 0x1a5   : > { %v2440_v46 = vmul.f32 %v4812_v42, %v11663_v54  ;;  %v8789_v54 = vadd.f32 %v2417_v18, %v8646_v62  ;;  %v8798_v42 = vadd.f32 %v2420_v24, %v8655_v25  ;;  %v8801_v34 = vadd.f32 %v2421_v12, %v8658_v49  ;;  %v4813_v13 = vld [vmem:[%s5300_s19 + $0x60] sm:$0xff]  ;;  %v4818_v18 = vld [vmem:[%s5300_s19 + $0x98] sm:$0xff]  ;;  %v4819_v37 = vld [vmem:[%s5300_s19 + $0xa8] sm:$0xff] }
 0x1a6   : > { %v8804_v7 = vadd.f32 %v2422_v2, %v8661_v38  ;;  %v8807_v62 = vadd.f32 %v2423_v20, %v8664_v35  ;;  %v8810_v11 = vadd.f32 %v2424_v53, %v8667_v57  ;;  %v8813_v60 = vadd.f32 %v2425_v48, %v8670_v40  ;;  %v4814_v40 = vld [vmem:[%s5300_s19 + $0x68] sm:$0xff]  ;;  %v4816_v36 = vld [vmem:[%s5300_s19 + $0x80] sm:$0xff] }
 0x1a7   : > { %v8816_v25 = vadd.f32 %v2426_v39, %v8673_v55  ;;  %v8819_v49 = vadd.f32 %v2427_v56, %v8676_v32  ;;  %v8822_v38 = vadd.f32 %v2428_v15, %v8679_v27  ;;  %v8825_v35 = vadd.f32 %v2429_v31, %v8682_v10  ;;  %v11678_v2 = vld [vmem:[#allocation99_spill] sm:$0xff]  ;;  %v11680_v53 = vld [vmem:[#allocation100_spill] sm:$0xff]  ;;  %v11682_v39 = vld [vmem:[#allocation101_spill] sm:$0xff] }
 0x1a8   : > { %v8828_v57 = vadd.f32 %v2430_v50, %v8685_v22  ;;  %v8835_v55 = vadd.f32 %v2431_v52, %v8688_v8  ;;  %v8838_v32 = vadd.f32 %v2432_v16, %v8691_v9  ;;  %v8841_v27 = vadd.f32 %v2433_v21, %v8694_v17  ;;  %v4817_v22 = vld [vmem:[%s5300_s19 + $0x90] sm:$0xff]  ;;  %v11676_v21 = vld [vmem:[#allocation98_spill] sm:$0xff]  ;;  %v4822_v50 = vld [vmem:[%s5300_s19 + $0xc8] sm:$0xff] }
 0x1a9   : > { %v8844_v10 = vadd.f32 %v2434_v59, %v8697_v0  ;;  %v8850_v29 = vadd.f32 %v2435_v5, %v8700_v47  ;;  %v11672_v8 = vld [vmem:[#allocation96_spill] sm:$0xff]  ;;  %v11674_v9 = vld [vmem:[#allocation97_spill] sm:$0xff]  ;;  %v8859_v17 = vadd.f32 %v2438_v58, %v11676_v21  ;;  %v4821_v59 = vld [vmem:[%s5300_s19 + $0xc0] sm:$0xff]  ;;  %v8867_v20 = vadd.f32 %v2439_v1, %v11678_v2 }
 0x1aa   : > { %11666 = vst [vmem:[#allocation42_spill] sm:$0xff] %v8828_v57  ;;  %11667 = vst [vmem:[#allocation112_spill] sm:$0xff] %v8835_v55  ;;  %v8853_v24 = vadd.f32 %v2436_v26, %v11672_v8  ;;  %v8856_v12 = vadd.f32 %v2437_v23, %v11674_v9  ;;  %v4820_v0 = vld [vmem:[%s5300_s19 + $0xb0] sm:$0xff]  ;;  %v4846_v47 = vld [vmem:[%s10278_s3 + $0x20] ss:$0 sm:$0xff]  ;;  %v8870_v48 = vadd.f32 %v2440_v46, %v11680_v53 }
 0x1ab   : > { %11668 = vst [vmem:[#allocation113_spill] sm:$0xff] %v8838_v32  ;;  %11669 = vst [vmem:[#allocation114_spill] sm:$0xff] %v8841_v27  ;;  %v8873_v56 = vadd.f32 %v2441_v44, %v11682_v39  ;;  %v11684_v15 = vld [vmem:[#allocation105_spill] sm:$0xff]  ;;  %v4824_v16 = vld [vmem:[%s5300_s19 + $0xe0] sm:$0xff]  ;;  %v2518_v39 = vmul.f32 %v4846_v47, %v4813_v13  ;;  %v2524_v4 = vmul.f32 %v4846_v47, %v4819_v37 }
 0x1ac   : > { %11670 = vst [vmem:[#allocation115_spill] sm:$0xff] %v8844_v10  ;;  %11671 = vst [vmem:[#allocation116_spill] sm:$0xff] %v8850_v29  ;;  %v8876_v31 = vadd.f32 %v2442_v41, %v11684_v15  ;;  %v4823_v52 = vld [vmem:[%s5300_s19 + $0xd8] sm:$0xff]  ;;  %v11688_v1 = vld [vmem:[#allocation111_spill] sm:$0xff]  ;;  %v2519_v15 = vmul.f32 %v4846_v47, %v4814_v40  ;;  %v2525_v28 = vmul.f32 %v4846_v47, %v4820_v0 }
 0x1ad   : > { %11673 = vst [vmem:[#allocation117_spill] sm:$0xff] %v8853_v24  ;;  %11675 = vst [vmem:[#allocation118_spill] sm:$0xff] %v8856_v12  ;;  %v11686_v5 = vld [vmem:[#allocation106_spill] sm:$0xff]  ;;  %v8885_v23 = vadd.f32 %v2444_v19, %v11688_v1  ;;  %v11692_v44 = vld [vmem:[#allocation27_spill] sm:$0xff]  ;;  %v2521_v19 = vmul.f32 %v4846_v47, %v4816_v36  ;;  %v2528_v13 = vmul.f32 %v4846_v47, %v4823_v52 }
 0x1ae   : > { %11677 = vst [vmem:[#allocation119_spill] sm:$0xff] %v8859_v17  ;;  %11679 = vst [vmem:[#allocation120_spill] sm:$0xff] %v8867_v20  ;;  %v8882_v26 = vadd.f32 %v2443_v33, %v11686_v5  ;;  %v11690_v46 = vld [vmem:[#allocation26_spill] sm:$0xff]  ;;  %v8891_v8 = vadd.f32 %v2446_v30, %v11692_v44  ;;  %v4825_v41 = vld [vmem:[%s5300_s19 + $0xf0] sm:$0xff]  ;;  %v2520_v5 = vmul.f32 %v4846_v47, %v4815_v43 }
 0x1af   : > { %11681 = vst [vmem:[#allocation121_spill] sm:$0xff] %v8870_v48  ;;  %11683 = vst [vmem:[#allocation122_spill] sm:$0xff] %v8873_v56  ;;  %v8888_v58 = vadd.f32 %v2445_v63, %v11690_v46  ;;  %v4826_v9 = vld [vmem:[%s5300_s19 + $0xf8] sm:$0xff]  ;;  %v4827_v21 = vld [vmem:[%s5300_s19 + $0x108] sm:$0xff]  ;;  %v2522_v30 = vmul.f32 %v4846_v47, %v4817_v22  ;;  %v2523_v44 = vmul.f32 %v4846_v47, %v4818_v18 }
 0x1b0   : > { %11685 = vst [vmem:[#allocation123_spill] sm:$0xff] %v8876_v31  ;;  %11687 = vst [vmem:[#allocation107_spill] sm:$0xff] %v8882_v26  ;;  %v4828_v2 = vld [vmem:[%s5300_s19 + $0x110] sm:$0xff]  ;;  %v4829_v53 = vld [vmem:[%s5300_s19 + $0x120] sm:$0xff]  ;;  %v2529_v40 = vmul.f32 %v4846_v47, %v4824_v16  ;;  %v2530_v36 = vmul.f32 %v4846_v47, %v4825_v41  ;;  %v2531_v31 = vmul.f32 %v4846_v47, %v4826_v9 }
 0x1b1   : > { %11689 = vst [vmem:[#allocation108_spill] sm:$0xff] %v8885_v23  ;;  %11691 = vst [vmem:[#allocation29_spill] sm:$0xff] %v8888_v58  ;;  %v4830_v33 = vld [vmem:[%s5300_s19 + $0x128] sm:$0xff]  ;;  %v4831_v63 = vld [vmem:[%s5300_s19 + $0x138] sm:$0xff]  ;;  %v2526_v58 = vmul.f32 %v4846_v47, %v4821_v59  ;;  %v2527_v23 = vmul.f32 %v4846_v47, %v4822_v50  ;;  %v2532_v56 = vmul.f32 %v4846_v47, %v4827_v21 }
 0x1b2   : > { %11693 = vst [vmem:[#allocation30_spill] sm:$0xff] %v8891_v8  ;;  %v4832_v1 = vld [vmem:[%s5300_s19 + $0x140] sm:$0xff]  ;;  %v4833_v46 = vld [vmem:[%s5300_s19 + $0x150] sm:$0xff]  ;;  %v4835_v14 = vld [vmem:[%s5300_s19 + $0x168] sm:$0xff]  ;;  %v2533_v48 = vmul.f32 %v4846_v47, %v4828_v2  ;;  %v2534_v18 = vmul.f32 %v4846_v47, %v4829_v53  ;;  %v2535_v17 = vmul.f32 %v4846_v47, %v4830_v33  ;;  %v2536_v37 = vmul.f32 %v4846_v47, %v4831_v63 }
 0x1b3   : > { %v4836_v8 = vld [vmem:[%s5300_s19 + $0x170] sm:$0xff]  ;;  %v4839_v43 = vld [vmem:[%s5300_s19 + $0x198] sm:$0xff]  ;;  %v4840_v26 = vld [vmem:[%s5300_s19 + $0x1a0] sm:$0xff]  ;;  %v2537_v12 = vmul.f32 %v4846_v47, %v4832_v1  ;;  %v2538_v0 = vmul.f32 %v4846_v47, %v4833_v46  ;;  %v2539_v24 = vmul.f32 %v4846_v47, %v4834_v3  ;;  %v2540_v29 = vmul.f32 %v4846_v47, %v4835_v14 }
 0x1b4   : > { %v4843_v20 = vld [vmem:[%s5300_s19 + $0x1c8] sm:$0xff]  ;;  %v4844_v22 = vld [vmem:[%s5300_s19 + $0x1d0] sm:$0xff]  ;;  %v2541_v10 = vmul.f32 %v4846_v47, %v4836_v8  ;;  %v2544_v27 = vmul.f32 %v4846_v47, %v4839_v43  ;;  %v2545_v32 = vmul.f32 %v4846_v47, %v4840_v26  ;;  %v8914_v53 = vadd.f32 %v2518_v39, %v8783_v6  ;;  %v4852_v39 = vld [vmem:[%s5300_s19 + $0x99] sm:$0xff] }
 0x1b5   : > { %v11694_v59 = vld [vmem:[#allocation20_spill] sm:$0xff]  ;;  %v11696_v41 = vld [vmem:[#allocation103_spill] sm:$0xff]  ;;  %v2548_v55 = vmul.f32 %v4846_v47, %v4843_v20  ;;  %v2549_v57 = vmul.f32 %v4846_v47, %v4844_v22  ;;  %v8917_v3 = vadd.f32 %v2519_v15, %v8786_v45  ;;  %v8920_v14 = vadd.f32 %v2520_v5, %v8789_v54  ;;  %v4849_v20 = vld [vmem:[%s5300_s19 + $0x79] sm:$0xff] }
 0x1b6   : > { %v2542_v50 = vmul.f32 %v4846_v47, %v11694_v59  ;;  %v11695_v52 = vld [vmem:[#allocation24_spill] sm:$0xff]  ;;  %v2546_v9 = vmul.f32 %v4846_v47, %v11696_v41  ;;  %v8923_v26 = vadd.f32 %v2521_v19, %v8792_v61  ;;  %v8926_v8 = vadd.f32 %v2522_v30, %v8795_v51  ;;  %v11710_v63 = vld [vmem:[#allocation117_spill] sm:$0xff]  ;;  %v11714_v30 = vld [vmem:[#allocation119_spill] sm:$0xff] }
 0x1b7   : > { %v2543_v16 = vmul.f32 %v4846_v47, %v11695_v52  ;;  %v11697_v21 = vld [vmem:[#allocation104_spill] sm:$0xff]  ;;  %v8932_v6 = vadd.f32 %v2524_v4, %v8801_v34  ;;  %v8935_v45 = vadd.f32 %v2525_v28, %v8804_v7  ;;  %v8938_v54 = vadd.f32 %v2526_v58, %v8807_v62  ;;  %v11698_v7 = vld [vmem:[#allocation42_spill] sm:$0xff]  ;;  %v11724_v41 = vld [vmem:[#allocation107_spill] sm:$0xff] }
 0x1b8   : > { %v2547_v2 = vmul.f32 %v4846_v47, %v11697_v21  ;;  %v8929_v47 = vadd.f32 %v2523_v44, %v8798_v42  ;;  %v8941_v61 = vadd.f32 %v2527_v23, %v8810_v11  ;;  %v8944_v51 = vadd.f32 %v2528_v13, %v8813_v60  ;;  %v4847_v11 = vld [vmem:[%s5300_s19 + $0x61] sm:$0xff]  ;;  %v4848_v60 = vld [vmem:[%s5300_s19 + $0x69] sm:$0xff]  ;;  %v4857_v59 = vld [vmem:[%s5300_s19 + $0xd9] sm:$0xff] }
 0x1b9   : > { %v8947_v42 = vadd.f32 %v2529_v40, %v8816_v25  ;;  %v8950_v4 = vadd.f32 %v2530_v36, %v8819_v49  ;;  %v8953_v28 = vadd.f32 %v2531_v31, %v8822_v38  ;;  %v8956_v34 = vadd.f32 %v2532_v56, %v8825_v35  ;;  %v4850_v23 = vld [vmem:[%s5300_s19 + $0x81] sm:$0xff]  ;;  %v11700_v25 = vld [vmem:[#allocation112_spill] sm:$0xff]  ;;  %v11702_v49 = vld [vmem:[#allocation113_spill] sm:$0xff] }
 0x1ba   : > { %v8959_v62 = vadd.f32 %v2533_v48, %v11698_v7  ;;  %v8966_v58 = vadd.f32 %v2534_v18, %v11700_v25  ;;  %v8969_v33 = vadd.f32 %v2535_v17, %v11702_v49  ;;  %v11704_v38 = vld [vmem:[#allocation114_spill] sm:$0xff]  ;;  %v11706_v35 = vld [vmem:[#allocation115_spill] sm:$0xff]  ;;  %v4851_v48 = vld [vmem:[%s5300_s19 + $0x91] sm:$0xff]  ;;  %v8984_v1 = vadd.f32 %v2539_v24, %v11710_v63 }
 0x1bb   : > { %v8972_v31 = vadd.f32 %v2536_v37, %v11704_v38  ;;  %v8975_v56 = vadd.f32 %v2537_v12, %v11706_v35  ;;  %v4853_v15 = vld [vmem:[%s5300_s19 + $0xa9] sm:$0xff]  ;;  %v11712_v17 = vld [vmem:[#allocation118_spill] sm:$0xff]  ;;  %v8990_v44 = vadd.f32 %v2541_v10, %v11714_v30  ;;  %v4854_v12 = vld [vmem:[%s5300_s19 + $0xb1] sm:$0xff]  ;;  %v9013_v21 = vadd.f32 %v2546_v9, %v11724_v41 }
 0x1bc   : > { %11699 = vst [vmem:[#allocation31_spill] sm:$0xff] %v8959_v62  ;;  %11701 = vst [vmem:[#allocation72_spill] sm:$0xff] %v8966_v58  ;;  %v11708_v5 = vld [vmem:[#allocation116_spill] sm:$0xff]  ;;  %v8987_v46 = vadd.f32 %v2540_v29, %v11712_v17  ;;  %v4855_v13 = vld [vmem:[%s5300_s19 + $0xc1] sm:$0xff] }
 0x1bd   : > { %11703 = vst [vmem:[#allocation62_spill] sm:$0xff] %v8969_v33  ;;  %11705 = vst [vmem:[#allocation63_spill] sm:$0xff] %v8972_v31  ;;  %v8981_v19 = vadd.f32 %v2538_v0, %v11708_v5  ;;  %v4880_v40 = vld [vmem:[%s10278_s3 + $0x21] ss:$0 sm:$0xff]  ;;  %v11716_v43 = vld [vmem:[#allocation120_spill] sm:$0xff] }
 0x1be   : > { %11707 = vst [vmem:[#allocation64_spill] sm:$0xff] %v8975_v56  ;;  %11711 = vst [vmem:[#allocation66_spill] sm:$0xff] %v8984_v1  ;;  %v8998_v24 = vadd.f32 %v2542_v50, %v11716_v43  ;;  %v11718_v36 = vld [vmem:[#allocation121_spill] sm:$0xff]  ;;  %v11720_v22 = vld [vmem:[#allocation122_spill] sm:$0xff]  ;;  %v2619_v17 = vmul.f32 %v4880_v40, %v4847_v11  ;;  %v2620_v30 = vmul.f32 %v4880_v40, %v4848_v60 }
 0x1bf   : > { %11709 = vst [vmem:[#allocation65_spill] sm:$0xff] %v8981_v19  ;;  %11713 = vst [vmem:[#allocation124_spill] sm:$0xff] %v8987_v46  ;;  %v9001_v29 = vadd.f32 %v2543_v16, %v11718_v36  ;;  %v9004_v10 = vadd.f32 %v2544_v27, %v11720_v22  ;;  %v11722_v18 = vld [vmem:[#allocation123_spill] sm:$0xff]  ;;  %v11726_v50 = vld [vmem:[#allocation108_spill] sm:$0xff]  ;;  %v2621_v43 = vmul.f32 %v4880_v40, %v4849_v20 }
 0x1c0   : > { %11715 = vst [vmem:[#allocation125_spill] sm:$0xff] %v8990_v44  ;;  %11717 = vst [vmem:[#allocation126_spill] sm:$0xff] %v8998_v24  ;;  %v9007_v37 = vadd.f32 %v2545_v32, %v11722_v18  ;;  %v4856_v0 = vld [vmem:[%s5300_s19 + $0xc9] sm:$0xff]  ;;  %v4858_v52 = vld [vmem:[%s5300_s19 + $0xe1] sm:$0xff]  ;;  %v9016_v7 = vadd.f32 %v2547_v2, %v11726_v50  ;;  %v2622_v2 = vmul.f32 %v4880_v40, %v4850_v23 }
 0x1c1   : > { %11719 = vst [vmem:[#allocation127_spill] sm:$0xff] %v9001_v29  ;;  %11721 = vst [vmem:[#allocation128_spill] sm:$0xff] %v9004_v10  ;;  %v11728_v16 = vld [vmem:[#allocation29_spill] sm:$0xff]  ;;  %v11730_v27 = vld [vmem:[#allocation30_spill] sm:$0xff]  ;;  %v2624_v18 = vmul.f32 %v4880_v40, %v4852_v39  ;;  %v2625_v41 = vmul.f32 %v4880_v40, %v4853_v15  ;;  %v2626_v50 = vmul.f32 %v4880_v40, %v4854_v12 }
 0x1c2   : > { %11723 = vst [vmem:[#allocation129_spill] sm:$0xff] %v9007_v37  ;;  %11725 = vst [vmem:[#allocation133_spill] sm:$0xff] %v9013_v21  ;;  %v9019_v25 = vadd.f32 %v2548_v55, %v11728_v16  ;;  %v9022_v49 = vadd.f32 %v2549_v57, %v11730_v27  ;;  %v4859_v32 = vld [vmem:[%s5300_s19 + $0xf1] sm:$0xff]  ;;  %v4860_v38 = vld [vmem:[%s5300_s19 + $0xf9] sm:$0xff]  ;;  %v2623_v57 = vmul.f32 %v4880_v40, %v4851_v48 }
 0x1c3   : > { %11727 = vst [vmem:[#allocation134_spill] sm:$0xff] %v9016_v7  ;;  %v4861_v35 = vld [vmem:[%s5300_s19 + $0x109] sm:$0xff]  ;;  %v4862_v5 = vld [vmem:[%s5300_s19 + $0x111] sm:$0xff]  ;;  %v4863_v63 = vld [vmem:[%s5300_s19 + $0x121] sm:$0xff]  ;;  %v2628_v7 = vmul.f32 %v4880_v40, %v4856_v0  ;;  %v2629_v11 = vmul.f32 %v4880_v40, %v4857_v59  ;;  %v2630_v60 = vmul.f32 %v4880_v40, %v4858_v52  ;;  %v2631_v23 = vmul.f32 %v4880_v40, %v4859_v32 }
 0x1c4   : > { %11729 = vst [vmem:[#allocation139_spill] sm:$0xff] %v9019_v25  ;;  %11731 = vst [vmem:[#allocation140_spill] sm:$0xff] %v9022_v49  ;;  %v4864_v9 = vld [vmem:[%s5300_s19 + $0x129] sm:$0xff]  ;;  %v4865_v55 = vld [vmem:[%s5300_s19 + $0x139] sm:$0xff]  ;;  %v2627_v25 = vmul.f32 %v4880_v40, %v4855_v13  ;;  %v2632_v37 = vmul.f32 %v4880_v40, %v4860_v38  ;;  %v2633_v10 = vmul.f32 %v4880_v40, %v4861_v35 }
 0x1c5   : > { %v4866_v36 = vld [vmem:[%s5300_s19 + $0x141] sm:$0xff]  ;;  %v4867_v22 = vld [vmem:[%s5300_s19 + $0x151] sm:$0xff]  ;;  %v4868_v16 = vld [vmem:[%s5300_s19 + $0x159] sm:$0xff]  ;;  %v2634_v29 = vmul.f32 %v4880_v40, %v4862_v5  ;;  %v2635_v39 = vmul.f32 %v4880_v40, %v4863_v63  ;;  %v2636_v44 = vmul.f32 %v4880_v40, %v4864_v9  ;;  %v2637_v15 = vmul.f32 %v4880_v40, %v4865_v55 }
 0x1c6   : > { %v4869_v27 = vld [vmem:[%s5300_s19 + $0x169] sm:$0xff]  ;;  %v4870_v49 = vld [vmem:[%s5300_s19 + $0x171] sm:$0xff]  ;;  %v4873_v20 = vld [vmem:[%s5300_s19 + $0x199] sm:$0xff]  ;;  %v2638_v46 = vmul.f32 %v4880_v40, %v4866_v36  ;;  %v2639_v12 = vmul.f32 %v4880_v40, %v4867_v22  ;;  %v2640_v1 = vmul.f32 %v4880_v40, %v4868_v16  ;;  %v9045_v63 = vadd.f32 %v2619_v17, %v8914_v53 }
 0x1c7   : > { %v4874_v21 = vld [vmem:[%s5300_s19 + $0x1a1] sm:$0xff]  ;;  %v4877_v24 = vld [vmem:[%s5300_s19 + $0x1c9] sm:$0xff]  ;;  %v4878_v48 = vld [vmem:[%s5300_s19 + $0x1d1] sm:$0xff]  ;;  %v2641_v19 = vmul.f32 %v4880_v40, %v4869_v27  ;;  %v2642_v56 = vmul.f32 %v4880_v40, %v4870_v49  ;;  %v2645_v31 = vmul.f32 %v4880_v40, %v4873_v20  ;;  %v9048_v9 = vadd.f32 %v2620_v30, %v8917_v3 }
 0x1c8   : > { %v11732_v13 = vld [vmem:[#allocation67_spill] sm:$0xff]  ;;  %v2646_v33 = vmul.f32 %v4880_v40, %v4874_v21  ;;  %v11734_v32 = vld [vmem:[#allocation76_spill] sm:$0xff]  ;;  %v11735_v35 = vld [vmem:[#allocation14_spill] sm:$0xff]  ;;  %v2649_v58 = vmul.f32 %v4880_v40, %v4877_v24  ;;  %v2650_v62 = vmul.f32 %v4880_v40, %v4878_v48  ;;  %v9051_v49 = vadd.f32 %v2621_v43, %v8920_v14 }
 0x1c9   : > { %v2643_v0 = vmul.f32 %v4880_v40, %v11732_v13  ;;  %v11733_v59 = vld [vmem:[#allocation71_spill] sm:$0xff]  ;;  %v2647_v38 = vmul.f32 %v4880_v40, %v11734_v32  ;;  %v2648_v5 = vmul.f32 %v4880_v40, %v11735_v35  ;;  %v9054_v21 = vadd.f32 %v2622_v2, %v8923_v26  ;;  %v4886_v2 = vld [vmem:[%s5300_s19 + $0x9a] sm:$0xff]  ;;  %v11758_v48 = vld [vmem:[#allocation128_spill] sm:$0xff] }
 0x1ca   : > { %v2644_v52 = vmul.f32 %v4880_v40, %v11733_v59  ;;  %v9057_v55 = vadd.f32 %v2623_v57, %v8926_v8  ;;  %v9060_v40 = vadd.f32 %v2624_v18, %v8929_v47  ;;  %v9063_v53 = vadd.f32 %v2625_v41, %v8932_v6  ;;  %v11736_v24 = vld [vmem:[#allocation31_spill] sm:$0xff]  ;;  %v11746_v22 = vld [vmem:[#allocation65_spill] sm:$0xff]  ;;  %v11748_v18 = vld [vmem:[#allocation66_spill] sm:$0xff] }
 0x1cb   : > { %v9066_v3 = vadd.f32 %v2626_v50, %v8935_v45  ;;  %v9069_v14 = vadd.f32 %v2627_v25, %v8938_v54  ;;  %v9072_v26 = vadd.f32 %v2628_v7, %v8941_v61  ;;  %v9075_v8 = vadd.f32 %v2629_v11, %v8944_v51  ;;  %v4881_v7 = vld [vmem:[%s5300_s19 + $0x62] sm:$0xff]  ;;  %v4882_v51 = vld [vmem:[%s5300_s19 + $0x6a] sm:$0xff]  ;;  %v4883_v25 = vld [vmem:[%s5300_s19 + $0x7a] sm:$0xff] }
 0x1cc   : > { %v9078_v47 = vadd.f32 %v2630_v60, %v8947_v42  ;;  %v9081_v6 = vadd.f32 %v2631_v23, %v8950_v4  ;;  %v9084_v45 = vadd.f32 %v2632_v37, %v8953_v28  ;;  %v9087_v54 = vadd.f32 %v2633_v10, %v8956_v34  ;;  %v4884_v17 = vld [vmem:[%s5300_s19 + $0x82] sm:$0xff]  ;;  %v11738_v42 = vld [vmem:[#allocation72_spill] sm:$0xff]  ;;  %v11752_v16 = vld [vmem:[#allocation125_spill] sm:$0xff] }
 0x1cd   : > { %v9090_v61 = vadd.f32 %v2634_v29, %v11736_v24  ;;  %v9097_v30 = vadd.f32 %v2635_v39, %v11738_v42  ;;  %v11740_v4 = vld [vmem:[#allocation62_spill] sm:$0xff]  ;;  %v11742_v28 = vld [vmem:[#allocation63_spill] sm:$0xff]  ;;  %v11744_v34 = vld [vmem:[#allocation64_spill] sm:$0xff]  ;;  %v9112_v57 = vadd.f32 %v2639_v12, %v11746_v22  ;;  %v9115_v41 = vadd.f32 %v2640_v1, %v11748_v18 }
 0x1ce   : > { %v9100_v43 = vadd.f32 %v2636_v44, %v11740_v4  ;;  %v9103_v37 = vadd.f32 %v2637_v15, %v11742_v28  ;;  %v9106_v10 = vadd.f32 %v2638_v46, %v11744_v34  ;;  %v4885_v29 = vld [vmem:[%s5300_s19 + $0x92] sm:$0xff]  ;;  %v4887_v36 = vld [vmem:[%s5300_s19 + $0xaa] sm:$0xff]  ;;  %v9121_v27 = vadd.f32 %v2642_v56, %v11752_v16  ;;  %v4889_v11 = vld [vmem:[%s5300_s19 + $0xc2] sm:$0xff] }
 0x1cf   : > { %11737 = vst [vmem:[#allocation141_spill] sm:$0xff] %v9090_v61  ;;  %11739 = vst [vmem:[#allocation49_spill] sm:$0xff] %v9097_v30  ;;  %v11750_v44 = vld [vmem:[#allocation124_spill] sm:$0xff]  ;;  %v4914_v60 = vld [vmem:[%s10278_s3 + $0x22] ss:$0 sm:$0xff]  ;;  %v9135_v56 = vadd.f32 %v2645_v31, %v11758_v48 }
 0x1d0   : > { %11741 = vst [vmem:[#allocation54_spill] sm:$0xff] %v9100_v43  ;;  %11743 = vst [vmem:[#allocation55_spill] sm:$0xff] %v9103_v37  ;;  %v9118_v50 = vadd.f32 %v2641_v19, %v11750_v44  ;;  %v4888_v46 = vld [vmem:[%s5300_s19 + $0xb2] sm:$0xff]  ;;  %v11754_v20 = vld [vmem:[#allocation126_spill] sm:$0xff]  ;;  %v2720_v44 = vmul.f32 %v4914_v60, %v4881_v7  ;;  %v2721_v16 = vmul.f32 %v4914_v60, %v4882_v51 }
 0x1d1   : > { %11745 = vst [vmem:[#allocation56_spill] sm:$0xff] %v9106_v10  ;;  %11747 = vst [vmem:[#allocation57_spill] sm:$0xff] %v9112_v57  ;;  %v9129_v1 = vadd.f32 %v2643_v0, %v11754_v20  ;;  %v11756_v23 = vld [vmem:[#allocation127_spill] sm:$0xff]  ;;  %v11760_v39 = vld [vmem:[#allocation129_spill] sm:$0xff]  ;;  %v2722_v20 = vmul.f32 %v4914_v60, %v4883_v25 }
 0x1d2   : > { %11749 = vst [vmem:[#allocation90_spill] sm:$0xff] %v9115_v41  ;;  %11751 = vst [vmem:[#allocation91_spill] sm:$0xff] %v9118_v50  ;;  %v9132_v19 = vadd.f32 %v2644_v52, %v11756_v23  ;;  %v9138_v15 = vadd.f32 %v2646_v33, %v11760_v39  ;;  %v4890_v12 = vld [vmem:[%s5300_s19 + $0xca] sm:$0xff]  ;;  %v4891_v13 = vld [vmem:[%s5300_s19 + $0xda] sm:$0xff]  ;;  %v2725_v39 = vmul.f32 %v4914_v60, %v4886_v2 }
 0x1d3   : > { %11753 = vst [vmem:[#allocation92_spill] sm:$0xff] %v9121_v27  ;;  %11755 = vst [vmem:[#allocation93_spill] sm:$0xff] %v9129_v1  ;;  %v4892_v59 = vld [vmem:[%s5300_s19 + $0xe2] sm:$0xff]  ;;  %v11762_v32 = vld [vmem:[#allocation133_spill] sm:$0xff]  ;;  %v2730_v7 = vmul.f32 %v4914_v60, %v4891_v13 }
 0x1d4   : > { %11757 = vst [vmem:[#allocation33_spill] sm:$0xff] %v9132_v19  ;;  %11759 = vst [vmem:[#allocation142_spill] sm:$0xff] %v9135_v56  ;;  %v9144_v35 = vadd.f32 %v2647_v38, %v11762_v32  ;;  %v11764_v0 = vld [vmem:[#allocation134_spill] sm:$0xff]  ;;  %v11766_v52 = vld [vmem:[#allocation139_spill] sm:$0xff]  ;;  %v2726_v32 = vmul.f32 %v4914_v60, %v4887_v36  ;;  %v2731_v51 = vmul.f32 %v4914_v60, %v4892_v59 }
 0x1d5   : > { %11761 = vst [vmem:[#allocation143_spill] sm:$0xff] %v9138_v15  ;;  %v9147_v24 = vadd.f32 %v2648_v5, %v11764_v0  ;;  %v9150_v42 = vadd.f32 %v2649_v58, %v11766_v52  ;;  %v11768_v31 = vld [vmem:[#allocation140_spill] sm:$0xff]  ;;  %v4894_v28 = vld [vmem:[%s5300_s19 + $0xfa] sm:$0xff]  ;;  %v4897_v18 = vld [vmem:[%s5300_s19 + $0x122] sm:$0xff]  ;;  %v2723_v5 = vmul.f32 %v4914_v60, %v4884_v17  ;;  %v2727_v0 = vmul.f32 %v4914_v60, %v4888_v46 }
 0x1d6   : > { %11763 = vst [vmem:[#allocation144_spill] sm:$0xff] %v9144_v35  ;;  %v9153_v4 = vadd.f32 %v2650_v62, %v11768_v31  ;;  %v4893_v33 = vld [vmem:[%s5300_s19 + $0xf2] sm:$0xff]  ;;  %v4895_v34 = vld [vmem:[%s5300_s19 + $0x10a] sm:$0xff]  ;;  %v4899_v58 = vld [vmem:[%s5300_s19 + $0x13a] sm:$0xff]  ;;  %v2724_v62 = vmul.f32 %v4914_v60, %v4885_v29  ;;  %v2733_v15 = vmul.f32 %v4914_v60, %v4894_v28  ;;  %v2736_v2 = vmul.f32 %v4914_v60, %v4897_v18 }
 0x1d7   : > { %11765 = vst [vmem:[#allocation145_spill] sm:$0xff] %v9147_v24  ;;  %11767 = vst [vmem:[#allocation146_spill] sm:$0xff] %v9150_v42  ;;  %v4896_v22 = vld [vmem:[%s5300_s19 + $0x112] sm:$0xff]  ;;  %v4898_v38 = vld [vmem:[%s5300_s19 + $0x12a] sm:$0xff]  ;;  %v2728_v42 = vmul.f32 %v4914_v60, %v4889_v11  ;;  %v2729_v24 = vmul.f32 %v4914_v60, %v4890_v12  ;;  %v2732_v17 = vmul.f32 %v4914_v60, %v4893_v33 }
 0x1d8   : > { %11769 = vst [vmem:[#allocation147_spill] sm:$0xff] %v9153_v4  ;;  %v4900_v23 = vld [vmem:[%s5300_s19 + $0x142] sm:$0xff]  ;;  %v4901_v48 = vld [vmem:[%s5300_s19 + $0x152] sm:$0xff]  ;;  %v4902_v52 = vld [vmem:[%s5300_s19 + $0x15a] sm:$0xff]  ;;  %v2734_v56 = vmul.f32 %v4914_v60, %v4895_v34  ;;  %v2735_v19 = vmul.f32 %v4914_v60, %v4896_v22  ;;  %v2737_v27 = vmul.f32 %v4914_v60, %v4898_v38  ;;  %v2738_v36 = vmul.f32 %v4914_v60, %v4899_v58 }
 0x1d9   : > { %v4903_v31 = vld [vmem:[%s5300_s19 + $0x16a] sm:$0xff]  ;;  %v4904_v4 = vld [vmem:[%s5300_s19 + $0x172] sm:$0xff]  ;;  %v4907_v25 = vld [vmem:[%s5300_s19 + $0x19a] sm:$0xff]  ;;  %v2739_v50 = vmul.f32 %v4914_v60, %v4900_v23  ;;  %v2740_v46 = vmul.f32 %v4914_v60, %v4901_v48  ;;  %v2741_v41 = vmul.f32 %v4914_v60, %v4902_v52  ;;  %v9176_v18 = vadd.f32 %v2720_v44, %v9045_v63 }
 0x1da   : > { %v4908_v35 = vld [vmem:[%s5300_s19 + $0x1a2] sm:$0xff]  ;;  %v4911_v1 = vld [vmem:[%s5300_s19 + $0x1ca] sm:$0xff]  ;;  %v4912_v29 = vld [vmem:[%s5300_s19 + $0x1d2] sm:$0xff]  ;;  %v2742_v57 = vmul.f32 %v4914_v60, %v4903_v31  ;;  %v2743_v10 = vmul.f32 %v4914_v60, %v4904_v4  ;;  %v2746_v37 = vmul.f32 %v4914_v60, %v4907_v25  ;;  %v9179_v38 = vadd.f32 %v2721_v16, %v9048_v9 }
 0x1db   : > { %v11770_v11 = vld [vmem:[#allocation50_spill] sm:$0xff]  ;;  %v11771_v13 = vld [vmem:[#allocation85_spill] sm:$0xff]  ;;  %v2747_v43 = vmul.f32 %v4914_v60, %v4908_v35  ;;  %v11773_v34 = vld [vmem:[#allocation87_spill] sm:$0xff]  ;;  %v2750_v30 = vmul.f32 %v4914_v60, %v4911_v1  ;;  %v2751_v61 = vmul.f32 %v4914_v60, %v4912_v29  ;;  %v9182_v4 = vadd.f32 %v2722_v20, %v9051_v49 }
 0x1dc   : > { %v2744_v12 = vmul.f32 %v4914_v60, %v11770_v11  ;;  %v2745_v59 = vmul.f32 %v4914_v60, %v11771_v13  ;;  %v11772_v33 = vld [vmem:[#allocation86_spill] sm:$0xff]  ;;  %v2749_v22 = vmul.f32 %v4914_v60, %v11773_v34  ;;  %v9185_v35 = vadd.f32 %v2723_v5, %v9054_v21  ;;  %v11774_v1 = vld [vmem:[#allocation141_spill] sm:$0xff]  ;;  %v4918_v44 = vld [vmem:[%s5300_s19 + $0x83] sm:$0xff] }
 0x1dd   : > { %v2748_v28 = vmul.f32 %v4914_v60, %v11772_v33  ;;  %v9188_v58 = vadd.f32 %v2724_v62, %v9057_v55  ;;  %v9191_v60 = vadd.f32 %v2725_v39, %v9060_v40  ;;  %v9194_v63 = vadd.f32 %v2726_v32, %v9063_v53  ;;  %v4920_v5 = vld [vmem:[%s5300_s19 + $0x9b] sm:$0xff]  ;;  %v4921_v23 = vld [vmem:[%s5300_s19 + $0xab] sm:$0xff]  ;;  %v11784_v48 = vld [vmem:[#allocation57_spill] sm:$0xff] }
 0x1de   : > { %v9197_v9 = vadd.f32 %v2727_v0, %v9066_v3  ;;  %v9200_v49 = vadd.f32 %v2728_v42, %v9069_v14  ;;  %v9203_v21 = vadd.f32 %v2729_v24, %v9072_v26  ;;  %v9206_v55 = vadd.f32 %v2730_v7, %v9075_v8  ;;  %v4915_v24 = vld [vmem:[%s5300_s19 + $0x63] sm:$0xff]  ;;  %v4916_v8 = vld [vmem:[%s5300_s19 + $0x6b] sm:$0xff]  ;;  %v4917_v42 = vld [vmem:[%s5300_s19 + $0x7b] sm:$0xff] }
 0x1df   : > { %v9209_v40 = vadd.f32 %v2731_v51, %v9078_v47  ;;  %v9212_v53 = vadd.f32 %v2732_v17, %v9081_v6  ;;  %v9215_v3 = vadd.f32 %v2733_v15, %v9084_v45  ;;  %v9218_v14 = vadd.f32 %v2734_v56, %v9087_v54  ;;  %v11776_v47 = vld [vmem:[#allocation49_spill] sm:$0xff]  ;;  %v11778_v6 = vld [vmem:[#allocation54_spill] sm:$0xff]  ;;  %v11780_v45 = vld [vmem:[#allocation55_spill] sm:$0xff] }
 0x1e0   : > { %v9221_v26 = vadd.f32 %v2735_v19, %v11774_v1  ;;  %v9228_v16 = vadd.f32 %v2736_v2, %v11776_v47  ;;  %v9231_v20 = vadd.f32 %v2737_v27, %v11778_v6  ;;  %v9234_v15 = vadd.f32 %v2738_v36, %v11780_v45  ;;  %v11782_v54 = vld [vmem:[#allocation56_spill] sm:$0xff]  ;;  %v4919_v19 = vld [vmem:[%s5300_s19 + $0x93] sm:$0xff]  ;;  %v11786_v39 = vld [vmem:[#allocation90_spill] sm:$0xff] }
 0x1e1   : > { %v9237_v56 = vadd.f32 %v2739_v50, %v11782_v54  ;;  %v9243_v62 = vadd.f32 %v2740_v46, %v11784_v48  ;;  %v9246_v32 = vadd.f32 %v2741_v41, %v11786_v39  ;;  %v11788_v27 = vld [vmem:[#allocation91_spill] sm:$0xff]  ;;  %v11790_v52 = vld [vmem:[#allocation92_spill] sm:$0xff]  ;;  %v4922_v50 = vld [vmem:[%s5300_s19 + $0xb3] sm:$0xff] }
 0x1e2   : > { %11775 = vst [vmem:[#allocation148_spill] sm:$0xff] %v9221_v26  ;;  %11777 = vst [vmem:[#allocation15_spill] sm:$0xff] %v9228_v16  ;;  %v9249_v0 = vadd.f32 %v2742_v57, %v11788_v27  ;;  %v9252_v31 = vadd.f32 %v2743_v10, %v11790_v52  ;;  %v4923_v7 = vld [vmem:[%s5300_s19 + $0xc3] sm:$0xff]  ;;  %v11792_v25 = vld [vmem:[#allocation93_spill] sm:$0xff] }
 0x1e3   : > { %11779 = vst [vmem:[#allocation16_spill] sm:$0xff] %v9231_v20  ;;  %11781 = vst [vmem:[#allocation21_spill] sm:$0xff] %v9234_v15  ;;  %v4948_v51 = vld [vmem:[%s10278_s3 + $0x23] ss:$0 sm:$0xff]  ;;  %v9260_v41 = vadd.f32 %v2744_v12, %v11792_v25  ;;  %v11794_v17 = vld [vmem:[#allocation33_spill] sm:$0xff] }
 0x1e4   : > { %11783 = vst [vmem:[#allocation22_spill] sm:$0xff] %v9237_v56  ;;  %11785 = vst [vmem:[#allocation23_spill] sm:$0xff] %v9243_v62  ;;  %v9263_v57 = vadd.f32 %v2745_v59, %v11794_v17  ;;  %v11796_v29 = vld [vmem:[#allocation142_spill] sm:$0xff]  ;;  %v11798_v2 = vld [vmem:[#allocation143_spill] sm:$0xff]  ;;  %v2821_v27 = vmul.f32 %v4948_v51, %v4915_v24  ;;  %v2822_v52 = vmul.f32 %v4948_v51, %v4916_v8 }
 0x1e5   : > { %11787 = vst [vmem:[#allocation80_spill] sm:$0xff] %v9246_v32  ;;  %11789 = vst [vmem:[#allocation81_spill] sm:$0xff] %v9249_v0  ;;  %v9266_v10 = vadd.f32 %v2746_v37, %v11796_v29  ;;  %v9269_v36 = vadd.f32 %v2747_v43, %v11798_v2  ;;  %v4924_v46 = vld [vmem:[%s5300_s19 + $0xcb] sm:$0xff]  ;;  %v4925_v11 = vld [vmem:[%s5300_s19 + $0xdb] sm:$0xff]  ;;  %v2823_v25 = vmul.f32 %v4948_v51, %v4917_v42 }
 0x1e6   : > { %11791 = vst [vmem:[#allocation43_spill] sm:$0xff] %v9252_v31  ;;  %11793 = vst [vmem:[#allocation82_spill] sm:$0xff] %v9260_v41  ;;  %v4926_v13 = vld [vmem:[%s5300_s19 + $0xe3] sm:$0xff]  ;;  %v11800_v33 = vld [vmem:[#allocation144_spill] sm:$0xff]  ;;  %v2826_v2 = vmul.f32 %v4948_v51, %v4920_v5  ;;  %v2831_v24 = vmul.f32 %v4948_v51, %v4925_v11 }
 0x1e7   : > { %11795 = vst [vmem:[#allocation83_spill] sm:$0xff] %v9263_v57  ;;  %11797 = vst [vmem:[#allocation84_spill] sm:$0xff] %v9266_v10  ;;  %v9275_v34 = vadd.f32 %v2748_v28, %v11800_v33  ;;  %v11802_v12 = vld [vmem:[#allocation145_spill] sm:$0xff]  ;;  %v11804_v59 = vld [vmem:[#allocation146_spill] sm:$0xff]  ;;  %v2827_v33 = vmul.f32 %v4948_v51, %v4921_v23  ;;  %v2832_v8 = vmul.f32 %v4948_v51, %v4926_v13 }
 0x1e8   : > { %11799 = vst [vmem:[#allocation149_spill] sm:$0xff] %v9269_v36  ;;  %v9278_v1 = vadd.f32 %v2749_v22, %v11802_v12  ;;  %v9281_v47 = vadd.f32 %v2750_v30, %v11804_v59  ;;  %v11806_v37 = vld [vmem:[#allocation147_spill] sm:$0xff]  ;;  %v4927_v43 = vld [vmem:[%s5300_s19 + $0xf3] sm:$0xff]  ;;  %v4928_v45 = vld [vmem:[%s5300_s19 + $0xfb] sm:$0xff]  ;;  %v2824_v22 = vmul.f32 %v4948_v51, %v4918_v44  ;;  %v2828_v12 = vmul.f32 %v4948_v51, %v4922_v50 }
 0x1e9   : > { %11801 = vst [vmem:[#allocation150_spill] sm:$0xff] %v9275_v34  ;;  %v9284_v6 = vadd.f32 %v2751_v61, %v11806_v37  ;;  %v4929_v54 = vld [vmem:[%s5300_s19 + $0x10b] sm:$0xff]  ;;  %v4930_v48 = vld [vmem:[%s5300_s19 + $0x113] sm:$0xff]  ;;  %v4931_v39 = vld [vmem:[%s5300_s19 + $0x123] sm:$0xff]  ;;  %v2825_v61 = vmul.f32 %v4948_v51, %v4919_v19  ;;  %v2833_v44 = vmul.f32 %v4948_v51, %v4927_v43  ;;  %v2834_v36 = vmul.f32 %v4948_v51, %v4928_v45 }
 0x1ea   : > { %11803 = vst [vmem:[#allocation151_spill] sm:$0xff] %v9278_v1  ;;  %11805 = vst [vmem:[#allocation152_spill] sm:$0xff] %v9281_v47  ;;  %v4932_v28 = vld [vmem:[%s5300_s19 + $0x12b] sm:$0xff]  ;;  %v4933_v30 = vld [vmem:[%s5300_s19 + $0x13b] sm:$0xff]  ;;  %v2829_v47 = vmul.f32 %v4948_v51, %v4923_v7  ;;  %v2830_v1 = vmul.f32 %v4948_v51, %v4924_v46  ;;  %v2835_v10 = vmul.f32 %v4948_v51, %v4929_v54 }
 0x1eb   : > { %11807 = vst [vmem:[#allocation153_spill] sm:$0xff] %v9284_v6  ;;  %v4934_v17 = vld [vmem:[%s5300_s19 + $0x143] sm:$0xff]  ;;  %v4935_v29 = vld [vmem:[%s5300_s19 + $0x153] sm:$0xff]  ;;  %v4936_v59 = vld [vmem:[%s5300_s19 + $0x15b] sm:$0xff]  ;;  %v2836_v57 = vmul.f32 %v4948_v51, %v4930_v48  ;;  %v2837_v5 = vmul.f32 %v4948_v51, %v4931_v39  ;;  %v2838_v31 = vmul.f32 %v4948_v51, %v4932_v28  ;;  %v2839_v23 = vmul.f32 %v4948_v51, %v4933_v30 }
 0x1ec   : > { %v4937_v37 = vld [vmem:[%s5300_s19 + $0x16b] sm:$0xff]  ;;  %v4938_v6 = vld [vmem:[%s5300_s19 + $0x173] sm:$0xff]  ;;  %v4941_v42 = vld [vmem:[%s5300_s19 + $0x19b] sm:$0xff]  ;;  %v2840_v0 = vmul.f32 %v4948_v51, %v4934_v17  ;;  %v2841_v50 = vmul.f32 %v4948_v51, %v4935_v29  ;;  %v2842_v32 = vmul.f32 %v4948_v51, %v4936_v59  ;;  %v9307_v39 = vadd.f32 %v2821_v27, %v9176_v18 }
 0x1ed   : > { %v4942_v34 = vld [vmem:[%s5300_s19 + $0x1a3] sm:$0xff]  ;;  %v4945_v41 = vld [vmem:[%s5300_s19 + $0x1cb] sm:$0xff]  ;;  %v4946_v19 = vld [vmem:[%s5300_s19 + $0x1d3] sm:$0xff]  ;;  %v2843_v62 = vmul.f32 %v4948_v51, %v4937_v37  ;;  %v2844_v56 = vmul.f32 %v4948_v51, %v4938_v6  ;;  %v2847_v15 = vmul.f32 %v4948_v51, %v4941_v42  ;;  %v9310_v28 = vadd.f32 %v2822_v52, %v9179_v38 }
 0x1ee   : > { %v11808_v7 = vld [vmem:[#allocation170_spill] sm:$0xff]  ;;  %v11809_v11 = vld [vmem:[#allocation60_spill] sm:$0xff]  ;;  %v2848_v20 = vmul.f32 %v4948_v51, %v4942_v34  ;;  %v11810_v43 = vld [vmem:[#allocation61_spill] sm:$0xff]  ;;  %v2851_v16 = vmul.f32 %v4948_v51, %v4945_v41  ;;  %v2852_v26 = vmul.f32 %v4948_v51, %v4946_v19  ;;  %v9313_v6 = vadd.f32 %v2823_v25, %v9182_v4 }
 0x1ef   : > { %v2845_v46 = vmul.f32 %v4948_v51, %v11808_v7  ;;  %v2846_v13 = vmul.f32 %v4948_v51, %v11809_v11  ;;  %v2849_v45 = vmul.f32 %v4948_v51, %v11810_v43  ;;  %v11811_v54 = vld [vmem:[#allocation19_spill] sm:$0xff]  ;;  %v9316_v34 = vadd.f32 %v2824_v22, %v9185_v35  ;;  %v11812_v41 = vld [vmem:[#allocation148_spill] sm:$0xff]  ;;  %v11830_v42 = vld [vmem:[#allocation82_spill] sm:$0xff] }
 0x1f0   : > { %v2850_v48 = vmul.f32 %v4948_v51, %v11811_v54  ;;  %v9319_v30 = vadd.f32 %v2825_v61, %v9188_v58  ;;  %v9322_v51 = vadd.f32 %v2826_v2, %v9191_v60  ;;  %v9325_v18 = vadd.f32 %v2827_v33, %v9194_v63  ;;  %v4952_v27 = vld [vmem:[%s5300_s19 + $0x84] sm:$0xff]  ;;  %v4954_v22 = vld [vmem:[%s5300_s19 + $0x9c] sm:$0xff]  ;;  %v4955_v17 = vld [vmem:[%s5300_s19 + $0xac] sm:$0xff] }
 0x1f1   : > { %v9328_v38 = vadd.f32 %v2828_v12, %v9197_v9  ;;  %v9331_v4 = vadd.f32 %v2829_v47, %v9200_v49  ;;  %v9334_v35 = vadd.f32 %v2830_v1, %v9203_v21  ;;  %v9337_v58 = vadd.f32 %v2831_v24, %v9206_v55  ;;  %v4949_v1 = vld [vmem:[%s5300_s19 + $0x64] sm:$0xff]  ;;  %v4950_v55 = vld [vmem:[%s5300_s19 + $0x6c] sm:$0xff]  ;;  %v4951_v47 = vld [vmem:[%s5300_s19 + $0x7c] sm:$0xff] }
 0x1f2   : > { %v9340_v60 = vadd.f32 %v2832_v8, %v9209_v40  ;;  %v9343_v63 = vadd.f32 %v2833_v44, %v9212_v53  ;;  %v9346_v9 = vadd.f32 %v2834_v36, %v9215_v3  ;;  %v9349_v49 = vadd.f32 %v2835_v10, %v9218_v14  ;;  %v11814_v40 = vld [vmem:[#allocation15_spill] sm:$0xff]  ;;  %v11816_v53 = vld [vmem:[#allocation16_spill] sm:$0xff]  ;;  %v11818_v3 = vld [vmem:[#allocation21_spill] sm:$0xff] }
 0x1f3   : > { %v9352_v21 = vadd.f32 %v2836_v57, %v11812_v41  ;;  %v9359_v52 = vadd.f32 %v2837_v5, %v11814_v40  ;;  %v9362_v25 = vadd.f32 %v2838_v31, %v11816_v53  ;;  %v9365_v36 = vadd.f32 %v2839_v23, %v11818_v3  ;;  %v11820_v14 = vld [vmem:[#allocation22_spill] sm:$0xff]  ;;  %v11822_v29 = vld [vmem:[#allocation23_spill] sm:$0xff]  ;;  %v11824_v2 = vld [vmem:[#allocation80_spill] sm:$0xff] }
 0x1f4   : > { %v9368_v10 = vadd.f32 %v2840_v0, %v11820_v14  ;;  %v4953_v57 = vld [vmem:[%s5300_s19 + $0x94] sm:$0xff]  ;;  %v9374_v61 = vadd.f32 %v2841_v50, %v11822_v29  ;;  %v9377_v33 = vadd.f32 %v2842_v32, %v11824_v2  ;;  %v11828_v59 = vld [vmem:[#allocation43_spill] sm:$0xff]  ;;  %v9391_v32 = vadd.f32 %v2845_v46, %v11830_v42  ;;  %v11834_v19 = vld [vmem:[#allocation84_spill] sm:$0xff] }
 0x1f5   : > { %11813 = vst [vmem:[#allocation154_spill] sm:$0xff] %v9352_v21  ;;  %11815 = vst [vmem:[#allocation158_spill] sm:$0xff] %v9359_v52  ;;  %v11826_v31 = vld [vmem:[#allocation81_spill] sm:$0xff]  ;;  %v9383_v37 = vadd.f32 %v2844_v56, %v11828_v59  ;;  %v4957_v24 = vld [vmem:[%s5300_s19 + $0xc4] sm:$0xff]  ;;  %v9397_v56 = vadd.f32 %v2847_v15, %v11834_v19 }
 0x1f6   : > { %11817 = vst [vmem:[#allocation159_spill] sm:$0xff] %v9362_v25  ;;  %11819 = vst [vmem:[#allocation164_spill] sm:$0xff] %v9365_v36  ;;  %v9380_v12 = vadd.f32 %v2843_v62, %v11826_v31  ;;  %v4956_v0 = vld [vmem:[%s5300_s19 + $0xb4] sm:$0xff]  ;;  %v4982_v8 = vld [vmem:[%s10278_s3 + $0x24] ss:$0 sm:$0xff] }
 0x1f7   : > { %11821 = vst [vmem:[#allocation165_spill] sm:$0xff] %v9368_v10  ;;  %11823 = vst [vmem:[#allocation166_spill] sm:$0xff] %v9374_v61  ;;  %v11832_v44 = vld [vmem:[#allocation83_spill] sm:$0xff]  ;;  %v11836_v5 = vld [vmem:[#allocation149_spill] sm:$0xff]  ;;  %v2922_v31 = vmul.f32 %v4982_v8, %v4949_v1  ;;  %v2923_v59 = vmul.f32 %v4982_v8, %v4950_v55  ;;  %v2924_v42 = vmul.f32 %v4982_v8, %v4951_v47 }
 0x1f8   : > { %11825 = vst [vmem:[#allocation171_spill] sm:$0xff] %v9377_v33  ;;  %11827 = vst [vmem:[#allocation39_spill] sm:$0xff] %v9380_v12  ;;  %v9394_v62 = vadd.f32 %v2846_v13, %v11832_v44  ;;  %v9400_v23 = vadd.f32 %v2848_v20, %v11836_v5  ;;  %v4958_v50 = vld [vmem:[%s5300_s19 + $0xcc] sm:$0xff]  ;;  %v4959_v7 = vld [vmem:[%s5300_s19 + $0xdc] sm:$0xff]  ;;  %v2927_v5 = vmul.f32 %v4982_v8, %v4954_v22 }
 0x1f9   : > { %11829 = vst [vmem:[#allocation40_spill] sm:$0xff] %v9383_v37  ;;  %11831 = vst [vmem:[#allocation41_spill] sm:$0xff] %v9391_v32  ;;  %v4960_v11 = vld [vmem:[%s5300_s19 + $0xe4] sm:$0xff]  ;;  %v11838_v43 = vld [vmem:[#allocation150_spill] sm:$0xff]  ;;  %v2932_v1 = vmul.f32 %v4982_v8, %v4959_v7 }
 0x1fa   : > { %11833 = vst [vmem:[#allocation44_spill] sm:$0xff] %v9394_v62  ;;  %11835 = vst [vmem:[#allocation45_spill] sm:$0xff] %v9397_v56  ;;  %v9406_v54 = vadd.f32 %v2849_v45, %v11838_v43  ;;  %v11840_v46 = vld [vmem:[#allocation151_spill] sm:$0xff]  ;;  %v11842_v13 = vld [vmem:[#allocation152_spill] sm:$0xff]  ;;  %v2928_v43 = vmul.f32 %v4982_v8, %v4955_v17  ;;  %v2933_v55 = vmul.f32 %v4982_v8, %v4960_v11 }
 0x1fb   : > { %11837 = vst [vmem:[#allocation46_spill] sm:$0xff] %v9400_v23  ;;  %v9409_v41 = vadd.f32 %v2850_v48, %v11840_v46  ;;  %v9412_v40 = vadd.f32 %v2851_v16, %v11842_v13  ;;  %v11844_v15 = vld [vmem:[#allocation153_spill] sm:$0xff]  ;;  %v4962_v3 = vld [vmem:[%s5300_s19 + $0xfc] sm:$0xff]  ;;  %v4965_v2 = vld [vmem:[%s5300_s19 + $0x124] sm:$0xff]  ;;  %v2925_v48 = vmul.f32 %v4982_v8, %v4952_v27  ;;  %v2929_v46 = vmul.f32 %v4982_v8, %v4956_v0 }
 0x1fc   : > { %11839 = vst [vmem:[#allocation51_spill] sm:$0xff] %v9406_v54  ;;  %v9415_v53 = vadd.f32 %v2852_v26, %v11844_v15  ;;  %v4961_v20 = vld [vmem:[%s5300_s19 + $0xf4] sm:$0xff]  ;;  %v4963_v14 = vld [vmem:[%s5300_s19 + $0x10c] sm:$0xff]  ;;  %v4967_v16 = vld [vmem:[%s5300_s19 + $0x13c] sm:$0xff]  ;;  %v2926_v26 = vmul.f32 %v4982_v8, %v4953_v57  ;;  %v2935_v23 = vmul.f32 %v4982_v8, %v4962_v3  ;;  %v2938_v22 = vmul.f32 %v4982_v8, %v4965_v2 }
 0x1fd   : > { %11841 = vst [vmem:[#allocation52_spill] sm:$0xff] %v9409_v41  ;;  %11843 = vst [vmem:[#allocation53_spill] sm:$0xff] %v9412_v40  ;;  %v4964_v29 = vld [vmem:[%s5300_s19 + $0x114] sm:$0xff]  ;;  %v4966_v45 = vld [vmem:[%s5300_s19 + $0x12c] sm:$0xff]  ;;  %v2930_v40 = vmul.f32 %v4982_v8, %v4957_v24  ;;  %v2931_v41 = vmul.f32 %v4982_v8, %v4958_v50  ;;  %v2934_v27 = vmul.f32 %v4982_v8, %v4961_v20 }
 0x1fe   : > { %11845 = vst [vmem:[#allocation58_spill] sm:$0xff] %v9415_v53  ;;  %v4968_v44 = vld [vmem:[%s5300_s19 + $0x144] sm:$0xff]  ;;  %v4969_v19 = vld [vmem:[%s5300_s19 + $0x154] sm:$0xff]  ;;  %v4970_v13 = vld [vmem:[%s5300_s19 + $0x15c] sm:$0xff]  ;;  %v2936_v56 = vmul.f32 %v4982_v8, %v4963_v14  ;;  %v2937_v62 = vmul.f32 %v4982_v8, %v4964_v29  ;;  %v2939_v37 = vmul.f32 %v4982_v8, %v4966_v45  ;;  %v2940_v17 = vmul.f32 %v4982_v8, %v4967_v16 }
 0x1ff   : > { %v4971_v15 = vld [vmem:[%s5300_s19 + $0x16c] sm:$0xff]  ;;  %v4972_v53 = vld [vmem:[%s5300_s19 + $0x174] sm:$0xff]  ;;  %v4975_v47 = vld [vmem:[%s5300_s19 + $0x19c] sm:$0xff]  ;;  %v2941_v12 = vmul.f32 %v4982_v8, %v4968_v44  ;;  %v2942_v0 = vmul.f32 %v4982_v8, %v4969_v19  ;;  %v2943_v33 = vmul.f32 %v4982_v8, %v4970_v13  ;;  %v2954_v2 = vadd.f32 %v2922_v31, %v9307_v39 }
 0x200   : > { %v4976_v54 = vld [vmem:[%s5300_s19 + $0x1a4] sm:$0xff]  ;;  %v4979_v32 = vld [vmem:[%s5300_s19 + $0x1cc] sm:$0xff]  ;;  %v4980_v57 = vld [vmem:[%s5300_s19 + $0x1d4] sm:$0xff]  ;;  %v2944_v61 = vmul.f32 %v4982_v8, %v4971_v15  ;;  %v2945_v10 = vmul.f32 %v4982_v8, %v4972_v53  ;;  %v2948_v36 = vmul.f32 %v4982_v8, %v4975_v47  ;;  %v2955_v45 = vadd.f32 %v2923_v59, %v9310_v28  ;;  %s437_s19 = scalar_lea.vmem [#allocation6], %s436_s22 }
 0x201   : > { %v11846_v24 = vld [vmem:[#allocation32_spill] sm:$0xff]  ;;  %v11847_v7 = vld [vmem:[#allocation35_spill] sm:$0xff]  ;;  %v2949_v25 = vmul.f32 %v4982_v8, %v4976_v54  ;;  %v11849_v14 = vld [vmem:[#allocation37_spill] sm:$0xff]  ;;  %v2952_v52 = vmul.f32 %v4982_v8, %v4979_v32  ;;  %v2953_v21 = vmul.f32 %v4982_v8, %v4980_v57  ;;  %v2956_v16 = vadd.f32 %v2924_v42, %v9313_v6  ;;  %s4188_s29 = sshll.u32 %s437_s19, 4  ;;  %s10235_s29 = int_to_ptr.vmem [resolvable:$true] %s4188_s29 }
 0x202   : > { %v2946_v50 = vmul.f32 %v4982_v8, %v11846_v24  ;;  %v2947_v11 = vmul.f32 %v4982_v8, %v11847_v7  ;;  %v11848_v20 = vld [vmem:[#allocation36_spill] sm:$0xff]  ;;  %v2951_v29 = vmul.f32 %v4982_v8, %v11849_v14  ;;  %v2957_v53 = vadd.f32 %v2925_v48, %v9316_v34  ;;  %v11850_v32 = vld [vmem:[#allocation154_spill] sm:$0xff]  ;;  %v11852_v59 = vld [vmem:[#allocation159_spill] sm:$0xff]  ;;  %s5088_s25 = scalar_lea.vmem %s10235_s29, 16  ;;  %p5095_p0 = scmp.lt.s32.totalorder %s10235_s29, %s5093_s16 }
 0x203   : > { %v2950_v3 = vmul.f32 %v4982_v8, %v11848_v20  ;;  %v2958_v44 = vadd.f32 %v2926_v26, %v9319_v30  ;;  %v2959_v19 = vadd.f32 %v2927_v5, %v9322_v51  ;;  %v2960_v54 = vadd.f32 %v2928_v43, %v9325_v18  ;;  %v11851_v31 = vld [vmem:[#allocation158_spill] sm:$0xff]  ;;  %v11853_v42 = vld [vmem:[#allocation164_spill] sm:$0xff]  ;;  %v11856_v48 = vld [vmem:[#allocation171_spill] sm:$0xff]  ;;  %p5089_p11 = scmp.ne.s32.totalorder %s10235_s29, %s5088_s25  ;;  %p5096_p1 = scmp.lt.s32.totalorder %s5094_s20, %s5088_s25 }
 0x204   : > { %v2961_v13 = vadd.f32 %v2929_v46, %v9328_v38  ;;  %v2962_v15 = vadd.f32 %v2930_v40, %v9331_v4  ;;  %v2963_v8 = vadd.f32 %v2931_v41, %v9334_v35  ;;  %v2964_v39 = vadd.f32 %v2932_v1, %v9337_v58  ;;  %v11854_v40 = vld [vmem:[#allocation165_spill] sm:$0xff]  ;;  %v11855_v41 = vld [vmem:[#allocation166_spill] sm:$0xff]  ;;  %v11857_v26 = vld [vmem:[#allocation39_spill] sm:$0xff] }
 0x205   : > { %v2965_v28 = vadd.f32 %v2933_v55, %v9340_v60  ;;  %v2966_v6 = vadd.f32 %v2934_v27, %v9343_v63  ;;  %v2967_v34 = vadd.f32 %v2935_v23, %v9346_v9  ;;  %v2968_v30 = vadd.f32 %v2936_v56, %v9349_v49  ;;  %v11858_v5 = vld [vmem:[#allocation40_spill] sm:$0xff]  ;;  %v4983_v49 = vld [vmem:[%s10279_s4] ss:$0 sm:$0xff]  ;;  %v11861_v43 = vld [vmem:[#allocation45_spill] sm:$0xff]  ;;  %p5090_p12 = pnand %p5089_p11, %p5261_p5  ;;  %p5097_p2 = por %p5096_p1, %p5095_p0 }
 0x206   : > { %v2969_v51 = vadd.f32 %v2937_v62, %v11850_v32  ;;  %v2970_v18 = vadd.f32 %v2938_v22, %v11851_v31  ;;  %v2971_v38 = vadd.f32 %v2939_v37, %v11852_v59  ;;  %v2972_v4 = vadd.f32 %v2940_v17, %v11853_v42  ;;  %v11859_v62 = vld [vmem:[#allocation41_spill] sm:$0xff]  ;;  %v11860_v23 = vld [vmem:[#allocation44_spill] sm:$0xff]  ;;  %v11862_v1 = vld [vmem:[#allocation46_spill] sm:$0xff] }
 0x207   : > { %v2973_v35 = vadd.f32 %v2941_v12, %v11854_v40  ;;  %v2974_v58 = vadd.f32 %v2942_v0, %v11855_v41  ;;  %v2975_v60 = vadd.f32 %v2943_v33, %v11856_v48  ;;  %v2976_v63 = vadd.f32 %v2944_v61, %v11857_v26  ;;  %v11863_v55 = vld [vmem:[#allocation51_spill] sm:$0xff]  ;;  %v11864_v27 = vld [vmem:[#allocation52_spill] sm:$0xff]  ;;  %v11865_v57 = vld [vmem:[#allocation53_spill] sm:$0xff]  ;;  %p5091_p13 = pneg %p5090_p12 }
 0x208   : > { %v2977_v9 = vadd.f32 %v2945_v10, %v11858_v5  ;;  %v2978_v56 = vadd.f32 %v2946_v50, %v11859_v62  ;;  %v2979_v37 = vadd.f32 %v2947_v11, %v11860_v23  ;;  %v2980_v46 = vadd.f32 %v2948_v36, %v11861_v43  ;;  %v11866_v22 = vld [vmem:[#allocation58_spill] sm:$0xff] }
 0x209   : > { %v2981_v12 = vadd.f32 %v2949_v25, %v11862_v1  ;;  %v2982_v47 = vadd.f32 %v2950_v3, %v11863_v55  ;;  %v2983_v33 = vadd.f32 %v2951_v29, %v11864_v27  ;;  %v2984_v61 = vadd.f32 %v2952_v52, %v11865_v57  ;;  %p5098_p3 = pnand %p5097_p2, %p5091_p13 }
 0x20a   : > { %v2985_v10 = vadd.f32 %v2953_v21, %v11866_v22  ;;  %v9472_v17 = vadd.f32 %v4983_v49, %v2954_v2  ;;  %v9474_v0 = vadd.f32 %v4983_v49, %v2955_v45  ;;  %v9476_v24 = vadd.f32 %v4983_v49, %v2956_v16 }
 0x20b   : > { %v9478_v50 = vadd.f32 %v4983_v49, %v2957_v53  ;;  %v9480_v7 = vadd.f32 %v4983_v49, %v2958_v44  ;;  %v9482_v36 = vadd.f32 %v4983_v49, %v2959_v19  ;;  %v9484_v25 = vadd.f32 %v4983_v49, %v2960_v54 }
 0x20c   : > { %v9486_v11 = vadd.f32 %v4983_v49, %v2961_v13  ;;  %v9488_v20 = vadd.f32 %v4983_v49, %v2962_v15  ;;  %v9490_v52 = vadd.f32 %v4983_v49, %v2963_v8  ;;  %v9492_v21 = vadd.f32 %v4983_v49, %v2964_v39 }
 0x20d   : > { %v9494_v3 = vadd.f32 %v4983_v49, %v2965_v28  ;;  %v9496_v14 = vadd.f32 %v4983_v49, %v2966_v6  ;;  %v9498_v29 = vadd.f32 %v4983_v49, %v2967_v34  ;;  %v9500_v2 = vadd.f32 %v4983_v49, %v2968_v30 }
 0x20e   : > { %v9502_v45 = vadd.f32 %v4983_v49, %v2969_v51  ;;  %v9504_v16 = vadd.f32 %v4983_v49, %v2970_v18  ;;  %v9506_v53 = vadd.f32 %v4983_v49, %v2971_v38  ;;  %v9508_v44 = vadd.f32 %v4983_v49, %v2972_v4 }
 0x20f   : > { %v9510_v19 = vadd.f32 %v4983_v49, %v2973_v35  ;;  %v9512_v54 = vadd.f32 %v4983_v49, %v2974_v58  ;;  %v9514_v13 = vadd.f32 %v4983_v49, %v2975_v60  ;;  %v9516_v15 = vadd.f32 %v4983_v49, %v2976_v63 }
 0x210   : > { %v9518_v8 = vadd.f32 %v4983_v49, %v2977_v9  ;;  %v9520_v39 = vadd.f32 %v4983_v49, %v2978_v56  ;;  %v9522_v28 = vadd.f32 %v4983_v49, %v2979_v37  ;;  %v9524_v6 = vadd.f32 %v4983_v49, %v2980_v46 }
 0x211   : > { %v9526_v34 = vadd.f32 %v4983_v49, %v2981_v12  ;;  %v9528_v30 = vadd.f32 %v4983_v49, %v2982_v47  ;;  %v9530_v32 = vadd.f32 %v4983_v49, %v2983_v33  ;;  %v9532_v51 = vadd.f32 %v4983_v49, %v2984_v61 }
 0x212   : > { %v9534_v31 = vadd.f32 %v4983_v49, %v2985_v10  ;;  %v3025_v18 = vmax.f32 %v9472_v17, 0.0  ;;  %v3026_v59 = vmax.f32 %v9474_v0, 0.0  ;;  %v3027_v38 = vmax.f32 %v9476_v24, 0.0 }
 0x213   : > { %v3028_v42 = vmax.f32 %v9478_v50, 0.0  ;;  %v3029_v4 = vmax.f32 %v9480_v7, 0.0  ;;  %v3030_v40 = vmax.f32 %v9482_v36, 0.0  ;;  %v3031_v35 = vmax.f32 %v9484_v25, 0.0 }
 0x214   : > { %v3032_v41 = vmax.f32 %v9486_v11, 0.0  ;;  %v3033_v58 = vmax.f32 %v9488_v20, 0.0  ;;  %v3034_v48 = vmax.f32 %v9490_v52, 0.0  ;;  %v3035_v60 = vmax.f32 %v9492_v21, 0.0  ;;  %3058 = vst.msk [vmem:[#allocation2] sm:$0xff] %vm3057_vm1, %v3025_v18  ;;  %3059 = vst.msk [vmem:[#allocation2 + $0x8] sm:$0xff] %vm3057_vm1, %v3026_v59 }
 0x215   : > { %v3036_v26 = vmax.f32 %v9494_v3, 0.0  ;;  %v3037_v63 = vmax.f32 %v9496_v14, 0.0  ;;  %v3038_v5 = vmax.f32 %v9498_v29, 0.0  ;;  %v3039_v9 = vmax.f32 %v9500_v2, 0.0  ;;  %3060 = vst.msk [vmem:[#allocation2 + $0x10] sm:$0xff] %vm3057_vm1, %v3027_v38  ;;  %3061 = vst.msk [vmem:[#allocation2 + $0x18] sm:$0xff] %vm3057_vm1, %v3028_v42 }
 0x216   : > { %v3040_v49 = vmax.f32 %v9502_v45, 0.0  ;;  %v3041_v62 = vmax.f32 %v9504_v16, 0.0  ;;  %v3042_v56 = vmax.f32 %v9506_v53, 0.0  ;;  %v3043_v23 = vmax.f32 %v9508_v44, 0.0  ;;  %3062 = vst.msk [vmem:[#allocation2 + $0x20] sm:$0xff] %vm3057_vm1, %v3029_v4  ;;  %3063 = vst.msk [vmem:[#allocation2 + $0x28] sm:$0xff] %vm3057_vm1, %v3030_v40 }
 0x217   : > { %v3044_v37 = vmax.f32 %v9510_v19, 0.0  ;;  %v3045_v43 = vmax.f32 %v9512_v54, 0.0  ;;  %v3046_v46 = vmax.f32 %v9514_v13, 0.0  ;;  %v3047_v1 = vmax.f32 %v9516_v15, 0.0  ;;  %3064 = vst.msk [vmem:[#allocation2 + $0x30] sm:$0xff] %vm3057_vm1, %v3031_v35  ;;  %3065 = vst.msk [vmem:[#allocation2 + $0x38] sm:$0xff] %vm3057_vm1, %v3032_v41 }
 0x218   : > { %v3048_v12 = vmax.f32 %v9518_v8, 0.0  ;;  %v3049_v55 = vmax.f32 %v9520_v39, 0.0  ;;  %v3050_v47 = vmax.f32 %v9522_v28, 0.0  ;;  %v3051_v27 = vmax.f32 %v9524_v6, 0.0  ;;  %3066 = vst.msk [vmem:[#allocation2 + $0x40] sm:$0xff] %vm3057_vm1, %v3033_v58  ;;  %3067 = vst.msk [vmem:[#allocation2 + $0x48] sm:$0xff] %vm3057_vm1, %v3034_v48 }
 0x219   : > { %v3052_v33 = vmax.f32 %v9526_v34, 0.0  ;;  %v3053_v57 = vmax.f32 %v9528_v30, 0.0  ;;  %v3054_v61 = vmax.f32 %v9530_v32, 0.0  ;;  %v3055_v22 = vmax.f32 %v9532_v51, 0.0  ;;  %3068 = vst.msk [vmem:[#allocation2 + $0x50] sm:$0xff] %vm3057_vm1, %v3035_v60  ;;  %3069 = vst.msk [vmem:[#allocation2 + $0x58] sm:$0xff] %vm3057_vm1, %v3036_v26 }
 0x21a   : > { %v3056_v10 = vmax.f32 %v9534_v31, 0.0  ;;  %3070 = vst.msk [vmem:[#allocation2 + $0x60] sm:$0xff] %vm3057_vm1, %v3037_v63  ;;  %3071 = vst.msk [vmem:[#allocation2 + $0x68] sm:$0xff] %vm3057_vm1, %v3038_v5  ;;  %v5153_v17 = vmov 0.0   ;;  %v9638_v42 = vld [vmem:[%s10280_s5] ss:$0 sm:$0xff] }
 0x21b   : > { %3072 = vst.msk [vmem:[#allocation2 + $0x70] sm:$0xff] %vm3057_vm1, %v3039_v9  ;;  %3073 = vst.msk [vmem:[#allocation2 + $0x78] sm:$0xff] %vm3057_vm1, %v3040_v49  ;;  %v3090_v0 = vld [vmem:[#allocation2] ss:$2 sm:$0xff]  ;;  %v3106_v7 = vld [vmem:[#allocation2 + $0x1] ss:$2 sm:$0xff] }
 0x21c   : > { %3074 = vst.msk [vmem:[#allocation2 + $0x80] sm:$0xff] %vm3057_vm1, %v3041_v62  ;;  %3075 = vst.msk [vmem:[#allocation2 + $0x88] sm:$0xff] %vm3057_vm1, %v3042_v56  ;;  %v3130_v53 = vld [vmem:[#allocation2 + $0x10] ss:$2 sm:$0xff]  ;;  %v3121_v15 = vmax.f32 %v3090_v0, %v3106_v7  ;;  %v3146_v18 = vld [vmem:[#allocation2 + $0x11] ss:$2 sm:$0xff] }
 0x21d   : > { %3076 = vst.msk [vmem:[#allocation2 + $0x90] sm:$0xff] %vm3057_vm1, %v3043_v23  ;;  %3077 = vst.msk [vmem:[#allocation2 + $0x98] sm:$0xff] %vm3057_vm1, %v3044_v37  ;;  %v3092_v24 = vld [vmem:[#allocation2 + $0x20] ss:$2 sm:$0xff]  ;;  %v3108_v52 = vld [vmem:[#allocation2 + $0x21] ss:$2 sm:$0xff]  ;;  %v3161_v58 = vmax.f32 %v3130_v53, %v3146_v18 }
 0x21e   : > { %3078 = vst.msk [vmem:[#allocation2 + $0xa0] sm:$0xff] %vm3057_vm1, %v3045_v43  ;;  %3079 = vst.msk [vmem:[#allocation2 + $0xa8] sm:$0xff] %vm3057_vm1, %v3046_v46  ;;  %v3132_v44 = vld [vmem:[#allocation2 + $0x30] ss:$2 sm:$0xff]  ;;  %v3122_v8 = vmax.f32 %v3092_v24, %v3108_v52  ;;  %v3148_v59 = vld [vmem:[#allocation2 + $0x31] ss:$2 sm:$0xff] }
 0x21f   : > { %3080 = vst.msk [vmem:[#allocation2 + $0xb0] sm:$0xff] %vm3057_vm1, %v3047_v1  ;;  %3081 = vst.msk [vmem:[#allocation2 + $0xb8] sm:$0xff] %vm3057_vm1, %v3048_v12  ;;  %v3094_v50 = vld [vmem:[#allocation2 + $0x40] ss:$2 sm:$0xff]  ;;  %v3110_v21 = vld [vmem:[#allocation2 + $0x41] ss:$2 sm:$0xff]  ;;  %v3162_v48 = vmax.f32 %v3132_v44, %v3148_v59  ;;  %v3169_v12 = vmax.f32 %v3121_v15, %v3161_v58 }
 0x220   : > { %3082 = vst.msk [vmem:[#allocation2 + $0xc0] sm:$0xff] %vm3057_vm1, %v3049_v55  ;;  %3083 = vst.msk [vmem:[#allocation2 + $0xc8] sm:$0xff] %vm3057_vm1, %v3050_v47  ;;  %v3134_v19 = vld [vmem:[#allocation2 + $0x50] ss:$2 sm:$0xff]  ;;  %v3123_v39 = vmax.f32 %v3094_v50, %v3110_v21  ;;  %v3150_v38 = vld [vmem:[#allocation2 + $0x51] ss:$2 sm:$0xff] }
 0x221   : > { %3084 = vst.msk [vmem:[#allocation2 + $0xd0] sm:$0xff] %vm3057_vm1, %v3051_v27  ;;  %3085 = vst.msk [vmem:[#allocation2 + $0xd8] sm:$0xff] %vm3057_vm1, %v3052_v33  ;;  %v3096_v36 = vld [vmem:[#allocation2 + $0x60] ss:$2 sm:$0xff]  ;;  %v3112_v3 = vld [vmem:[#allocation2 + $0x61] ss:$2 sm:$0xff]  ;;  %v3163_v60 = vmax.f32 %v3134_v19, %v3150_v38  ;;  %v3170_v55 = vmax.f32 %v3122_v8, %v3162_v48 }
 0x222   : > { %3086 = vst.msk [vmem:[#allocation2 + $0xe0] sm:$0xff] %vm3057_vm1, %v3053_v57  ;;  %3087 = vst.msk [vmem:[#allocation2 + $0xe8] sm:$0xff] %vm3057_vm1, %v3054_v61  ;;  %v3136_v54 = vld [vmem:[#allocation2 + $0x70] ss:$2 sm:$0xff]  ;;  %v3124_v30 = vmax.f32 %v3096_v36, %v3112_v3  ;;  %v3152_v40 = vld [vmem:[#allocation2 + $0x71] ss:$2 sm:$0xff] }
 0x223   : > { %3088 = vst.msk [vmem:[#allocation2 + $0xf0] sm:$0xff] %vm3057_vm1, %v3055_v22  ;;  %3089 = vst.msk [vmem:[#allocation2 + $0xf8] sm:$0xff] %vm3057_vm1, %v3056_v10  ;;  %v3098_v25 = vld [vmem:[#allocation2 + $0x80] ss:$2 sm:$0xff]  ;;  %v3114_v29 = vld [vmem:[#allocation2 + $0x81] ss:$2 sm:$0xff]  ;;  %v3164_v49 = vmax.f32 %v3136_v54, %v3152_v40  ;;  %v3171_v22 = vmax.f32 %v3123_v39, %v3163_v60 }
 0x224   : > { %3177 = vst.msk [vmem:[#allocation3] sm:$0xff] %vm3057_vm1, %v5153_v17  ;;  %3180 = vst.msk [vmem:[#allocation3 + $0x10] sm:$0xff] %vm3057_vm1, %v5153_v17  ;;  %v3138_v13 = vld [vmem:[#allocation2 + $0x90] ss:$2 sm:$0xff]  ;;  %v3125_v32 = vmax.f32 %v3098_v25, %v3114_v29  ;;  %v3154_v35 = vld [vmem:[#allocation2 + $0x91] ss:$2 sm:$0xff] }
 0x225   : > { %3179 = vst.msk [vmem:[#allocation3 + $0x8] sm:$0xf] %vm3178_vm2, %v5153_v17  ;;  %3181 = vst.msk [vmem:[#allocation3 + $0x18] sm:$0xf] %vm3178_vm2, %v5153_v17  ;;  %v3100_v11 = vld [vmem:[#allocation2 + $0xa0] ss:$2 sm:$0xff]  ;;  %v3165_v62 = vmax.f32 %v3138_v13, %v3154_v35  ;;  %v3172_v10 = vmax.f32 %v3124_v30, %v3164_v49 }
 0x226   : > { %3183 = vst.msk [vmem:[#allocation3 + $0xa0] sm:$0xff] %vm3057_vm1, %v5153_v17  ;;  %3185 = vst.msk [vmem:[#allocation3 + $0xb0] sm:$0xff] %vm3057_vm1, %v5153_v17  ;;  %v3116_v2 = vld [vmem:[#allocation2 + $0xa1] ss:$2 sm:$0xff]  ;;  %v3140_v28 = vld [vmem:[#allocation2 + $0xb0] ss:$2 sm:$0xff] }
 0x227   : > { %3184 = vst.msk [vmem:[#allocation3 + $0xa8] sm:$0xf] %vm3178_vm2, %v5153_v17  ;;  %3186 = vst.msk [vmem:[#allocation3 + $0xb8] sm:$0xf] %vm3178_vm2, %v5153_v17  ;;  %v9632_v20 = vld [vmem:[#allocation2 + $0xc0] ss:$2 sm:$0xff]  ;;  %v3126_v51 = vmax.f32 %v3100_v11, %v3116_v2 }
 0x228   : > { %3190 = vst.msk [vmem:[#allocation3 + $0x20] sm:$0x3] %vm3187_vm3, %v5153_v17  ;;  %3191 = vst.msk [vmem:[#allocation3 + $0x30] sm:$0x3] %vm3187_vm3, %v5153_v17  ;;  %v3118_v45 = vld [vmem:[#allocation2 + $0xc1] ss:$2 sm:$0xff] }
 0x229   : > { %3192 = vst.msk [vmem:[#allocation3 + $0x40] sm:$0x3] %vm3187_vm3, %v5153_v17  ;;  %3193 = vst.msk [vmem:[#allocation3 + $0x50] sm:$0x3] %vm3187_vm3, %v5153_v17  ;;  %v3104_v14 = vld [vmem:[#allocation2 + $0xe0] ss:$2 sm:$0xff]  ;;  %v3127_v31 = vmax.f32 %v9632_v20, %v3118_v45 }
 0x22a   : > { %3194 = vst.msk [vmem:[#allocation3 + $0x60] sm:$0x3] %vm3187_vm3, %v5153_v17  ;;  %3195 = vst.msk [vmem:[#allocation3 + $0x70] sm:$0x3] %vm3187_vm3, %v5153_v17  ;;  %v3120_v16 = vld [vmem:[#allocation2 + $0xe1] ss:$2 sm:$0xff] }
 0x22b   : > { %3196 = vst.msk [vmem:[#allocation3 + $0x80] sm:$0x3] %vm3187_vm3, %v5153_v17  ;;  %3197 = vst.msk [vmem:[#allocation3 + $0x90] sm:$0x3] %vm3187_vm3, %v5153_v17  ;;  %v3142_v6 = vld [vmem:[#allocation2 + $0xd0] ss:$2 sm:$0xff]  ;;  %v3128_v4 = vmax.f32 %v3104_v14, %v3120_v16 }
 0x22c   : > { %3202 = vst.msk [vmem:[#allocation3 + $0x2a] sm:$0x3] %vm3187_vm3, %v5153_v17  ;;  %3203 = vst.msk [vmem:[#allocation3 + $0x3a] sm:$0x3] %vm3187_vm3, %v5153_v17  ;;  %v3144_v34 = vld [vmem:[#allocation2 + $0xf0] ss:$2 sm:$0xff] }
 0x22d   : > { %3204 = vst.msk [vmem:[#allocation3 + $0x4a] sm:$0x3] %vm3187_vm3, %v5153_v17  ;;  %3205 = vst.msk [vmem:[#allocation3 + $0x5a] sm:$0x3] %vm3187_vm3, %v5153_v17  ;;  %v3156_v41 = vld [vmem:[#allocation2 + $0xb1] ss:$2 sm:$0xff] }
 0x22e   : > { %3206 = vst.msk [vmem:[#allocation3 + $0x6a] sm:$0x3] %vm3187_vm3, %v5153_v17  ;;  %3207 = vst.msk [vmem:[#allocation3 + $0x7a] sm:$0x3] %vm3187_vm3, %v5153_v17  ;;  %v9643_v26 = vld [vmem:[%s10280_s5 + $0x1] ss:$0 sm:$0xff]  ;;  %v3166_v56 = vmax.f32 %v3140_v28, %v3156_v41 }
 0x22f   : > { %3208 = vst.msk [vmem:[#allocation3 + $0x8a] sm:$0x3] %vm3187_vm3, %v5153_v17  ;;  %3209 = vst.msk [vmem:[#allocation3 + $0x9a] sm:$0x3] %vm3187_vm3, %v5153_v17  ;;  %v9648_v63 = vld [vmem:[%s10280_s5 + $0x2] ss:$0 sm:$0xff] }
 0x230   : > { %3188 = vst.msk [vmem:[#allocation3] sm:$0x3] %vm3187_vm3, %v5153_v17  ;;  %3189 = vst.msk [vmem:[#allocation3 + $0x10] sm:$0x3] %vm3187_vm3, %v5153_v17  ;;  %v3158_v5 = vld [vmem:[#allocation2 + $0xd1] ss:$2 sm:$0xff]  ;;  %v3174_v0 = vmax.f32 %v3126_v51, %v3166_v56 }
 0x231   : > { %3198 = vst.msk [vmem:[#allocation3 + $0xa0] sm:$0x3] %vm3187_vm3, %v5153_v17  ;;  %3199 = vst.msk [vmem:[#allocation3 + $0xb0] sm:$0x3] %vm3187_vm3, %v5153_v17  ;;  %v3160_v9 = vld [vmem:[#allocation2 + $0xf1] ss:$2 sm:$0xff]  ;;  %v3167_v46 = vmax.f32 %v3142_v6, %v3158_v5 }
 0x232   : > { %3200 = vst.msk [vmem:[#allocation3 + $0xa] sm:$0x3] %vm3187_vm3, %v5153_v17  ;;  %3201 = vst.msk [vmem:[#allocation3 + $0x1a] sm:$0x3] %vm3187_vm3, %v5153_v17  ;;  %v9653_v37 = vld [vmem:[%s10280_s5 + $0x3] ss:$0 sm:$0xff]  ;;  %v3168_v1 = vmax.f32 %v3144_v34, %v3160_v9 }
 0x233   : > { %3210 = vst.msk [vmem:[#allocation3 + $0xaa] sm:$0x3] %vm3187_vm3, %v5153_v17  ;;  %3211 = vst.msk [vmem:[#allocation3 + $0xba] sm:$0x3] %vm3187_vm3, %v5153_v17  ;;  %v9658_v43 = vld [vmem:[%s10280_s5 + $0x4] ss:$0 sm:$0xff]  ;;  %v3173_v17 = vmax.f32 %v3125_v32, %v3165_v62  ;;  %v3175_v25 = vmax.f32 %v3127_v31, %v3167_v46 }
 0x234   : > { %v9663_v57 = vld [vmem:[%s10280_s5 + $0x8] ss:$0 sm:$0xff]  ;;  %v9668_v61 = vld [vmem:[%s10280_s5 + $0x9] ss:$0 sm:$0xff]  ;;  %v3280_v50 = vld [vmem:[#allocation3 + $0x12] sm:$0xff]  ;;  %v3176_v11 = vmax.f32 %v3128_v4, %v3168_v1  ;;  %3213 = vst.msk [vmem:[#allocation3 + $0x22] sm:$0xff] %vm3057_vm1, %v3169_v12 }
 0x235   : > { %v3279_v24 = vld [vmem:[#allocation3 + $0x2] sm:$0xff]  ;;  %v9673_v36 = vld [vmem:[%s10280_s5 + $0xa] ss:$0 sm:$0xff]  ;;  %3214 = vst.msk [vmem:[#allocation3 + $0x32] sm:$0xff] %vm3057_vm1, %v3170_v55  ;;  %3215 = vst.msk [vmem:[#allocation3 + $0x42] sm:$0xff] %vm3057_vm1, %v3171_v22  ;;  %v3293_v16 = vmul.f32 %v9648_v63, %v3280_v50 }
 0x236   : > { %3216 = vst.msk [vmem:[#allocation3 + $0x52] sm:$0xff] %vm3057_vm1, %v3172_v10  ;;  %3217 = vst.msk [vmem:[#allocation3 + $0x62] sm:$0xff] %vm3057_vm1, %v3173_v17  ;;  %v3292_v45 = vmul.f32 %v9648_v63, %v3279_v24  ;;  %v9690_v53 = vld [vmem:[%s10280_s5 + $0xb] ss:$0 sm:$0xff]  ;;  %v9695_v44 = vld [vmem:[%s10280_s5 + $0xc] ss:$0 sm:$0xff]  ;;  %v9723_v38 = vmul.f32 %v9673_v36, %v3280_v50 }
 0x237   : > { %v3221_v23 = vld [vmem:[#allocation3] sm:$0xff]  ;;  %v3222_v47 = vld [vmem:[#allocation3 + $0x10] sm:$0xff]  ;;  %3218 = vst.msk [vmem:[#allocation3 + $0x72] sm:$0xff] %vm3057_vm1, %v3174_v0  ;;  %3219 = vst.msk [vmem:[#allocation3 + $0x82] sm:$0xff] %vm3057_vm1, %v3175_v25 }
 0x238   : > { %v3250_v27 = vld [vmem:[#allocation3 + $0x1] sm:$0xff]  ;;  %v3251_v33 = vld [vmem:[#allocation3 + $0x11] sm:$0xff]  ;;  %v3234_v20 = vmul.f32 %v9638_v42, %v3221_v23  ;;  %v3235_v52 = vmul.f32 %v9638_v42, %v3222_v47  ;;  %3220 = vst.msk [vmem:[#allocation3 + $0x92] sm:$0xff] %vm3057_vm1, %v3176_v11  ;;  %v9713_v32 = vmul.f32 %v9663_v57, %v3222_v47  ;;  %v9737_v41 = vld [vmem:[%s10280_s5 + $0x19] ss:$0 sm:$0xff] }
 0x239   : > { %v3308_v7 = vld [vmem:[#allocation3 + $0x3] sm:$0xff]  ;;  %v3309_v21 = vld [vmem:[#allocation3 + $0x13] sm:$0xff]  ;;  %v3263_v29 = vmul.f32 %v9643_v26, %v3250_v27  ;;  %v3264_v2 = vmul.f32 %v9643_v26, %v3251_v33  ;;  %v9716_v51 = vmul.f32 %v9668_v61, %v3251_v33  ;;  %11873 = vst [vmem:[#allocation88_spill] sm:$0xff] %v9737_v41  ;;  %v9754_v62 = vld [vmem:[%s10280_s5 + $0x1b] ss:$0 sm:$0xff] }
 0x23a   : > { %v3337_v3 = vld [vmem:[#allocation3 + $0x4] sm:$0xff]  ;;  %v3338_v14 = vld [vmem:[#allocation3 + $0x14] sm:$0xff]  ;;  %v3321_v54 = vmul.f32 %v9653_v37, %v3308_v7  ;;  %v3322_v13 = vmul.f32 %v9653_v37, %v3309_v21  ;;  %v9726_v4 = vmul.f32 %v9690_v53, %v3309_v21  ;;  %11877 = vst [vmem:[#allocation160_spill] sm:$0xff] %v9754_v62  ;;  %v9759_v56 = vld [vmem:[%s10280_s5 + $0x1c] ss:$0 sm:$0xff] }
 0x23b   : > { %v3667_v19 = vld [vmem:[#allocation3 + $0xa0] sm:$0xff]  ;;  %v3350_v15 = vmul.f32 %v9658_v43, %v3337_v3  ;;  %v9703_v8 = vmul.f32 %v9658_v43, %v3338_v14  ;;  %v9708_v39 = vld [vmem:[%s10280_s5 + $0x18] ss:$0 sm:$0xff]  ;;  %v3271_v34 = vadd.f32 %v3263_v29, %v3234_v20  ;;  %v3272_v30 = vadd.f32 %v3264_v2, %v3235_v52  ;;  %v3814_v59 = vld [vmem:[#allocation3 + $0xb0] sm:$0xff]  ;;  %11878 = vst [vmem:[#allocation161_spill] sm:$0xff] %v9759_v56 }
 0x23c   : > { %11867 = vst [vmem:[#allocation59_spill] sm:$0xff] %v9708_v39  ;;  %v3697_v28 = vld [vmem:[#allocation3 + $0xa1] sm:$0xff]  ;;  %v9729_v40 = vmul.f32 %v9695_v44, %v3338_v14  ;;  %v9732_v35 = vmul.f32 %v9708_v39, %v3667_v19  ;;  %v9742_v58 = vld [vmem:[%s10280_s5 + $0x1a] ss:$0 sm:$0xff]  ;;  %v3844_v48 = vld [vmem:[#allocation3 + $0xb1] sm:$0xff] }
 0x23d   : > { %v9710_v6 = vld [vmem:[#allocation3 + $0xa2] sm:$0xff]  ;;  %11874 = vst [vmem:[#allocation89_spill] sm:$0xff] %v9742_v58  ;;  %v3300_v60 = vadd.f32 %v3292_v45, %v3271_v34  ;;  %v3301_v5 = vadd.f32 %v3293_v16, %v3272_v30  ;;  %v9745_v9 = vmul.f32 %v9737_v41, %v3697_v28  ;;  %v9764_v23 = vld [vmem:[%s10280_s5 + $0x20] ss:$0 sm:$0xff]  ;;  %v9783_v47 = vld [vmem:[%s10280_s5 + $0x21] ss:$0 sm:$0xff] }
 0x23e   : > { %11868 = vst [vmem:[#allocation11_spill] sm:$0xff] %v9710_v6  ;;  %v9718_v31 = vld [vmem:[#allocation3 + $0xa3] sm:$0xff]  ;;  %11871 = vst [vmem:[#allocation69_spill] sm:$0xff] %v9729_v40  ;;  %v9749_v49 = vmul.f32 %v9742_v58, %v9710_v6  ;;  %v9775_v12 = vmul.f32 %v9764_v23, %v3667_v19  ;;  %v9778_v55 = vmul.f32 %v9764_v23, %v3814_v59  ;;  %v9787_v33 = vld [vmem:[#allocation3 + $0x30] sm:$0xff] }
 0x23f   : > { %11869 = vst [vmem:[#allocation12_spill] sm:$0xff] %v9718_v31  ;;  %v9720_v18 = vld [vmem:[#allocation3 + $0xa4] sm:$0xff]  ;;  %11872 = vst [vmem:[#allocation70_spill] sm:$0xff] %v9732_v35  ;;  %v9768_v46 = vmul.f32 %v9754_v62, %v9718_v31  ;;  %v3329_v10 = vadd.f32 %v3321_v54, %v3300_v60  ;;  %v3330_v17 = vadd.f32 %v3322_v13, %v3301_v5  ;;  %v9799_v7 = vld [vmem:[#allocation3 + $0x50] sm:$0xff] }
 0x240   : > { %11870 = vst [vmem:[#allocation68_spill] sm:$0xff] %v9720_v18  ;;  %11875 = vst [vmem:[#allocation94_spill] sm:$0xff] %v9745_v9  ;;  %v9772_v1 = vmul.f32 %v9759_v56, %v9720_v18  ;;  %v9785_v27 = vld [vmem:[#allocation3 + $0x20] sm:$0xff]  ;;  %v9792_v0 = vmul.f32 %v9783_v47, %v3697_v28  ;;  %v9795_v24 = vmul.f32 %v9783_v47, %v3844_v48  ;;  %v9813_v3 = vld [vmem:[#allocation3 + $0x70] sm:$0xff] }
 0x241   : > { %11876 = vst [vmem:[#allocation95_spill] sm:$0xff] %v9749_v49  ;;  %11879 = vst [vmem:[#allocation162_spill] sm:$0xff] %v9764_v23  ;;  %v9789_v22 = vld [vmem:[#allocation3 + $0x21] sm:$0xff]  ;;  %v3236_v11 = vmul.f32 %v9638_v42, %v9785_v27  ;;  %v3237_v20 = vmul.f32 %v9638_v42, %v9787_v33  ;;  %v9811_v21 = vmul.f32 %v9663_v57, %v9785_v27  ;;  %v9821_v45 = vld [vmem:[#allocation3 + $0x31] sm:$0xff] }
 0x242   : > { %11880 = vst [vmem:[#allocation163_spill] sm:$0xff] %v9768_v46  ;;  %11881 = vst [vmem:[#allocation167_spill] sm:$0xff] %v9772_v1  ;;  %v9797_v50 = vld [vmem:[#allocation3 + $0x40] sm:$0xff]  ;;  %v3265_v52 = vmul.f32 %v9643_v26, %v9789_v22  ;;  %v3239_v29 = vmul.f32 %v9638_v42, %v9799_v7  ;;  %v9825_v19 = vadd.f32 %v3350_v15, %v3329_v10  ;;  %v9829_v13 = vld [vmem:[#allocation3 + $0x51] sm:$0xff] }
 0x243   : > { %11882 = vst [vmem:[#allocation168_spill] sm:$0xff] %v9775_v12  ;;  %11883 = vst [vmem:[#allocation169_spill] sm:$0xff] %v9778_v55  ;;  %v9801_v25 = vld [vmem:[#allocation3 + $0x60] sm:$0xff]  ;;  %v3238_v14 = vmul.f32 %v9638_v42, %v9797_v50  ;;  %v3241_v54 = vmul.f32 %v9638_v42, %v9813_v3  ;;  %v9833_v34 = vld [vmem:[#allocation3 + $0x71] sm:$0xff]  ;;  %v3266_v30 = vmul.f32 %v9643_v26, %v9821_v45 }
 0x244   : > { %11884 = vst [vmem:[#allocation77_spill] sm:$0xff] %v9783_v47  ;;  %11885 = vst [vmem:[#allocation78_spill] sm:$0xff] %v9785_v27  ;;  %v3240_v2 = vmul.f32 %v9638_v42, %v9801_v25  ;;  %v9823_v16 = vld [vmem:[#allocation3 + $0x41] sm:$0xff]  ;;  %v3273_v48 = vadd.f32 %v3265_v52, %v3236_v11  ;;  %v3268_v15 = vmul.f32 %v9643_v26, %v9829_v13  ;;  %v9847_v10 = vld [vmem:[#allocation3 + $0x32] sm:$0xff] }
 0x245   : > { %11886 = vst [vmem:[#allocation79_spill] sm:$0xff] %v9792_v0  ;;  %11887 = vst [vmem:[#allocation13_spill] sm:$0xff] %v9795_v24  ;;  %v9831_v28 = vld [vmem:[#allocation3 + $0x61] sm:$0xff]  ;;  %v3267_v59 = vmul.f32 %v9643_v26, %v9823_v16  ;;  %v3270_v42 = vmul.f32 %v9643_v26, %v9833_v34  ;;  %v9852_v31 = vadd.f32 %v9703_v8, %v3330_v17  ;;  %v9854_v52 = vld [vmem:[#allocation3 + $0x52] sm:$0xff] }
 0x246   : > { %v3269_v60 = vmul.f32 %v9643_v26, %v9831_v28  ;;  %v9845_v5 = vld [vmem:[#allocation3 + $0x22] sm:$0xff]  ;;  %v3274_v6 = vadd.f32 %v3266_v30, %v3237_v20  ;;  %v9858_v0 = vld [vmem:[#allocation3 + $0x72] sm:$0xff]  ;;  %v3295_v47 = vmul.f32 %v9648_v63, %v9847_v10  ;;  %v3276_v55 = vadd.f32 %v3268_v15, %v3239_v29 }
 0x247   : > { %v9849_v18 = vld [vmem:[#allocation3 + $0x42] sm:$0xff]  ;;  %v3275_v11 = vadd.f32 %v3267_v59, %v3238_v14  ;;  %v3294_v26 = vmul.f32 %v9648_v63, %v9845_v5  ;;  %v3278_v23 = vadd.f32 %v3270_v42, %v3241_v54  ;;  %v9868_v20 = vld [vmem:[#allocation3 + $0x33] sm:$0xff]  ;;  %v3297_v30 = vmul.f32 %v9648_v63, %v9854_v52 }
 0x248   : > { %v9856_v24 = vld [vmem:[#allocation3 + $0x62] sm:$0xff]  ;;  %v3277_v12 = vadd.f32 %v3269_v60, %v3240_v2  ;;  %v3296_v8 = vmul.f32 %v9648_v63, %v9849_v18  ;;  %v3299_v29 = vmul.f32 %v9648_v63, %v9858_v0  ;;  %v9878_v54 = vld [vmem:[#allocation3 + $0x53] sm:$0xff]  ;;  %v3303_v42 = vadd.f32 %v3295_v47, %v3274_v6 }
 0x249   : > { %v9866_v17 = vld [vmem:[#allocation3 + $0x23] sm:$0xff]  ;;  %v3298_v59 = vmul.f32 %v9648_v63, %v9856_v24  ;;  %v3302_v2 = vadd.f32 %v3294_v26, %v3273_v48  ;;  %v9882_v60 = vld [vmem:[#allocation3 + $0x73] sm:$0xff]  ;;  %v3324_v46 = vmul.f32 %v9653_v37, %v9868_v20  ;;  %v3305_v63 = vadd.f32 %v3297_v30, %v3276_v55 }
 0x24a   : > { %v9870_v14 = vld [vmem:[#allocation3 + $0x43] sm:$0xff]  ;;  %v3304_v1 = vadd.f32 %v3296_v8, %v3275_v11  ;;  %v3323_v56 = vmul.f32 %v9653_v37, %v9866_v17  ;;  %v9890_v49 = vld [vmem:[#allocation3 + $0x34] sm:$0xff]  ;;  %v3307_v26 = vadd.f32 %v3299_v29, %v3278_v23  ;;  %v3326_v6 = vmul.f32 %v9653_v37, %v9878_v54 }
 0x24b   : > { %v9880_v15 = vld [vmem:[#allocation3 + $0x63] sm:$0xff]  ;;  %v3306_v48 = vadd.f32 %v3298_v59, %v3277_v12  ;;  %v3325_v58 = vmul.f32 %v9653_v37, %v9870_v14  ;;  %v3328_v11 = vmul.f32 %v9653_v37, %v9882_v60  ;;  %v9902_v41 = vld [vmem:[#allocation3 + $0x54] sm:$0xff]  ;;  %v3332_v12 = vadd.f32 %v3324_v46, %v3303_v42 }
 0x24c   : > { %v9888_v62 = vld [vmem:[#allocation3 + $0x24] sm:$0xff]  ;;  %v3327_v47 = vmul.f32 %v9653_v37, %v9880_v15  ;;  %v3331_v8 = vadd.f32 %v3323_v56, %v3302_v2  ;;  %v9906_v23 = vld [vmem:[#allocation3 + $0x74] sm:$0xff]  ;;  %v3353_v29 = vmul.f32 %v9658_v43, %v9890_v49  ;;  %v3334_v35 = vadd.f32 %v3326_v6, %v3305_v63 }
 0x24d   : > { %v9894_v9 = vld [vmem:[#allocation3 + $0x44] sm:$0xff]  ;;  %11889 = vst [vmem:[#allocation18_spill] sm:$0xff] %v9906_v23  ;;  %v3333_v30 = vadd.f32 %v3325_v58, %v3304_v1  ;;  %v3352_v59 = vmul.f32 %v9658_v43, %v9888_v62  ;;  %v3336_v27 = vadd.f32 %v3328_v11, %v3307_v26  ;;  %v3355_v56 = vmul.f32 %v9658_v43, %v9902_v41 }
 0x24e   : > { %v9904_v55 = vld [vmem:[#allocation3 + $0x64] sm:$0xff]  ;;  %v3335_v39 = vadd.f32 %v3327_v47, %v3306_v48  ;;  %v3354_v37 = vmul.f32 %v9658_v43, %v9894_v9  ;;  %v3357_v58 = vmul.f32 %v9658_v43, %v9906_v23  ;;  %v3361_v42 = vadd.f32 %v3353_v29, %v3332_v12 }
 0x24f   : > { %11888 = vst [vmem:[#allocation17_spill] sm:$0xff] %v9904_v55  ;;  %v3356_v2 = vmul.f32 %v9658_v43, %v9904_v55  ;;  %v3360_v46 = vadd.f32 %v3352_v59, %v3331_v8  ;;  %v9920_v1 = vld [vmem:[#allocation3 + $0x80] sm:$0xff]  ;;  %v3383_v63 = vmul.f32 %v9663_v57, %v9787_v33  ;;  %v3384_v48 = vmul.f32 %v9663_v57, %v9797_v50 }
 0x250   : > { %v3362_v40 = vadd.f32 %v3354_v37, %v3333_v30  ;;  %v3363_v26 = vadd.f32 %v3355_v56, %v3334_v35  ;;  %v3365_v47 = vadd.f32 %v3357_v58, %v3336_v27  ;;  %v3385_v11 = vmul.f32 %v9663_v57, %v9799_v7  ;;  %v9938_v29 = vld [vmem:[#allocation3 + $0x81] sm:$0xff] }
 0x251   : > { %v3364_v6 = vadd.f32 %v3356_v2, %v3335_v39  ;;  %v3386_v43 = vmul.f32 %v9663_v57, %v9801_v25  ;;  %v3387_v8 = vmul.f32 %v9663_v57, %v9813_v3  ;;  %v3388_v12 = vmul.f32 %v9663_v57, %v9920_v1 }
 0x252   : > { %v3389_v30 = vadd.f32 %v9713_v32, %v9825_v19  ;;  %v3390_v35 = vadd.f32 %v9811_v21, %v9852_v31  ;;  %v3391_v39 = vadd.f32 %v3383_v63, %v3360_v46  ;;  %v3392_v27 = vadd.f32 %v3384_v48, %v3361_v42 }
 0x253   : > { %v3393_v59 = vadd.f32 %v3385_v11, %v3362_v40  ;;  %v3394_v37 = vadd.f32 %v3386_v43, %v3363_v26  ;;  %v3395_v56 = vadd.f32 %v3387_v8, %v3364_v6  ;;  %v3396_v2 = vadd.f32 %v3388_v12, %v3365_v47  ;;  %v9955_v47 = vld [vmem:[#allocation3 + $0x82] sm:$0xff] }
 0x254   : > { %v3411_v58 = vmul.f32 %v9668_v61, %v9789_v22  ;;  %v3412_v57 = vmul.f32 %v9668_v61, %v9821_v45  ;;  %v3413_v32 = vmul.f32 %v9668_v61, %v9823_v16  ;;  %v3414_v31 = vmul.f32 %v9668_v61, %v9829_v13 }
 0x255   : > { %v3415_v40 = vmul.f32 %v9668_v61, %v9831_v28  ;;  %v3416_v21 = vmul.f32 %v9668_v61, %v9833_v34  ;;  %v3417_v19 = vmul.f32 %v9668_v61, %v9938_v29  ;;  %v3418_v46 = vadd.f32 %v9716_v51, %v3389_v30 }
 0x256   : > { %v3419_v42 = vadd.f32 %v3411_v58, %v3390_v35  ;;  %v3420_v63 = vadd.f32 %v3412_v57, %v3391_v39  ;;  %v3421_v48 = vadd.f32 %v3413_v32, %v3392_v27  ;;  %v3422_v26 = vadd.f32 %v3414_v31, %v3393_v59 }
 0x257   : > { %v3423_v6 = vadd.f32 %v3415_v40, %v3394_v37  ;;  %v3424_v11 = vadd.f32 %v3416_v21, %v3395_v56  ;;  %v3425_v43 = vadd.f32 %v3417_v19, %v3396_v2  ;;  %v3440_v8 = vmul.f32 %v9673_v36, %v9845_v5  ;;  %v9972_v56 = vld [vmem:[#allocation3 + $0x83] sm:$0xff] }
 0x258   : > { %v3441_v12 = vmul.f32 %v9673_v36, %v9847_v10  ;;  %v3442_v61 = vmul.f32 %v9673_v36, %v9849_v18  ;;  %v3443_v51 = vmul.f32 %v9673_v36, %v9854_v52  ;;  %v3444_v30 = vmul.f32 %v9673_v36, %v9856_v24  ;;  %11890 = vst [vmem:[#allocation25_spill] sm:$0xff] %v9972_v56 }
 0x259   : > { %v3445_v35 = vmul.f32 %v9673_v36, %v9858_v0  ;;  %v3446_v39 = vmul.f32 %v9673_v36, %v9955_v47  ;;  %v3447_v27 = vadd.f32 %v9723_v38, %v3418_v46  ;;  %v3448_v59 = vadd.f32 %v3440_v8, %v3419_v42 }
 0x25a   : > { %v3449_v37 = vadd.f32 %v3441_v12, %v3420_v63  ;;  %v3450_v2 = vadd.f32 %v3442_v61, %v3421_v48  ;;  %v3451_v58 = vadd.f32 %v3443_v51, %v3422_v26  ;;  %v3452_v57 = vadd.f32 %v3444_v30, %v3423_v6 }
 0x25b   : > { %v3453_v32 = vadd.f32 %v3445_v35, %v3424_v11  ;;  %v3454_v31 = vadd.f32 %v3446_v39, %v3425_v43  ;;  %v3469_v40 = vmul.f32 %v9690_v53, %v9866_v17  ;;  %v3470_v21 = vmul.f32 %v9690_v53, %v9868_v20  ;;  %v9989_v11 = vld [vmem:[#allocation3 + $0x84] sm:$0xff]  ;;  %v5000_v35 = vld [vmem:[%s10280_s5 + $0x10] ss:$0 sm:$0xff] }
 0x25c   : > { %v3471_v36 = vmul.f32 %v9690_v53, %v9870_v14  ;;  %v3472_v38 = vmul.f32 %v9690_v53, %v9878_v54  ;;  %v3473_v19 = vmul.f32 %v9690_v53, %v9880_v15  ;;  %v3474_v46 = vmul.f32 %v9690_v53, %v9882_v60 }
 0x25d   : > { %v3475_v42 = vmul.f32 %v9690_v53, %v9972_v56  ;;  %v3476_v63 = vadd.f32 %v9726_v4, %v3447_v27  ;;  %v3477_v48 = vadd.f32 %v3469_v40, %v3448_v59  ;;  %v3478_v26 = vadd.f32 %v3470_v21, %v3449_v37  ;;  %v11891_v37 = vld [vmem:[#allocation69_spill] sm:$0xff] }
 0x25e   : > { %v3479_v6 = vadd.f32 %v3471_v36, %v3450_v2  ;;  %v3480_v43 = vadd.f32 %v3472_v38, %v3451_v58  ;;  %v3481_v8 = vadd.f32 %v3473_v19, %v3452_v57  ;;  %v3482_v12 = vadd.f32 %v3474_v46, %v3453_v32  ;;  %v10009_v40 = vld [vmem:[#allocation3 + $0x90] sm:$0xff]  ;;  %v11892_v19 = vld [vmem:[#allocation78_spill] sm:$0xff] }
 0x25f   : > { %v3483_v61 = vadd.f32 %v3475_v42, %v3454_v31  ;;  %v3498_v51 = vmul.f32 %v9695_v44, %v9888_v62  ;;  %v3499_v30 = vmul.f32 %v9695_v44, %v9890_v49  ;;  %v3500_v53 = vmul.f32 %v9695_v44, %v9894_v9 }
 0x260   : > { %v3501_v4 = vmul.f32 %v9695_v44, %v9902_v41  ;;  %v3502_v39 = vmul.f32 %v9695_v44, %v9904_v55  ;;  %v3503_v27 = vmul.f32 %v9695_v44, %v9906_v23  ;;  %v3504_v59 = vmul.f32 %v9695_v44, %v9989_v11 }
 0x261   : > { %v3505_v2 = vadd.f32 %v11891_v37, %v3476_v63  ;;  %v3506_v58 = vadd.f32 %v3498_v51, %v3477_v48  ;;  %v3507_v57 = vadd.f32 %v3499_v30, %v3478_v26  ;;  %v3508_v32 = vadd.f32 %v3500_v53, %v3479_v6  ;;  %v5002_v63 = vld [vmem:[%s10280_s5 + $0x11] ss:$0 sm:$0xff] }
 0x262   : > { %v3509_v31 = vadd.f32 %v3501_v4, %v3480_v43  ;;  %v3510_v21 = vadd.f32 %v3502_v39, %v3481_v8  ;;  %v3511_v36 = vadd.f32 %v3503_v27, %v3482_v12  ;;  %v3512_v38 = vadd.f32 %v3504_v59, %v3483_v61  ;;  %v10022_v30 = vld [vmem:[#allocation3 + $0x91] sm:$0xff] }
 0x263   : > { %v3527_v46 = vmul.f32 %v5000_v35, %v11892_v19  ;;  %v3528_v42 = vmul.f32 %v5000_v35, %v9787_v33  ;;  %v3529_v23 = vmul.f32 %v5000_v35, %v9797_v50  ;;  %v3530_v55 = vmul.f32 %v5000_v35, %v9799_v7 }
 0x264   : > { %v3531_v44 = vmul.f32 %v5000_v35, %v9801_v25  ;;  %v3532_v48 = vmul.f32 %v5000_v35, %v9813_v3  ;;  %v3533_v26 = vmul.f32 %v5000_v35, %v9920_v1  ;;  %v3534_v6 = vmul.f32 %v5000_v35, %v10009_v40 }
 0x265   : > { %v3535_v43 = vadd.f32 %v3527_v46, %v3505_v2  ;;  %v3536_v8 = vadd.f32 %v3528_v42, %v3506_v58  ;;  %v3537_v12 = vadd.f32 %v3529_v23, %v3507_v57  ;;  %v3538_v61 = vadd.f32 %v3530_v55, %v3508_v32  ;;  %v5004_v55 = vld [vmem:[%s10280_s5 + $0x12] ss:$0 sm:$0xff] }
 0x266   : > { %v3539_v51 = vadd.f32 %v3531_v44, %v3509_v31  ;;  %v3540_v53 = vadd.f32 %v3532_v48, %v3510_v21  ;;  %v3541_v4 = vadd.f32 %v3533_v26, %v3511_v36  ;;  %v3542_v39 = vadd.f32 %v3534_v6, %v3512_v38  ;;  %v10035_v36 = vld [vmem:[#allocation3 + $0x92] sm:$0xff] }
 0x267   : > { %v3556_v27 = vmul.f32 %v5002_v63, %v9789_v22  ;;  %v3557_v59 = vmul.f32 %v5002_v63, %v9821_v45  ;;  %v3558_v37 = vmul.f32 %v5002_v63, %v9823_v16  ;;  %v3559_v19 = vmul.f32 %v5002_v63, %v9829_v13 }
 0x268   : > { %v3560_v35 = vmul.f32 %v5002_v63, %v9831_v28  ;;  %v3561_v23 = vmul.f32 %v5002_v63, %v9833_v34  ;;  %v3562_v2 = vmul.f32 %v5002_v63, %v9938_v29  ;;  %v3563_v58 = vmul.f32 %v5002_v63, %v10022_v30 }
 0x269   : > { %v3564_v57 = vadd.f32 %v3556_v27, %v3535_v43  ;;  %v3565_v22 = vadd.f32 %v3557_v59, %v3536_v8  ;;  %v3566_v32 = vadd.f32 %v3558_v37, %v3537_v12  ;;  %v3567_v31 = vadd.f32 %v3559_v19, %v3538_v61  ;;  %v5006_v43 = vld [vmem:[%s10280_s5 + $0x13] ss:$0 sm:$0xff] }
 0x26a   : > { %v3568_v21 = vadd.f32 %v3560_v35, %v3539_v51  ;;  %v3569_v38 = vadd.f32 %v3561_v23, %v3540_v53  ;;  %v3570_v46 = vadd.f32 %v3562_v2, %v3541_v4  ;;  %v3571_v42 = vadd.f32 %v3563_v58, %v3542_v39  ;;  %v10048_v27 = vld [vmem:[#allocation3 + $0x93] sm:$0xff] }
 0x26b   : > { %v3585_v44 = vmul.f32 %v5004_v55, %v9845_v5  ;;  %v3586_v48 = vmul.f32 %v5004_v55, %v9847_v10  ;;  %v3587_v26 = vmul.f32 %v5004_v55, %v9849_v18  ;;  %v3588_v6 = vmul.f32 %v5004_v55, %v9854_v52 }
 0x26c   : > { %v3589_v63 = vmul.f32 %v5004_v55, %v9856_v24  ;;  %v3590_v8 = vmul.f32 %v5004_v55, %v9858_v0  ;;  %v3591_v12 = vmul.f32 %v5004_v55, %v9955_v47  ;;  %v3592_v61 = vmul.f32 %v5004_v55, %v10035_v36 }
 0x26d   : > { %v3593_v51 = vadd.f32 %v3585_v44, %v3564_v57  ;;  %v3594_v5 = vadd.f32 %v3586_v48, %v3565_v22  ;;  %v3595_v53 = vadd.f32 %v3587_v26, %v3566_v32  ;;  %v3596_v4 = vadd.f32 %v3588_v6, %v3567_v31  ;;  %v5008_v57 = vld [vmem:[%s10280_s5 + $0x14] ss:$0 sm:$0xff] }
 0x26e   : > { %v3597_v39 = vadd.f32 %v3589_v63, %v3568_v21  ;;  %v3598_v59 = vadd.f32 %v3590_v8, %v3569_v38  ;;  %v3599_v37 = vadd.f32 %v3591_v12, %v3570_v46  ;;  %v3600_v19 = vadd.f32 %v3592_v61, %v3571_v42  ;;  %v10061_v44 = vld [vmem:[#allocation3 + $0x94] sm:$0xff] }
 0x26f   : > { %v3614_v35 = vmul.f32 %v5006_v43, %v9866_v17  ;;  %v3615_v23 = vmul.f32 %v5006_v43, %v9868_v20  ;;  %v3616_v2 = vmul.f32 %v5006_v43, %v9870_v14  ;;  %v3617_v58 = vmul.f32 %v5006_v43, %v9878_v54 }
 0x270   : > { %v3618_v55 = vmul.f32 %v5006_v43, %v9880_v15  ;;  %v3619_v22 = vmul.f32 %v5006_v43, %v9882_v60  ;;  %v3620_v32 = vmul.f32 %v5006_v43, %v9972_v56  ;;  %v3621_v31 = vmul.f32 %v5006_v43, %v10048_v27  ;;  %v11893_v56 = vld [vmem:[#allocation17_spill] sm:$0xff] }
 0x271   : > { %v3622_v21 = vadd.f32 %v3614_v35, %v3593_v51  ;;  %v3623_v17 = vadd.f32 %v3615_v23, %v3594_v5  ;;  %v3624_v38 = vadd.f32 %v3616_v2, %v3595_v53  ;;  %v3625_v46 = vadd.f32 %v3617_v58, %v3596_v4  ;;  %v11894_v51 = vld [vmem:[#allocation18_spill] sm:$0xff]  ;;  %v11895_v58 = vld [vmem:[#allocation59_spill] sm:$0xff] }
 0x272   : > { %v3626_v42 = vadd.f32 %v3618_v55, %v3597_v39  ;;  %v3627_v48 = vadd.f32 %v3619_v22, %v3598_v59  ;;  %v3628_v26 = vadd.f32 %v3620_v32, %v3599_v37  ;;  %v3629_v6 = vadd.f32 %v3621_v31, %v3600_v19 }
 0x273   : > { %v3643_v63 = vmul.f32 %v5008_v57, %v9888_v62  ;;  %v3644_v8 = vmul.f32 %v5008_v57, %v9890_v49  ;;  %v3645_v12 = vmul.f32 %v5008_v57, %v9894_v9  ;;  %v3646_v61 = vmul.f32 %v5008_v57, %v9902_v41 }
 0x274   : > { %v3647_v43 = vmul.f32 %v5008_v57, %v11893_v56  ;;  %v3648_v5 = vmul.f32 %v5008_v57, %v11894_v51  ;;  %v3649_v53 = vmul.f32 %v5008_v57, %v9989_v11  ;;  %v3650_v4 = vmul.f32 %v5008_v57, %v10061_v44 }
 0x275   : > { %v3651_v39 = vadd.f32 %v3643_v63, %v3622_v21  ;;  %v3652_v59 = vadd.f32 %v3644_v8, %v3623_v17  ;;  %v3653_v37 = vadd.f32 %v3645_v12, %v3624_v38  ;;  %v3654_v19 = vadd.f32 %v3646_v61, %v3625_v46  ;;  %v11897_v12 = vld [vmem:[#allocation88_spill] sm:$0xff] }
 0x276   : > { %v3655_v35 = vadd.f32 %v3647_v43, %v3626_v42  ;;  %v3656_v62 = vadd.f32 %v3648_v5, %v3627_v48  ;;  %v3657_v23 = vadd.f32 %v3649_v53, %v3628_v26  ;;  %v3658_v2 = vadd.f32 %v3650_v4, %v3629_v6 }
 0x277   : > { %v3674_v55 = vmul.f32 %v11895_v58, %v9787_v33  ;;  %v3675_v22 = vmul.f32 %v11895_v58, %v9797_v50  ;;  %v3676_v32 = vmul.f32 %v11895_v58, %v9799_v7  ;;  %v3677_v57 = vmul.f32 %v11895_v58, %v9801_v25  ;;  %v11896_v33 = vld [vmem:[#allocation70_spill] sm:$0xff] }
 0x278   : > { %v3678_v31 = vmul.f32 %v11895_v58, %v9813_v3  ;;  %v3679_v21 = vmul.f32 %v11895_v58, %v9920_v1  ;;  %v3680_v17 = vmul.f32 %v11895_v58, %v10009_v40  ;;  %v3689_v46 = vadd.f32 %v11896_v33, %v3658_v2 }
 0x279   : > { %v3682_v38 = vadd.f32 %v3674_v55, %v3651_v39  ;;  %v3683_v42 = vadd.f32 %v3675_v22, %v3652_v59  ;;  %v3684_v48 = vadd.f32 %v3676_v32, %v3653_v37  ;;  %v3685_v26 = vadd.f32 %v3677_v57, %v3654_v19  ;;  %v11898_v19 = vld [vmem:[#allocation94_spill] sm:$0xff]  ;;  %v11899_v22 = vld [vmem:[#allocation89_spill] sm:$0xff] }
 0x27a   : > { %v3686_v6 = vadd.f32 %v3678_v31, %v3655_v35  ;;  %v3687_v63 = vadd.f32 %v3679_v21, %v3656_v62  ;;  %v3688_v8 = vadd.f32 %v3680_v17, %v3657_v23  ;;  %v3703_v61 = vmul.f32 %v11897_v12, %v9821_v45 }
 0x27b   : > { %v3704_v43 = vmul.f32 %v11897_v12, %v9823_v16  ;;  %v3705_v5 = vmul.f32 %v11897_v12, %v9829_v13  ;;  %v3706_v53 = vmul.f32 %v11897_v12, %v9831_v28  ;;  %v3707_v4 = vmul.f32 %v11897_v12, %v9833_v34 }
 0x27c   : > { %v3708_v39 = vmul.f32 %v11897_v12, %v9938_v29  ;;  %v3709_v59 = vmul.f32 %v11897_v12, %v10022_v30  ;;  %v3711_v37 = vadd.f32 %v3703_v61, %v3682_v38  ;;  %v3718_v35 = vadd.f32 %v11898_v19, %v3689_v46  ;;  %v11901_v61 = vld [vmem:[#allocation160_spill] sm:$0xff]  ;;  %v11903_v19 = vld [vmem:[#allocation163_spill] sm:$0xff] }
 0x27d   : > { %v3712_v45 = vadd.f32 %v3704_v43, %v3683_v42  ;;  %v3713_v62 = vadd.f32 %v3705_v5, %v3684_v48  ;;  %v3714_v23 = vadd.f32 %v3706_v53, %v3685_v26  ;;  %v3715_v2 = vadd.f32 %v3707_v4, %v3686_v6  ;;  %v11900_v48 = vld [vmem:[#allocation95_spill] sm:$0xff] }
 0x27e   : > { %v3716_v58 = vadd.f32 %v3708_v39, %v3687_v63  ;;  %v3717_v55 = vadd.f32 %v3709_v59, %v3688_v8  ;;  %v3732_v32 = vmul.f32 %v11899_v22, %v9847_v10  ;;  %v3733_v57 = vmul.f32 %v11899_v22, %v9849_v18  ;;  %v11902_v59 = vld [vmem:[#allocation25_spill] sm:$0xff] }
 0x27f   : > { %v3734_v31 = vmul.f32 %v11899_v22, %v9854_v52  ;;  %v3735_v21 = vmul.f32 %v11899_v22, %v9856_v24  ;;  %v3736_v17 = vmul.f32 %v11899_v22, %v9858_v0  ;;  %v3737_v38 = vmul.f32 %v11899_v22, %v9955_v47 }
 0x280   : > { %v3738_v33 = vmul.f32 %v11899_v22, %v10035_v36  ;;  %v3740_v46 = vadd.f32 %v3732_v32, %v3711_v37  ;;  %v3741_v10 = vadd.f32 %v3733_v57, %v3712_v45  ;;  %v3747_v26 = vadd.f32 %v11900_v48, %v3718_v35  ;;  %v11904_v32 = vld [vmem:[#allocation161_spill] sm:$0xff] }
 0x281   : > { %v3742_v42 = vadd.f32 %v3734_v31, %v3713_v62  ;;  %v3743_v6 = vadd.f32 %v3735_v21, %v3714_v23  ;;  %v3744_v63 = vadd.f32 %v3736_v17, %v3715_v2  ;;  %v3745_v8 = vadd.f32 %v3737_v38, %v3716_v58 }
 0x282   : > { %v3746_v12 = vadd.f32 %v3738_v33, %v3717_v55  ;;  %v3761_v43 = vmul.f32 %v11901_v61, %v9868_v20  ;;  %v3762_v5 = vmul.f32 %v11901_v61, %v9870_v14  ;;  %v3763_v53 = vmul.f32 %v11901_v61, %v9878_v54 }
 0x283   : > { %v3764_v4 = vmul.f32 %v11901_v61, %v9880_v15  ;;  %v3765_v39 = vmul.f32 %v11901_v61, %v9882_v60  ;;  %v3766_v37 = vmul.f32 %v11901_v61, %v11902_v59  ;;  %v3767_v45 = vmul.f32 %v11901_v61, %v10048_v27  ;;  %v11906_v61 = vld [vmem:[#allocation162_spill] sm:$0xff] }
 0x284   : > { %v3776_v20 = vadd.f32 %v11903_v19, %v3747_v26  ;;  %v3769_v35 = vadd.f32 %v3761_v43, %v3740_v46  ;;  %v3770_v62 = vadd.f32 %v3762_v5, %v3741_v10  ;;  %v3771_v23 = vadd.f32 %v3763_v53, %v3742_v42 }
 0x285   : > { %v3772_v2 = vadd.f32 %v3764_v4, %v3743_v6  ;;  %v3773_v58 = vadd.f32 %v3765_v39, %v3744_v63  ;;  %v3774_v55 = vadd.f32 %v3766_v37, %v3745_v8  ;;  %v3775_v22 = vadd.f32 %v3767_v45, %v3746_v12 }
 0x286   : > { %v3790_v57 = vmul.f32 %v11904_v32, %v9890_v49  ;;  %v3791_v31 = vmul.f32 %v11904_v32, %v9894_v9  ;;  %v3792_v21 = vmul.f32 %v11904_v32, %v9902_v41  ;;  %v3793_v17 = vmul.f32 %v11904_v32, %v11893_v56  ;;  %v11905_v49 = vld [vmem:[#allocation167_spill] sm:$0xff] }
 0x287   : > { %v3794_v38 = vmul.f32 %v11904_v32, %v11894_v51  ;;  %v3795_v33 = vmul.f32 %v11904_v32, %v9989_v11  ;;  %v3796_v46 = vmul.f32 %v11904_v32, %v10061_v44  ;;  %v3805_v42 = vadd.f32 %v11905_v49, %v3776_v20  ;;  %v11907_v20 = vld [vmem:[#allocation168_spill] sm:$0xff] }
 0x288   : > { %v3798_v10 = vadd.f32 %v3790_v57, %v3769_v35  ;;  %v3799_v48 = vadd.f32 %v3791_v31, %v3770_v62  ;;  %v3800_v26 = vadd.f32 %v3792_v21, %v3771_v23  ;;  %v3801_v6 = vadd.f32 %v3793_v17, %v3772_v2  ;;  %v11911_v21 = vld [vmem:[#allocation13_spill] sm:$0xff] }
 0x289   : > { %v3802_v63 = vadd.f32 %v3794_v38, %v3773_v58  ;;  %v3803_v8 = vadd.f32 %v3795_v33, %v3774_v55  ;;  %v3804_v12 = vadd.f32 %v3796_v46, %v3775_v22  ;;  %v3821_v43 = vmul.f32 %v11906_v61, %v9797_v50  ;;  %v11908_v50 = vld [vmem:[#allocation169_spill] sm:$0xff]  ;;  %v5024_v22 = vld [vmem:[%s10280_s5 + $0x22] ss:$0 sm:$0xff] }
 0x28a   : > { %v3822_v5 = vmul.f32 %v11906_v61, %v9799_v7  ;;  %v3823_v53 = vmul.f32 %v11906_v61, %v9801_v25  ;;  %v3824_v4 = vmul.f32 %v11906_v61, %v9813_v3  ;;  %v3825_v39 = vmul.f32 %v11906_v61, %v9920_v1  ;;  %v11909_v25 = vld [vmem:[#allocation77_spill] sm:$0xff] }
 0x28b   : > { %v3826_v37 = vmul.f32 %v11906_v61, %v10009_v40  ;;  %v3829_v45 = vadd.f32 %v3821_v43, %v3798_v10  ;;  %v3835_v35 = vadd.f32 %v11907_v20, %v3804_v12  ;;  %v3836_v62 = vadd.f32 %v11908_v50, %v3805_v42  ;;  %v3873_v46 = vld [vmem:[#allocation3 + $0xb2] sm:$0xff]  ;;  %v5028_v20 = vld [vmem:[%s10280_s5 + $0x24] ss:$0 sm:$0xff] }
 0x28c   : > { %v3830_v19 = vadd.f32 %v3822_v5, %v3799_v48  ;;  %v3831_v23 = vadd.f32 %v3823_v53, %v3800_v26  ;;  %v3832_v7 = vadd.f32 %v3824_v4, %v3801_v6  ;;  %v3833_v2 = vadd.f32 %v3825_v39, %v3802_v63  ;;  %v5026_v6 = vld [vmem:[%s10280_s5 + $0x23] ss:$0 sm:$0xff] }
 0x28d   : > { %v3834_v58 = vadd.f32 %v3826_v37, %v3803_v8  ;;  %v3850_v55 = vmul.f32 %v11909_v25, %v9823_v16  ;;  %v3851_v3 = vmul.f32 %v11909_v25, %v9829_v13  ;;  %v3852_v1 = vmul.f32 %v11909_v25, %v9831_v28  ;;  %v11910_v16 = vld [vmem:[#allocation79_spill] sm:$0xff] }
 0x28e   : > { %v3853_v40 = vmul.f32 %v11909_v25, %v9833_v34  ;;  %v3854_v32 = vmul.f32 %v11909_v25, %v9938_v29  ;;  %v3855_v57 = vmul.f32 %v11909_v25, %v10022_v30  ;;  %v3864_v31 = vadd.f32 %v11910_v16, %v3835_v35  ;;  %v11912_v63 = vld [vmem:[#allocation11_spill] sm:$0xff]  ;;  %v11913_v35 = vld [vmem:[#allocation12_spill] sm:$0xff] }
 0x28f   : > { %v3865_v13 = vadd.f32 %v11911_v21, %v3836_v62  ;;  %v3858_v17 = vadd.f32 %v3850_v55, %v3829_v45  ;;  %v3859_v38 = vadd.f32 %v3851_v3, %v3830_v19  ;;  %v3860_v28 = vadd.f32 %v3852_v1, %v3831_v23 }
 0x290   : > { %v3861_v33 = vadd.f32 %v3853_v40, %v3832_v7  ;;  %v3862_v34 = vadd.f32 %v3854_v32, %v3833_v2  ;;  %v3863_v10 = vadd.f32 %v3855_v57, %v3834_v58  ;;  %v3879_v49 = vmul.f32 %v5024_v22, %v9849_v18  ;;  %v11914_v32 = vld [vmem:[#allocation68_spill] sm:$0xff] }
 0x291   : > { %v3880_v42 = vmul.f32 %v5024_v22, %v9854_v52  ;;  %v3881_v29 = vmul.f32 %v5024_v22, %v9856_v24  ;;  %v3882_v48 = vmul.f32 %v5024_v22, %v9858_v0  ;;  %v3883_v30 = vmul.f32 %v5024_v22, %v9955_v47  ;;  %v3902_v24 = vld [vmem:[#allocation3 + $0xb3] sm:$0xff] }
 0x292   : > { %v3884_v26 = vmul.f32 %v5024_v22, %v10035_v36  ;;  %v3885_v8 = vmul.f32 %v5024_v22, %v11912_v63  ;;  %v3886_v12 = vmul.f32 %v5024_v22, %v3873_v46  ;;  %v3887_v61 = vadd.f32 %v3879_v49, %v3858_v17  ;;  %v5029_v22 = vld [vmem:[%s10281_s6] ss:$0 sm:$0xff] }
 0x293   : > { %v3888_v43 = vadd.f32 %v3880_v42, %v3859_v38  ;;  %v3889_v18 = vadd.f32 %v3881_v29, %v3860_v28  ;;  %v3890_v5 = vadd.f32 %v3882_v48, %v3861_v33  ;;  %v3891_v52 = vadd.f32 %v3883_v30, %v3862_v34 }
 0x294   : > { %v3892_v53 = vadd.f32 %v3884_v26, %v3863_v10  ;;  %v3893_v4 = vadd.f32 %v3885_v8, %v3864_v31  ;;  %v3894_v0 = vadd.f32 %v3886_v12, %v3865_v13  ;;  %v3908_v47 = vmul.f32 %v5026_v6, %v9870_v14 }
 0x295   : > { %v3909_v36 = vmul.f32 %v5026_v6, %v9878_v54  ;;  %v3910_v39 = vmul.f32 %v5026_v6, %v9880_v15  ;;  %v3911_v37 = vmul.f32 %v5026_v6, %v9882_v60  ;;  %v3912_v45 = vmul.f32 %v5026_v6, %v11902_v59  ;;  %v3931_v15 = vld [vmem:[#allocation3 + $0xb4] sm:$0xff] }
 0x296   : > { %v3913_v19 = vmul.f32 %v5026_v6, %v10048_v27  ;;  %v3914_v50 = vmul.f32 %v5026_v6, %v11913_v35  ;;  %v3915_v62 = vmul.f32 %v5026_v6, %v3902_v24  ;;  %v3916_v23 = vadd.f32 %v3908_v47, %v3887_v61  ;;  %v4127_v61 = vpop.permute.xlu1 %4126 }
 0x297   : > { %v3917_v7 = vadd.f32 %v3909_v36, %v3888_v43  ;;  %v3918_v14 = vadd.f32 %v3910_v39, %v3889_v18  ;;  %v3919_v2 = vadd.f32 %v3911_v37, %v3890_v5  ;;  %v3920_v54 = vadd.f32 %v3912_v45, %v3891_v52 }
 0x298   : > { %v3921_v58 = vadd.f32 %v3913_v19, %v3892_v53  ;;  %v3922_v25 = vadd.f32 %v3914_v50, %v3893_v4  ;;  %v3923_v60 = vadd.f32 %v3915_v62, %v3894_v0  ;;  %v3937_v59 = vmul.f32 %v5028_v20, %v9894_v9 }
 0x299   : > { %v3938_v27 = vmul.f32 %v5028_v20, %v9902_v41  ;;  %v3939_v55 = vmul.f32 %v5028_v20, %v11893_v56  ;;  %v3940_v3 = vmul.f32 %v5028_v20, %v11894_v51  ;;  %v3941_v1 = vmul.f32 %v5028_v20, %v9989_v11 }
 0x29a   : > { %v3942_v40 = vmul.f32 %v5028_v20, %v10061_v44  ;;  %v3943_v57 = vmul.f32 %v5028_v20, %v11914_v32  ;;  %v3944_v16 = vmul.f32 %v5028_v20, %v3931_v15  ;;  %v3945_v31 = vadd.f32 %v3937_v59, %v3916_v23  ;;  %v4132_v50 = vpop.permute.xlu1 %4131 }
 0x29b   : > { %v3946_v21 = vadd.f32 %v3938_v27, %v3917_v7  ;;  %v3947_v9 = vadd.f32 %v3939_v55, %v3918_v14  ;;  %v3948_v13 = vadd.f32 %v3940_v3, %v3919_v2  ;;  %v3949_v41 = vadd.f32 %v3941_v1, %v3920_v54  ;;  %v5031_v27 = vld [vmem:[%s10283_s8] ss:$0 sm:$0xff]  ;;  %v4122_v1 = vpop.permute.xlu0 %4121 }
 0x29c   : > { %v3950_v17 = vadd.f32 %v3942_v40, %v3921_v58  ;;  %v3951_v56 = vadd.f32 %v3943_v57, %v3922_v25  ;;  %v3952_v38 = vadd.f32 %v3944_v16, %v3923_v60  ;;  %v3960_v51 = vadd.f32 %v5029_v22, %v3945_v31  ;;  %v5030_v58 = vld [vmem:[%s10282_s7] ss:$0 sm:$0xff] }
 0x29d   : > { %v3961_v28 = vadd.f32 %v5029_v22, %v3946_v21  ;;  %v3962_v11 = vadd.f32 %v5029_v22, %v3947_v9  ;;  %v3963_v33 = vadd.f32 %v5029_v22, %v3948_v13  ;;  %v3964_v44 = vadd.f32 %v5029_v22, %v3949_v41 }
 0x29e   : > { %v3965_v46 = vadd.f32 %v5029_v22, %v3950_v17  ;;  %v3966_v34 = vadd.f32 %v5029_v22, %v3951_v56  ;;  %v3967_v10 = vadd.f32 %v5029_v22, %v3952_v38  ;;  %v3968_v49 = vmax.f32 %v3960_v51, 0.0  ;;  %v4137_v32 = vpop.permute.xlu1 %4136 }
 0x29f   : > { %v3969_v42 = vmax.f32 %v3961_v28, 0.0  ;;  %v3970_v29 = vmax.f32 %v3962_v11, 0.0  ;;  %v3971_v48 = vmax.f32 %v3963_v33, 0.0  ;;  %v3972_v30 = vmax.f32 %v3964_v44, 0.0 }
 0x2a0   : > { %v3973_v26 = vmax.f32 %v3965_v46, 0.0  ;;  %v3974_v6 = vmax.f32 %v3966_v34, 0.0  ;;  %v3975_v63 = vmax.f32 %v3967_v10, 0.0  ;;  %3976 = vst.msk [vmem:[#allocation4] sm:$0xff] %vm3057_vm1, %v3968_v49 }
 0x2a1   : > { %3977 = vst.msk [vmem:[#allocation4 + $0x8] sm:$0xff] %vm3057_vm1, %v3969_v42  ;;  %3978 = vst.msk [vmem:[#allocation4 + $0x10] sm:$0xff] %vm3057_vm1, %v3970_v29 }
 0x2a2   : > { %3979 = vst.msk [vmem:[#allocation4 + $0x18] sm:$0xff] %vm3057_vm1, %v3971_v48  ;;  %3980 = vst.msk [vmem:[#allocation4 + $0x20] sm:$0xff] %vm3057_vm1, %v3972_v30 }
 0x2a3   : > { %3981 = vst.msk [vmem:[#allocation4 + $0x28] sm:$0xff] %vm3057_vm1, %v3973_v26  ;;  %3982 = vst.msk [vmem:[#allocation4 + $0x30] sm:$0xff] %vm3057_vm1, %v3974_v6 }
 0x2a4   : > { %3983 = vst.msk [vmem:[#allocation4 + $0x38] sm:$0xff] %vm3057_vm1, %v3975_v63 }
 0x2a7   : > { %v3984_v8 = vld [vmem:[#allocation4] ss:$2 sm:$0xf]  ;;  %v3992_v12 = vld [vmem:[#allocation4 + $0x1] ss:$2 sm:$0xf] }
 0x2a8   : > { %v3986_v43 = vld [vmem:[#allocation4 + $0x10] ss:$2 sm:$0xf]  ;;  %v3994_v52 = vld [vmem:[#allocation4 + $0x11] ss:$2 sm:$0xf]  ;;  %v3999_v47 = vmax.f32 %v3984_v8, %v3992_v12 }
 0x2a9   : > { %v3988_v18 = vld [vmem:[#allocation4 + $0x20] ss:$2 sm:$0xf]  ;;  %v3996_v53 = vld [vmem:[#allocation4 + $0x21] ss:$2 sm:$0xf]  ;;  %v4000_v36 = vmax.f32 %v3986_v43, %v3994_v52 }
 0x2aa   : > { %v3990_v5 = vld [vmem:[#allocation4 + $0x30] ss:$2 sm:$0xf]  ;;  %v3998_v24 = vld [vmem:[#allocation4 + $0x31] ss:$2 sm:$0xf]  ;;  %v4001_v45 = vmax.f32 %v3988_v18, %v3996_v53 }
 0x2ab   : > { %v4004_v4 = vld [vmem:[#allocation4 + $0x8] ss:$2 sm:$0xf]  ;;  %v4006_v0 = vld [vmem:[#allocation4 + $0x18] ss:$2 sm:$0xf]  ;;  %v4002_v19 = vmax.f32 %v3990_v5, %v3998_v24 }
 0x2ac   : > { %v4008_v39 = vld [vmem:[#allocation4 + $0x28] ss:$2 sm:$0xf]  ;;  %v4010_v37 = vld [vmem:[#allocation4 + $0x38] ss:$2 sm:$0xf] }
 0x2ad   : > { %v4012_v20 = vld [vmem:[#allocation4 + $0x9] ss:$2 sm:$0xf]  ;;  %v4014_v35 = vld [vmem:[#allocation4 + $0x19] ss:$2 sm:$0xf] }
 0x2ae   : > { %v4016_v62 = vld [vmem:[#allocation4 + $0x29] ss:$2 sm:$0xf]  ;;  %v4018_v23 = vld [vmem:[#allocation4 + $0x39] ss:$2 sm:$0xf]  ;;  %v4019_v7 = vmax.f32 %v4004_v4, %v4012_v20  ;;  %v4020_v14 = vmax.f32 %v4006_v0, %v4014_v35 }
 0x2af   : > { %v4021_v2 = vmax.f32 %v4008_v39, %v4016_v62  ;;  %v4022_v54 = vmax.f32 %v4010_v37, %v4018_v23 }
 0x2b0   : > { %v4023_v15 = vmax.f32 %v3999_v47, %v4019_v7  ;;  %v4024_v25 = vmax.f32 %v4000_v36, %v4020_v14 }
 0x2b1   : > { %v4025_v60 = vmax.f32 %v4001_v45, %v4021_v2  ;;  %v4026_v59 = vmax.f32 %v4002_v19, %v4022_v54 }
 0x2b2   : > { %v4034_v55 = vmul.f32 %v5030_v58, %v4023_v15  ;;  %v4035_v3 = vmul.f32 %v5030_v58, %v4024_v25 }
 0x2b3   : > { %v4036_v40 = vmul.f32 %v5030_v58, %v4025_v60  ;;  %v4037_v22 = vmul.f32 %v5030_v58, %v4026_v59 }
 0x2b4   : > { %v4045_v57 = vadd.f32 %v5031_v27, %v4034_v55  ;;  %v4046_v16 = vadd.f32 %v5031_v27, %v4035_v3 }
 0x2b5   : > { %v4047_v31 = vadd.f32 %v5031_v27, %v4036_v40  ;;  %v4048_v21 = vadd.f32 %v5031_v27, %v4037_v22 }
 0x2b6   : > { %v4139_v9 = vmul.f32 %v4122_v1, %v4045_v57  ;;  %v4140_v13 = vmul.f32 %v4127_v61, %v4046_v16 }
 0x2b7   : > { %v4141_v41 = vmul.f32 %v4132_v50, %v4047_v31  ;;  %v4142_v17 = vmul.f32 %v4137_v32, %v4048_v21 }
 0x2b8   : > { %v4143_v56 = vsel %vm3178_vm2, %v4139_v9, 0.0  ;;  %v4144_v38 = vsel %vm3178_vm2, %v4140_v13, 0.0 }
 0x2b9   : > { %v4145_v51 = vadd.f32 %v4144_v38, %v4143_v56  ;;  %v4146_v28 = vsel %vm3178_vm2, %v4141_v41, 0.0  ;;  %v4148_v11 = vsel %vm3178_vm2, %v4142_v17, 0.0 }
 0x2bb   : > { %v4147_v33 = vadd.f32 %v4146_v28, %v4145_v51 }
 0x2bd   : > { %v4149_v44 = vadd.f32 %v4148_v11, %v4147_v33 }
 0x2bf   : > { %v4150_v46 = vsel %vm3178_vm2, %v4149_v44, 0.0 }
 0x2c0   : > { %v4151_v34 = vrot.slane %v4150_v46, 4 }
 0x2c2   : > { %v4152_v10 = vadd.f32 %v4151_v34, %v4150_v46 }
 0x2c4   : > { %v4153_v49 = vrot.slane %v4152_v10, 2 }
 0x2c6   : > { %v4154_v42 = vadd.f32 %v4153_v49, %v4152_v10 }
 0x2c8   : > { %v4155_v29 = vrot.slane %v4154_v42, 1 }
 0x2ca   : > { %v4156_v48 = vadd.f32 %v4155_v29, %v4154_v42 }
 0x2cc   : > { %v4158_v30 = vmul.f32 0.25, %v4156_v48 }
 0x2ce   : > { %v4159_v26 = vsel %vm3057_vm1, %v4158_v30, -inf }
 0x2cf   : > { %4160 = vmax.xlane.f32.xlu1 %v4159_v26 }
 0x35c   : > { %v4161_v6 = vpop.xlane.xlu1 %4160 }
 0x35d   : > { %v4162_v63 = vsub.f32 %v4158_v30, %v4161_v6 }
 0x35f   : > { %v4163_v8 = vmul.f32 1.442695, %v4162_v63 }
 0x361   : > { %5084 = vpow2.f32 %v4163_v8 }
 0x36b   : > { %v5085_v12 = vpop.eup %5084 }
 0x36c   : > { %v4165_v61 = vsel %vm3057_vm1, %v5085_v12, 0.0 }
 0x36d   : > { %4166 = vadd.xlane.f32.xlu0 %v4165_v61 }
 0x3fa   : > { %v4167_v43 = vpop.xlane.xlu0 %4166 }
 0x3fb   : > { %5086 = vrcp.f32 %v4167_v43 }
 0x405   : > { %v5087_v18 = vpop.eup %5086 }
 0x406   : > { %v4169_v5 = vmul.f32 %v5087_v18, %v4167_v43 }
 0x408   : > { %v4170_v52 = vsub.f32 2.0, %v4169_v5 }
 0x40a   : > { %v4171_v53 = vmul.f32 %v5087_v18, %v4170_v52 }
 0x40c   : > { %v4172_v24 = vmul.f32 %v5085_v12, %v4171_v53 }
 0x40e   : > { %4174 = vst.msk [vmem:[%s437_s19] sm:$0x1] %vm4173_vm4, %v4172_v24 }
 0x40f   : > { %5101 = shalt.err (!%p5098_p3)
}
 0x410   : > { %s5102_s21 = scalar_lea.hbm %s10233_s17, 16  ;;  %s5106_s19 = scalar_lea.hbm %s10287_s12, 32 }
 0x411   : > { %p5103_p4 = scmp.ne.s32.totalorder %s10233_s17, %s5102_s21  ;;  %p5107_p9 = scmp.lt.u32.totalorder %s10233_s17, %s10287_s12 }
 0x412   : > { %p5108_p10 = scmp.lt.u32.totalorder %s5106_s19, %s5102_s21  ;;  %p5110_p12 = scmp.lt.u32.totalorder %s5102_s21, %s10233_s17 }
 0x413   : > { %p5104_p7 = pnand %p5103_p4, %p5261_p5 }
 0x414   : > { %p5109_p11 = por %p5108_p10, %p5107_p9 }
 0x415   : > { %p5105_p8 = pneg %p5104_p7 }
 0x416   : > { %p5111_p13 = por %p5110_p12, %p5109_p11 }
 0x418   : > { %p5112_p0 = pnand %p5111_p13, %p5105_p8 }
 0x41a   : > { %5115 = shalt.err (!%p5112_p0)
}
 0x41b   : > { %5041 = dma.vmem_to_hbm [thread:$0]  (%p5261_p5), %s10235_s29, 16, %s10233_s17, %s4176_s18  }
 0x41c PF: > { %p5047_p1 = scmp.ge.s32.totalorder %s5150_s26, 2  ;;  %s4200_s25 = sand.u32 1, %s5138_s23  }
 0x41d   : > { %s4201_s11 = scalar_lea.sflag [#allocation7], %s4200_s25 }
 0x41e   : > { %p5044_p2 = pnand %p5047_p1, %p5265_p6 }
 0x420   : > { %5133 = dma.done.wait (!%p5044_p2), %s4201_s11, 16  }
 0x421   : > { %5135 = vsyncadd (!%p5044_p2), %s4201_s11, 4294967280  ;;  %s11915_s16 = sld [smem:[#allocation9_spill]]  ;;  %s11916_s25 = sld [smem:[#allocation10_spill]] }
 0x422   : > { %p24_p3 = scmp.ge.s32.totalorder %s5248_s28, 4   ;;  %s11917_s23 = smov %s5142_s24 }
 0x423   : > { %s11919_s26 = smov %s5248_s28 }
 0x424   :  { %26 = sbr.rel (!%p24_p3) target bundleno = 6 (0x6), region = 172 }
 0x427   : > { %s11918_s24 = smov %s11915_s16 }
 0x42b   :  { %4205 = vsyncpa [#allocation7], 1 }
 0x42c   :  { %4207 = vsyncpa [#allocation7 + $0x1], 1 }

</bundles_post_ra>
